<compile_context>
chip_gen: v7x
topology: tpu7x:2x2x1
jax: 0.10.0
libtpu: 0.0.40
codegen_flags: <defaults>
</compile_context>

<pallas_src>
import functools

import jax
import jax.numpy as jnp
from jax.experimental import pallas as pl
from jax.experimental.pallas import tpu as pltpu

_VMEM_LIMIT = 32 * 1024 * 1024   # explicit scoped-VMEM budget (safe on v5e/v6e/v7x)
_TM_MAX = 512                    # max rows (M = N*OH*OW) per tile
_TK_MAX = 512                    # max K (reduction) per tile


def _round_up(x, m):
    return (x + m - 1) // m * m


def _pick_tile(dim, max_tile, quantum):
    """Largest multiple-of-`quantum` divisor of `dim` that is <= max_tile."""
    best = quantum
    t = quantum
    while t <= min(dim, max_tile):
        if dim % t == 0:
            best = t
        t += quantum
    return best


# ----------------------------------------------------------------------------
# Pallas kernels
# ----------------------------------------------------------------------------
def _matmul_stats_kernel(p_ref, w_ref, y_ref, stats_ref):
    """Tiled conv-as-matmul.  y[m_tile] is accumulated in f32 across the K grid
    axis; on the last K step the per-tile (sum, sum-of-squares) are emitted so
    BatchNorm statistics stay exact under M tiling."""
    k = pl.program_id(1)

    @pl.when(k == 0)
    def _():
        y_ref[...] = jnp.zeros_like(y_ref)

    y_ref[...] += jnp.dot(p_ref[...], w_ref[...],
                          preferred_element_type=jnp.float32)

    @pl.when(k == pl.num_programs(1) - 1)
    def _():
        y = y_ref[...]
        s = jnp.sum(y, axis=0, keepdims=True)        # [1, Cout]
        ss = jnp.sum(y * y, axis=0, keepdims=True)   # [1, Cout]
        stats_ref[...] = jnp.concatenate([s, ss], axis=0)[None]   # [1, 2, Cout]


def _make_bn_act_kernel(add_residual: bool, relu: bool):
    """BN affine (precomputed per-channel scale/shift) + residual + ReLU."""

    def kernel(y_ref, scale_ref, shift_ref, *rest):
        if add_residual:
            r_ref, o_ref = rest
        else:
            (o_ref,) = rest
        y = y_ref[...] * scale_ref[...] + shift_ref[...]     # f32 epilogue math
        if add_residual:
            y = y + r_ref[...].astype(jnp.float32)
        if relu:
            y = jnp.maximum(y, 0.0)
        o_ref[...] = y.astype(o_ref.dtype)

    return kernel


def _maxpool_kernel(*refs):
    """Pairwise maximum tree over the 9 shifted-window views (VPU only)."""
    o_ref = refs[-1]
    vals = [r[...] for r in refs[:-1]]
    while len(vals) > 1:
        nxt = [jnp.maximum(a, b) for a, b in zip(vals[0::2], vals[1::2])]
        if len(vals) % 2:
            nxt.append(vals[-1])
        vals = nxt
    o_ref[...] = vals[0]


# ----------------------------------------------------------------------------
# Glue: im2col + wrappers around pallas_call
# ----------------------------------------------------------------------------
def _im2col(x, kh, kw, stride, pad):
    """x: [N, H, W, C] -> patches [N*OH*OW, kh*kw*C], plus (OH, OW)."""
    n, h, w, c = x.shape
    oh = (h + 2 * pad - kh) // stride + 1
    ow = (w + 2 * pad - kw) // stride + 1
    xp = jnp.pad(x, ((0, 0), (pad, pad), (pad, pad), (0, 0)))
    cols = []
    for i in range(kh):
        for j in range(kw):
            cols.append(jax.lax.slice(
                xp,
                (0, i, j, 0),
                (n, i + stride * (oh - 1) + 1, j + stride * (ow - 1) + 1, c),
                (1, stride, stride, 1)))                     # [N, OH, OW, C]
    patches = jnp.stack(cols, axis=3)                        # [N, OH, OW, kh*kw, C]
    return patches.reshape(n * oh * ow, kh * kw * c), oh, ow


def conv_bn(x, w_hwio, gamma, beta, *, stride, pad, relu, residual=None,
            eps=1e-5):
    """x: [N,H,W,Cin_act] bf16 (channel-padded), w_hwio: [kh,kw,Cin,Cout].

    Returns [N,OH,OW,Cout_pad] bf16 where Cout_pad = round_up(Cout, 128) and
    the padded channels are exactly zero."""
    n = x.shape[0]
    cin_act = x.shape[-1]
    kh, kw, cin, cout = w_hwio.shape
    cout_pad = _round_up(cout, 128)

    # --- weight matrix [K_pad, Cout_pad], zero-padded, bf16 for the MXU ---
    w = jnp.pad(w_hwio, ((0, 0), (0, 0), (0, cin_act - cin),
                         (0, cout_pad - cout)))
    k_dim = kh * kw * cin_act
    k_pad = _round_up(k_dim, 128)
    w2 = jnp.pad(w.reshape(k_dim, cout_pad),
                 ((0, k_pad - k_dim), (0, 0))).astype(jnp.bfloat16)

    # --- im2col patches (plain-JAX glue), bf16, zero-padded on K and M ---
    # TODO(synk): lower the 3x3 convs directly from the padded NHWC activation
    # with element-offset BlockSpecs instead of materialising im2col patches.
    patches, oh, ow = _im2col(x.astype(jnp.bfloat16), kh, kw, stride, pad)
    m = patches.shape[0]
    m_pad = _round_up(m, 8)
    tm = _pick_tile(m_pad, _TM_MAX, 8)
    tk = _pick_tile(k_pad, _TK_MAX, 128)
    nm, nk = m_pad // tm, k_pad // tk
    patches = jnp.pad(patches, ((0, m_pad - m), (0, k_pad - k_dim)))

    # --- pass 1: tiled matmul + per-tile BN partial statistics ---
    y, stats = pl.pallas_call(
        _matmul_stats_kernel,
        grid=(nm, nk),
        in_specs=[pl.BlockSpec((tm, tk), lambda i, k: (i, k)),
                  pl.BlockSpec((tk, cout_pad), lambda i, k: (k, 0))],
        out_specs=[pl.BlockSpec((tm, cout_pad), lambda i, k: (i, 0)),
                   pl.BlockSpec((1, 2, cout_pad), lambda i, k: (i, 0, 0))],
        out_shape=[jax.ShapeDtypeStruct((m_pad, cout_pad), jnp.float32),
                   jax.ShapeDtypeStruct((nm, 2, cout_pad), jnp.float32)],
        compiler_params=pltpu.CompilerParams(
            dimension_semantics=("parallel", "arbitrary"),
            vmem_limit_bytes=_VMEM_LIMIT),
    )(patches, w2)

    # --- tiny per-channel glue: reduce partials -> affine scale/shift (f32) ---
    count = float(m)                       # zero-padded rows contribute nothing
    mean = jnp.sum(stats[:, 0, :], axis=0) / count
    var = jnp.maximum(jnp.sum(stats[:, 1, :], axis=0) / count - mean * mean, 0.0)
    inv = jax.lax.rsqrt(var + eps)
    g = jnp.pad(gamma.astype(jnp.float32), (0, cout_pad - cout))
    b = jnp.pad(beta.astype(jnp.float32), (0, cout_pad - cout))
    scale = (g * inv).reshape(1, cout_pad)
    shift = (b - mean * g * inv).reshape(1, cout_pad)

    # --- pass 2: tiled BN-apply + residual + ReLU, bf16 output ---
    args = [y, scale, shift]
    in_specs = [pl.BlockSpec((tm, cout_pad), lambda i: (i, 0)),
                pl.BlockSpec((1, cout_pad), lambda i: (0, 0)),
                pl.BlockSpec((1, cout_pad), lambda i: (0, 0))]
    if residual is not None:
        r = residual.reshape(m, cout_pad).astype(jnp.bfloat16)
        args.append(jnp.pad(r, ((0, m_pad - m), (0, 0))))
        in_specs.append(pl.BlockSpec((tm, cout_pad), lambda i: (i, 0)))

    out = pl.pallas_call(
        _make_bn_act_kernel(residual is not None, relu),
        grid=(nm,),
        in_specs=in_specs,
        out_specs=pl.BlockSpec((tm, cout_pad), lambda i: (i, 0)),
        out_shape=jax.ShapeDtypeStruct((m_pad, cout_pad), jnp.bfloat16),
        compiler_params=pltpu.CompilerParams(
            dimension_semantics=("parallel",),
            vmem_limit_bytes=_VMEM_LIMIT),
    )(*args)

    return out[:m].reshape(n, oh, ow, cout_pad)


def maxpool_3x3_s2_p1(x):
    """PyTorch nn.MaxPool2d(kernel_size=3, stride=2, padding=1) in NHWC bf16."""
    n, h, w, c = x.shape
    k, s, pad = 3, 2, 1
    oh = (h + 2 * pad - k) // s + 1
    ow = (w + 2 * pad - k) // s + 1
    xp = jnp.pad(x, ((0, 0), (pad, pad), (pad, pad), (0, 0)),
                 constant_values=float("-inf"))
    m = n * oh * ow
    m_pad = _round_up(m, 8)
    tm = _pick_tile(m_pad, _TM_MAX, 8)
    nm = m_pad // tm

    views = []
    for i in range(k):
        for j in range(k):
            v = jax.lax.slice(
                xp, (0, i, j, 0),
                (n, i + s * (oh - 1) + 1, j + s * (ow - 1) + 1, c),
                (1, s, s, 1)).reshape(m, c)
            views.append(jnp.pad(v, ((0, m_pad - m), (0, 0))))

    out = pl.pallas_call(
        _maxpool_kernel,
        grid=(nm,),
        in_specs=[pl.BlockSpec((tm, c), lambda i: (i, 0))] * 9,
        out_specs=pl.BlockSpec((tm, c), lambda i: (i, 0)),
        out_shape=jax.ShapeDtypeStruct((m_pad, c), x.dtype),
        compiler_params=pltpu.CompilerParams(
            dimension_semantics=("parallel",),
            vmem_limit_bytes=_VMEM_LIMIT),
    )(*views)
    return out[:m].reshape(n, oh, ow, c)


# ----------------------------------------------------------------------------
# Model: parameters + forward
# ----------------------------------------------------------------------------
def _conv_weight(key, cout, cin, kh, kw):
    fan_in = cin * kh * kw
    scale = (2.0 / fan_in) ** 0.5
    return jax.random.normal(key, (kh, kw, cin, cout), jnp.float32) * scale


def make_resnet_params(key, in_channels=3, layers=(1, 1, 1, 1)):
    keys = iter(jax.random.split(key, 128))
    params = {
        "conv1_w": _conv_weight(next(keys), 64, in_channels, 7, 7),
        "bn1_g": jnp.ones((64,), jnp.float32),
        "bn1_b": jnp.zeros((64,), jnp.float32),
        "layers": [],
    }
    inplanes = 64
    for planes, nblocks, layer_stride in zip((64, 128, 256, 512), layers,
                                             (1, 2, 2, 2)):
        blocks = []
        for bi in range(nblocks):
            stride = layer_stride if bi == 0 else 1
            bp = {
                "stride": stride,
                "w1": _conv_weight(next(keys), planes, inplanes, 3, 3),
                "g1": jnp.ones((planes,), jnp.float32),
                "b1": jnp.zeros((planes,), jnp.float32),
                "w2": _conv_weight(next(keys), planes, planes, 3, 3),
                "g2": jnp.ones((planes,), jnp.float32),
                "b2": jnp.zeros((planes,), jnp.float32),
            }
            if stride != 1 or inplanes != planes:   # BasicBlock.expansion == 1
                bp["dw"] = _conv_weight(next(keys), planes, inplanes, 1, 1)
                bp["dg"] = jnp.ones((planes,), jnp.float32)
                bp["db"] = jnp.zeros((planes,), jnp.float32)
            blocks.append(bp)
            inplanes = planes
        params["layers"].append(blocks)
    return params


def basic_block(x, p, eps=1e-5):
    stride = p["stride"]
    if "dw" in p:
        residual = conv_bn(x, p["dw"], p["dg"], p["db"],
                           stride=stride, pad=0, relu=False, eps=eps)
    else:
        residual = x
    out = conv_bn(x, p["w1"], p["g1"], p["b1"],
                  stride=stride, pad=1, relu=True, eps=eps)
    out = conv_bn(out, p["w2"], p["g2"], p["b2"],
                  stride=1, pad=1, relu=True, residual=residual, eps=eps)
    return out


def resnet_forward(params, x_nchw, eps=1e-5):
    """x_nchw: [N, Cin, H, W]; returns [layer1, layer2, layer3, layer4] NCHW f32."""
    x = jnp.transpose(x_nchw, (0, 2, 3, 1)).astype(jnp.bfloat16)   # NCHW -> NHWC
    # Stem: conv7x7/s2 -> BN -> ReLU -> maxpool3x3/s2
    x = conv_bn(x, params["conv1_w"], params["bn1_g"], params["bn1_b"],
                stride=2, pad=3, relu=True, eps=eps)
    x = maxpool_3x3_s2_p1(x)
    outs = []
    for layer in params["layers"]:
        for bp in layer:
            x = basic_block(x, bp, eps=eps)
        c_true = layer[-1]["w2"].shape[-1]          # drop lane-padding channels
        outs.append(jnp.transpose(x[..., :c_true].astype(jnp.float32),
                                  (0, 3, 1, 2)))    # NHWC -> NCHW
    return outs


# ----------------------------------------------------------------------------
if __name__ == "__main__":
    key = jax.random.PRNGKey(0)
    k_params, k_x = jax.random.split(key)

    # Small but consistent with the module: stem is Conv2d(3, 64, 7, stride=2).
    x = jax.random.normal(k_x, (2, 3, 32, 32), jnp.float32)         # NCHW
    params = make_resnet_params(k_params, in_channels=3, layers=(1, 1, 1, 1))

    fwd = jax.jit(functools.partial(resnet_forward, params))
    outs = jax.block_until_ready(fwd(x))

    expected = [(2, 64, 8, 8), (2, 128, 4, 4), (2, 256, 2, 2), (2, 512, 1, 1)]
    assert [tuple(o.shape) for o in outs] == expected, \
        [tuple(o.shape) for o in outs]
    assert all(bool(jnp.all(jnp.isfinite(o))) for o in outs)
    print("KERNEL_OK")
</pallas_src>

<mosaic_0001>
module attributes {stable_mosaic.version = 11 : i64} {
  func.func @_matmul_stats_kernel(%arg0: i32, %arg1: i32, %arg2: memref<512x256xbf16, #tpu.memory_space<vmem>>, %arg3: memref<256x128xbf16, #tpu.memory_space<vmem>>, %arg4: memref<512x128xf32, #tpu.memory_space<vmem>>, %arg5: memref<1x2x128xf32, #tpu.memory_space<vmem>>) attributes {dimension_semantics = [#tpu.dimension_semantics<parallel>, #tpu.dimension_semantics<arbitrary>], iteration_bounds = array<i64: 1, 1>, scalar_prefetch = 0 : i64, scratch_operands = 0 : i64, tpu.core_type = #tpu.core_type<tc>, window_params = [{transform_indices = @transform_0, window_bounds = array<i64: 512, 256>}, {transform_indices = @transform_1, window_bounds = array<i64: 256, 128>}, {transform_indices = @transform_2, window_bounds = array<i64: 512, 128>}, {transform_indices = @transform_3, window_bounds = array<i64: 1, 2, 128>}]} {
    %c0_i32 = arith.constant 0 : i32
    %0 = arith.cmpi eq, %arg1, %c0_i32 : i32
    %1 = arith.extui %0 : i1 to i32
    %c0_i32_0 = arith.constant 0 : i32
    %2 = arith.cmpi ne, %1, %c0_i32_0 : i32
    scf.if %2 {
      %cst_10 = arith.constant 0.000000e+00 : f32
      %12 = vector.broadcast %cst_10 : f32 to vector<512x128xf32>
      %c0_11 = arith.constant 0 : index
      %c0_12 = arith.constant 0 : index
      %13 = vector.load %arg4[%c0_11, %c0_12] : memref<512x128xf32, #tpu.memory_space<vmem>>, vector<512x128xf32>
      tpu.vector_store %arg4[%c0_11, %c0_12], %12 {strides = array<i32>} : memref<512x128xf32, #tpu.memory_space<vmem>>, vector<512x128xf32>,
    } else {
    }
    %c0 = arith.constant 0 : index
    %c0_1 = arith.constant 0 : index
    %3 = vector.load %arg4[%c0, %c0_1] : memref<512x128xf32, #tpu.memory_space<vmem>>, vector<512x128xf32>
    %c0_2 = arith.constant 0 : index
    %c0_3 = arith.constant 0 : index
    %4 = vector.load %arg2[%c0_2, %c0_3] : memref<512x256xbf16, #tpu.memory_space<vmem>>, vector<512x256xbf16>
    %c0_4 = arith.constant 0 : index
    %c0_5 = arith.constant 0 : index
    %5 = vector.load %arg3[%c0_4, %c0_5] : memref<256x128xbf16, #tpu.memory_space<vmem>>, vector<256x128xbf16>
    %cst = arith.constant dense<0.000000e+00> : vector<512x128xf32>
    %6 = tpu.matmul %4, %5, %cst {dimension_numbers = #tpu.dot_dimension_numbers<[1], [0], [0], [1], [0, 0, 1, 1], [], []>} : vector<512x256xbf16>, vector<256x128xbf16>, vector<512x128xf32> -> vector<512x128xf32>
    %7 = arith.addf %3, %6 : vector<512x128xf32>
    %c0_6 = arith.constant 0 : index
    %c0_7 = arith.constant 0 : index
    %8 = vector.load %arg4[%c0_6, %c0_7] : memref<512x128xf32, #tpu.memory_space<vmem>>, vector<512x128xf32>
    tpu.vector_store %arg4[%c0_6, %c0_7], %7 {strides = array<i32>} : memref<512x128xf32, #tpu.memory_space<vmem>>, vector<512x128xf32>,
    %c0_i32_8 = arith.constant 0 : i32
    %9 = arith.cmpi eq, %arg1, %c0_i32_8 : i32
    %10 = arith.extui %9 : i1 to i32
    %c0_i32_9 = arith.constant 0 : i32
    %11 = arith.cmpi ne, %10, %c0_i32_9 : i32
    scf.if %11 {
      %c0_10 = arith.constant 0 : index
      %c0_11 = arith.constant 0 : index
      %12 = vector.load %arg4[%c0_10, %c0_11] : memref<512x128xf32, #tpu.memory_space<vmem>>, vector<512x128xf32>
      %cst_12 = arith.constant dense<0.000000e+00> : vector<128xf32>
      %13 = vector.multi_reduction <add>, %12, %cst_12 [0] : vector<512x128xf32> to vector<128xf32>
      %14 = vector.shape_cast %13 : vector<128xf32> to vector<1x128xf32>
      %15 = arith.mulf %12, %12 : vector<512x128xf32>
      %cst_13 = arith.constant dense<0.000000e+00> : vector<128xf32>
      %16 = vector.multi_reduction <add>, %15, %cst_13 [0] : vector<512x128xf32> to vector<128xf32>
      %17 = vector.shape_cast %16 : vector<128xf32> to vector<1x128xf32>
      %18 = tpu.concatenate %14, %17 in 0 : vector<1x128xf32>, vector<1x128xf32> -> vector<2x128xf32>
      %19 = vector.shape_cast %18 : vector<2x128xf32> to vector<1x2x128xf32>
      %c0_14 = arith.constant 0 : index
      %c0_15 = arith.constant 0 : index
      %c0_16 = arith.constant 0 : index
      %20 = vector.load %arg5[%c0_14, %c0_15, %c0_16] : memref<1x2x128xf32, #tpu.memory_space<vmem>>, vector<1x2x128xf32>
      tpu.vector_store %arg5[%c0_14, %c0_15, %c0_16], %19 {strides = array<i32>} : memref<1x2x128xf32, #tpu.memory_space<vmem>>, vector<1x2x128xf32>,
    } else {
    }
    return
  }
  func.func @transform_0(%arg0: i32, %arg1: i32) -> (i32, i32) {
    %c0_i32 = arith.constant 0 : i32
    return %arg0, %arg1 : i32, i32
  }
  func.func @transform_1(%arg0: i32, %arg1: i32) -> (i32, i32) {
    %c0_i32 = arith.constant 0 : i32
    %c0_i32_0 = arith.constant 0 : i32
    return %arg1, %c0_i32 : i32, i32
  }
  func.func @transform_2(%arg0: i32, %arg1: i32) -> (i32, i32) {
    %c0_i32 = arith.constant 0 : i32
    %c0_i32_0 = arith.constant 0 : i32
    return %arg0, %c0_i32 : i32, i32
  }
  func.func @transform_3(%arg0: i32, %arg1: i32) -> (i32, i32, i32) {
    %c0_i32 = arith.constant 0 : i32
    %c0_i32_0 = arith.constant 0 : i32
    %c0_i32_1 = arith.constant 0 : i32
    return %arg0, %c0_i32, %c0_i32_0 : i32, i32, i32
  }
}

module attributes {stable_mosaic.version = 11 : i64} {
  func.func @kernel(%arg0: i32, %arg1: memref<512x128xf32, #tpu.memory_space<vmem>>, %arg2: memref<1x128xf32, #tpu.memory_space<vmem>>, %arg3: memref<1x128xf32, #tpu.memory_space<vmem>>, %arg4: memref<512x128xbf16, #tpu.memory_space<vmem>>) attributes {dimension_semantics = [#tpu.dimension_semantics<parallel>], iteration_bounds = array<i64: 1>, scalar_prefetch = 0 : i64, scratch_operands = 0 : i64, tpu.core_type = #tpu.core_type<tc>, window_params = [{transform_indices = @transform_0, window_bounds = array<i64: 512, 128>}, {pipeline_mode = #tpu.pipeline_mode<synchronous>, transform_indices = @transform_1, window_bounds = array<i64: 1, 128>}, {pipeline_mode = #tpu.pipeline_mode<synchronous>, transform_indices = @transform_2, window_bounds = array<i64: 1, 128>}, {transform_indices = @transform_3, window_bounds = array<i64: 512, 128>}]} {
    %c0 = arith.constant 0 : index
    %c0_0 = arith.constant 0 : index
    %0 = vector.load %arg1[%c0, %c0_0] : memref<512x128xf32, #tpu.memory_space<vmem>>, vector<512x128xf32>
    %c0_1 = arith.constant 0 : index
    %c0_2 = arith.constant 0 : index
    %1 = vector.load %arg2[%c0_1, %c0_2] : memref<1x128xf32, #tpu.memory_space<vmem>>, vector<1x128xf32>
    %2 = vector.broadcast %1 : vector<1x128xf32> to vector<512x128xf32>
    %3 = arith.mulf %0, %2 : vector<512x128xf32>
    %c0_3 = arith.constant 0 : index
    %c0_4 = arith.constant 0 : index
    %4 = vector.load %arg3[%c0_3, %c0_4] : memref<1x128xf32, #tpu.memory_space<vmem>>, vector<1x128xf32>
    %5 = vector.broadcast %4 : vector<1x128xf32> to vector<512x128xf32>
    %6 = arith.addf %3, %5 : vector<512x128xf32>
    %cst = arith.constant 0.000000e+00 : f32
    %7 = vector.broadcast %cst : f32 to vector<512x128xf32>
    %8 = arith.maximumf %6, %7 : vector<512x128xf32>
    %9 = arith.truncf %8 : vector<512x128xf32> to vector<512x128xbf16>
    %c0_5 = arith.constant 0 : index
    %c0_6 = arith.constant 0 : index
    %10 = vector.load %arg4[%c0_5, %c0_6] : memref<512x128xbf16, #tpu.memory_space<vmem>>, vector<512x128xbf16>
    tpu.vector_store %arg4[%c0_5, %c0_6], %9 {strides = array<i32>} : memref<512x128xbf16, #tpu.memory_space<vmem>>, vector<512x128xbf16>,
    return
  }
  func.func @transform_0(%arg0: i32) -> (i32, i32) {
    %c0_i32 = arith.constant 0 : i32
    %c0_i32_0 = arith.constant 0 : i32
    return %arg0, %c0_i32 : i32, i32
  }
  func.func @transform_1(%arg0: i32) -> (i32, i32) {
    %c0_i32 = arith.constant 0 : i32
    %c0_i32_0 = arith.constant 0 : i32
    %c0_i32_1 = arith.constant 0 : i32
    return %c0_i32, %c0_i32_0 : i32, i32
  }
  func.func @transform_2(%arg0: i32) -> (i32, i32) {
    %c0_i32 = arith.constant 0 : i32
    %c0_i32_0 = arith.constant 0 : i32
    %c0_i32_1 = arith.constant 0 : i32
    return %c0_i32, %c0_i32_0 : i32, i32
  }
  func.func @transform_3(%arg0: i32) -> (i32, i32) {
    %c0_i32 = arith.constant 0 : i32
    %c0_i32_0 = arith.constant 0 : i32
    return %arg0, %c0_i32 : i32, i32
  }
}

module attributes {stable_mosaic.version = 11 : i64} {
  func.func @_maxpool_kernel(%arg0: i32, %arg1: memref<128x128xbf16, #tpu.memory_space<vmem>>, %arg2: memref<128x128xbf16, #tpu.memory_space<vmem>>, %arg3: memref<128x128xbf16, #tpu.memory_space<vmem>>, %arg4: memref<128x128xbf16, #tpu.memory_space<vmem>>, %arg5: memref<128x128xbf16, #tpu.memory_space<vmem>>, %arg6: memref<128x128xbf16, #tpu.memory_space<vmem>>, %arg7: memref<128x128xbf16, #tpu.memory_space<vmem>>, %arg8: memref<128x128xbf16, #tpu.memory_space<vmem>>, %arg9: memref<128x128xbf16, #tpu.memory_space<vmem>>, %arg10: memref<128x128xbf16, #tpu.memory_space<vmem>>) attributes {dimension_semantics = [#tpu.dimension_semantics<parallel>], iteration_bounds = array<i64: 1>, scalar_prefetch = 0 : i64, scratch_operands = 0 : i64, tpu.core_type = #tpu.core_type<tc>, window_params = [{transform_indices = @transform_0, window_bounds = array<i64: 128, 128>}, {transform_indices = @transform_1, window_bounds = array<i64: 128, 128>}, {transform_indices = @transform_2, window_bounds = array<i64: 128, 128>}, {transform_indices = @transform_3, window_bounds = array<i64: 128, 128>}, {transform_indices = @transform_4, window_bounds = array<i64: 128, 128>}, {transform_indices = @transform_5, window_bounds = array<i64: 128, 128>}, {transform_indices = @transform_6, window_bounds = array<i64: 128, 128>}, {transform_indices = @transform_7, window_bounds = array<i64: 128, 128>}, {transform_indices = @transform_8, window_bounds = array<i64: 128, 128>}, {transform_indices = @transform_9, window_bounds = array<i64: 128, 128>}]} {
    %c0 = arith.constant 0 : index
    %c0_0 = arith.constant 0 : index
    %0 = vector.load %arg1[%c0, %c0_0] : memref<128x128xbf16, #tpu.memory_space<vmem>>, vector<128x128xbf16>
    %c0_1 = arith.constant 0 : index
    %c0_2 = arith.constant 0 : index
    %1 = vector.load %arg2[%c0_1, %c0_2] : memref<128x128xbf16, #tpu.memory_space<vmem>>, vector<128x128xbf16>
    %c0_3 = arith.constant 0 : index
    %c0_4 = arith.constant 0 : index
    %2 = vector.load %arg3[%c0_3, %c0_4] : memref<128x128xbf16, #tpu.memory_space<vmem>>, vector<128x128xbf16>
    %c0_5 = arith.constant 0 : index
    %c0_6 = arith.constant 0 : index
    %3 = vector.load %arg4[%c0_5, %c0_6] : memref<128x128xbf16, #tpu.memory_space<vmem>>, vector<128x128xbf16>
    %c0_7 = arith.constant 0 : index
    %c0_8 = arith.constant 0 : index
    %4 = vector.load %arg5[%c0_7, %c0_8] : memref<128x128xbf16, #tpu.memory_space<vmem>>, vector<128x128xbf16>
    %c0_9 = arith.constant 0 : index
    %c0_10 = arith.constant 0 : index
    %5 = vector.load %arg6[%c0_9, %c0_10] : memref<128x128xbf16, #tpu.memory_space<vmem>>, vector<128x128xbf16>
    %c0_11 = arith.constant 0 : index
    %c0_12 = arith.constant 0 : index
    %6 = vector.load %arg7[%c0_11, %c0_12] : memref<128x128xbf16, #tpu.memory_space<vmem>>, vector<128x128xbf16>
    %c0_13 = arith.constant 0 : index
    %c0_14 = arith.constant 0 : index
    %7 = vector.load %arg8[%c0_13, %c0_14] : memref<128x128xbf16, #tpu.memory_space<vmem>>, vector<128x128xbf16>
    %c0_15 = arith.constant 0 : index
    %c0_16 = arith.constant 0 : index
    %8 = vector.load %arg9[%c0_15, %c0_16] : memref<128x128xbf16, #tpu.memory_space<vmem>>, vector<128x128xbf16>
    %9 = arith.maximumf %0, %1 : vector<128x128xbf16>
    %10 = arith.maximumf %2, %3 : vector<128x128xbf16>
    %11 = arith.maximumf %4, %5 : vector<128x128xbf16>
    %12 = arith.maximumf %6, %7 : vector<128x128xbf16>
    %13 = arith.maximumf %9, %10 : vector<128x128xbf16>
    %14 = arith.maximumf %11, %12 : vector<128x128xbf16>
    %15 = arith.maximumf %13, %14 : vector<128x128xbf16>
    %16 = arith.maximumf %15, %8 : vector<128x128xbf16>
    %c0_17 = arith.constant 0 : index
    %c0_18 = arith.constant 0 : index
    %17 = vector.load %arg10[%c0_17, %c0_18] : memref<128x128xbf16, #tpu.memory_space<vmem>>, vector<128x128xbf16>
    tpu.vector_store %arg10[%c0_17, %c0_18], %16 {strides = array<i32>} : memref<128x128xbf16, #tpu.memory_space<vmem>>, vector<128x128xbf16>,
    return
  }
  func.func @transform_0(%arg0: i32) -> (i32, i32) {
    %c0_i32 = arith.constant 0 : i32
    %c0_i32_0 = arith.constant 0 : i32
    return %arg0, %c0_i32 : i32, i32
  }
  func.func @transform_1(%arg0: i32) -> (i32, i32) {
    %c0_i32 = arith.constant 0 : i32
    %c0_i32_0 = arith.constant 0 : i32
    return %arg0, %c0_i32 : i32, i32
  }
  func.func @transform_2(%arg0: i32) -> (i32, i32) {
    %c0_i32 = arith.constant 0 : i32
    %c0_i32_0 = arith.constant 0 : i32
    return %arg0, %c0_i32 : i32, i32
  }
  func.func @transform_3(%arg0: i32) -> (i32, i32) {
    %c0_i32 = arith.constant 0 : i32
    %c0_i32_0 = arith.constant 0 : i32
    return %arg0, %c0_i32 : i32, i32
  }
  func.func @transform_4(%arg0: i32) -> (i32, i32) {
    %c0_i32 = arith.constant 0 : i32
    %c0_i32_0 = arith.constant 0 : i32
    return %arg0, %c0_i32 : i32, i32
  }
  func.func @transform_5(%arg0: i32) -> (i32, i32) {
    %c0_i32 = arith.constant 0 : i32
    %c0_i32_0 = arith.constant 0 : i32
    return %arg0, %c0_i32 : i32, i32
  }
  func.func @transform_6(%arg0: i32) -> (i32, i32) {
    %c0_i32 = arith.constant 0 : i32
    %c0_i32_0 = arith.constant 0 : i32
    return %arg0, %c0_i32 : i32, i32
  }
  func.func @transform_7(%arg0: i32) -> (i32, i32) {
    %c0_i32 = arith.constant 0 : i32
    %c0_i32_0 = arith.constant 0 : i32
    return %arg0, %c0_i32 : i32, i32
  }
  func.func @transform_8(%arg0: i32) -> (i32, i32) {
    %c0_i32 = arith.constant 0 : i32
    %c0_i32_0 = arith.constant 0 : i32
    return %arg0, %c0_i32 : i32, i32
  }
  func.func @transform_9(%arg0: i32) -> (i32, i32) {
    %c0_i32 = arith.constant 0 : i32
    %c0_i32_0 = arith.constant 0 : i32
    return %arg0, %c0_i32 : i32, i32
  }
}

module attributes {stable_mosaic.version = 11 : i64} {
  func.func @_matmul_stats_kernel(%arg0: i32, %arg1: i32, %arg2: memref<128x384xbf16, #tpu.memory_space<vmem>>, %arg3: memref<384x128xbf16, #tpu.memory_space<vmem>>, %arg4: memref<128x128xf32, #tpu.memory_space<vmem>>, %arg5: memref<1x2x128xf32, #tpu.memory_space<vmem>>) attributes {dimension_semantics = [#tpu.dimension_semantics<parallel>, #tpu.dimension_semantics<arbitrary>], iteration_bounds = array<i64: 1, 3>, scalar_prefetch = 0 : i64, scratch_operands = 0 : i64, tpu.core_type = #tpu.core_type<tc>, window_params = [{transform_indices = @transform_0, window_bounds = array<i64: 128, 384>}, {transform_indices = @transform_1, window_bounds = array<i64: 384, 128>}, {transform_indices = @transform_2, window_bounds = array<i64: 128, 128>}, {transform_indices = @transform_3, window_bounds = array<i64: 1, 2, 128>}]} {
    %c0_i32 = arith.constant 0 : i32
    %0 = arith.cmpi eq, %arg1, %c0_i32 : i32
    %1 = arith.extui %0 : i1 to i32
    %c0_i32_0 = arith.constant 0 : i32
    %2 = arith.cmpi ne, %1, %c0_i32_0 : i32
    scf.if %2 {
      %cst_9 = arith.constant 0.000000e+00 : f32
      %12 = vector.broadcast %cst_9 : f32 to vector<128x128xf32>
      %c0_10 = arith.constant 0 : index
      %c0_11 = arith.constant 0 : index
      %13 = vector.load %arg4[%c0_10, %c0_11] : memref<128x128xf32, #tpu.memory_space<vmem>>, vector<128x128xf32>
      tpu.vector_store %arg4[%c0_10, %c0_11], %12 {strides = array<i32>} : memref<128x128xf32, #tpu.memory_space<vmem>>, vector<128x128xf32>,
    } else {
    }
    %c0 = arith.constant 0 : index
    %c0_1 = arith.constant 0 : index
    %3 = vector.load %arg4[%c0, %c0_1] : memref<128x128xf32, #tpu.memory_space<vmem>>, vector<128x128xf32>
    %c0_2 = arith.constant 0 : index
    %c0_3 = arith.constant 0 : index
    %4 = vector.load %arg2[%c0_2, %c0_3] : memref<128x384xbf16, #tpu.memory_space<vmem>>, vector<128x384xbf16>
    %c0_4 = arith.constant 0 : index
    %c0_5 = arith.constant 0 : index
    %5 = vector.load %arg3[%c0_4, %c0_5] : memref<384x128xbf16, #tpu.memory_space<vmem>>, vector<384x128xbf16>
    %cst = arith.constant dense<0.000000e+00> : vector<128x128xf32>
    %6 = tpu.matmul %4, %5, %cst {dimension_numbers = #tpu.dot_dimension_numbers<[1], [0], [0], [1], [0, 0, 1, 1], [], []>} : vector<128x384xbf16>, vector<384x128xbf16>, vector<128x128xf32> -> vector<128x128xf32>
    %7 = arith.addf %3, %6 : vector<128x128xf32>
    %c0_6 = arith.constant 0 : index
    %c0_7 = arith.constant 0 : index
    %8 = vector.load %arg4[%c0_6, %c0_7] : memref<128x128xf32, #tpu.memory_space<vmem>>, vector<128x128xf32>
    tpu.vector_store %arg4[%c0_6, %c0_7], %7 {strides = array<i32>} : memref<128x128xf32, #tpu.memory_space<vmem>>, vector<128x128xf32>,
    %c2_i32 = arith.constant 2 : i32
    %9 = arith.cmpi eq, %arg1, %c2_i32 : i32
    %10 = arith.extui %9 : i1 to i32
    %c0_i32_8 = arith.constant 0 : i32
    %11 = arith.cmpi ne, %10, %c0_i32_8 : i32
    scf.if %11 {
      %c0_9 = arith.constant 0 : index
      %c0_10 = arith.constant 0 : index
      %12 = vector.load %arg4[%c0_9, %c0_10] : memref<128x128xf32, #tpu.memory_space<vmem>>, vector<128x128xf32>
      %cst_11 = arith.constant dense<0.000000e+00> : vector<128xf32>
      %13 = vector.multi_reduction <add>, %12, %cst_11 [0] : vector<128x128xf32> to vector<128xf32>
      %14 = vector.shape_cast %13 : vector<128xf32> to vector<1x128xf32>
      %15 = arith.mulf %12, %12 : vector<128x128xf32>
      %cst_12 = arith.constant dense<0.000000e+00> : vector<128xf32>
      %16 = vector.multi_reduction <add>, %15, %cst_12 [0] : vector<128x128xf32> to vector<128xf32>
      %17 = vector.shape_cast %16 : vector<128xf32> to vector<1x128xf32>
      %18 = tpu.concatenate %14, %17 in 0 : vector<1x128xf32>, vector<1x128xf32> -> vector<2x128xf32>
      %19 = vector.shape_cast %18 : vector<2x128xf32> to vector<1x2x128xf32>
      %c0_13 = arith.constant 0 : index
      %c0_14 = arith.constant 0 : index
      %c0_15 = arith.constant 0 : index
      %20 = vector.load %arg5[%c0_13, %c0_14, %c0_15] : memref<1x2x128xf32, #tpu.memory_space<vmem>>, vector<1x2x128xf32>
      tpu.vector_store %arg5[%c0_13, %c0_14, %c0_15], %19 {strides = array<i32>} : memref<1x2x128xf32, #tpu.memory_space<vmem>>, vector<1x2x128xf32>,
    } else {
    }
    return
  }
  func.func @transform_0(%arg0: i32, %arg1: i32) -> (i32, i32) {
    %c0_i32 = arith.constant 0 : i32
    return %arg0, %arg1 : i32, i32
  }
  func.func @transform_1(%arg0: i32, %arg1: i32) -> (i32, i32) {
    %c0_i32 = arith.constant 0 : i32
    %c0_i32_0 = arith.constant 0 : i32
    return %arg1, %c0_i32 : i32, i32
  }
  func.func @transform_2(%arg0: i32, %arg1: i32) -> (i32, i32) {
    %c0_i32 = arith.constant 0 : i32
    %c0_i32_0 = arith.constant 0 : i32
    return %arg0, %c0_i32 : i32, i32
  }
  func.func @transform_3(%arg0: i32, %arg1: i32) -> (i32, i32, i32) {
    %c0_i32 = arith.constant 0 : i32
    %c0_i32_0 = arith.constant 0 : i32
    %c0_i32_1 = arith.constant 0 : i32
    return %arg0, %c0_i32, %c0_i32_0 : i32, i32, i32
  }
}

module attributes {stable_mosaic.version = 11 : i64} {
  func.func @kernel(%arg0: i32, %arg1: memref<128x128xf32, #tpu.memory_space<vmem>>, %arg2: memref<1x128xf32, #tpu.memory_space<vmem>>, %arg3: memref<1x128xf32, #tpu.memory_space<vmem>>, %arg4: memref<128x128xbf16, #tpu.memory_space<vmem>>) attributes {dimension_semantics = [#tpu.dimension_semantics<parallel>], iteration_bounds = array<i64: 1>, scalar_prefetch = 0 : i64, scratch_operands = 0 : i64, tpu.core_type = #tpu.core_type<tc>, window_params = [{transform_indices = @transform_0, window_bounds = array<i64: 128, 128>}, {pipeline_mode = #tpu.pipeline_mode<synchronous>, transform_indices = @transform_1, window_bounds = array<i64: 1, 128>}, {pipeline_mode = #tpu.pipeline_mode<synchronous>, transform_indices = @transform_2, window_bounds = array<i64: 1, 128>}, {transform_indices = @transform_3, window_bounds = array<i64: 128, 128>}]} {
    %c0 = arith.constant 0 : index
    %c0_0 = arith.constant 0 : index
    %0 = vector.load %arg1[%c0, %c0_0] : memref<128x128xf32, #tpu.memory_space<vmem>>, vector<128x128xf32>
    %c0_1 = arith.constant 0 : index
    %c0_2 = arith.constant 0 : index
    %1 = vector.load %arg2[%c0_1, %c0_2] : memref<1x128xf32, #tpu.memory_space<vmem>>, vector<1x128xf32>
    %2 = vector.broadcast %1 : vector<1x128xf32> to vector<128x128xf32>
    %3 = arith.mulf %0, %2 : vector<128x128xf32>
    %c0_3 = arith.constant 0 : index
    %c0_4 = arith.constant 0 : index
    %4 = vector.load %arg3[%c0_3, %c0_4] : memref<1x128xf32, #tpu.memory_space<vmem>>, vector<1x128xf32>
    %5 = vector.broadcast %4 : vector<1x128xf32> to vector<128x128xf32>
    %6 = arith.addf %3, %5 : vector<128x128xf32>
    %cst = arith.constant 0.000000e+00 : f32
    %7 = vector.broadcast %cst : f32 to vector<128x128xf32>
    %8 = arith.maximumf %6, %7 : vector<128x128xf32>
    %9 = arith.truncf %8 : vector<128x128xf32> to vector<128x128xbf16>
    %c0_5 = arith.constant 0 : index
    %c0_6 = arith.constant 0 : index
    %10 = vector.load %arg4[%c0_5, %c0_6] : memref<128x128xbf16, #tpu.memory_space<vmem>>, vector<128x128xbf16>
    tpu.vector_store %arg4[%c0_5, %c0_6], %9 {strides = array<i32>} : memref<128x128xbf16, #tpu.memory_space<vmem>>, vector<128x128xbf16>,
    return
  }
  func.func @transform_0(%arg0: i32) -> (i32, i32) {
    %c0_i32 = arith.constant 0 : i32
    %c0_i32_0 = arith.constant 0 : i32
    return %arg0, %c0_i32 : i32, i32
  }
  func.func @transform_1(%arg0: i32) -> (i32, i32) {
    %c0_i32 = arith.constant 0 : i32
    %c0_i32_0 = arith.constant 0 : i32
    %c0_i32_1 = arith.constant 0 : i32
    return %c0_i32, %c0_i32_0 : i32, i32
  }
  func.func @transform_2(%arg0: i32) -> (i32, i32) {
    %c0_i32 = arith.constant 0 : i32
    %c0_i32_0 = arith.constant 0 : i32
    %c0_i32_1 = arith.constant 0 : i32
    return %c0_i32, %c0_i32_0 : i32, i32
  }
  func.func @transform_3(%arg0: i32) -> (i32, i32) {
    %c0_i32 = arith.constant 0 : i32
    %c0_i32_0 = arith.constant 0 : i32
    return %arg0, %c0_i32 : i32, i32
  }
}

module attributes {stable_mosaic.version = 11 : i64} {
  func.func @kernel(%arg0: i32, %arg1: memref<128x128xf32, #tpu.memory_space<vmem>>, %arg2: memref<1x128xf32, #tpu.memory_space<vmem>>, %arg3: memref<1x128xf32, #tpu.memory_space<vmem>>, %arg4: memref<128x128xbf16, #tpu.memory_space<vmem>>, %arg5: memref<128x128xbf16, #tpu.memory_space<vmem>>) attributes {dimension_semantics = [#tpu.dimension_semantics<parallel>], iteration_bounds = array<i64: 1>, scalar_prefetch = 0 : i64, scratch_operands = 0 : i64, tpu.core_type = #tpu.core_type<tc>, window_params = [{transform_indices = @transform_0, window_bounds = array<i64: 128, 128>}, {pipeline_mode = #tpu.pipeline_mode<synchronous>, transform_indices = @transform_1, window_bounds = array<i64: 1, 128>}, {pipeline_mode = #tpu.pipeline_mode<synchronous>, transform_indices = @transform_2, window_bounds = array<i64: 1, 128>}, {transform_indices = @transform_3, window_bounds = array<i64: 128, 128>}, {transform_indices = @transform_4, window_bounds = array<i64: 128, 128>}]} {
    %c0 = arith.constant 0 : index
    %c0_0 = arith.constant 0 : index
    %0 = vector.load %arg1[%c0, %c0_0] : memref<128x128xf32, #tpu.memory_space<vmem>>, vector<128x128xf32>
    %c0_1 = arith.constant 0 : index
    %c0_2 = arith.constant 0 : index
    %1 = vector.load %arg2[%c0_1, %c0_2] : memref<1x128xf32, #tpu.memory_space<vmem>>, vector<1x128xf32>
    %2 = vector.broadcast %1 : vector<1x128xf32> to vector<128x128xf32>
    %3 = arith.mulf %0, %2 : vector<128x128xf32>
    %c0_3 = arith.constant 0 : index
    %c0_4 = arith.constant 0 : index
    %4 = vector.load %arg3[%c0_3, %c0_4] : memref<1x128xf32, #tpu.memory_space<vmem>>, vector<1x128xf32>
    %5 = vector.broadcast %4 : vector<1x128xf32> to vector<128x128xf32>
    %6 = arith.addf %3, %5 : vector<128x128xf32>
    %c0_5 = arith.constant 0 : index
    %c0_6 = arith.constant 0 : index
    %7 = vector.load %arg4[%c0_5, %c0_6] : memref<128x128xbf16, #tpu.memory_space<vmem>>, vector<128x128xbf16>
    %8 = arith.extf %7 : vector<128x128xbf16> to vector<128x128xf32>
    %9 = arith.addf %6, %8 : vector<128x128xf32>
    %cst = arith.constant 0.000000e+00 : f32
    %10 = vector.broadcast %cst : f32 to vector<128x128xf32>
    %11 = arith.maximumf %9, %10 : vector<128x128xf32>
    %12 = arith.truncf %11 : vector<128x128xf32> to vector<128x128xbf16>
    %c0_7 = arith.constant 0 : index
    %c0_8 = arith.constant 0 : index
    %13 = vector.load %arg5[%c0_7, %c0_8] : memref<128x128xbf16, #tpu.memory_space<vmem>>, vector<128x128xbf16>
    tpu.vector_store %arg5[%c0_7, %c0_8], %12 {strides = array<i32>} : memref<128x128xbf16, #tpu.memory_space<vmem>>, vector<128x128xbf16>,
    return
  }
  func.func @transform_0(%arg0: i32) -> (i32, i32) {
    %c0_i32 = arith.constant 0 : i32
    %c0_i32_0 = arith.constant 0 : i32
    return %arg0, %c0_i32 : i32, i32
  }
  func.func @transform_1(%arg0: i32) -> (i32, i32) {
    %c0_i32 = arith.constant 0 : i32
    %c0_i32_0 = arith.constant 0 : i32
    %c0_i32_1 = arith.constant 0 : i32
    return %c0_i32, %c0_i32_0 : i32, i32
  }
  func.func @transform_2(%arg0: i32) -> (i32, i32) {
    %c0_i32 = arith.constant 0 : i32
    %c0_i32_0 = arith.constant 0 : i32
    %c0_i32_1 = arith.constant 0 : i32
    return %c0_i32, %c0_i32_0 : i32, i32
  }
  func.func @transform_3(%arg0: i32) -> (i32, i32) {
    %c0_i32 = arith.constant 0 : i32
    %c0_i32_0 = arith.constant 0 : i32
    return %arg0, %c0_i32 : i32, i32
  }
  func.func @transform_4(%arg0: i32) -> (i32, i32) {
    %c0_i32 = arith.constant 0 : i32
    %c0_i32_0 = arith.constant 0 : i32
    return %arg0, %c0_i32 : i32, i32
  }
}

module attributes {stable_mosaic.version = 11 : i64} {
  func.func @_matmul_stats_kernel(%arg0: i32, %arg1: i32, %arg2: memref<32x128xbf16, #tpu.memory_space<vmem>>, %arg3: memref<128x128xbf16, #tpu.memory_space<vmem>>, %arg4: memref<32x128xf32, #tpu.memory_space<vmem>>, %arg5: memref<1x2x128xf32, #tpu.memory_space<vmem>>) attributes {dimension_semantics = [#tpu.dimension_semantics<parallel>, #tpu.dimension_semantics<arbitrary>], iteration_bounds = array<i64: 1, 1>, scalar_prefetch = 0 : i64, scratch_operands = 0 : i64, tpu.core_type = #tpu.core_type<tc>, window_params = [{transform_indices = @transform_0, window_bounds = array<i64: 32, 128>}, {transform_indices = @transform_1, window_bounds = array<i64: 128, 128>}, {transform_indices = @transform_2, window_bounds = array<i64: 32, 128>}, {transform_indices = @transform_3, window_bounds = array<i64: 1, 2, 128>}]} {
    %c0_i32 = arith.constant 0 : i32
    %0 = arith.cmpi eq, %arg1, %c0_i32 : i32
    %1 = arith.extui %0 : i1 to i32
    %c0_i32_0 = arith.constant 0 : i32
    %2 = arith.cmpi ne, %1, %c0_i32_0 : i32
    scf.if %2 {
      %cst_10 = arith.constant 0.000000e+00 : f32
      %12 = vector.broadcast %cst_10 : f32 to vector<32x128xf32>
      %c0_11 = arith.constant 0 : index
      %c0_12 = arith.constant 0 : index
      %13 = vector.load %arg4[%c0_11, %c0_12] : memref<32x128xf32, #tpu.memory_space<vmem>>, vector<32x128xf32>
      tpu.vector_store %arg4[%c0_11, %c0_12], %12 {strides = array<i32>} : memref<32x128xf32, #tpu.memory_space<vmem>>, vector<32x128xf32>,
    } else {
    }
    %c0 = arith.constant 0 : index
    %c0_1 = arith.constant 0 : index
    %3 = vector.load %arg4[%c0, %c0_1] : memref<32x128xf32, #tpu.memory_space<vmem>>, vector<32x128xf32>
    %c0_2 = arith.constant 0 : index
    %c0_3 = arith.constant 0 : index
    %4 = vector.load %arg2[%c0_2, %c0_3] : memref<32x128xbf16, #tpu.memory_space<vmem>>, vector<32x128xbf16>
    %c0_4 = arith.constant 0 : index
    %c0_5 = arith.constant 0 : index
    %5 = vector.load %arg3[%c0_4, %c0_5] : memref<128x128xbf16, #tpu.memory_space<vmem>>, vector<128x128xbf16>
    %cst = arith.constant dense<0.000000e+00> : vector<32x128xf32>
    %6 = tpu.matmul %4, %5, %cst {dimension_numbers = #tpu.dot_dimension_numbers<[1], [0], [0], [1], [0, 0, 1, 1], [], []>} : vector<32x128xbf16>, vector<128x128xbf16>, vector<32x128xf32> -> vector<32x128xf32>
    %7 = arith.addf %3, %6 : vector<32x128xf32>
    %c0_6 = arith.constant 0 : index
    %c0_7 = arith.constant 0 : index
    %8 = vector.load %arg4[%c0_6, %c0_7] : memref<32x128xf32, #tpu.memory_space<vmem>>, vector<32x128xf32>
    tpu.vector_store %arg4[%c0_6, %c0_7], %7 {strides = array<i32>} : memref<32x128xf32, #tpu.memory_space<vmem>>, vector<32x128xf32>,
    %c0_i32_8 = arith.constant 0 : i32
    %9 = arith.cmpi eq, %arg1, %c0_i32_8 : i32
    %10 = arith.extui %9 : i1 to i32
    %c0_i32_9 = arith.constant 0 : i32
    %11 = arith.cmpi ne, %10, %c0_i32_9 : i32
    scf.if %11 {
      %c0_10 = arith.constant 0 : index
      %c0_11 = arith.constant 0 : index
      %12 = vector.load %arg4[%c0_10, %c0_11] : memref<32x128xf32, #tpu.memory_space<vmem>>, vector<32x128xf32>
      %cst_12 = arith.constant dense<0.000000e+00> : vector<128xf32>
      %13 = vector.multi_reduction <add>, %12, %cst_12 [0] : vector<32x128xf32> to vector<128xf32>
      %14 = vector.shape_cast %13 : vector<128xf32> to vector<1x128xf32>
      %15 = arith.mulf %12, %12 : vector<32x128xf32>
      %cst_13 = arith.constant dense<0.000000e+00> : vector<128xf32>
      %16 = vector.multi_reduction <add>, %15, %cst_13 [0] : vector<32x128xf32> to vector<128xf32>
      %17 = vector.shape_cast %16 : vector<128xf32> to vector<1x128xf32>
      %18 = tpu.concatenate %14, %17 in 0 : vector<1x128xf32>, vector<1x128xf32> -> vector<2x128xf32>
      %19 = vector.shape_cast %18 : vector<2x128xf32> to vector<1x2x128xf32>
      %c0_14 = arith.constant 0 : index
      %c0_15 = arith.constant 0 : index
      %c0_16 = arith.constant 0 : index
      %20 = vector.load %arg5[%c0_14, %c0_15, %c0_16] : memref<1x2x128xf32, #tpu.memory_space<vmem>>, vector<1x2x128xf32>
      tpu.vector_store %arg5[%c0_14, %c0_15, %c0_16], %19 {strides = array<i32>} : memref<1x2x128xf32, #tpu.memory_space<vmem>>, vector<1x2x128xf32>,
    } else {
    }
    return
  }
  func.func @transform_0(%arg0: i32, %arg1: i32) -> (i32, i32) {
    %c0_i32 = arith.constant 0 : i32
    return %arg0, %arg1 : i32, i32
  }
  func.func @transform_1(%arg0: i32, %arg1: i32) -> (i32, i32) {
    %c0_i32 = arith.constant 0 : i32
    %c0_i32_0 = arith.constant 0 : i32
    return %arg1, %c0_i32 : i32, i32
  }
  func.func @transform_2(%arg0: i32, %arg1: i32) -> (i32, i32) {
    %c0_i32 = arith.constant 0 : i32
    %c0_i32_0 = arith.constant 0 : i32
    return %arg0, %c0_i32 : i32, i32
  }
  func.func @transform_3(%arg0: i32, %arg1: i32) -> (i32, i32, i32) {
    %c0_i32 = arith.constant 0 : i32
    %c0_i32_0 = arith.constant 0 : i32
    %c0_i32_1 = arith.constant 0 : i32
    return %arg0, %c0_i32, %c0_i32_0 : i32, i32, i32
  }
}

module attributes {stable_mosaic.version = 11 : i64} {
  func.func @kernel(%arg0: i32, %arg1: memref<32x128xf32, #tpu.memory_space<vmem>>, %arg2: memref<1x128xf32, #tpu.memory_space<vmem>>, %arg3: memref<1x128xf32, #tpu.memory_space<vmem>>, %arg4: memref<32x128xbf16, #tpu.memory_space<vmem>>) attributes {dimension_semantics = [#tpu.dimension_semantics<parallel>], iteration_bounds = array<i64: 1>, scalar_prefetch = 0 : i64, scratch_operands = 0 : i64, tpu.core_type = #tpu.core_type<tc>, window_params = [{transform_indices = @transform_0, window_bounds = array<i64: 32, 128>}, {pipeline_mode = #tpu.pipeline_mode<synchronous>, transform_indices = @transform_1, window_bounds = array<i64: 1, 128>}, {pipeline_mode = #tpu.pipeline_mode<synchronous>, transform_indices = @transform_2, window_bounds = array<i64: 1, 128>}, {transform_indices = @transform_3, window_bounds = array<i64: 32, 128>}]} {
    %c0 = arith.constant 0 : index
    %c0_0 = arith.constant 0 : index
    %0 = vector.load %arg1[%c0, %c0_0] : memref<32x128xf32, #tpu.memory_space<vmem>>, vector<32x128xf32>
    %c0_1 = arith.constant 0 : index
    %c0_2 = arith.constant 0 : index
    %1 = vector.load %arg2[%c0_1, %c0_2] : memref<1x128xf32, #tpu.memory_space<vmem>>, vector<1x128xf32>
    %2 = vector.broadcast %1 : vector<1x128xf32> to vector<32x128xf32>
    %3 = arith.mulf %0, %2 : vector<32x128xf32>
    %c0_3 = arith.constant 0 : index
    %c0_4 = arith.constant 0 : index
    %4 = vector.load %arg3[%c0_3, %c0_4] : memref<1x128xf32, #tpu.memory_space<vmem>>, vector<1x128xf32>
    %5 = vector.broadcast %4 : vector<1x128xf32> to vector<32x128xf32>
    %6 = arith.addf %3, %5 : vector<32x128xf32>
    %7 = arith.truncf %6 : vector<32x128xf32> to vector<32x128xbf16>
    %c0_5 = arith.constant 0 : index
    %c0_6 = arith.constant 0 : index
    %8 = vector.load %arg4[%c0_5, %c0_6] : memref<32x128xbf16, #tpu.memory_space<vmem>>, vector<32x128xbf16>
    tpu.vector_store %arg4[%c0_5, %c0_6], %7 {strides = array<i32>} : memref<32x128xbf16, #tpu.memory_space<vmem>>, vector<32x128xbf16>,
    return
  }
  func.func @transform_0(%arg0: i32) -> (i32, i32) {
    %c0_i32 = arith.constant 0 : i32
    %c0_i32_0 = arith.constant 0 : i32
    return %arg0, %c0_i32 : i32, i32
  }
  func.func @transform_1(%arg0: i32) -> (i32, i32) {
    %c0_i32 = arith.constant 0 : i32
    %c0_i32_0 = arith.constant 0 : i32
    %c0_i32_1 = arith.constant 0 : i32
    return %c0_i32, %c0_i32_0 : i32, i32
  }
  func.func @transform_2(%arg0: i32) -> (i32, i32) {
    %c0_i32 = arith.constant 0 : i32
    %c0_i32_0 = arith.constant 0 : i32
    %c0_i32_1 = arith.constant 0 : i32
    return %c0_i32, %c0_i32_0 : i32, i32
  }
  func.func @transform_3(%arg0: i32) -> (i32, i32) {
    %c0_i32 = arith.constant 0 : i32
    %c0_i32_0 = arith.constant 0 : i32
    return %arg0, %c0_i32 : i32, i32
  }
}

module attributes {stable_mosaic.version = 11 : i64} {
  func.func @_matmul_stats_kernel(%arg0: i32, %arg1: i32, %arg2: memref<32x384xbf16, #tpu.memory_space<vmem>>, %arg3: memref<384x128xbf16, #tpu.memory_space<vmem>>, %arg4: memref<32x128xf32, #tpu.memory_space<vmem>>, %arg5: memref<1x2x128xf32, #tpu.memory_space<vmem>>) attributes {dimension_semantics = [#tpu.dimension_semantics<parallel>, #tpu.dimension_semantics<arbitrary>], iteration_bounds = array<i64: 1, 3>, scalar_prefetch = 0 : i64, scratch_operands = 0 : i64, tpu.core_type = #tpu.core_type<tc>, window_params = [{transform_indices = @transform_0, window_bounds = array<i64: 32, 384>}, {transform_indices = @transform_1, window_bounds = array<i64: 384, 128>}, {transform_indices = @transform_2, window_bounds = array<i64: 32, 128>}, {transform_indices = @transform_3, window_bounds = array<i64: 1, 2, 128>}]} {
    %c0_i32 = arith.constant 0 : i32
    %0 = arith.cmpi eq, %arg1, %c0_i32 : i32
    %1 = arith.extui %0 : i1 to i32
    %c0_i32_0 = arith.constant 0 : i32
    %2 = arith.cmpi ne, %1, %c0_i32_0 : i32
    scf.if %2 {
      %cst_9 = arith.constant 0.000000e+00 : f32
      %12 = vector.broadcast %cst_9 : f32 to vector<32x128xf32>
      %c0_10 = arith.constant 0 : index
      %c0_11 = arith.constant 0 : index
      %13 = vector.load %arg4[%c0_10, %c0_11] : memref<32x128xf32, #tpu.memory_space<vmem>>, vector<32x128xf32>
      tpu.vector_store %arg4[%c0_10, %c0_11], %12 {strides = array<i32>} : memref<32x128xf32, #tpu.memory_space<vmem>>, vector<32x128xf32>,
    } else {
    }
    %c0 = arith.constant 0 : index
    %c0_1 = arith.constant 0 : index
    %3 = vector.load %arg4[%c0, %c0_1] : memref<32x128xf32, #tpu.memory_space<vmem>>, vector<32x128xf32>
    %c0_2 = arith.constant 0 : index
    %c0_3 = arith.constant 0 : index
    %4 = vector.load %arg2[%c0_2, %c0_3] : memref<32x384xbf16, #tpu.memory_space<vmem>>, vector<32x384xbf16>
    %c0_4 = arith.constant 0 : index
    %c0_5 = arith.constant 0 : index
    %5 = vector.load %arg3[%c0_4, %c0_5] : memref<384x128xbf16, #tpu.memory_space<vmem>>, vector<384x128xbf16>
    %cst = arith.constant dense<0.000000e+00> : vector<32x128xf32>
    %6 = tpu.matmul %4, %5, %cst {dimension_numbers = #tpu.dot_dimension_numbers<[1], [0], [0], [1], [0, 0, 1, 1], [], []>} : vector<32x384xbf16>, vector<384x128xbf16>, vector<32x128xf32> -> vector<32x128xf32>
    %7 = arith.addf %3, %6 : vector<32x128xf32>
    %c0_6 = arith.constant 0 : index
    %c0_7 = arith.constant 0 : index
    %8 = vector.load %arg4[%c0_6, %c0_7] : memref<32x128xf32, #tpu.memory_space<vmem>>, vector<32x128xf32>
    tpu.vector_store %arg4[%c0_6, %c0_7], %7 {strides = array<i32>} : memref<32x128xf32, #tpu.memory_space<vmem>>, vector<32x128xf32>,
    %c2_i32 = arith.constant 2 : i32
    %9 = arith.cmpi eq, %arg1, %c2_i32 : i32
    %10 = arith.extui %9 : i1 to i32
    %c0_i32_8 = arith.constant 0 : i32
    %11 = arith.cmpi ne, %10, %c0_i32_8 : i32
    scf.if %11 {
      %c0_9 = arith.constant 0 : index
      %c0_10 = arith.constant 0 : index
      %12 = vector.load %arg4[%c0_9, %c0_10] : memref<32x128xf32, #tpu.memory_space<vmem>>, vector<32x128xf32>
      %cst_11 = arith.constant dense<0.000000e+00> : vector<128xf32>
      %13 = vector.multi_reduction <add>, %12, %cst_11 [0] : vector<32x128xf32> to vector<128xf32>
      %14 = vector.shape_cast %13 : vector<128xf32> to vector<1x128xf32>
      %15 = arith.mulf %12, %12 : vector<32x128xf32>
      %cst_12 = arith.constant dense<0.000000e+00> : vector<128xf32>
      %16 = vector.multi_reduction <add>, %15, %cst_12 [0] : vector<32x128xf32> to vector<128xf32>
      %17 = vector.shape_cast %16 : vector<128xf32> to vector<1x128xf32>
      %18 = tpu.concatenate %14, %17 in 0 : vector<1x128xf32>, vector<1x128xf32> -> vector<2x128xf32>
      %19 = vector.shape_cast %18 : vector<2x128xf32> to vector<1x2x128xf32>
      %c0_13 = arith.constant 0 : index
      %c0_14 = arith.constant 0 : index
      %c0_15 = arith.constant 0 : index
      %20 = vector.load %arg5[%c0_13, %c0_14, %c0_15] : memref<1x2x128xf32, #tpu.memory_space<vmem>>, vector<1x2x128xf32>
      tpu.vector_store %arg5[%c0_13, %c0_14, %c0_15], %19 {strides = array<i32>} : memref<1x2x128xf32, #tpu.memory_space<vmem>>, vector<1x2x128xf32>,
    } else {
    }
    return
  }
  func.func @transform_0(%arg0: i32, %arg1: i32) -> (i32, i32) {
    %c0_i32 = arith.constant 0 : i32
    return %arg0, %arg1 : i32, i32
  }
  func.func @transform_1(%arg0: i32, %arg1: i32) -> (i32, i32) {
    %c0_i32 = arith.constant 0 : i32
    %c0_i32_0 = arith.constant 0 : i32
    return %arg1, %c0_i32 : i32, i32
  }
  func.func @transform_2(%arg0: i32, %arg1: i32) -> (i32, i32) {
    %c0_i32 = arith.constant 0 : i32
    %c0_i32_0 = arith.constant 0 : i32
    return %arg0, %c0_i32 : i32, i32
  }
  func.func @transform_3(%arg0: i32, %arg1: i32) -> (i32, i32, i32) {
    %c0_i32 = arith.constant 0 : i32
    %c0_i32_0 = arith.constant 0 : i32
    %c0_i32_1 = arith.constant 0 : i32
    return %arg0, %c0_i32, %c0_i32_0 : i32, i32, i32
  }
}

module attributes {stable_mosaic.version = 11 : i64} {
  func.func @kernel(%arg0: i32, %arg1: memref<32x128xf32, #tpu.memory_space<vmem>>, %arg2: memref<1x128xf32, #tpu.memory_space<vmem>>, %arg3: memref<1x128xf32, #tpu.memory_space<vmem>>, %arg4: memref<32x128xbf16, #tpu.memory_space<vmem>>) attributes {dimension_semantics = [#tpu.dimension_semantics<parallel>], iteration_bounds = array<i64: 1>, scalar_prefetch = 0 : i64, scratch_operands = 0 : i64, tpu.core_type = #tpu.core_type<tc>, window_params = [{transform_indices = @transform_0, window_bounds = array<i64: 32, 128>}, {pipeline_mode = #tpu.pipeline_mode<synchronous>, transform_indices = @transform_1, window_bounds = array<i64: 1, 128>}, {pipeline_mode = #tpu.pipeline_mode<synchronous>, transform_indices = @transform_2, window_bounds = array<i64: 1, 128>}, {transform_indices = @transform_3, window_bounds = array<i64: 32, 128>}]} {
    %c0 = arith.constant 0 : index
    %c0_0 = arith.constant 0 : index
    %0 = vector.load %arg1[%c0, %c0_0] : memref<32x128xf32, #tpu.memory_space<vmem>>, vector<32x128xf32>
    %c0_1 = arith.constant 0 : index
    %c0_2 = arith.constant 0 : index
    %1 = vector.load %arg2[%c0_1, %c0_2] : memref<1x128xf32, #tpu.memory_space<vmem>>, vector<1x128xf32>
    %2 = vector.broadcast %1 : vector<1x128xf32> to vector<32x128xf32>
    %3 = arith.mulf %0, %2 : vector<32x128xf32>
    %c0_3 = arith.constant 0 : index
    %c0_4 = arith.constant 0 : index
    %4 = vector.load %arg3[%c0_3, %c0_4] : memref<1x128xf32, #tpu.memory_space<vmem>>, vector<1x128xf32>
    %5 = vector.broadcast %4 : vector<1x128xf32> to vector<32x128xf32>
    %6 = arith.addf %3, %5 : vector<32x128xf32>
    %cst = arith.constant 0.000000e+00 : f32
    %7 = vector.broadcast %cst : f32 to vector<32x128xf32>
    %8 = arith.maximumf %6, %7 : vector<32x128xf32>
    %9 = arith.truncf %8 : vector<32x128xf32> to vector<32x128xbf16>
    %c0_5 = arith.constant 0 : index
    %c0_6 = arith.constant 0 : index
    %10 = vector.load %arg4[%c0_5, %c0_6] : memref<32x128xbf16, #tpu.memory_space<vmem>>, vector<32x128xbf16>
    tpu.vector_store %arg4[%c0_5, %c0_6], %9 {strides = array<i32>} : memref<32x128xbf16, #tpu.memory_space<vmem>>, vector<32x128xbf16>,
    return
  }
  func.func @transform_0(%arg0: i32) -> (i32, i32) {
    %c0_i32 = arith.constant 0 : i32
    %c0_i32_0 = arith.constant 0 : i32
    return %arg0, %c0_i32 : i32, i32
  }
  func.func @transform_1(%arg0: i32) -> (i32, i32) {
    %c0_i32 = arith.constant 0 : i32
    %c0_i32_0 = arith.constant 0 : i32
    %c0_i32_1 = arith.constant 0 : i32
    return %c0_i32, %c0_i32_0 : i32, i32
  }
  func.func @transform_2(%arg0: i32) -> (i32, i32) {
    %c0_i32 = arith.constant 0 : i32
    %c0_i32_0 = arith.constant 0 : i32
    %c0_i32_1 = arith.constant 0 : i32
    return %c0_i32, %c0_i32_0 : i32, i32
  }
  func.func @transform_3(%arg0: i32) -> (i32, i32) {
    %c0_i32 = arith.constant 0 : i32
    %c0_i32_0 = arith.constant 0 : i32
    return %arg0, %c0_i32 : i32, i32
  }
}

module attributes {stable_mosaic.version = 11 : i64} {
  func.func @kernel(%arg0: i32, %arg1: memref<8x256xf32, #tpu.memory_space<vmem>>, %arg2: memref<1x256xf32, #tpu.memory_space<vmem>>, %arg3: memref<1x256xf32, #tpu.memory_space<vmem>>, %arg4: memref<8x256xbf16, #tpu.memory_space<vmem>>) attributes {dimension_semantics = [#tpu.dimension_semantics<parallel>], iteration_bounds = array<i64: 1>, scalar_prefetch = 0 : i64, scratch_operands = 0 : i64, tpu.core_type = #tpu.core_type<tc>, window_params = [{transform_indices = @transform_0, window_bounds = array<i64: 8, 256>}, {pipeline_mode = #tpu.pipeline_mode<synchronous>, transform_indices = @transform_1, window_bounds = array<i64: 1, 256>}, {pipeline_mode = #tpu.pipeline_mode<synchronous>, transform_indices = @transform_2, window_bounds = array<i64: 1, 256>}, {transform_indices = @transform_3, window_bounds = array<i64: 8, 256>}]} {
    %c0 = arith.constant 0 : index
    %c0_0 = arith.constant 0 : index
    %0 = vector.load %arg1[%c0, %c0_0] : memref<8x256xf32, #tpu.memory_space<vmem>>, vector<8x256xf32>
    %c0_1 = arith.constant 0 : index
    %c0_2 = arith.constant 0 : index
    %1 = vector.load %arg2[%c0_1, %c0_2] : memref<1x256xf32, #tpu.memory_space<vmem>>, vector<1x256xf32>
    %2 = vector.broadcast %1 : vector<1x256xf32> to vector<8x256xf32>
    %3 = arith.mulf %0, %2 : vector<8x256xf32>
    %c0_3 = arith.constant 0 : index
    %c0_4 = arith.constant 0 : index
    %4 = vector.load %arg3[%c0_3, %c0_4] : memref<1x256xf32, #tpu.memory_space<vmem>>, vector<1x256xf32>
    %5 = vector.broadcast %4 : vector<1x256xf32> to vector<8x256xf32>
    %6 = arith.addf %3, %5 : vector<8x256xf32>
    %7 = arith.truncf %6 : vector<8x256xf32> to vector<8x256xbf16>
    %c0_5 = arith.constant 0 : index
    %c0_6 = arith.constant 0 : index
    %8 = vector.load %arg4[%c0_5, %c0_6] : memref<8x256xbf16, #tpu.memory_space<vmem>>, vector<8x256xbf16>
    tpu.vector_store %arg4[%c0_5, %c0_6], %7 {strides = array<i32>} : memref<8x256xbf16, #tpu.memory_space<vmem>>, vector<8x256xbf16>,
    return
  }
  func.func @transform_0(%arg0: i32) -> (i32, i32) {
    %c0_i32 = arith.constant 0 : i32
    %c0_i32_0 = arith.constant 0 : i32
    return %arg0, %c0_i32 : i32, i32
  }
  func.func @transform_1(%arg0: i32) -> (i32, i32) {
    %c0_i32 = arith.constant 0 : i32
    %c0_i32_0 = arith.constant 0 : i32
    %c0_i32_1 = arith.constant 0 : i32
    return %c0_i32, %c0_i32_0 : i32, i32
  }
  func.func @transform_2(%arg0: i32) -> (i32, i32) {
    %c0_i32 = arith.constant 0 : i32
    %c0_i32_0 = arith.constant 0 : i32
    %c0_i32_1 = arith.constant 0 : i32
    return %c0_i32, %c0_i32_0 : i32, i32
  }
  func.func @transform_3(%arg0: i32) -> (i32, i32) {
    %c0_i32 = arith.constant 0 : i32
    %c0_i32_0 = arith.constant 0 : i32
    return %arg0, %c0_i32 : i32, i32
  }
}

module attributes {stable_mosaic.version = 11 : i64} {
  func.func @kernel(%arg0: i32, %arg1: memref<32x128xf32, #tpu.memory_space<vmem>>, %arg2: memref<1x128xf32, #tpu.memory_space<vmem>>, %arg3: memref<1x128xf32, #tpu.memory_space<vmem>>, %arg4: memref<32x128xbf16, #tpu.memory_space<vmem>>, %arg5: memref<32x128xbf16, #tpu.memory_space<vmem>>) attributes {dimension_semantics = [#tpu.dimension_semantics<parallel>], iteration_bounds = array<i64: 1>, scalar_prefetch = 0 : i64, scratch_operands = 0 : i64, tpu.core_type = #tpu.core_type<tc>, window_params = [{transform_indices = @transform_0, window_bounds = array<i64: 32, 128>}, {pipeline_mode = #tpu.pipeline_mode<synchronous>, transform_indices = @transform_1, window_bounds = array<i64: 1, 128>}, {pipeline_mode = #tpu.pipeline_mode<synchronous>, transform_indices = @transform_2, window_bounds = array<i64: 1, 128>}, {transform_indices = @transform_3, window_bounds = array<i64: 32, 128>}, {transform_indices = @transform_4, window_bounds = array<i64: 32, 128>}]} {
    %c0 = arith.constant 0 : index
    %c0_0 = arith.constant 0 : index
    %0 = vector.load %arg1[%c0, %c0_0] : memref<32x128xf32, #tpu.memory_space<vmem>>, vector<32x128xf32>
    %c0_1 = arith.constant 0 : index
    %c0_2 = arith.constant 0 : index
    %1 = vector.load %arg2[%c0_1, %c0_2] : memref<1x128xf32, #tpu.memory_space<vmem>>, vector<1x128xf32>
    %2 = vector.broadcast %1 : vector<1x128xf32> to vector<32x128xf32>
    %3 = arith.mulf %0, %2 : vector<32x128xf32>
    %c0_3 = arith.constant 0 : index
    %c0_4 = arith.constant 0 : index
    %4 = vector.load %arg3[%c0_3, %c0_4] : memref<1x128xf32, #tpu.memory_space<vmem>>, vector<1x128xf32>
    %5 = vector.broadcast %4 : vector<1x128xf32> to vector<32x128xf32>
    %6 = arith.addf %3, %5 : vector<32x128xf32>
    %c0_5 = arith.constant 0 : index
    %c0_6 = arith.constant 0 : index
    %7 = vector.load %arg4[%c0_5, %c0_6] : memref<32x128xbf16, #tpu.memory_space<vmem>>, vector<32x128xbf16>
    %8 = arith.extf %7 : vector<32x128xbf16> to vector<32x128xf32>
    %9 = arith.addf %6, %8 : vector<32x128xf32>
    %cst = arith.constant 0.000000e+00 : f32
    %10 = vector.broadcast %cst : f32 to vector<32x128xf32>
    %11 = arith.maximumf %9, %10 : vector<32x128xf32>
    %12 = arith.truncf %11 : vector<32x128xf32> to vector<32x128xbf16>
    %c0_7 = arith.constant 0 : index
    %c0_8 = arith.constant 0 : index
    %13 = vector.load %arg5[%c0_7, %c0_8] : memref<32x128xbf16, #tpu.memory_space<vmem>>, vector<32x128xbf16>
    tpu.vector_store %arg5[%c0_7, %c0_8], %12 {strides = array<i32>} : memref<32x128xbf16, #tpu.memory_space<vmem>>, vector<32x128xbf16>,
    return
  }
  func.func @transform_0(%arg0: i32) -> (i32, i32) {
    %c0_i32 = arith.constant 0 : i32
    %c0_i32_0 = arith.constant 0 : i32
    return %arg0, %c0_i32 : i32, i32
  }
  func.func @transform_1(%arg0: i32) -> (i32, i32) {
    %c0_i32 = arith.constant 0 : i32
    %c0_i32_0 = arith.constant 0 : i32
    %c0_i32_1 = arith.constant 0 : i32
    return %c0_i32, %c0_i32_0 : i32, i32
  }
  func.func @transform_2(%arg0: i32) -> (i32, i32) {
    %c0_i32 = arith.constant 0 : i32
    %c0_i32_0 = arith.constant 0 : i32
    %c0_i32_1 = arith.constant 0 : i32
    return %c0_i32, %c0_i32_0 : i32, i32
  }
  func.func @transform_3(%arg0: i32) -> (i32, i32) {
    %c0_i32 = arith.constant 0 : i32
    %c0_i32_0 = arith.constant 0 : i32
    return %arg0, %c0_i32 : i32, i32
  }
  func.func @transform_4(%arg0: i32) -> (i32, i32) {
    %c0_i32 = arith.constant 0 : i32
    %c0_i32_0 = arith.constant 0 : i32
    return %arg0, %c0_i32 : i32, i32
  }
}

module attributes {stable_mosaic.version = 11 : i64} {
  func.func @_matmul_stats_kernel(%arg0: i32, %arg1: i32, %arg2: memref<8x128xbf16, #tpu.memory_space<vmem>>, %arg3: memref<128x256xbf16, #tpu.memory_space<vmem>>, %arg4: memref<8x256xf32, #tpu.memory_space<vmem>>, %arg5: memref<1x2x256xf32, #tpu.memory_space<vmem>>) attributes {dimension_semantics = [#tpu.dimension_semantics<parallel>, #tpu.dimension_semantics<arbitrary>], iteration_bounds = array<i64: 1, 1>, scalar_prefetch = 0 : i64, scratch_operands = 0 : i64, tpu.core_type = #tpu.core_type<tc>, window_params = [{transform_indices = @transform_0, window_bounds = array<i64: 8, 128>}, {transform_indices = @transform_1, window_bounds = array<i64: 128, 256>}, {transform_indices = @transform_2, window_bounds = array<i64: 8, 256>}, {transform_indices = @transform_3, window_bounds = array<i64: 1, 2, 256>}]} {
    %c0_i32 = arith.constant 0 : i32
    %0 = arith.cmpi eq, %arg1, %c0_i32 : i32
    %1 = arith.extui %0 : i1 to i32
    %c0_i32_0 = arith.constant 0 : i32
    %2 = arith.cmpi ne, %1, %c0_i32_0 : i32
    scf.if %2 {
      %cst_10 = arith.constant 0.000000e+00 : f32
      %12 = vector.broadcast %cst_10 : f32 to vector<8x256xf32>
      %c0_11 = arith.constant 0 : index
      %c0_12 = arith.constant 0 : index
      %13 = vector.load %arg4[%c0_11, %c0_12] : memref<8x256xf32, #tpu.memory_space<vmem>>, vector<8x256xf32>
      tpu.vector_store %arg4[%c0_11, %c0_12], %12 {strides = array<i32>} : memref<8x256xf32, #tpu.memory_space<vmem>>, vector<8x256xf32>,
    } else {
    }
    %c0 = arith.constant 0 : index
    %c0_1 = arith.constant 0 : index
    %3 = vector.load %arg4[%c0, %c0_1] : memref<8x256xf32, #tpu.memory_space<vmem>>, vector<8x256xf32>
    %c0_2 = arith.constant 0 : index
    %c0_3 = arith.constant 0 : index
    %4 = vector.load %arg2[%c0_2, %c0_3] : memref<8x128xbf16, #tpu.memory_space<vmem>>, vector<8x128xbf16>
    %c0_4 = arith.constant 0 : index
    %c0_5 = arith.constant 0 : index
    %5 = vector.load %arg3[%c0_4, %c0_5] : memref<128x256xbf16, #tpu.memory_space<vmem>>, vector<128x256xbf16>
    %cst = arith.constant dense<0.000000e+00> : vector<8x256xf32>
    %6 = tpu.matmul %4, %5, %cst {dimension_numbers = #tpu.dot_dimension_numbers<[1], [0], [0], [1], [0, 0, 1, 1], [], []>} : vector<8x128xbf16>, vector<128x256xbf16>, vector<8x256xf32> -> vector<8x256xf32>
    %7 = arith.addf %3, %6 : vector<8x256xf32>
    %c0_6 = arith.constant 0 : index
    %c0_7 = arith.constant 0 : index
    %8 = vector.load %arg4[%c0_6, %c0_7] : memref<8x256xf32, #tpu.memory_space<vmem>>, vector<8x256xf32>
    tpu.vector_store %arg4[%c0_6, %c0_7], %7 {strides = array<i32>} : memref<8x256xf32, #tpu.memory_space<vmem>>, vector<8x256xf32>,
    %c0_i32_8 = arith.constant 0 : i32
    %9 = arith.cmpi eq, %arg1, %c0_i32_8 : i32
    %10 = arith.extui %9 : i1 to i32
    %c0_i32_9 = arith.constant 0 : i32
    %11 = arith.cmpi ne, %10, %c0_i32_9 : i32
    scf.if %11 {
      %c0_10 = arith.constant 0 : index
      %c0_11 = arith.constant 0 : index
      %12 = vector.load %arg4[%c0_10, %c0_11] : memref<8x256xf32, #tpu.memory_space<vmem>>, vector<8x256xf32>
      %cst_12 = arith.constant dense<0.000000e+00> : vector<256xf32>
      %13 = vector.multi_reduction <add>, %12, %cst_12 [0] : vector<8x256xf32> to vector<256xf32>
      %14 = vector.shape_cast %13 : vector<256xf32> to vector<1x256xf32>
      %15 = arith.mulf %12, %12 : vector<8x256xf32>
      %cst_13 = arith.constant dense<0.000000e+00> : vector<256xf32>
      %16 = vector.multi_reduction <add>, %15, %cst_13 [0] : vector<8x256xf32> to vector<256xf32>
      %17 = vector.shape_cast %16 : vector<256xf32> to vector<1x256xf32>
      %18 = tpu.concatenate %14, %17 in 0 : vector<1x256xf32>, vector<1x256xf32> -> vector<2x256xf32>
      %19 = vector.shape_cast %18 : vector<2x256xf32> to vector<1x2x256xf32>
      %c0_14 = arith.constant 0 : index
      %c0_15 = arith.constant 0 : index
      %c0_16 = arith.constant 0 : index
      %20 = vector.load %arg5[%c0_14, %c0_15, %c0_16] : memref<1x2x256xf32, #tpu.memory_space<vmem>>, vector<1x2x256xf32>
      tpu.vector_store %arg5[%c0_14, %c0_15, %c0_16], %19 {strides = array<i32>} : memref<1x2x256xf32, #tpu.memory_space<vmem>>, vector<1x2x256xf32>,
    } else {
    }
    return
  }
  func.func @transform_0(%arg0: i32, %arg1: i32) -> (i32, i32) {
    %c0_i32 = arith.constant 0 : i32
    return %arg0, %arg1 : i32, i32
  }
  func.func @transform_1(%arg0: i32, %arg1: i32) -> (i32, i32) {
    %c0_i32 = arith.constant 0 : i32
    %c0_i32_0 = arith.constant 0 : i32
    return %arg1, %c0_i32 : i32, i32
  }
  func.func @transform_2(%arg0: i32, %arg1: i32) -> (i32, i32) {
    %c0_i32 = arith.constant 0 : i32
    %c0_i32_0 = arith.constant 0 : i32
    return %arg0, %c0_i32 : i32, i32
  }
  func.func @transform_3(%arg0: i32, %arg1: i32) -> (i32, i32, i32) {
    %c0_i32 = arith.constant 0 : i32
    %c0_i32_0 = arith.constant 0 : i32
    %c0_i32_1 = arith.constant 0 : i32
    return %arg0, %c0_i32, %c0_i32_0 : i32, i32, i32
  }
}

module attributes {stable_mosaic.version = 11 : i64} {
  func.func @kernel(%arg0: i32, %arg1: memref<8x256xf32, #tpu.memory_space<vmem>>, %arg2: memref<1x256xf32, #tpu.memory_space<vmem>>, %arg3: memref<1x256xf32, #tpu.memory_space<vmem>>, %arg4: memref<8x256xbf16, #tpu.memory_space<vmem>>) attributes {dimension_semantics = [#tpu.dimension_semantics<parallel>], iteration_bounds = array<i64: 1>, scalar_prefetch = 0 : i64, scratch_operands = 0 : i64, tpu.core_type = #tpu.core_type<tc>, window_params = [{transform_indices = @transform_0, window_bounds = array<i64: 8, 256>}, {pipeline_mode = #tpu.pipeline_mode<synchronous>, transform_indices = @transform_1, window_bounds = array<i64: 1, 256>}, {pipeline_mode = #tpu.pipeline_mode<synchronous>, transform_indices = @transform_2, window_bounds = array<i64: 1, 256>}, {transform_indices = @transform_3, window_bounds = array<i64: 8, 256>}]} {
    %c0 = arith.constant 0 : index
    %c0_0 = arith.constant 0 : index
    %0 = vector.load %arg1[%c0, %c0_0] : memref<8x256xf32, #tpu.memory_space<vmem>>, vector<8x256xf32>
    %c0_1 = arith.constant 0 : index
    %c0_2 = arith.constant 0 : index
    %1 = vector.load %arg2[%c0_1, %c0_2] : memref<1x256xf32, #tpu.memory_space<vmem>>, vector<1x256xf32>
    %2 = vector.broadcast %1 : vector<1x256xf32> to vector<8x256xf32>
    %3 = arith.mulf %0, %2 : vector<8x256xf32>
    %c0_3 = arith.constant 0 : index
    %c0_4 = arith.constant 0 : index
    %4 = vector.load %arg3[%c0_3, %c0_4] : memref<1x256xf32, #tpu.memory_space<vmem>>, vector<1x256xf32>
    %5 = vector.broadcast %4 : vector<1x256xf32> to vector<8x256xf32>
    %6 = arith.addf %3, %5 : vector<8x256xf32>
    %cst = arith.constant 0.000000e+00 : f32
    %7 = vector.broadcast %cst : f32 to vector<8x256xf32>
    %8 = arith.maximumf %6, %7 : vector<8x256xf32>
    %9 = arith.truncf %8 : vector<8x256xf32> to vector<8x256xbf16>
    %c0_5 = arith.constant 0 : index
    %c0_6 = arith.constant 0 : index
    %10 = vector.load %arg4[%c0_5, %c0_6] : memref<8x256xbf16, #tpu.memory_space<vmem>>, vector<8x256xbf16>
    tpu.vector_store %arg4[%c0_5, %c0_6], %9 {strides = array<i32>} : memref<8x256xbf16, #tpu.memory_space<vmem>>, vector<8x256xbf16>,
    return
  }
  func.func @transform_0(%arg0: i32) -> (i32, i32) {
    %c0_i32 = arith.constant 0 : i32
    %c0_i32_0 = arith.constant 0 : i32
    return %arg0, %c0_i32 : i32, i32
  }
  func.func @transform_1(%arg0: i32) -> (i32, i32) {
    %c0_i32 = arith.constant 0 : i32
    %c0_i32_0 = arith.constant 0 : i32
    %c0_i32_1 = arith.constant 0 : i32
    return %c0_i32, %c0_i32_0 : i32, i32
  }
  func.func @transform_2(%arg0: i32) -> (i32, i32) {
    %c0_i32 = arith.constant 0 : i32
    %c0_i32_0 = arith.constant 0 : i32
    %c0_i32_1 = arith.constant 0 : i32
    return %c0_i32, %c0_i32_0 : i32, i32
  }
  func.func @transform_3(%arg0: i32) -> (i32, i32) {
    %c0_i32 = arith.constant 0 : i32
    %c0_i32_0 = arith.constant 0 : i32
    return %arg0, %c0_i32 : i32, i32
  }
}

module attributes {stable_mosaic.version = 11 : i64} {
  func.func @_matmul_stats_kernel(%arg0: i32, %arg1: i32, %arg2: memref<8x384xbf16, #tpu.memory_space<vmem>>, %arg3: memref<384x256xbf16, #tpu.memory_space<vmem>>, %arg4: memref<8x256xf32, #tpu.memory_space<vmem>>, %arg5: memref<1x2x256xf32, #tpu.memory_space<vmem>>) attributes {dimension_semantics = [#tpu.dimension_semantics<parallel>, #tpu.dimension_semantics<arbitrary>], iteration_bounds = array<i64: 1, 3>, scalar_prefetch = 0 : i64, scratch_operands = 0 : i64, tpu.core_type = #tpu.core_type<tc>, window_params = [{transform_indices = @transform_0, window_bounds = array<i64: 8, 384>}, {transform_indices = @transform_1, window_bounds = array<i64: 384, 256>}, {transform_indices = @transform_2, window_bounds = array<i64: 8, 256>}, {transform_indices = @transform_3, window_bounds = array<i64: 1, 2, 256>}]} {
    %c0_i32 = arith.constant 0 : i32
    %0 = arith.cmpi eq, %arg1, %c0_i32 : i32
    %1 = arith.extui %0 : i1 to i32
    %c0_i32_0 = arith.constant 0 : i32
    %2 = arith.cmpi ne, %1, %c0_i32_0 : i32
    scf.if %2 {
      %cst_9 = arith.constant 0.000000e+00 : f32
      %12 = vector.broadcast %cst_9 : f32 to vector<8x256xf32>
      %c0_10 = arith.constant 0 : index
      %c0_11 = arith.constant 0 : index
      %13 = vector.load %arg4[%c0_10, %c0_11] : memref<8x256xf32, #tpu.memory_space<vmem>>, vector<8x256xf32>
      tpu.vector_store %arg4[%c0_10, %c0_11], %12 {strides = array<i32>} : memref<8x256xf32, #tpu.memory_space<vmem>>, vector<8x256xf32>,
    } else {
    }
    %c0 = arith.constant 0 : index
    %c0_1 = arith.constant 0 : index
    %3 = vector.load %arg4[%c0, %c0_1] : memref<8x256xf32, #tpu.memory_space<vmem>>, vector<8x256xf32>
    %c0_2 = arith.constant 0 : index
    %c0_3 = arith.constant 0 : index
    %4 = vector.load %arg2[%c0_2, %c0_3] : memref<8x384xbf16, #tpu.memory_space<vmem>>, vector<8x384xbf16>
    %c0_4 = arith.constant 0 : index
    %c0_5 = arith.constant 0 : index
    %5 = vector.load %arg3[%c0_4, %c0_5] : memref<384x256xbf16, #tpu.memory_space<vmem>>, vector<384x256xbf16>
    %cst = arith.constant dense<0.000000e+00> : vector<8x256xf32>
    %6 = tpu.matmul %4, %5, %cst {dimension_numbers = #tpu.dot_dimension_numbers<[1], [0], [0], [1], [0, 0, 1, 1], [], []>} : vector<8x384xbf16>, vector<384x256xbf16>, vector<8x256xf32> -> vector<8x256xf32>
    %7 = arith.addf %3, %6 : vector<8x256xf32>
    %c0_6 = arith.constant 0 : index
    %c0_7 = arith.constant 0 : index
    %8 = vector.load %arg4[%c0_6, %c0_7] : memref<8x256xf32, #tpu.memory_space<vmem>>, vector<8x256xf32>
    tpu.vector_store %arg4[%c0_6, %c0_7], %7 {strides = array<i32>} : memref<8x256xf32, #tpu.memory_space<vmem>>, vector<8x256xf32>,
    %c2_i32 = arith.constant 2 : i32
    %9 = arith.cmpi eq, %arg1, %c2_i32 : i32
    %10 = arith.extui %9 : i1 to i32
    %c0_i32_8 = arith.constant 0 : i32
    %11 = arith.cmpi ne, %10, %c0_i32_8 : i32
    scf.if %11 {
      %c0_9 = arith.constant 0 : index
      %c0_10 = arith.constant 0 : index
      %12 = vector.load %arg4[%c0_9, %c0_10] : memref<8x256xf32, #tpu.memory_space<vmem>>, vector<8x256xf32>
      %cst_11 = arith.constant dense<0.000000e+00> : vector<256xf32>
      %13 = vector.multi_reduction <add>, %12, %cst_11 [0] : vector<8x256xf32> to vector<256xf32>
      %14 = vector.shape_cast %13 : vector<256xf32> to vector<1x256xf32>
      %15 = arith.mulf %12, %12 : vector<8x256xf32>
      %cst_12 = arith.constant dense<0.000000e+00> : vector<256xf32>
      %16 = vector.multi_reduction <add>, %15, %cst_12 [0] : vector<8x256xf32> to vector<256xf32>
      %17 = vector.shape_cast %16 : vector<256xf32> to vector<1x256xf32>
      %18 = tpu.concatenate %14, %17 in 0 : vector<1x256xf32>, vector<1x256xf32> -> vector<2x256xf32>
      %19 = vector.shape_cast %18 : vector<2x256xf32> to vector<1x2x256xf32>
      %c0_13 = arith.constant 0 : index
      %c0_14 = arith.constant 0 : index
      %c0_15 = arith.constant 0 : index
      %20 = vector.load %arg5[%c0_13, %c0_14, %c0_15] : memref<1x2x256xf32, #tpu.memory_space<vmem>>, vector<1x2x256xf32>
      tpu.vector_store %arg5[%c0_13, %c0_14, %c0_15], %19 {strides = array<i32>} : memref<1x2x256xf32, #tpu.memory_space<vmem>>, vector<1x2x256xf32>,
    } else {
    }
    return
  }
  func.func @transform_0(%arg0: i32, %arg1: i32) -> (i32, i32) {
    %c0_i32 = arith.constant 0 : i32
    return %arg0, %arg1 : i32, i32
  }
  func.func @transform_1(%arg0: i32, %arg1: i32) -> (i32, i32) {
    %c0_i32 = arith.constant 0 : i32
    %c0_i32_0 = arith.constant 0 : i32
    return %arg1, %c0_i32 : i32, i32
  }
  func.func @transform_2(%arg0: i32, %arg1: i32) -> (i32, i32) {
    %c0_i32 = arith.constant 0 : i32
    %c0_i32_0 = arith.constant 0 : i32
    return %arg0, %c0_i32 : i32, i32
  }
  func.func @transform_3(%arg0: i32, %arg1: i32) -> (i32, i32, i32) {
    %c0_i32 = arith.constant 0 : i32
    %c0_i32_0 = arith.constant 0 : i32
    %c0_i32_1 = arith.constant 0 : i32
    return %arg0, %c0_i32, %c0_i32_0 : i32, i32, i32
  }
}

module attributes {stable_mosaic.version = 11 : i64} {
  func.func @_matmul_stats_kernel(%arg0: i32, %arg1: i32, %arg2: memref<8x384xbf16, #tpu.memory_space<vmem>>, %arg3: memref<384x256xbf16, #tpu.memory_space<vmem>>, %arg4: memref<8x256xf32, #tpu.memory_space<vmem>>, %arg5: memref<1x2x256xf32, #tpu.memory_space<vmem>>) attributes {dimension_semantics = [#tpu.dimension_semantics<parallel>, #tpu.dimension_semantics<arbitrary>], iteration_bounds = array<i64: 1, 6>, scalar_prefetch = 0 : i64, scratch_operands = 0 : i64, tpu.core_type = #tpu.core_type<tc>, window_params = [{transform_indices = @transform_0, window_bounds = array<i64: 8, 384>}, {transform_indices = @transform_1, window_bounds = array<i64: 384, 256>}, {transform_indices = @transform_2, window_bounds = array<i64: 8, 256>}, {transform_indices = @transform_3, window_bounds = array<i64: 1, 2, 256>}]} {
    %c0_i32 = arith.constant 0 : i32
    %0 = arith.cmpi eq, %arg1, %c0_i32 : i32
    %1 = arith.extui %0 : i1 to i32
    %c0_i32_0 = arith.constant 0 : i32
    %2 = arith.cmpi ne, %1, %c0_i32_0 : i32
    scf.if %2 {
      %cst_9 = arith.constant 0.000000e+00 : f32
      %12 = vector.broadcast %cst_9 : f32 to vector<8x256xf32>
      %c0_10 = arith.constant 0 : index
      %c0_11 = arith.constant 0 : index
      %13 = vector.load %arg4[%c0_10, %c0_11] : memref<8x256xf32, #tpu.memory_space<vmem>>, vector<8x256xf32>
      tpu.vector_store %arg4[%c0_10, %c0_11], %12 {strides = array<i32>} : memref<8x256xf32, #tpu.memory_space<vmem>>, vector<8x256xf32>,
    } else {
    }
    %c0 = arith.constant 0 : index
    %c0_1 = arith.constant 0 : index
    %3 = vector.load %arg4[%c0, %c0_1] : memref<8x256xf32, #tpu.memory_space<vmem>>, vector<8x256xf32>
    %c0_2 = arith.constant 0 : index
    %c0_3 = arith.constant 0 : index
    %4 = vector.load %arg2[%c0_2, %c0_3] : memref<8x384xbf16, #tpu.memory_space<vmem>>, vector<8x384xbf16>
    %c0_4 = arith.constant 0 : index
    %c0_5 = arith.constant 0 : index
    %5 = vector.load %arg3[%c0_4, %c0_5] : memref<384x256xbf16, #tpu.memory_space<vmem>>, vector<384x256xbf16>
    %cst = arith.constant dense<0.000000e+00> : vector<8x256xf32>
    %6 = tpu.matmul %4, %5, %cst {dimension_numbers = #tpu.dot_dimension_numbers<[1], [0], [0], [1], [0, 0, 1, 1], [], []>} : vector<8x384xbf16>, vector<384x256xbf16>, vector<8x256xf32> -> vector<8x256xf32>
    %7 = arith.addf %3, %6 : vector<8x256xf32>
    %c0_6 = arith.constant 0 : index
    %c0_7 = arith.constant 0 : index
    %8 = vector.load %arg4[%c0_6, %c0_7] : memref<8x256xf32, #tpu.memory_space<vmem>>, vector<8x256xf32>
    tpu.vector_store %arg4[%c0_6, %c0_7], %7 {strides = array<i32>} : memref<8x256xf32, #tpu.memory_space<vmem>>, vector<8x256xf32>,
    %c5_i32 = arith.constant 5 : i32
    %9 = arith.cmpi eq, %arg1, %c5_i32 : i32
    %10 = arith.extui %9 : i1 to i32
    %c0_i32_8 = arith.constant 0 : i32
    %11 = arith.cmpi ne, %10, %c0_i32_8 : i32
    scf.if %11 {
      %c0_9 = arith.constant 0 : index
      %c0_10 = arith.constant 0 : index
      %12 = vector.load %arg4[%c0_9, %c0_10] : memref<8x256xf32, #tpu.memory_space<vmem>>, vector<8x256xf32>
      %cst_11 = arith.constant dense<0.000000e+00> : vector<256xf32>
      %13 = vector.multi_reduction <add>, %12, %cst_11 [0] : vector<8x256xf32> to vector<256xf32>
      %14 = vector.shape_cast %13 : vector<256xf32> to vector<1x256xf32>
      %15 = arith.mulf %12, %12 : vector<8x256xf32>
      %cst_12 = arith.constant dense<0.000000e+00> : vector<256xf32>
      %16 = vector.multi_reduction <add>, %15, %cst_12 [0] : vector<8x256xf32> to vector<256xf32>
      %17 = vector.shape_cast %16 : vector<256xf32> to vector<1x256xf32>
      %18 = tpu.concatenate %14, %17 in 0 : vector<1x256xf32>, vector<1x256xf32> -> vector<2x256xf32>
      %19 = vector.shape_cast %18 : vector<2x256xf32> to vector<1x2x256xf32>
      %c0_13 = arith.constant 0 : index
      %c0_14 = arith.constant 0 : index
      %c0_15 = arith.constant 0 : index
      %20 = vector.load %arg5[%c0_13, %c0_14, %c0_15] : memref<1x2x256xf32, #tpu.memory_space<vmem>>, vector<1x2x256xf32>
      tpu.vector_store %arg5[%c0_13, %c0_14, %c0_15], %19 {strides = array<i32>} : memref<1x2x256xf32, #tpu.memory_space<vmem>>, vector<1x2x256xf32>,
    } else {
    }
    return
  }
  func.func @transform_0(%arg0: i32, %arg1: i32) -> (i32, i32) {
    %c0_i32 = arith.constant 0 : i32
    return %arg0, %arg1 : i32, i32
  }
  func.func @transform_1(%arg0: i32, %arg1: i32) -> (i32, i32) {
    %c0_i32 = arith.constant 0 : i32
    %c0_i32_0 = arith.constant 0 : i32
    return %arg1, %c0_i32 : i32, i32
  }
  func.func @transform_2(%arg0: i32, %arg1: i32) -> (i32, i32) {
    %c0_i32 = arith.constant 0 : i32
    %c0_i32_0 = arith.constant 0 : i32
    return %arg0, %c0_i32 : i32, i32
  }
  func.func @transform_3(%arg0: i32, %arg1: i32) -> (i32, i32, i32) {
    %c0_i32 = arith.constant 0 : i32
    %c0_i32_0 = arith.constant 0 : i32
    %c0_i32_1 = arith.constant 0 : i32
    return %arg0, %c0_i32, %c0_i32_0 : i32, i32, i32
  }
}

module attributes {stable_mosaic.version = 11 : i64} {
  func.func @kernel(%arg0: i32, %arg1: memref<8x256xf32, #tpu.memory_space<vmem>>, %arg2: memref<1x256xf32, #tpu.memory_space<vmem>>, %arg3: memref<1x256xf32, #tpu.memory_space<vmem>>, %arg4: memref<8x256xbf16, #tpu.memory_space<vmem>>, %arg5: memref<8x256xbf16, #tpu.memory_space<vmem>>) attributes {dimension_semantics = [#tpu.dimension_semantics<parallel>], iteration_bounds = array<i64: 1>, scalar_prefetch = 0 : i64, scratch_operands = 0 : i64, tpu.core_type = #tpu.core_type<tc>, window_params = [{transform_indices = @transform_0, window_bounds = array<i64: 8, 256>}, {pipeline_mode = #tpu.pipeline_mode<synchronous>, transform_indices = @transform_1, window_bounds = array<i64: 1, 256>}, {pipeline_mode = #tpu.pipeline_mode<synchronous>, transform_indices = @transform_2, window_bounds = array<i64: 1, 256>}, {transform_indices = @transform_3, window_bounds = array<i64: 8, 256>}, {transform_indices = @transform_4, window_bounds = array<i64: 8, 256>}]} {
    %c0 = arith.constant 0 : index
    %c0_0 = arith.constant 0 : index
    %0 = vector.load %arg1[%c0, %c0_0] : memref<8x256xf32, #tpu.memory_space<vmem>>, vector<8x256xf32>
    %c0_1 = arith.constant 0 : index
    %c0_2 = arith.constant 0 : index
    %1 = vector.load %arg2[%c0_1, %c0_2] : memref<1x256xf32, #tpu.memory_space<vmem>>, vector<1x256xf32>
    %2 = vector.broadcast %1 : vector<1x256xf32> to vector<8x256xf32>
    %3 = arith.mulf %0, %2 : vector<8x256xf32>
    %c0_3 = arith.constant 0 : index
    %c0_4 = arith.constant 0 : index
    %4 = vector.load %arg3[%c0_3, %c0_4] : memref<1x256xf32, #tpu.memory_space<vmem>>, vector<1x256xf32>
    %5 = vector.broadcast %4 : vector<1x256xf32> to vector<8x256xf32>
    %6 = arith.addf %3, %5 : vector<8x256xf32>
    %c0_5 = arith.constant 0 : index
    %c0_6 = arith.constant 0 : index
    %7 = vector.load %arg4[%c0_5, %c0_6] : memref<8x256xbf16, #tpu.memory_space<vmem>>, vector<8x256xbf16>
    %8 = arith.extf %7 : vector<8x256xbf16> to vector<8x256xf32>
    %9 = arith.addf %6, %8 : vector<8x256xf32>
    %cst = arith.constant 0.000000e+00 : f32
    %10 = vector.broadcast %cst : f32 to vector<8x256xf32>
    %11 = arith.maximumf %9, %10 : vector<8x256xf32>
    %12 = arith.truncf %11 : vector<8x256xf32> to vector<8x256xbf16>
    %c0_7 = arith.constant 0 : index
    %c0_8 = arith.constant 0 : index
    %13 = vector.load %arg5[%c0_7, %c0_8] : memref<8x256xbf16, #tpu.memory_space<vmem>>, vector<8x256xbf16>
    tpu.vector_store %arg5[%c0_7, %c0_8], %12 {strides = array<i32>} : memref<8x256xbf16, #tpu.memory_space<vmem>>, vector<8x256xbf16>,
    return
  }
  func.func @transform_0(%arg0: i32) -> (i32, i32) {
    %c0_i32 = arith.constant 0 : i32
    %c0_i32_0 = arith.constant 0 : i32
    return %arg0, %c0_i32 : i32, i32
  }
  func.func @transform_1(%arg0: i32) -> (i32, i32) {
    %c0_i32 = arith.constant 0 : i32
    %c0_i32_0 = arith.constant 0 : i32
    %c0_i32_1 = arith.constant 0 : i32
    return %c0_i32, %c0_i32_0 : i32, i32
  }
  func.func @transform_2(%arg0: i32) -> (i32, i32) {
    %c0_i32 = arith.constant 0 : i32
    %c0_i32_0 = arith.constant 0 : i32
    %c0_i32_1 = arith.constant 0 : i32
    return %c0_i32, %c0_i32_0 : i32, i32
  }
  func.func @transform_3(%arg0: i32) -> (i32, i32) {
    %c0_i32 = arith.constant 0 : i32
    %c0_i32_0 = arith.constant 0 : i32
    return %arg0, %c0_i32 : i32, i32
  }
  func.func @transform_4(%arg0: i32) -> (i32, i32) {
    %c0_i32 = arith.constant 0 : i32
    %c0_i32_0 = arith.constant 0 : i32
    return %arg0, %c0_i32 : i32, i32
  }
}

module attributes {stable_mosaic.version = 11 : i64} {
  func.func @_matmul_stats_kernel(%arg0: i32, %arg1: i32, %arg2: memref<8x256xbf16, #tpu.memory_space<vmem>>, %arg3: memref<256x512xbf16, #tpu.memory_space<vmem>>, %arg4: memref<8x512xf32, #tpu.memory_space<vmem>>, %arg5: memref<1x2x512xf32, #tpu.memory_space<vmem>>) attributes {dimension_semantics = [#tpu.dimension_semantics<parallel>, #tpu.dimension_semantics<arbitrary>], iteration_bounds = array<i64: 1, 1>, scalar_prefetch = 0 : i64, scratch_operands = 0 : i64, tpu.core_type = #tpu.core_type<tc>, window_params = [{transform_indices = @transform_0, window_bounds = array<i64: 8, 256>}, {transform_indices = @transform_1, window_bounds = array<i64: 256, 512>}, {transform_indices = @transform_2, window_bounds = array<i64: 8, 512>}, {transform_indices = @transform_3, window_bounds = array<i64: 1, 2, 512>}]} {
    %c0_i32 = arith.constant 0 : i32
    %0 = arith.cmpi eq, %arg1, %c0_i32 : i32
    %1 = arith.extui %0 : i1 to i32
    %c0_i32_0 = arith.constant 0 : i32
    %2 = arith.cmpi ne, %1, %c0_i32_0 : i32
    scf.if %2 {
      %cst_10 = arith.constant 0.000000e+00 : f32
      %12 = vector.broadcast %cst_10 : f32 to vector<8x512xf32>
      %c0_11 = arith.constant 0 : index
      %c0_12 = arith.constant 0 : index
      %13 = vector.load %arg4[%c0_11, %c0_12] : memref<8x512xf32, #tpu.memory_space<vmem>>, vector<8x512xf32>
      tpu.vector_store %arg4[%c0_11, %c0_12], %12 {strides = array<i32>} : memref<8x512xf32, #tpu.memory_space<vmem>>, vector<8x512xf32>,
    } else {
    }
    %c0 = arith.constant 0 : index
    %c0_1 = arith.constant 0 : index
    %3 = vector.load %arg4[%c0, %c0_1] : memref<8x512xf32, #tpu.memory_space<vmem>>, vector<8x512xf32>
    %c0_2 = arith.constant 0 : index
    %c0_3 = arith.constant 0 : index
    %4 = vector.load %arg2[%c0_2, %c0_3] : memref<8x256xbf16, #tpu.memory_space<vmem>>, vector<8x256xbf16>
    %c0_4 = arith.constant 0 : index
    %c0_5 = arith.constant 0 : index
    %5 = vector.load %arg3[%c0_4, %c0_5] : memref<256x512xbf16, #tpu.memory_space<vmem>>, vector<256x512xbf16>
    %cst = arith.constant dense<0.000000e+00> : vector<8x512xf32>
    %6 = tpu.matmul %4, %5, %cst {dimension_numbers = #tpu.dot_dimension_numbers<[1], [0], [0], [1], [0, 0, 1, 1], [], []>} : vector<8x256xbf16>, vector<256x512xbf16>, vector<8x512xf32> -> vector<8x512xf32>
    %7 = arith.addf %3, %6 : vector<8x512xf32>
    %c0_6 = arith.constant 0 : index
    %c0_7 = arith.constant 0 : index
    %8 = vector.load %arg4[%c0_6, %c0_7] : memref<8x512xf32, #tpu.memory_space<vmem>>, vector<8x512xf32>
    tpu.vector_store %arg4[%c0_6, %c0_7], %7 {strides = array<i32>} : memref<8x512xf32, #tpu.memory_space<vmem>>, vector<8x512xf32>,
    %c0_i32_8 = arith.constant 0 : i32
    %9 = arith.cmpi eq, %arg1, %c0_i32_8 : i32
    %10 = arith.extui %9 : i1 to i32
    %c0_i32_9 = arith.constant 0 : i32
    %11 = arith.cmpi ne, %10, %c0_i32_9 : i32
    scf.if %11 {
      %c0_10 = arith.constant 0 : index
      %c0_11 = arith.constant 0 : index
      %12 = vector.load %arg4[%c0_10, %c0_11] : memref<8x512xf32, #tpu.memory_space<vmem>>, vector<8x512xf32>
      %cst_12 = arith.constant dense<0.000000e+00> : vector<512xf32>
      %13 = vector.multi_reduction <add>, %12, %cst_12 [0] : vector<8x512xf32> to vector<512xf32>
      %14 = vector.shape_cast %13 : vector<512xf32> to vector<1x512xf32>
      %15 = arith.mulf %12, %12 : vector<8x512xf32>
      %cst_13 = arith.constant dense<0.000000e+00> : vector<512xf32>
      %16 = vector.multi_reduction <add>, %15, %cst_13 [0] : vector<8x512xf32> to vector<512xf32>
      %17 = vector.shape_cast %16 : vector<512xf32> to vector<1x512xf32>
      %18 = tpu.concatenate %14, %17 in 0 : vector<1x512xf32>, vector<1x512xf32> -> vector<2x512xf32>
      %19 = vector.shape_cast %18 : vector<2x512xf32> to vector<1x2x512xf32>
      %c0_14 = arith.constant 0 : index
      %c0_15 = arith.constant 0 : index
      %c0_16 = arith.constant 0 : index
      %20 = vector.load %arg5[%c0_14, %c0_15, %c0_16] : memref<1x2x512xf32, #tpu.memory_space<vmem>>, vector<1x2x512xf32>
      tpu.vector_store %arg5[%c0_14, %c0_15, %c0_16], %19 {strides = array<i32>} : memref<1x2x512xf32, #tpu.memory_space<vmem>>, vector<1x2x512xf32>,
    } else {
    }
    return
  }
  func.func @transform_0(%arg0: i32, %arg1: i32) -> (i32, i32) {
    %c0_i32 = arith.constant 0 : i32
    return %arg0, %arg1 : i32, i32
  }
  func.func @transform_1(%arg0: i32, %arg1: i32) -> (i32, i32) {
    %c0_i32 = arith.constant 0 : i32
    %c0_i32_0 = arith.constant 0 : i32
    return %arg1, %c0_i32 : i32, i32
  }
  func.func @transform_2(%arg0: i32, %arg1: i32) -> (i32, i32) {
    %c0_i32 = arith.constant 0 : i32
    %c0_i32_0 = arith.constant 0 : i32
    return %arg0, %c0_i32 : i32, i32
  }
  func.func @transform_3(%arg0: i32, %arg1: i32) -> (i32, i32, i32) {
    %c0_i32 = arith.constant 0 : i32
    %c0_i32_0 = arith.constant 0 : i32
    %c0_i32_1 = arith.constant 0 : i32
    return %arg0, %c0_i32, %c0_i32_0 : i32, i32, i32
  }
}

module attributes {stable_mosaic.version = 11 : i64} {
  func.func @kernel(%arg0: i32, %arg1: memref<8x512xf32, #tpu.memory_space<vmem>>, %arg2: memref<1x512xf32, #tpu.memory_space<vmem>>, %arg3: memref<1x512xf32, #tpu.memory_space<vmem>>, %arg4: memref<8x512xbf16, #tpu.memory_space<vmem>>) attributes {dimension_semantics = [#tpu.dimension_semantics<parallel>], iteration_bounds = array<i64: 1>, scalar_prefetch = 0 : i64, scratch_operands = 0 : i64, tpu.core_type = #tpu.core_type<tc>, window_params = [{transform_indices = @transform_0, window_bounds = array<i64: 8, 512>}, {pipeline_mode = #tpu.pipeline_mode<synchronous>, transform_indices = @transform_1, window_bounds = array<i64: 1, 512>}, {pipeline_mode = #tpu.pipeline_mode<synchronous>, transform_indices = @transform_2, window_bounds = array<i64: 1, 512>}, {transform_indices = @transform_3, window_bounds = array<i64: 8, 512>}]} {
    %c0 = arith.constant 0 : index
    %c0_0 = arith.constant 0 : index
    %0 = vector.load %arg1[%c0, %c0_0] : memref<8x512xf32, #tpu.memory_space<vmem>>, vector<8x512xf32>
    %c0_1 = arith.constant 0 : index
    %c0_2 = arith.constant 0 : index
    %1 = vector.load %arg2[%c0_1, %c0_2] : memref<1x512xf32, #tpu.memory_space<vmem>>, vector<1x512xf32>
    %2 = vector.broadcast %1 : vector<1x512xf32> to vector<8x512xf32>
    %3 = arith.mulf %0, %2 : vector<8x512xf32>
    %c0_3 = arith.constant 0 : index
    %c0_4 = arith.constant 0 : index
    %4 = vector.load %arg3[%c0_3, %c0_4] : memref<1x512xf32, #tpu.memory_space<vmem>>, vector<1x512xf32>
    %5 = vector.broadcast %4 : vector<1x512xf32> to vector<8x512xf32>
    %6 = arith.addf %3, %5 : vector<8x512xf32>
    %7 = arith.truncf %6 : vector<8x512xf32> to vector<8x512xbf16>
    %c0_5 = arith.constant 0 : index
    %c0_6 = arith.constant 0 : index
    %8 = vector.load %arg4[%c0_5, %c0_6] : memref<8x512xbf16, #tpu.memory_space<vmem>>, vector<8x512xbf16>
    tpu.vector_store %arg4[%c0_5, %c0_6], %7 {strides = array<i32>} : memref<8x512xbf16, #tpu.memory_space<vmem>>, vector<8x512xbf16>,
    return
  }
  func.func @transform_0(%arg0: i32) -> (i32, i32) {
    %c0_i32 = arith.constant 0 : i32
    %c0_i32_0 = arith.constant 0 : i32
    return %arg0, %c0_i32 : i32, i32
  }
  func.func @transform_1(%arg0: i32) -> (i32, i32) {
    %c0_i32 = arith.constant 0 : i32
    %c0_i32_0 = arith.constant 0 : i32
    %c0_i32_1 = arith.constant 0 : i32
    return %c0_i32, %c0_i32_0 : i32, i32
  }
  func.func @transform_2(%arg0: i32) -> (i32, i32) {
    %c0_i32 = arith.constant 0 : i32
    %c0_i32_0 = arith.constant 0 : i32
    %c0_i32_1 = arith.constant 0 : i32
    return %c0_i32, %c0_i32_0 : i32, i32
  }
  func.func @transform_3(%arg0: i32) -> (i32, i32) {
    %c0_i32 = arith.constant 0 : i32
    %c0_i32_0 = arith.constant 0 : i32
    return %arg0, %c0_i32 : i32, i32
  }
}

module attributes {stable_mosaic.version = 11 : i64} {
  func.func @_matmul_stats_kernel(%arg0: i32, %arg1: i32, %arg2: memref<8x384xbf16, #tpu.memory_space<vmem>>, %arg3: memref<384x512xbf16, #tpu.memory_space<vmem>>, %arg4: memref<8x512xf32, #tpu.memory_space<vmem>>, %arg5: memref<1x2x512xf32, #tpu.memory_space<vmem>>) attributes {dimension_semantics = [#tpu.dimension_semantics<parallel>, #tpu.dimension_semantics<arbitrary>], iteration_bounds = array<i64: 1, 6>, scalar_prefetch = 0 : i64, scratch_operands = 0 : i64, tpu.core_type = #tpu.core_type<tc>, window_params = [{transform_indices = @transform_0, window_bounds = array<i64: 8, 384>}, {transform_indices = @transform_1, window_bounds = array<i64: 384, 512>}, {transform_indices = @transform_2, window_bounds = array<i64: 8, 512>}, {transform_indices = @transform_3, window_bounds = array<i64: 1, 2, 512>}]} {
    %c0_i32 = arith.constant 0 : i32
    %0 = arith.cmpi eq, %arg1, %c0_i32 : i32
    %1 = arith.extui %0 : i1 to i32
    %c0_i32_0 = arith.constant 0 : i32
    %2 = arith.cmpi ne, %1, %c0_i32_0 : i32
    scf.if %2 {
      %cst_9 = arith.constant 0.000000e+00 : f32
      %12 = vector.broadcast %cst_9 : f32 to vector<8x512xf32>
      %c0_10 = arith.constant 0 : index
      %c0_11 = arith.constant 0 : index
      %13 = vector.load %arg4[%c0_10, %c0_11] : memref<8x512xf32, #tpu.memory_space<vmem>>, vector<8x512xf32>
      tpu.vector_store %arg4[%c0_10, %c0_11], %12 {strides = array<i32>} : memref<8x512xf32, #tpu.memory_space<vmem>>, vector<8x512xf32>,
    } else {
    }
    %c0 = arith.constant 0 : index
    %c0_1 = arith.constant 0 : index
    %3 = vector.load %arg4[%c0, %c0_1] : memref<8x512xf32, #tpu.memory_space<vmem>>, vector<8x512xf32>
    %c0_2 = arith.constant 0 : index
    %c0_3 = arith.constant 0 : index
    %4 = vector.load %arg2[%c0_2, %c0_3] : memref<8x384xbf16, #tpu.memory_space<vmem>>, vector<8x384xbf16>
    %c0_4 = arith.constant 0 : index
    %c0_5 = arith.constant 0 : index
    %5 = vector.load %arg3[%c0_4, %c0_5] : memref<384x512xbf16, #tpu.memory_space<vmem>>, vector<384x512xbf16>
    %cst = arith.constant dense<0.000000e+00> : vector<8x512xf32>
    %6 = tpu.matmul %4, %5, %cst {dimension_numbers = #tpu.dot_dimension_numbers<[1], [0], [0], [1], [0, 0, 1, 1], [], []>} : vector<8x384xbf16>, vector<384x512xbf16>, vector<8x512xf32> -> vector<8x512xf32>
    %7 = arith.addf %3, %6 : vector<8x512xf32>
    %c0_6 = arith.constant 0 : index
    %c0_7 = arith.constant 0 : index
    %8 = vector.load %arg4[%c0_6, %c0_7] : memref<8x512xf32, #tpu.memory_space<vmem>>, vector<8x512xf32>
    tpu.vector_store %arg4[%c0_6, %c0_7], %7 {strides = array<i32>} : memref<8x512xf32, #tpu.memory_space<vmem>>, vector<8x512xf32>,
    %c5_i32 = arith.constant 5 : i32
    %9 = arith.cmpi eq, %arg1, %c5_i32 : i32
    %10 = arith.extui %9 : i1 to i32
    %c0_i32_8 = arith.constant 0 : i32
    %11 = arith.cmpi ne, %10, %c0_i32_8 : i32
    scf.if %11 {
      %c0_9 = arith.constant 0 : index
      %c0_10 = arith.constant 0 : index
      %12 = vector.load %arg4[%c0_9, %c0_10] : memref<8x512xf32, #tpu.memory_space<vmem>>, vector<8x512xf32>
      %cst_11 = arith.constant dense<0.000000e+00> : vector<512xf32>
      %13 = vector.multi_reduction <add>, %12, %cst_11 [0] : vector<8x512xf32> to vector<512xf32>
      %14 = vector.shape_cast %13 : vector<512xf32> to vector<1x512xf32>
      %15 = arith.mulf %12, %12 : vector<8x512xf32>
      %cst_12 = arith.constant dense<0.000000e+00> : vector<512xf32>
      %16 = vector.multi_reduction <add>, %15, %cst_12 [0] : vector<8x512xf32> to vector<512xf32>
      %17 = vector.shape_cast %16 : vector<512xf32> to vector<1x512xf32>
      %18 = tpu.concatenate %14, %17 in 0 : vector<1x512xf32>, vector<1x512xf32> -> vector<2x512xf32>
      %19 = vector.shape_cast %18 : vector<2x512xf32> to vector<1x2x512xf32>
      %c0_13 = arith.constant 0 : index
      %c0_14 = arith.constant 0 : index
      %c0_15 = arith.constant 0 : index
      %20 = vector.load %arg5[%c0_13, %c0_14, %c0_15] : memref<1x2x512xf32, #tpu.memory_space<vmem>>, vector<1x2x512xf32>
      tpu.vector_store %arg5[%c0_13, %c0_14, %c0_15], %19 {strides = array<i32>} : memref<1x2x512xf32, #tpu.memory_space<vmem>>, vector<1x2x512xf32>,
    } else {
    }
    return
  }
  func.func @transform_0(%arg0: i32, %arg1: i32) -> (i32, i32) {
    %c0_i32 = arith.constant 0 : i32
    return %arg0, %arg1 : i32, i32
  }
  func.func @transform_1(%arg0: i32, %arg1: i32) -> (i32, i32) {
    %c0_i32 = arith.constant 0 : i32
    %c0_i32_0 = arith.constant 0 : i32
    return %arg1, %c0_i32 : i32, i32
  }
  func.func @transform_2(%arg0: i32, %arg1: i32) -> (i32, i32) {
    %c0_i32 = arith.constant 0 : i32
    %c0_i32_0 = arith.constant 0 : i32
    return %arg0, %c0_i32 : i32, i32
  }
  func.func @transform_3(%arg0: i32, %arg1: i32) -> (i32, i32, i32) {
    %c0_i32 = arith.constant 0 : i32
    %c0_i32_0 = arith.constant 0 : i32
    %c0_i32_1 = arith.constant 0 : i32
    return %arg0, %c0_i32, %c0_i32_0 : i32, i32, i32
  }
}

module attributes {stable_mosaic.version = 11 : i64} {
  func.func @kernel(%arg0: i32, %arg1: memref<8x512xf32, #tpu.memory_space<vmem>>, %arg2: memref<1x512xf32, #tpu.memory_space<vmem>>, %arg3: memref<1x512xf32, #tpu.memory_space<vmem>>, %arg4: memref<8x512xbf16, #tpu.memory_space<vmem>>) attributes {dimension_semantics = [#tpu.dimension_semantics<parallel>], iteration_bounds = array<i64: 1>, scalar_prefetch = 0 : i64, scratch_operands = 0 : i64, tpu.core_type = #tpu.core_type<tc>, window_params = [{transform_indices = @transform_0, window_bounds = array<i64: 8, 512>}, {pipeline_mode = #tpu.pipeline_mode<synchronous>, transform_indices = @transform_1, window_bounds = array<i64: 1, 512>}, {pipeline_mode = #tpu.pipeline_mode<synchronous>, transform_indices = @transform_2, window_bounds = array<i64: 1, 512>}, {transform_indices = @transform_3, window_bounds = array<i64: 8, 512>}]} {
    %c0 = arith.constant 0 : index
    %c0_0 = arith.constant 0 : index
    %0 = vector.load %arg1[%c0, %c0_0] : memref<8x512xf32, #tpu.memory_space<vmem>>, vector<8x512xf32>
    %c0_1 = arith.constant 0 : index
    %c0_2 = arith.constant 0 : index
    %1 = vector.load %arg2[%c0_1, %c0_2] : memref<1x512xf32, #tpu.memory_space<vmem>>, vector<1x512xf32>
    %2 = vector.broadcast %1 : vector<1x512xf32> to vector<8x512xf32>
    %3 = arith.mulf %0, %2 : vector<8x512xf32>
    %c0_3 = arith.constant 0 : index
    %c0_4 = arith.constant 0 : index
    %4 = vector.load %arg3[%c0_3, %c0_4] : memref<1x512xf32, #tpu.memory_space<vmem>>, vector<1x512xf32>
    %5 = vector.broadcast %4 : vector<1x512xf32> to vector<8x512xf32>
    %6 = arith.addf %3, %5 : vector<8x512xf32>
    %cst = arith.constant 0.000000e+00 : f32
    %7 = vector.broadcast %cst : f32 to vector<8x512xf32>
    %8 = arith.maximumf %6, %7 : vector<8x512xf32>
    %9 = arith.truncf %8 : vector<8x512xf32> to vector<8x512xbf16>
    %c0_5 = arith.constant 0 : index
    %c0_6 = arith.constant 0 : index
    %10 = vector.load %arg4[%c0_5, %c0_6] : memref<8x512xbf16, #tpu.memory_space<vmem>>, vector<8x512xbf16>
    tpu.vector_store %arg4[%c0_5, %c0_6], %9 {strides = array<i32>} : memref<8x512xbf16, #tpu.memory_space<vmem>>, vector<8x512xbf16>,
    return
  }
  func.func @transform_0(%arg0: i32) -> (i32, i32) {
    %c0_i32 = arith.constant 0 : i32
    %c0_i32_0 = arith.constant 0 : i32
    return %arg0, %c0_i32 : i32, i32
  }
  func.func @transform_1(%arg0: i32) -> (i32, i32) {
    %c0_i32 = arith.constant 0 : i32
    %c0_i32_0 = arith.constant 0 : i32
    %c0_i32_1 = arith.constant 0 : i32
    return %c0_i32, %c0_i32_0 : i32, i32
  }
  func.func @transform_2(%arg0: i32) -> (i32, i32) {
    %c0_i32 = arith.constant 0 : i32
    %c0_i32_0 = arith.constant 0 : i32
    %c0_i32_1 = arith.constant 0 : i32
    return %c0_i32, %c0_i32_0 : i32, i32
  }
  func.func @transform_3(%arg0: i32) -> (i32, i32) {
    %c0_i32 = arith.constant 0 : i32
    %c0_i32_0 = arith.constant 0 : i32
    return %arg0, %c0_i32 : i32, i32
  }
}

module attributes {stable_mosaic.version = 11 : i64} {
  func.func @_matmul_stats_kernel(%arg0: i32, %arg1: i32, %arg2: memref<8x512xbf16, #tpu.memory_space<vmem>>, %arg3: memref<512x512xbf16, #tpu.memory_space<vmem>>, %arg4: memref<8x512xf32, #tpu.memory_space<vmem>>, %arg5: memref<1x2x512xf32, #tpu.memory_space<vmem>>) attributes {dimension_semantics = [#tpu.dimension_semantics<parallel>, #tpu.dimension_semantics<arbitrary>], iteration_bounds = array<i64: 1, 9>, scalar_prefetch = 0 : i64, scratch_operands = 0 : i64, tpu.core_type = #tpu.core_type<tc>, window_params = [{transform_indices = @transform_0, window_bounds = array<i64: 8, 512>}, {transform_indices = @transform_1, window_bounds = array<i64: 512, 512>}, {transform_indices = @transform_2, window_bounds = array<i64: 8, 512>}, {transform_indices = @transform_3, window_bounds = array<i64: 1, 2, 512>}]} {
    %c0_i32 = arith.constant 0 : i32
    %0 = arith.cmpi eq, %arg1, %c0_i32 : i32
    %1 = arith.extui %0 : i1 to i32
    %c0_i32_0 = arith.constant 0 : i32
    %2 = arith.cmpi ne, %1, %c0_i32_0 : i32
    scf.if %2 {
      %cst_9 = arith.constant 0.000000e+00 : f32
      %12 = vector.broadcast %cst_9 : f32 to vector<8x512xf32>
      %c0_10 = arith.constant 0 : index
      %c0_11 = arith.constant 0 : index
      %13 = vector.load %arg4[%c0_10, %c0_11] : memref<8x512xf32, #tpu.memory_space<vmem>>, vector<8x512xf32>
      tpu.vector_store %arg4[%c0_10, %c0_11], %12 {strides = array<i32>} : memref<8x512xf32, #tpu.memory_space<vmem>>, vector<8x512xf32>,
    } else {
    }
    %c0 = arith.constant 0 : index
    %c0_1 = arith.constant 0 : index
    %3 = vector.load %arg4[%c0, %c0_1] : memref<8x512xf32, #tpu.memory_space<vmem>>, vector<8x512xf32>
    %c0_2 = arith.constant 0 : index
    %c0_3 = arith.constant 0 : index
    %4 = vector.load %arg2[%c0_2, %c0_3] : memref<8x512xbf16, #tpu.memory_space<vmem>>, vector<8x512xbf16>
    %c0_4 = arith.constant 0 : index
    %c0_5 = arith.constant 0 : index
    %5 = vector.load %arg3[%c0_4, %c0_5] : memref<512x512xbf16, #tpu.memory_space<vmem>>, vector<512x512xbf16>
    %cst = arith.constant dense<0.000000e+00> : vector<8x512xf32>
    %6 = tpu.matmul %4, %5, %cst {dimension_numbers = #tpu.dot_dimension_numbers<[1], [0], [0], [1], [0, 0, 1, 1], [], []>} : vector<8x512xbf16>, vector<512x512xbf16>, vector<8x512xf32> -> vector<8x512xf32>
    %7 = arith.addf %3, %6 : vector<8x512xf32>
    %c0_6 = arith.constant 0 : index
    %c0_7 = arith.constant 0 : index
    %8 = vector.load %arg4[%c0_6, %c0_7] : memref<8x512xf32, #tpu.memory_space<vmem>>, vector<8x512xf32>
    tpu.vector_store %arg4[%c0_6, %c0_7], %7 {strides = array<i32>} : memref<8x512xf32, #tpu.memory_space<vmem>>, vector<8x512xf32>,
    %c8_i32 = arith.constant 8 : i32
    %9 = arith.cmpi eq, %arg1, %c8_i32 : i32
    %10 = arith.extui %9 : i1 to i32
    %c0_i32_8 = arith.constant 0 : i32
    %11 = arith.cmpi ne, %10, %c0_i32_8 : i32
    scf.if %11 {
      %c0_9 = arith.constant 0 : index
      %c0_10 = arith.constant 0 : index
      %12 = vector.load %arg4[%c0_9, %c0_10] : memref<8x512xf32, #tpu.memory_space<vmem>>, vector<8x512xf32>
      %cst_11 = arith.constant dense<0.000000e+00> : vector<512xf32>
      %13 = vector.multi_reduction <add>, %12, %cst_11 [0] : vector<8x512xf32> to vector<512xf32>
      %14 = vector.shape_cast %13 : vector<512xf32> to vector<1x512xf32>
      %15 = arith.mulf %12, %12 : vector<8x512xf32>
      %cst_12 = arith.constant dense<0.000000e+00> : vector<512xf32>
      %16 = vector.multi_reduction <add>, %15, %cst_12 [0] : vector<8x512xf32> to vector<512xf32>
      %17 = vector.shape_cast %16 : vector<512xf32> to vector<1x512xf32>
      %18 = tpu.concatenate %14, %17 in 0 : vector<1x512xf32>, vector<1x512xf32> -> vector<2x512xf32>
      %19 = vector.shape_cast %18 : vector<2x512xf32> to vector<1x2x512xf32>
      %c0_13 = arith.constant 0 : index
      %c0_14 = arith.constant 0 : index
      %c0_15 = arith.constant 0 : index
      %20 = vector.load %arg5[%c0_13, %c0_14, %c0_15] : memref<1x2x512xf32, #tpu.memory_space<vmem>>, vector<1x2x512xf32>
      tpu.vector_store %arg5[%c0_13, %c0_14, %c0_15], %19 {strides = array<i32>} : memref<1x2x512xf32, #tpu.memory_space<vmem>>, vector<1x2x512xf32>,
    } else {
    }
    return
  }
  func.func @transform_0(%arg0: i32, %arg1: i32) -> (i32, i32) {
    %c0_i32 = arith.constant 0 : i32
    return %arg0, %arg1 : i32, i32
  }
  func.func @transform_1(%arg0: i32, %arg1: i32) -> (i32, i32) {
    %c0_i32 = arith.constant 0 : i32
    %c0_i32_0 = arith.constant 0 : i32
    return %arg1, %c0_i32 : i32, i32
  }
  func.func @transform_2(%arg0: i32, %arg1: i32) -> (i32, i32) {
    %c0_i32 = arith.constant 0 : i32
    %c0_i32_0 = arith.constant 0 : i32
    return %arg0, %c0_i32 : i32, i32
  }
  func.func @transform_3(%arg0: i32, %arg1: i32) -> (i32, i32, i32) {
    %c0_i32 = arith.constant 0 : i32
    %c0_i32_0 = arith.constant 0 : i32
    %c0_i32_1 = arith.constant 0 : i32
    return %arg0, %c0_i32, %c0_i32_0 : i32, i32, i32
  }
}

module attributes {stable_mosaic.version = 11 : i64} {
  func.func @kernel(%arg0: i32, %arg1: memref<8x512xf32, #tpu.memory_space<vmem>>, %arg2: memref<1x512xf32, #tpu.memory_space<vmem>>, %arg3: memref<1x512xf32, #tpu.memory_space<vmem>>, %arg4: memref<8x512xbf16, #tpu.memory_space<vmem>>, %arg5: memref<8x512xbf16, #tpu.memory_space<vmem>>) attributes {dimension_semantics = [#tpu.dimension_semantics<parallel>], iteration_bounds = array<i64: 1>, scalar_prefetch = 0 : i64, scratch_operands = 0 : i64, tpu.core_type = #tpu.core_type<tc>, window_params = [{transform_indices = @transform_0, window_bounds = array<i64: 8, 512>}, {pipeline_mode = #tpu.pipeline_mode<synchronous>, transform_indices = @transform_1, window_bounds = array<i64: 1, 512>}, {pipeline_mode = #tpu.pipeline_mode<synchronous>, transform_indices = @transform_2, window_bounds = array<i64: 1, 512>}, {transform_indices = @transform_3, window_bounds = array<i64: 8, 512>}, {transform_indices = @transform_4, window_bounds = array<i64: 8, 512>}]} {
    %c0 = arith.constant 0 : index
    %c0_0 = arith.constant 0 : index
    %0 = vector.load %arg1[%c0, %c0_0] : memref<8x512xf32, #tpu.memory_space<vmem>>, vector<8x512xf32>
    %c0_1 = arith.constant 0 : index
    %c0_2 = arith.constant 0 : index
    %1 = vector.load %arg2[%c0_1, %c0_2] : memref<1x512xf32, #tpu.memory_space<vmem>>, vector<1x512xf32>
    %2 = vector.broadcast %1 : vector<1x512xf32> to vector<8x512xf32>
    %3 = arith.mulf %0, %2 : vector<8x512xf32>
    %c0_3 = arith.constant 0 : index
    %c0_4 = arith.constant 0 : index
    %4 = vector.load %arg3[%c0_3, %c0_4] : memref<1x512xf32, #tpu.memory_space<vmem>>, vector<1x512xf32>
    %5 = vector.broadcast %4 : vector<1x512xf32> to vector<8x512xf32>
    %6 = arith.addf %3, %5 : vector<8x512xf32>
    %c0_5 = arith.constant 0 : index
    %c0_6 = arith.constant 0 : index
    %7 = vector.load %arg4[%c0_5, %c0_6] : memref<8x512xbf16, #tpu.memory_space<vmem>>, vector<8x512xbf16>
    %8 = arith.extf %7 : vector<8x512xbf16> to vector<8x512xf32>
    %9 = arith.addf %6, %8 : vector<8x512xf32>
    %cst = arith.constant 0.000000e+00 : f32
    %10 = vector.broadcast %cst : f32 to vector<8x512xf32>
    %11 = arith.maximumf %9, %10 : vector<8x512xf32>
    %12 = arith.truncf %11 : vector<8x512xf32> to vector<8x512xbf16>
    %c0_7 = arith.constant 0 : index
    %c0_8 = arith.constant 0 : index
    %13 = vector.load %arg5[%c0_7, %c0_8] : memref<8x512xbf16, #tpu.memory_space<vmem>>, vector<8x512xbf16>
    tpu.vector_store %arg5[%c0_7, %c0_8], %12 {strides = array<i32>} : memref<8x512xbf16, #tpu.memory_space<vmem>>, vector<8x512xbf16>,
    return
  }
  func.func @transform_0(%arg0: i32) -> (i32, i32) {
    %c0_i32 = arith.constant 0 : i32
    %c0_i32_0 = arith.constant 0 : i32
    return %arg0, %c0_i32 : i32, i32
  }
  func.func @transform_1(%arg0: i32) -> (i32, i32) {
    %c0_i32 = arith.constant 0 : i32
    %c0_i32_0 = arith.constant 0 : i32
    %c0_i32_1 = arith.constant 0 : i32
    return %c0_i32, %c0_i32_0 : i32, i32
  }
  func.func @transform_2(%arg0: i32) -> (i32, i32) {
    %c0_i32 = arith.constant 0 : i32
    %c0_i32_0 = arith.constant 0 : i32
    %c0_i32_1 = arith.constant 0 : i32
    return %c0_i32, %c0_i32_0 : i32, i32
  }
  func.func @transform_3(%arg0: i32) -> (i32, i32) {
    %c0_i32 = arith.constant 0 : i32
    %c0_i32_0 = arith.constant 0 : i32
    return %arg0, %c0_i32 : i32, i32
  }
  func.func @transform_4(%arg0: i32) -> (i32, i32) {
    %c0_i32 = arith.constant 0 : i32
    %c0_i32_0 = arith.constant 0 : i32
    return %arg0, %c0_i32 : i32, i32
  }
}

</mosaic_0001>

<bundles_post_ra>
// kernel: resnet_forward.26
= control target key start
LH: loop header
LB: loop body
LE: loop exit
PB: predicated region body
PF: predicated region fallthrough
CT: control target
= control target key end

     0   :  { %s1375_s0 = inlined_call_operand.vmem [shape: f32[512,128], index: 0, kind: input, shape index: {}]   ;;  %s1376_s1 = inlined_call_operand.vmem [shape: f32[1,128], index: 1, kind: input, shape index: {}]   ;;  %s1377_s2 = inlined_call_operand.vmem [shape: f32[1,128], index: 2, kind: input, shape index: {}]   ;;  %s1378_s3 = inlined_call_operand.vmem [shape: bf16[512,128], index: 3, kind: output, shape index: {}]  }
   0x1   :  { %v14_v0 = vld [vmem:[%s1375_s0] sm:$0xff]  ;;  %v15_v1 = vld [vmem:[%s1375_s0 + $0x8] sm:$0xff]  ;;  %v16_v6 = vld [vmem:[%s1375_s0 + $0x10] sm:$0xff] }
   0x2   :  { %v958_v2 = vld [vmem:[%s1376_s1] ss:$0 sm:$0xff]  ;;  %v17_v7 = vld [vmem:[%s1375_s0 + $0x18] sm:$0xff]  ;;  %v19_v11 = vld [vmem:[%s1375_s0 + $0x28] sm:$0xff] }
   0x3   :  { %v85_v3 = vmul.f32 %v958_v2, %v14_v0  ;;  %v86_v4 = vmul.f32 %v958_v2, %v15_v1  ;;  %v965_v5 = vld [vmem:[%s1377_s2] ss:$0 sm:$0xff]  ;;  %v87_v8 = vmul.f32 %v958_v2, %v16_v6  ;;  %v88_v9 = vmul.f32 %v958_v2, %v17_v7  ;;  %v20_v12 = vld [vmem:[%s1375_s0 + $0x30] sm:$0xff]  ;;  %v21_v17 = vld [vmem:[%s1375_s0 + $0x38] sm:$0xff] }
   0x4   :  { %v18_v10 = vld [vmem:[%s1375_s0 + $0x20] sm:$0xff]  ;;  %v90_v16 = vmul.f32 %v958_v2, %v19_v11  ;;  %v91_v20 = vmul.f32 %v958_v2, %v20_v12  ;;  %v92_v21 = vmul.f32 %v958_v2, %v21_v17  ;;  %v23_v27 = vld [vmem:[%s1375_s0 + $0x48] sm:$0xff]  ;;  %v24_v32 = vld [vmem:[%s1375_s0 + $0x50] sm:$0xff] }
   0x5   :  { %v156_v13 = vadd.f32 %v965_v5, %v85_v3  ;;  %v157_v14 = vadd.f32 %v965_v5, %v86_v4  ;;  %v89_v15 = vmul.f32 %v958_v2, %v18_v10  ;;  %v158_v18 = vadd.f32 %v965_v5, %v87_v8  ;;  %v22_v22 = vld [vmem:[%s1375_s0 + $0x40] sm:$0xff]  ;;  %v25_v33 = vld [vmem:[%s1375_s0 + $0x58] sm:$0xff]  ;;  %v27_v39 = vld [vmem:[%s1375_s0 + $0x68] sm:$0xff] }
   0x6   :  { %v159_v19 = vadd.f32 %v965_v5, %v88_v9  ;;  %v161_v26 = vadd.f32 %v965_v5, %v90_v16  ;;  %v162_v30 = vadd.f32 %v965_v5, %v91_v20  ;;  %v163_v31 = vadd.f32 %v965_v5, %v92_v21  ;;  %v26_v38 = vld [vmem:[%s1375_s0 + $0x60] sm:$0xff]  ;;  %v28_v44 = vld [vmem:[%s1375_s0 + $0x70] sm:$0xff]  ;;  %v29_v49 = vld [vmem:[%s1375_s0 + $0x78] sm:$0xff] }
   0x7   :  { %v220_v23 = vmax.f32 %v156_v13, 0.0  ;;  %v221_v24 = vmax.f32 %v157_v14, 0.0  ;;  %v160_v25 = vadd.f32 %v965_v5, %v89_v15  ;;  %v222_v28 = vmax.f32 %v158_v18, 0.0  ;;  %v30_v54 = vld [vmem:[%s1375_s0 + $0x80] sm:$0xff]  ;;  %v31_v63 = vld [vmem:[%s1375_s0 + $0x88] sm:$0xff]  ;;  %v32_v6 = vld [vmem:[%s1375_s0 + $0x90] sm:$0xff] }
   0x8   :  { %v223_v29 = vmax.f32 %v159_v19, 0.0  ;;  %v225_v36 = vmax.f32 %v161_v26, 0.0  ;;  %v93_v37 = vmul.f32 %v958_v2, %v22_v22  ;;  %v226_v41 = vmax.f32 %v162_v30, 0.0  ;;  %v33_v7 = vld [vmem:[%s1375_s0 + $0x98] sm:$0xff]  ;;  %v34_v12 = vld [vmem:[%s1375_s0 + $0xa0] sm:$0xff]  ;;  %v35_v13 = vld [vmem:[%s1375_s0 + $0xa8] sm:$0xff] }
   0x9   :  { %v741_v34 = vpack.c.bf16 %v221_v24, %v220_v23  ;;  %v224_v35 = vmax.f32 %v160_v25, 0.0  ;;  %v227_v42 = vmax.f32 %v163_v31, 0.0  ;;  %v94_v43 = vmul.f32 %v958_v2, %v23_v27  ;;  %v36_v18 = vld [vmem:[%s1375_s0 + $0xb0] sm:$0xff]  ;;  %v37_v23 = vld [vmem:[%s1375_s0 + $0xb8] sm:$0xff] }
   0xa   :  { %v746_v40 = vpack.c.bf16 %v223_v29, %v222_v28  ;;  %v164_v46 = vadd.f32 %v965_v5, %v93_v37  ;;  %v95_v47 = vmul.f32 %v958_v2, %v24_v32  ;;  %v96_v48 = vmul.f32 %v958_v2, %v25_v33  ;;  %v38_v28 = vld [vmem:[%s1375_s0 + $0xc0] sm:$0xff]  ;;  %v39_v37 = vld [vmem:[%s1375_s0 + $0xc8] sm:$0xff] }
   0xb   :  { %742 = vst [vmem:[%s1378_s3] sm:$0xff] %v741_v34   ;;  %v751_v45 = vpack.c.bf16 %v225_v36, %v224_v35  ;;  %v756_v50 = vpack.c.bf16 %v227_v42, %v226_v41  ;;  %v165_v51 = vadd.f32 %v965_v5, %v94_v43  ;;  %v97_v52 = vmul.f32 %v958_v2, %v26_v38  ;;  %v40_v42 = vld [vmem:[%s1375_s0 + $0xd0] sm:$0xff]  ;;  %v41_v43 = vld [vmem:[%s1375_s0 + $0xd8] sm:$0xff] }
   0xc   :  { %898 = vst [vmem:[%s1378_s3 + $0x8] sm:$0xff] %v746_v40   ;;  %v98_v53 = vmul.f32 %v958_v2, %v27_v39  ;;  %v228_v55 = vmax.f32 %v164_v46, 0.0  ;;  %v166_v56 = vadd.f32 %v965_v5, %v95_v47  ;;  %v167_v57 = vadd.f32 %v965_v5, %v96_v48  ;;  %v42_v48 = vld [vmem:[%s1375_s0 + $0xe0] sm:$0xff] }
   0xd   :  { %899 = vst [vmem:[%s1378_s3 + $0x10] sm:$0xff] %v751_v45   ;;  %v99_v58 = vmul.f32 %v958_v2, %v28_v44  ;;  %900 = vst [vmem:[%s1378_s3 + $0x18] sm:$0xff] %v756_v50   ;;  %v229_v59 = vmax.f32 %v165_v51, 0.0  ;;  %v168_v60 = vadd.f32 %v965_v5, %v97_v52  ;;  %v100_v62 = vmul.f32 %v958_v2, %v29_v49  ;;  %v43_v49 = vld [vmem:[%s1375_s0 + $0xe8] sm:$0xff] }
   0xe   :  { %v169_v61 = vadd.f32 %v965_v5, %v98_v53  ;;  %v230_v0 = vmax.f32 %v166_v56, 0.0  ;;  %v231_v1 = vmax.f32 %v167_v57, 0.0  ;;  %v101_v4 = vmul.f32 %v958_v2, %v30_v54  ;;  %v44_v54 = vld [vmem:[%s1375_s0 + $0xf0] sm:$0xff] }
   0xf   :  { %v170_v3 = vadd.f32 %v965_v5, %v99_v58  ;;  %v761_v8 = vpack.c.bf16 %v229_v59, %v228_v55  ;;  %v232_v9 = vmax.f32 %v168_v60, 0.0  ;;  %v171_v11 = vadd.f32 %v965_v5, %v100_v62  ;;  %v45_v59 = vld [vmem:[%s1375_s0 + $0xf8] sm:$0xff] }
  0x10   :  { %v233_v10 = vmax.f32 %v169_v61, 0.0  ;;  %v766_v14 = vpack.c.bf16 %v231_v1, %v230_v0  ;;  %v102_v16 = vmul.f32 %v958_v2, %v31_v63  ;;  %v172_v17 = vadd.f32 %v965_v5, %v101_v4  ;;  %v46_v0 = vld [vmem:[%s1375_s0 + $0x100] sm:$0xff] }
  0x11   :  { %v234_v15 = vmax.f32 %v170_v3, 0.0  ;;  %901 = vst [vmem:[%s1378_s3 + $0x20] sm:$0xff] %v761_v8   ;;  %v235_v20 = vmax.f32 %v171_v11, 0.0  ;;  %v103_v21 = vmul.f32 %v958_v2, %v32_v6  ;;  %v104_v22 = vmul.f32 %v958_v2, %v33_v7  ;;  %v47_v11 = vld [vmem:[%s1375_s0 + $0x108] sm:$0xff] }
  0x12   :  { %v771_v19 = vpack.c.bf16 %v233_v10, %v232_v9  ;;  %902 = vst [vmem:[%s1378_s3 + $0x28] sm:$0xff] %v766_v14   ;;  %v173_v24 = vadd.f32 %v965_v5, %v102_v16  ;;  %v236_v25 = vmax.f32 %v172_v17, 0.0  ;;  %v105_v26 = vmul.f32 %v958_v2, %v34_v12  ;;  %v48_v16 = vld [vmem:[%s1375_s0 + $0x110] sm:$0xff]  ;;  %v49_v17 = vld [vmem:[%s1375_s0 + $0x118] sm:$0xff] }
  0x13   :  { %v106_v27 = vmul.f32 %v958_v2, %v35_v13  ;;  %v776_v29 = vpack.c.bf16 %v235_v20, %v234_v15  ;;  %v174_v30 = vadd.f32 %v965_v5, %v103_v21  ;;  %v175_v31 = vadd.f32 %v965_v5, %v104_v22  ;;  %v50_v22 = vld [vmem:[%s1375_s0 + $0x120] sm:$0xff] }
  0x14   :  { %903 = vst [vmem:[%s1378_s3 + $0x30] sm:$0xff] %v771_v19   ;;  %v107_v32 = vmul.f32 %v958_v2, %v36_v18  ;;  %v237_v33 = vmax.f32 %v173_v24, 0.0  ;;  %v176_v34 = vadd.f32 %v965_v5, %v105_v26  ;;  %v108_v36 = vmul.f32 %v958_v2, %v37_v23  ;;  %v51_v23 = vld [vmem:[%s1375_s0 + $0x128] sm:$0xff] }
  0x15   :  { %v177_v35 = vadd.f32 %v965_v5, %v106_v27  ;;  %904 = vst [vmem:[%s1378_s3 + $0x38] sm:$0xff] %v776_v29   ;;  %v238_v38 = vmax.f32 %v174_v30, 0.0  ;;  %v239_v39 = vmax.f32 %v175_v31, 0.0  ;;  %v109_v41 = vmul.f32 %v958_v2, %v38_v28  ;;  %v52_v28 = vld [vmem:[%s1375_s0 + $0x130] sm:$0xff] }
  0x16   :  { %v178_v40 = vadd.f32 %v965_v5, %v107_v32  ;;  %v781_v44 = vpack.c.bf16 %v237_v33, %v236_v25  ;;  %v240_v45 = vmax.f32 %v176_v34, 0.0  ;;  %v179_v47 = vadd.f32 %v965_v5, %v108_v36  ;;  %v53_v33 = vld [vmem:[%s1375_s0 + $0x138] sm:$0xff] }
  0x17   :  { %v241_v46 = vmax.f32 %v177_v35, 0.0  ;;  %v786_v50 = vpack.c.bf16 %v239_v39, %v238_v38  ;;  %v110_v52 = vmul.f32 %v958_v2, %v39_v37  ;;  %v180_v53 = vadd.f32 %v965_v5, %v109_v41  ;;  %v54_v38 = vld [vmem:[%s1375_s0 + $0x140] sm:$0xff] }
  0x18   :  { %v242_v51 = vmax.f32 %v178_v40, 0.0  ;;  %905 = vst [vmem:[%s1378_s3 + $0x40] sm:$0xff] %v781_v44   ;;  %v243_v56 = vmax.f32 %v179_v47, 0.0  ;;  %v111_v57 = vmul.f32 %v958_v2, %v40_v42  ;;  %v112_v58 = vmul.f32 %v958_v2, %v41_v43  ;;  %v55_v47 = vld [vmem:[%s1375_s0 + $0x148] sm:$0xff] }
  0x19   :  { %v791_v55 = vpack.c.bf16 %v241_v46, %v240_v45  ;;  %906 = vst [vmem:[%s1378_s3 + $0x48] sm:$0xff] %v786_v50   ;;  %v181_v60 = vadd.f32 %v965_v5, %v110_v52  ;;  %v244_v61 = vmax.f32 %v180_v53, 0.0  ;;  %v113_v62 = vmul.f32 %v958_v2, %v42_v48  ;;  %v56_v52 = vld [vmem:[%s1375_s0 + $0x150] sm:$0xff]  ;;  %v57_v53 = vld [vmem:[%s1375_s0 + $0x158] sm:$0xff] }
  0x1a   :  { %v114_v63 = vmul.f32 %v958_v2, %v43_v49  ;;  %v796_v1 = vpack.c.bf16 %v243_v56, %v242_v51  ;;  %v182_v3 = vadd.f32 %v965_v5, %v111_v57  ;;  %v183_v4 = vadd.f32 %v965_v5, %v112_v58  ;;  %v58_v58 = vld [vmem:[%s1375_s0 + $0x160] sm:$0xff] }
  0x1b   :  { %907 = vst [vmem:[%s1378_s3 + $0x50] sm:$0xff] %v791_v55   ;;  %v115_v6 = vmul.f32 %v958_v2, %v44_v54  ;;  %v245_v7 = vmax.f32 %v181_v60, 0.0  ;;  %v184_v8 = vadd.f32 %v965_v5, %v113_v62  ;;  %v116_v10 = vmul.f32 %v958_v2, %v45_v59  ;;  %v59_v59 = vld [vmem:[%s1375_s0 + $0x168] sm:$0xff] }
  0x1c   :  { %v185_v9 = vadd.f32 %v965_v5, %v114_v63  ;;  %908 = vst [vmem:[%s1378_s3 + $0x58] sm:$0xff] %v796_v1   ;;  %v246_v12 = vmax.f32 %v182_v3, 0.0  ;;  %v247_v13 = vmax.f32 %v183_v4, 0.0  ;;  %v117_v15 = vmul.f32 %v958_v2, %v46_v0  ;;  %v60_v0 = vld [vmem:[%s1375_s0 + $0x170] sm:$0xff] }
  0x1d   :  { %v186_v14 = vadd.f32 %v965_v5, %v115_v6  ;;  %v801_v18 = vpack.c.bf16 %v245_v7, %v244_v61  ;;  %v248_v19 = vmax.f32 %v184_v8, 0.0  ;;  %v187_v21 = vadd.f32 %v965_v5, %v116_v10  ;;  %v61_v7 = vld [vmem:[%s1375_s0 + $0x178] sm:$0xff] }
  0x1e   :  { %v249_v20 = vmax.f32 %v185_v9, 0.0  ;;  %v806_v24 = vpack.c.bf16 %v247_v13, %v246_v12  ;;  %v118_v26 = vmul.f32 %v958_v2, %v47_v11  ;;  %v188_v27 = vadd.f32 %v965_v5, %v117_v15  ;;  %v62_v12 = vld [vmem:[%s1375_s0 + $0x180] sm:$0xff] }
  0x1f   :  { %v250_v25 = vmax.f32 %v186_v14, 0.0  ;;  %909 = vst [vmem:[%s1378_s3 + $0x60] sm:$0xff] %v801_v18   ;;  %v251_v30 = vmax.f32 %v187_v21, 0.0  ;;  %v119_v31 = vmul.f32 %v958_v2, %v48_v16  ;;  %v120_v32 = vmul.f32 %v958_v2, %v49_v17  ;;  %v63_v21 = vld [vmem:[%s1375_s0 + $0x188] sm:$0xff] }
  0x20   :  { %v811_v29 = vpack.c.bf16 %v249_v20, %v248_v19  ;;  %910 = vst [vmem:[%s1378_s3 + $0x68] sm:$0xff] %v806_v24   ;;  %v189_v34 = vadd.f32 %v965_v5, %v118_v26  ;;  %v252_v35 = vmax.f32 %v188_v27, 0.0  ;;  %v121_v36 = vmul.f32 %v958_v2, %v50_v22  ;;  %v64_v26 = vld [vmem:[%s1375_s0 + $0x190] sm:$0xff]  ;;  %v65_v27 = vld [vmem:[%s1375_s0 + $0x198] sm:$0xff] }
  0x21   :  { %v122_v37 = vmul.f32 %v958_v2, %v51_v23  ;;  %v816_v39 = vpack.c.bf16 %v251_v30, %v250_v25  ;;  %v190_v40 = vadd.f32 %v965_v5, %v119_v31  ;;  %v191_v41 = vadd.f32 %v965_v5, %v120_v32  ;;  %v66_v32 = vld [vmem:[%s1375_s0 + $0x1a0] sm:$0xff] }
  0x22   :  { %911 = vst [vmem:[%s1378_s3 + $0x70] sm:$0xff] %v811_v29   ;;  %v123_v42 = vmul.f32 %v958_v2, %v52_v28  ;;  %v253_v43 = vmax.f32 %v189_v34, 0.0  ;;  %v192_v44 = vadd.f32 %v965_v5, %v121_v36  ;;  %v124_v46 = vmul.f32 %v958_v2, %v53_v33  ;;  %v67_v33 = vld [vmem:[%s1375_s0 + $0x1a8] sm:$0xff] }
  0x23   :  { %v193_v45 = vadd.f32 %v965_v5, %v122_v37  ;;  %912 = vst [vmem:[%s1378_s3 + $0x78] sm:$0xff] %v816_v39   ;;  %v254_v48 = vmax.f32 %v190_v40, 0.0  ;;  %v255_v49 = vmax.f32 %v191_v41, 0.0  ;;  %v125_v51 = vmul.f32 %v958_v2, %v54_v38  ;;  %v68_v38 = vld [vmem:[%s1375_s0 + $0x1b0] sm:$0xff] }
  0x24   :  { %v194_v50 = vadd.f32 %v965_v5, %v123_v42  ;;  %v821_v54 = vpack.c.bf16 %v253_v43, %v252_v35  ;;  %v256_v55 = vmax.f32 %v192_v44, 0.0  ;;  %v195_v57 = vadd.f32 %v965_v5, %v124_v46  ;;  %v69_v43 = vld [vmem:[%s1375_s0 + $0x1b8] sm:$0xff] }
  0x25   :  { %v257_v56 = vmax.f32 %v193_v45, 0.0  ;;  %v826_v60 = vpack.c.bf16 %v255_v49, %v254_v48  ;;  %v126_v62 = vmul.f32 %v958_v2, %v55_v47  ;;  %v196_v63 = vadd.f32 %v965_v5, %v125_v51  ;;  %v70_v48 = vld [vmem:[%s1375_s0 + $0x1c0] sm:$0xff] }
  0x26   :  { %v258_v61 = vmax.f32 %v194_v50, 0.0  ;;  %913 = vst [vmem:[%s1378_s3 + $0x80] sm:$0xff] %v821_v54   ;;  %v259_v3 = vmax.f32 %v195_v57, 0.0  ;;  %v127_v4 = vmul.f32 %v958_v2, %v56_v52  ;;  %v128_v6 = vmul.f32 %v958_v2, %v57_v53  ;;  %v71_v57 = vld [vmem:[%s1375_s0 + $0x1c8] sm:$0xff] }
  0x27   :  { %v831_v1 = vpack.c.bf16 %v257_v56, %v256_v55  ;;  %914 = vst [vmem:[%s1378_s3 + $0x88] sm:$0xff] %v826_v60   ;;  %v197_v8 = vadd.f32 %v965_v5, %v126_v62  ;;  %v260_v9 = vmax.f32 %v196_v63, 0.0  ;;  %v129_v10 = vmul.f32 %v958_v2, %v58_v58  ;;  %v72_v62 = vld [vmem:[%s1375_s0 + $0x1d0] sm:$0xff]  ;;  %v73_v63 = vld [vmem:[%s1375_s0 + $0x1d8] sm:$0xff] }
  0x28   :  { %v130_v11 = vmul.f32 %v958_v2, %v59_v59  ;;  %v836_v13 = vpack.c.bf16 %v259_v3, %v258_v61  ;;  %v198_v14 = vadd.f32 %v965_v5, %v127_v4  ;;  %v199_v15 = vadd.f32 %v965_v5, %v128_v6  ;;  %v74_v6 = vld [vmem:[%s1375_s0 + $0x1e0] sm:$0xff] }
  0x29   :  { %915 = vst [vmem:[%s1378_s3 + $0x90] sm:$0xff] %v831_v1   ;;  %v131_v16 = vmul.f32 %v958_v2, %v60_v0  ;;  %v261_v17 = vmax.f32 %v197_v8, 0.0  ;;  %v200_v18 = vadd.f32 %v965_v5, %v129_v10  ;;  %v132_v20 = vmul.f32 %v958_v2, %v61_v7  ;;  %v75_v7 = vld [vmem:[%s1375_s0 + $0x1e8] sm:$0xff] }
  0x2a   :  { %v201_v19 = vadd.f32 %v965_v5, %v130_v11  ;;  %916 = vst [vmem:[%s1378_s3 + $0x98] sm:$0xff] %v836_v13   ;;  %v262_v22 = vmax.f32 %v198_v14, 0.0  ;;  %v263_v23 = vmax.f32 %v199_v15, 0.0  ;;  %v133_v25 = vmul.f32 %v958_v2, %v62_v12  ;;  %v76_v12 = vld [vmem:[%s1375_s0 + $0x1f0] sm:$0xff] }
  0x2b   :  { %v202_v24 = vadd.f32 %v965_v5, %v131_v16  ;;  %v841_v28 = vpack.c.bf16 %v261_v17, %v260_v9  ;;  %v264_v29 = vmax.f32 %v200_v18, 0.0  ;;  %v203_v31 = vadd.f32 %v965_v5, %v132_v20  ;;  %v77_v17 = vld [vmem:[%s1375_s0 + $0x1f8] sm:$0xff] }
  0x2c   :  { %v265_v30 = vmax.f32 %v201_v19, 0.0  ;;  %v846_v34 = vpack.c.bf16 %v263_v23, %v262_v22  ;;  %v134_v36 = vmul.f32 %v958_v2, %v63_v21  ;;  %v204_v37 = vadd.f32 %v965_v5, %v133_v25 }
  0x2d   :  { %v266_v35 = vmax.f32 %v202_v24, 0.0  ;;  %917 = vst [vmem:[%s1378_s3 + $0xa0] sm:$0xff] %v841_v28   ;;  %v267_v40 = vmax.f32 %v203_v31, 0.0  ;;  %v135_v41 = vmul.f32 %v958_v2, %v64_v26  ;;  %v136_v42 = vmul.f32 %v958_v2, %v65_v27 }
  0x2e   :  { %v851_v39 = vpack.c.bf16 %v265_v30, %v264_v29  ;;  %918 = vst [vmem:[%s1378_s3 + $0xa8] sm:$0xff] %v846_v34   ;;  %v205_v44 = vadd.f32 %v965_v5, %v134_v36  ;;  %v268_v45 = vmax.f32 %v204_v37, 0.0  ;;  %v137_v46 = vmul.f32 %v958_v2, %v66_v32 }
  0x2f   :  { %v138_v47 = vmul.f32 %v958_v2, %v67_v33  ;;  %v856_v49 = vpack.c.bf16 %v267_v40, %v266_v35  ;;  %v206_v50 = vadd.f32 %v965_v5, %v135_v41  ;;  %v207_v51 = vadd.f32 %v965_v5, %v136_v42 }
  0x30   :  { %919 = vst [vmem:[%s1378_s3 + $0xb0] sm:$0xff] %v851_v39   ;;  %v139_v52 = vmul.f32 %v958_v2, %v68_v38  ;;  %v269_v53 = vmax.f32 %v205_v44, 0.0  ;;  %v208_v54 = vadd.f32 %v965_v5, %v137_v46  ;;  %v140_v56 = vmul.f32 %v958_v2, %v69_v43 }
  0x31   :  { %v209_v55 = vadd.f32 %v965_v5, %v138_v47  ;;  %920 = vst [vmem:[%s1378_s3 + $0xb8] sm:$0xff] %v856_v49   ;;  %v270_v58 = vmax.f32 %v206_v50, 0.0  ;;  %v271_v59 = vmax.f32 %v207_v51, 0.0  ;;  %v141_v61 = vmul.f32 %v958_v2, %v70_v48 }
  0x32   :  { %v210_v60 = vadd.f32 %v965_v5, %v139_v52  ;;  %v861_v0 = vpack.c.bf16 %v269_v53, %v268_v45  ;;  %v272_v1 = vmax.f32 %v208_v54, 0.0  ;;  %v211_v4 = vadd.f32 %v965_v5, %v140_v56 }
  0x33   :  { %v273_v3 = vmax.f32 %v209_v55, 0.0  ;;  %v866_v8 = vpack.c.bf16 %v271_v59, %v270_v58  ;;  %v142_v10 = vmul.f32 %v958_v2, %v71_v57  ;;  %v212_v11 = vadd.f32 %v965_v5, %v141_v61 }
  0x34   :  { %v274_v9 = vmax.f32 %v210_v60, 0.0  ;;  %921 = vst [vmem:[%s1378_s3 + $0xc0] sm:$0xff] %v861_v0   ;;  %v275_v14 = vmax.f32 %v211_v4, 0.0  ;;  %v143_v15 = vmul.f32 %v958_v2, %v72_v62  ;;  %v144_v16 = vmul.f32 %v958_v2, %v73_v63 }
  0x35   :  { %v871_v13 = vpack.c.bf16 %v273_v3, %v272_v1  ;;  %922 = vst [vmem:[%s1378_s3 + $0xc8] sm:$0xff] %v866_v8   ;;  %v213_v18 = vadd.f32 %v965_v5, %v142_v10  ;;  %v276_v19 = vmax.f32 %v212_v11, 0.0  ;;  %v145_v20 = vmul.f32 %v958_v2, %v74_v6 }
  0x36   :  { %v146_v21 = vmul.f32 %v958_v2, %v75_v7  ;;  %v876_v22 = vpack.c.bf16 %v275_v14, %v274_v9  ;;  %v214_v23 = vadd.f32 %v965_v5, %v143_v15  ;;  %v215_v24 = vadd.f32 %v965_v5, %v144_v16 }
  0x37   :  { %923 = vst [vmem:[%s1378_s3 + $0xd0] sm:$0xff] %v871_v13   ;;  %v147_v25 = vmul.f32 %v958_v2, %v76_v12  ;;  %v277_v26 = vmax.f32 %v213_v18, 0.0  ;;  %v216_v27 = vadd.f32 %v965_v5, %v145_v20  ;;  %v148_v29 = vmul.f32 %v958_v2, %v77_v17 }
  0x38   :  { %v217_v28 = vadd.f32 %v965_v5, %v146_v21  ;;  %924 = vst [vmem:[%s1378_s3 + $0xd8] sm:$0xff] %v876_v22   ;;  %v278_v30 = vmax.f32 %v214_v23, 0.0  ;;  %v279_v31 = vmax.f32 %v215_v24, 0.0 }
  0x39   :  { %v218_v32 = vadd.f32 %v965_v5, %v147_v25  ;;  %v881_v33 = vpack.c.bf16 %v277_v26, %v276_v19  ;;  %v280_v34 = vmax.f32 %v216_v27, 0.0  ;;  %v219_v36 = vadd.f32 %v965_v5, %v148_v29 }
  0x3a   :  { %v281_v35 = vmax.f32 %v217_v28, 0.0  ;;  %v886_v37 = vpack.c.bf16 %v279_v31, %v278_v30 }
  0x3b   :  { %v282_v38 = vmax.f32 %v218_v32, 0.0  ;;  %925 = vst [vmem:[%s1378_s3 + $0xe0] sm:$0xff] %v881_v33   ;;  %v283_v39 = vmax.f32 %v219_v36, 0.0 }
  0x3c   :  { %v891_v2 = vpack.c.bf16 %v281_v35, %v280_v34  ;;  %926 = vst [vmem:[%s1378_s3 + $0xe8] sm:$0xff] %v886_v37  }
  0x3d   :  { %v896_v40 = vpack.c.bf16 %v283_v39, %v282_v38 }
  0x3e   :  { %927 = vst [vmem:[%s1378_s3 + $0xf0] sm:$0xff] %v891_v2  }
  0x3f   :  { %928 = vst [vmem:[%s1378_s3 + $0xf8] sm:$0xff] %v896_v40  }

// kernel: resnet_forward.25
= control target key start
LH: loop header
LB: loop body
LE: loop exit
PB: predicated region body
PF: predicated region fallthrough
CT: control target
= control target key end

     0   :  { %v1581_v0 = vmov 0   ;;  %vm1344_vm0 = vcmask 1040384   ;;  %s2261_s1 = inlined_call_operand.vmem [shape: bf16[256,128], index: 1, kind: input, shape index: {}]   ;;  %s2262_s0 = inlined_call_operand.vmem [shape: bf16[512,256], index: 0, kind: input, shape index: {}]   ;;  %s2263_s2 = inlined_call_operand.vmem [shape: f32[512,128], index: 2, kind: output, shape index: {0}]   ;;  %s2264_s3 = inlined_call_operand.vmem [shape: f32[1,2,128], index: 3, kind: output, shape index: {1}]  }
   0x1   :  { %658 = vmatprep.subr.bf16.mxu0 %v1581_v0  ;;  %v1469_v1 = vld [vmem:[%s2261_s1] sm:$0xff]   ;;  %1435 = vmatprep.subr.bf16.mxu1 %v1581_v0  ;;  %v1470_v2 = vld [vmem:[%s2261_s1 + $0x8] sm:$0xff]   ;;  %v1471_v3 = vld [vmem:[%s2261_s1 + $0x10] sm:$0xff]  }
   0x2   :  { %659 = vmatpush1.bf16.msra.mxu0 %v1469_v1  ;;  %1451 = vmatpush1.bf16.msra.mxu1 %v1469_v1  ;;  %v1472_v4 = vld [vmem:[%s2261_s1 + $0x18] sm:$0xff]   ;;  %v1473_v5 = vld [vmem:[%s2261_s1 + $0x20] sm:$0xff]   ;;  %v1474_v7 = vld [vmem:[%s2261_s1 + $0x28] sm:$0xff]  }
   0x3   :  { %660 = vmatprep.subr.bf16.mxu0 %v1581_v0  ;;  %1436 = vmatprep.subr.bf16.mxu1 %v1581_v0  ;;  %v1487_v6 = vld [vmem:[%s2262_s0 + $0x4] ss:$8 sps:$4 sm:$0xff]   ;;  %v1475_v8 = vld [vmem:[%s2261_s1 + $0x30] sm:$0xff]   ;;  %v1476_v9 = vld [vmem:[%s2261_s1 + $0x38] sm:$0xff]  }
   0x4   :  { %690 = vmatprep.mubr.bf16.mxu0 %v1487_v6  ;;  %v1511_v10 = vld [vmem:[%s2262_s0 + $0x104] ss:$8 sps:$4 sm:$0xff]   ;;  %v1479_v13 = vld [vmem:[%s2261_s1 + $0x50] sm:$0xff]   ;;  %v1480_v14 = vld [vmem:[%s2261_s1 + $0x58] sm:$0xff]  }
   0x5   :  { %818 = vmatprep.mubr.bf16.mxu1 %v1511_v10  ;;  %v1477_v11 = vld [vmem:[%s2261_s1 + $0x40] sm:$0xff]   ;;  %v1478_v12 = vld [vmem:[%s2261_s1 + $0x48] sm:$0xff]   ;;  %v1483_v17 = vld [vmem:[%s2261_s1 + $0x70] sm:$0xff]  }
   0x6   :  { %661 = vmatpush1.bf16.msra.mxu0 %v1470_v2  ;;  %1452 = vmatpush1.bf16.msra.mxu1 %v1470_v2  ;;  %v1481_v15 = vld [vmem:[%s2261_s1 + $0x60] sm:$0xff]   ;;  %v1482_v16 = vld [vmem:[%s2261_s1 + $0x68] sm:$0xff]   ;;  %v1484_v18 = vld [vmem:[%s2261_s1 + $0x78] sm:$0xff]  }
   0x7   :  { %662 = vmatprep.subr.bf16.mxu0 %v1581_v0  ;;  %1437 = vmatprep.subr.bf16.mxu1 %v1581_v0  ;;  %v1485_v19 = vld [vmem:[%s2262_s0] ss:$8 sps:$4 sm:$0xff]   ;;  %v1488_v21 = vld [vmem:[%s2262_s0 + $0x14] ss:$8 sps:$4 sm:$0xff]   ;;  %v1490_v23 = vld [vmem:[%s2262_s0 + $0x10] ss:$8 sps:$4 sm:$0xff]  }
   0x8   :  { %v1509_v20 = vld [vmem:[%s2262_s0 + $0x100] ss:$8 sps:$4 sm:$0xff]   ;;  %v1515_v22 = vld [vmem:[%s2262_s0 + $0x114] ss:$8 sps:$4 sm:$0xff]   ;;  %v1517_v24 = vld [vmem:[%s2262_s0 + $0x110] ss:$8 sps:$4 sm:$0xff]  }
   0x9   :  { %v1491_v25 = vld [vmem:[%s2262_s0 + $0x24] ss:$8 sps:$4 sm:$0xff]   ;;  %v1493_v27 = vld [vmem:[%s2262_s0 + $0x20] ss:$8 sps:$4 sm:$0xff]   ;;  %v1494_v29 = vld [vmem:[%s2262_s0 + $0x34] ss:$8 sps:$4 sm:$0xff]  }
   0xa   :  { %663 = vmatpush1.bf16.msra.mxu0 %v1471_v3  ;;  %1453 = vmatpush1.bf16.msra.mxu1 %v1471_v3  ;;  %v1521_v26 = vld [vmem:[%s2262_s0 + $0x124] ss:$8 sps:$4 sm:$0xff]   ;;  %v1523_v28 = vld [vmem:[%s2262_s0 + $0x120] ss:$8 sps:$4 sm:$0xff]   ;;  %v1527_v30 = vld [vmem:[%s2262_s0 + $0x134] ss:$8 sps:$4 sm:$0xff]  }
   0xb   :  { %664 = vmatprep.subr.bf16.mxu0 %v1581_v0  ;;  %1438 = vmatprep.subr.bf16.mxu1 %v1581_v0  ;;  %v1496_v31 = vld [vmem:[%s2262_s0 + $0x30] ss:$8 sps:$4 sm:$0xff]   ;;  %v1497_v33 = vld [vmem:[%s2262_s0 + $0x44] ss:$8 sps:$4 sm:$0xff]   ;;  %v1499_v35 = vld [vmem:[%s2262_s0 + $0x40] ss:$8 sps:$4 sm:$0xff]  }
   0xc   :  { %v1529_v32 = vld [vmem:[%s2262_s0 + $0x130] ss:$8 sps:$4 sm:$0xff]   ;;  %v1533_v34 = vld [vmem:[%s2262_s0 + $0x144] ss:$8 sps:$4 sm:$0xff]   ;;  %v1535_v36 = vld [vmem:[%s2262_s0 + $0x140] ss:$8 sps:$4 sm:$0xff]  }
   0xd   :  { %v1500_v37 = vld [vmem:[%s2262_s0 + $0x54] ss:$8 sps:$4 sm:$0xff]   ;;  %v1502_v39 = vld [vmem:[%s2262_s0 + $0x50] ss:$8 sps:$4 sm:$0xff]   ;;  %v1503_v41 = vld [vmem:[%s2262_s0 + $0x64] ss:$8 sps:$4 sm:$0xff]  }
   0xe   :  { %665 = vmatpush1.bf16.msra.mxu0 %v1472_v4  ;;  %1454 = vmatpush1.bf16.msra.mxu1 %v1472_v4  ;;  %v1539_v38 = vld [vmem:[%s2262_s0 + $0x154] ss:$8 sps:$4 sm:$0xff]   ;;  %v1541_v40 = vld [vmem:[%s2262_s0 + $0x150] ss:$8 sps:$4 sm:$0xff]   ;;  %v1545_v42 = vld [vmem:[%s2262_s0 + $0x164] ss:$8 sps:$4 sm:$0xff]  }
   0xf   :  { %666 = vmatprep.subr.bf16.mxu0 %v1581_v0  ;;  %1439 = vmatprep.subr.bf16.mxu1 %v1581_v0  ;;  %v1505_v43 = vld [vmem:[%s2262_s0 + $0x60] ss:$8 sps:$4 sm:$0xff]   ;;  %v1506_v45 = vld [vmem:[%s2262_s0 + $0x74] ss:$8 sps:$4 sm:$0xff]   ;;  %v1508_v47 = vld [vmem:[%s2262_s0 + $0x70] ss:$8 sps:$4 sm:$0xff]  }
  0x10   :  { %v1547_v44 = vld [vmem:[%s2262_s0 + $0x160] ss:$8 sps:$4 sm:$0xff]   ;;  %v1551_v46 = vld [vmem:[%s2262_s0 + $0x174] ss:$8 sps:$4 sm:$0xff]   ;;  %v1553_v48 = vld [vmem:[%s2262_s0 + $0x170] ss:$8 sps:$4 sm:$0xff]  }
  0x11   :  { %v1512_v49 = vld [vmem:[%s2262_s0 + $0x84] ss:$8 sps:$4 sm:$0xff]   ;;  %v1514_v51 = vld [vmem:[%s2262_s0 + $0x80] ss:$8 sps:$4 sm:$0xff]   ;;  %v1518_v53 = vld [vmem:[%s2262_s0 + $0x94] ss:$8 sps:$4 sm:$0xff]  }
  0x12   :  { %667 = vmatpush1.bf16.msra.mxu0 %v1473_v5  ;;  %1455 = vmatpush1.bf16.msra.mxu1 %v1473_v5  ;;  %v1557_v50 = vld [vmem:[%s2262_s0 + $0x184] ss:$8 sps:$4 sm:$0xff]   ;;  %v1559_v52 = vld [vmem:[%s2262_s0 + $0x180] ss:$8 sps:$4 sm:$0xff]   ;;  %v1560_v54 = vld [vmem:[%s2262_s0 + $0x194] ss:$8 sps:$4 sm:$0xff]  }
  0x13   :  { %668 = vmatprep.subr.bf16.mxu0 %v1581_v0  ;;  %1440 = vmatprep.subr.bf16.mxu1 %v1581_v0  ;;  %v1520_v55 = vld [vmem:[%s2262_s0 + $0x90] ss:$8 sps:$4 sm:$0xff]   ;;  %v1524_v57 = vld [vmem:[%s2262_s0 + $0xa4] ss:$8 sps:$4 sm:$0xff]   ;;  %v1526_v59 = vld [vmem:[%s2262_s0 + $0xa0] ss:$8 sps:$4 sm:$0xff]  }
  0x14   :  { %v1562_v56 = vld [vmem:[%s2262_s0 + $0x190] ss:$8 sps:$4 sm:$0xff]   ;;  %v1563_v58 = vld [vmem:[%s2262_s0 + $0x1a4] ss:$8 sps:$4 sm:$0xff]   ;;  %v1565_v60 = vld [vmem:[%s2262_s0 + $0x1a0] ss:$8 sps:$4 sm:$0xff]  }
  0x15   :  { %v1530_v61 = vld [vmem:[%s2262_s0 + $0xb4] ss:$8 sps:$4 sm:$0xff]   ;;  %v1532_v63 = vld [vmem:[%s2262_s0 + $0xb0] ss:$8 sps:$4 sm:$0xff]   ;;  %v1536_v1 = vld [vmem:[%s2262_s0 + $0xc4] ss:$8 sps:$4 sm:$0xff]  }
  0x16   :  { %669 = vmatpush1.bf16.msra.mxu0 %v1474_v7  ;;  %1456 = vmatpush1.bf16.msra.mxu1 %v1474_v7  ;;  %v1566_v62 = vld [vmem:[%s2262_s0 + $0x1b4] ss:$8 sps:$4 sm:$0xff]   ;;  %v1569_v2 = vld [vmem:[%s2262_s0 + $0x1c4] ss:$8 sps:$4 sm:$0xff]   ;;  %v1538_v3 = vld [vmem:[%s2262_s0 + $0xc0] ss:$8 sps:$4 sm:$0xff]  }
  0x17   :  { %670 = vmatprep.subr.bf16.mxu0 %v1581_v0  ;;  %1441 = vmatprep.subr.bf16.mxu1 %v1581_v0  ;;  %v1571_v4 = vld [vmem:[%s2262_s0 + $0x1c0] ss:$8 sps:$4 sm:$0xff]   ;;  %v1542_v5 = vld [vmem:[%s2262_s0 + $0xd4] ss:$8 sps:$4 sm:$0xff]   ;;  %v1544_v7 = vld [vmem:[%s2262_s0 + $0xd0] ss:$8 sps:$4 sm:$0xff]  }
  0x18   :  { %v1572_v6 = vld [vmem:[%s2262_s0 + $0x1d4] ss:$8 sps:$4 sm:$0xff]   ;;  %v1575_v10 = vld [vmem:[%s2262_s0 + $0x1e4] ss:$8 sps:$4 sm:$0xff]  }
  0x1a   :  { %671 = vmatpush1.bf16.msra.mxu0 %v1475_v8  ;;  %1457 = vmatpush1.bf16.msra.mxu1 %v1475_v8  ;;  %v1574_v8 = vld [vmem:[%s2262_s0 + $0x1d0] ss:$8 sps:$4 sm:$0xff]  }
  0x1b   :  { %672 = vmatprep.subr.bf16.mxu0 %v1581_v0  ;;  %1442 = vmatprep.subr.bf16.mxu1 %v1581_v0 }
  0x1e   :  { %673 = vmatpush1.bf16.msra.mxu0 %v1476_v9  ;;  %1458 = vmatpush1.bf16.msra.mxu1 %v1476_v9  ;;  %v1548_v9 = vld [vmem:[%s2262_s0 + $0xe4] ss:$8 sps:$4 sm:$0xff]  }
  0x1f   :  { %674 = vmatprep.subr.bf16.mxu0 %v1581_v0  ;;  %1443 = vmatprep.subr.bf16.mxu1 %v1581_v0 }
  0x22   :  { %675 = vmatpush1.bf16.msra.mxu0 %v1477_v11  ;;  %1459 = vmatpush1.bf16.msra.mxu1 %v1477_v11  ;;  %v1550_v11 = vld [vmem:[%s2262_s0 + $0xe0] ss:$8 sps:$4 sm:$0xff]  }
  0x23   :  { %676 = vmatprep.subr.bf16.mxu0 %v1581_v0  ;;  %1444 = vmatprep.subr.bf16.mxu1 %v1581_v0 }
  0x26   :  { %677 = vmatpush1.bf16.msra.mxu0 %v1478_v12  ;;  %1460 = vmatpush1.bf16.msra.mxu1 %v1478_v12  ;;  %v1577_v12 = vld [vmem:[%s2262_s0 + $0x1e0] ss:$8 sps:$4 sm:$0xff]  }
  0x27   :  { %678 = vmatprep.subr.bf16.mxu0 %v1581_v0  ;;  %1445 = vmatprep.subr.bf16.mxu1 %v1581_v0 }
  0x2a   :  { %679 = vmatpush1.bf16.msra.mxu0 %v1479_v13  ;;  %1461 = vmatpush1.bf16.msra.mxu1 %v1479_v13  ;;  %v1554_v13 = vld [vmem:[%s2262_s0 + $0xf4] ss:$8 sps:$4 sm:$0xff]  }
  0x2b   :  { %680 = vmatprep.subr.bf16.mxu0 %v1581_v0  ;;  %1446 = vmatprep.subr.bf16.mxu1 %v1581_v0 }
  0x2e   :  { %681 = vmatpush1.bf16.msra.mxu0 %v1480_v14  ;;  %1462 = vmatpush1.bf16.msra.mxu1 %v1480_v14  ;;  %v1578_v14 = vld [vmem:[%s2262_s0 + $0x1f4] ss:$8 sps:$4 sm:$0xff]  }
  0x2f   :  { %682 = vmatprep.subr.bf16.mxu0 %v1581_v0  ;;  %1447 = vmatprep.subr.bf16.mxu1 %v1581_v0 }
  0x32   :  { %683 = vmatpush1.bf16.msra.mxu0 %v1481_v15  ;;  %1463 = vmatpush1.bf16.msra.mxu1 %v1481_v15  ;;  %v1556_v15 = vld [vmem:[%s2262_s0 + $0xf0] ss:$8 sps:$4 sm:$0xff]  }
  0x33   :  { %684 = vmatprep.subr.bf16.mxu0 %v1581_v0  ;;  %1448 = vmatprep.subr.bf16.mxu1 %v1581_v0 }
  0x36   :  { %685 = vmatpush1.bf16.msra.mxu0 %v1482_v16  ;;  %1464 = vmatpush1.bf16.msra.mxu1 %v1482_v16  ;;  %v1580_v16 = vld [vmem:[%s2262_s0 + $0x1f0] ss:$8 sps:$4 sm:$0xff]  }
  0x37   :  { %686 = vmatprep.subr.bf16.mxu0 %v1581_v0  ;;  %1449 = vmatprep.subr.bf16.mxu1 %v1581_v0 }
  0x3a   :  { %687 = vmatpush1.bf16.msra.mxu0 %v1483_v17  ;;  %1465 = vmatpush1.bf16.msra.mxu1 %v1483_v17 }
  0x3b   :  { %688 = vmatprep.subr.bf16.mxu0 %v1581_v0  ;;  %1450 = vmatprep.subr.bf16.mxu1 %v1581_v0  ;;  %v1568_v0 = vld [vmem:[%s2262_s0 + $0x1b0] ss:$8 sps:$4 sm:$0xff]  }
  0x3e   :  { %689 = vmatpush1.bf16.msra.mxu0 %v1484_v18  ;;  %1466 = vmatpush1.bf16.msra.mxu1 %v1484_v18 }
  0x41   :  { %691 = vmatmul.mubr.bf16.vlgmr.msra.gmra.mrb[0].mxu0 %v1485_v19  ;;  %819 = vmatmul.mubr.bf16.vlgmr.msra.gmra.mrb[0].mxu1 %v1509_v20 }
  0x42   :  { %698 = vmatprep.mubr.bf16.mxu0 %v1488_v21  ;;  %826 = vmatprep.mubr.bf16.mxu1 %v1515_v22 }
  0x49   :  { %699 = vmatmul.mubr.bf16.gmra.mrb[4].mxu0 %v1490_v23  ;;  %827 = vmatmul.mubr.bf16.gmra.mrb[4].mxu1 %v1517_v24 }
  0x4a   :  { %706 = vmatprep.mubr.bf16.mxu0 %v1491_v25  ;;  %834 = vmatprep.mubr.bf16.mxu1 %v1521_v26 }
  0x51   :  { %707 = vmatmul.mubr.bf16.gmra.mrb[8].mxu0 %v1493_v27  ;;  %835 = vmatmul.mubr.bf16.gmra.mrb[8].mxu1 %v1523_v28 }
  0x52   :  { %714 = vmatprep.mubr.bf16.mxu0 %v1494_v29  ;;  %842 = vmatprep.mubr.bf16.mxu1 %v1527_v30 }
  0x59   :  { %715 = vmatmul.mubr.bf16.gmra.mrb[12].mxu0 %v1496_v31  ;;  %843 = vmatmul.mubr.bf16.gmra.mrb[12].mxu1 %v1529_v32 }
  0x5a   :  { %722 = vmatprep.mubr.bf16.mxu0 %v1497_v33  ;;  %850 = vmatprep.mubr.bf16.mxu1 %v1533_v34 }
  0x61   :  { %723 = vmatmul.mubr.bf16.gmra.mrb[16].mxu0 %v1499_v35  ;;  %851 = vmatmul.mubr.bf16.gmra.mrb[16].mxu1 %v1535_v36 }
  0x62   :  { %730 = vmatprep.mubr.bf16.mxu0 %v1500_v37  ;;  %858 = vmatprep.mubr.bf16.mxu1 %v1539_v38 }
  0x69   :  { %731 = vmatmul.mubr.bf16.gmra.mrb[20].mxu0 %v1502_v39  ;;  %859 = vmatmul.mubr.bf16.gmra.mrb[20].mxu1 %v1541_v40 }
  0x6a   :  { %738 = vmatprep.mubr.bf16.mxu0 %v1503_v41  ;;  %866 = vmatprep.mubr.bf16.mxu1 %v1545_v42 }
  0x71   :  { %739 = vmatmul.mubr.bf16.gmra.mrb[24].mxu0 %v1505_v43  ;;  %867 = vmatmul.mubr.bf16.gmra.mrb[24].mxu1 %v1547_v44 }
  0x72   :  { %746 = vmatprep.mubr.bf16.mxu0 %v1506_v45  ;;  %874 = vmatprep.mubr.bf16.mxu1 %v1551_v46 }
  0x79   :  { %747 = vmatmul.mubr.bf16.gmra.mrb[28].mxu0 %v1508_v47  ;;  %875 = vmatmul.mubr.bf16.gmra.mrb[28].mxu1 %v1553_v48 }
  0x7a   :  { %754 = vmatprep.mubr.bf16.mxu0 %v1512_v49  ;;  %882 = vmatprep.mubr.bf16.mxu1 %v1557_v50 }
  0x81   :  { %755 = vmatmul.mubr.bf16.gmra.mrb[32].mxu0 %v1514_v51  ;;  %883 = vmatmul.mubr.bf16.gmra.mrb[32].mxu1 %v1559_v52 }
  0x82   :  { %762 = vmatprep.mubr.bf16.mxu0 %v1518_v53  ;;  %890 = vmatprep.mubr.bf16.mxu1 %v1560_v54 }
  0x89   :  { %763 = vmatmul.mubr.bf16.gmra.mrb[36].mxu0 %v1520_v55  ;;  %891 = vmatmul.mubr.bf16.gmra.mrb[36].mxu1 %v1562_v56 }
  0x8a   :  { %770 = vmatprep.mubr.bf16.mxu0 %v1524_v57  ;;  %898 = vmatprep.mubr.bf16.mxu1 %v1563_v58 }
  0x91   :  { %771 = vmatmul.mubr.bf16.gmra.mrb[40].mxu0 %v1526_v59  ;;  %899 = vmatmul.mubr.bf16.gmra.mrb[40].mxu1 %v1565_v60 }
  0x92   :  { %778 = vmatprep.mubr.bf16.mxu0 %v1530_v61  ;;  %906 = vmatprep.mubr.bf16.mxu1 %v1566_v62 }
  0x99   :  { %779 = vmatmul.mubr.bf16.gmra.mrb[44].mxu0 %v1532_v63  ;;  %907 = vmatmul.mubr.bf16.gmra.mrb[44].mxu1 %v1568_v0 }
  0x9a   :  { %786 = vmatprep.mubr.bf16.mxu0 %v1536_v1  ;;  %914 = vmatprep.mubr.bf16.mxu1 %v1569_v2 }
  0xa1   :  { %787 = vmatmul.mubr.bf16.gmra.mrb[48].mxu0 %v1538_v3  ;;  %915 = vmatmul.mubr.bf16.gmra.mrb[48].mxu1 %v1571_v4 }
  0xa2   :  { %794 = vmatprep.mubr.bf16.mxu0 %v1542_v5  ;;  %922 = vmatprep.mubr.bf16.mxu1 %v1572_v6 }
  0xa9   :  { %795 = vmatmul.mubr.bf16.gmra.mrb[52].mxu0 %v1544_v7  ;;  %923 = vmatmul.mubr.bf16.gmra.mrb[52].mxu1 %v1574_v8 }
  0xaa   :  { %802 = vmatprep.mubr.bf16.mxu0 %v1548_v9  ;;  %930 = vmatprep.mubr.bf16.mxu1 %v1575_v10 }
  0xb1   :  { %803 = vmatmul.mubr.bf16.gmra.mrb[56].mxu0 %v1550_v11  ;;  %931 = vmatmul.mubr.bf16.gmra.mrb[56].mxu1 %v1577_v12 }
  0xb2   :  { %810 = vmatprep.mubr.bf16.mxu0 %v1554_v13  ;;  %938 = vmatprep.mubr.bf16.mxu1 %v1578_v14 }
  0xb9   :  { %811 = vmatmul.mubr.bf16.gmra.mrb[60].mxu0 %v1556_v15  ;;  %939 = vmatmul.mubr.bf16.gmra.mrb[60].mxu1 %v1580_v16 }
 0x114   :  { %v692_v17 = vpop.f32.mrb[0].mxu0  ;;  %v1874_v18 = vpop.f32.mrb[0].mxu1 }
 0x115   :  { %v694_v19 = vpop.f32.mrb[1].mxu0  ;;  %v822_v20 = vpop.f32.mrb[1].mxu1  ;;  %1011 = vst [vmem:[%s2263_s2] sm:$0xff] %v692_v17  ;;  %1043 = vst [vmem:[%s2263_s2 + $0x100] sm:$0xff] %v1874_v18  ;;  %v1211_v25 = vmul.f32 %v692_v17, %v692_v17 }
 0x116   :  { %v695_v21 = vpop.f32.mrb[2].mxu0  ;;  %v1876_v22 = vpop.f32.mrb[2].mxu1 }
 0x117   :  { %v697_v23 = vpop.f32.mrb[3].mxu0  ;;  %v825_v24 = vpop.f32.mrb[3].mxu1  ;;  %1012 = vst [vmem:[%s2263_s2 + $0x8] sm:$0xff] %v695_v21  ;;  %v1142_v26 = vadd.f32 %v695_v21, %v692_v17  ;;  %v1212_v27 = vmul.f32 %v695_v21, %v695_v21  ;;  %1044 = vst [vmem:[%s2263_s2 + $0x108] sm:$0xff] %v1876_v22 }
 0x119   :  { %v1275_v28 = vadd.f32 %v1212_v27, %v1211_v25 }
 0x11c   :  { %v700_v29 = vpop.f32.mrb[4].mxu0  ;;  %v1892_v30 = vpop.f32.mrb[4].mxu1 }
 0x11d   :  { %v702_v31 = vpop.f32.mrb[5].mxu0  ;;  %v830_v32 = vpop.f32.mrb[5].mxu1  ;;  %1013 = vst [vmem:[%s2263_s2 + $0x10] sm:$0xff] %v700_v29  ;;  %v1143_v35 = vadd.f32 %v1142_v26, %v700_v29  ;;  %v1213_v36 = vmul.f32 %v700_v29, %v700_v29  ;;  %1045 = vst [vmem:[%s2263_s2 + $0x110] sm:$0xff] %v1892_v30 }
 0x11e   :  { %v703_v33 = vpop.f32.mrb[6].mxu0  ;;  %v1894_v34 = vpop.f32.mrb[6].mxu1 }
 0x11f   :  { %v705_v37 = vpop.f32.mrb[7].mxu0  ;;  %v833_v38 = vpop.f32.mrb[7].mxu1  ;;  %v1276_v39 = vadd.f32 %v1275_v28, %v1213_v36  ;;  %1014 = vst [vmem:[%s2263_s2 + $0x18] sm:$0xff] %v703_v33  ;;  %v1144_v40 = vadd.f32 %v1143_v35, %v703_v33  ;;  %v1214_v41 = vmul.f32 %v703_v33, %v703_v33  ;;  %1046 = vst [vmem:[%s2263_s2 + $0x118] sm:$0xff] %v1894_v34 }
 0x121   :  { %v1277_v42 = vadd.f32 %v1276_v39, %v1214_v41 }
 0x124   :  { %v708_v43 = vpop.f32.mrb[8].mxu0  ;;  %v1910_v44 = vpop.f32.mrb[8].mxu1 }
 0x125   :  { %v710_v45 = vpop.f32.mrb[9].mxu0  ;;  %v838_v46 = vpop.f32.mrb[9].mxu1  ;;  %1015 = vst [vmem:[%s2263_s2 + $0x20] sm:$0xff] %v708_v43  ;;  %v1145_v49 = vadd.f32 %v1144_v40, %v708_v43  ;;  %v1215_v50 = vmul.f32 %v708_v43, %v708_v43  ;;  %1047 = vst [vmem:[%s2263_s2 + $0x120] sm:$0xff] %v1910_v44 }
 0x126   :  { %v711_v47 = vpop.f32.mrb[10].mxu0  ;;  %v1912_v48 = vpop.f32.mrb[10].mxu1 }
 0x127   :  { %v713_v51 = vpop.f32.mrb[11].mxu0  ;;  %v841_v52 = vpop.f32.mrb[11].mxu1  ;;  %v1278_v53 = vadd.f32 %v1277_v42, %v1215_v50  ;;  %1016 = vst [vmem:[%s2263_s2 + $0x28] sm:$0xff] %v711_v47  ;;  %v1146_v54 = vadd.f32 %v1145_v49, %v711_v47  ;;  %v1216_v55 = vmul.f32 %v711_v47, %v711_v47  ;;  %1048 = vst [vmem:[%s2263_s2 + $0x128] sm:$0xff] %v1912_v48 }
 0x129   :  { %v1279_v56 = vadd.f32 %v1278_v53, %v1216_v55 }
 0x12c   :  { %v716_v57 = vpop.f32.mrb[12].mxu0  ;;  %v1928_v58 = vpop.f32.mrb[12].mxu1 }
 0x12d   :  { %v718_v59 = vpop.f32.mrb[13].mxu0  ;;  %v846_v60 = vpop.f32.mrb[13].mxu1  ;;  %1017 = vst [vmem:[%s2263_s2 + $0x30] sm:$0xff] %v716_v57  ;;  %v1147_v63 = vadd.f32 %v1146_v54, %v716_v57  ;;  %v1217_v0 = vmul.f32 %v716_v57, %v716_v57  ;;  %1049 = vst [vmem:[%s2263_s2 + $0x130] sm:$0xff] %v1928_v58 }
 0x12e   :  { %v719_v61 = vpop.f32.mrb[14].mxu0  ;;  %v1930_v62 = vpop.f32.mrb[14].mxu1 }
 0x12f   :  { %v721_v1 = vpop.f32.mrb[15].mxu0  ;;  %v849_v2 = vpop.f32.mrb[15].mxu1  ;;  %v1280_v3 = vadd.f32 %v1279_v56, %v1217_v0  ;;  %1018 = vst [vmem:[%s2263_s2 + $0x38] sm:$0xff] %v719_v61  ;;  %v1148_v4 = vadd.f32 %v1147_v63, %v719_v61  ;;  %v1218_v5 = vmul.f32 %v719_v61, %v719_v61  ;;  %1050 = vst [vmem:[%s2263_s2 + $0x138] sm:$0xff] %v1930_v62 }
 0x131   :  { %v1281_v6 = vadd.f32 %v1280_v3, %v1218_v5 }
 0x134   :  { %v724_v7 = vpop.f32.mrb[16].mxu0  ;;  %v1946_v8 = vpop.f32.mrb[16].mxu1 }
 0x135   :  { %v726_v9 = vpop.f32.mrb[17].mxu0  ;;  %v854_v10 = vpop.f32.mrb[17].mxu1  ;;  %1019 = vst [vmem:[%s2263_s2 + $0x40] sm:$0xff] %v724_v7  ;;  %v1149_v13 = vadd.f32 %v1148_v4, %v724_v7  ;;  %v1219_v14 = vmul.f32 %v724_v7, %v724_v7  ;;  %1051 = vst [vmem:[%s2263_s2 + $0x140] sm:$0xff] %v1946_v8 }
 0x136   :  { %v727_v11 = vpop.f32.mrb[18].mxu0  ;;  %v1948_v12 = vpop.f32.mrb[18].mxu1 }
 0x137   :  { %v729_v15 = vpop.f32.mrb[19].mxu0  ;;  %v857_v16 = vpop.f32.mrb[19].mxu1  ;;  %v1282_v17 = vadd.f32 %v1281_v6, %v1219_v14  ;;  %1020 = vst [vmem:[%s2263_s2 + $0x48] sm:$0xff] %v727_v11  ;;  %v1150_v19 = vadd.f32 %v1149_v13, %v727_v11  ;;  %v1220_v20 = vmul.f32 %v727_v11, %v727_v11  ;;  %1052 = vst [vmem:[%s2263_s2 + $0x148] sm:$0xff] %v1948_v12 }
 0x139   :  { %v1283_v21 = vadd.f32 %v1282_v17, %v1220_v20 }
 0x13c   :  { %v732_v23 = vpop.f32.mrb[20].mxu0  ;;  %v1964_v24 = vpop.f32.mrb[20].mxu1 }
 0x13d   :  { %v734_v25 = vpop.f32.mrb[21].mxu0  ;;  %v862_v26 = vpop.f32.mrb[21].mxu1  ;;  %1021 = vst [vmem:[%s2263_s2 + $0x50] sm:$0xff] %v732_v23  ;;  %v1151_v29 = vadd.f32 %v1150_v19, %v732_v23  ;;  %v1221_v31 = vmul.f32 %v732_v23, %v732_v23  ;;  %1053 = vst [vmem:[%s2263_s2 + $0x150] sm:$0xff] %v1964_v24 }
 0x13e   :  { %v735_v27 = vpop.f32.mrb[22].mxu0  ;;  %v1966_v28 = vpop.f32.mrb[22].mxu1 }
 0x13f   :  { %v737_v32 = vpop.f32.mrb[23].mxu0  ;;  %v865_v33 = vpop.f32.mrb[23].mxu1  ;;  %v1284_v35 = vadd.f32 %v1283_v21, %v1221_v31  ;;  %1022 = vst [vmem:[%s2263_s2 + $0x58] sm:$0xff] %v735_v27  ;;  %v1152_v36 = vadd.f32 %v1151_v29, %v735_v27  ;;  %v1222_v37 = vmul.f32 %v735_v27, %v735_v27  ;;  %1054 = vst [vmem:[%s2263_s2 + $0x158] sm:$0xff] %v1966_v28 }
 0x141   :  { %v1285_v38 = vadd.f32 %v1284_v35, %v1222_v37 }
 0x144   :  { %v740_v39 = vpop.f32.mrb[24].mxu0  ;;  %v1982_v40 = vpop.f32.mrb[24].mxu1 }
 0x145   :  { %v742_v41 = vpop.f32.mrb[25].mxu0  ;;  %v870_v42 = vpop.f32.mrb[25].mxu1  ;;  %1023 = vst [vmem:[%s2263_s2 + $0x60] sm:$0xff] %v740_v39  ;;  %v1153_v46 = vadd.f32 %v1152_v36, %v740_v39  ;;  %v1223_v47 = vmul.f32 %v740_v39, %v740_v39  ;;  %1055 = vst [vmem:[%s2263_s2 + $0x160] sm:$0xff] %v1982_v40 }
 0x146   :  { %v743_v43 = vpop.f32.mrb[26].mxu0  ;;  %v1984_v45 = vpop.f32.mrb[26].mxu1 }
 0x147   :  { %v745_v49 = vpop.f32.mrb[27].mxu0  ;;  %v873_v50 = vpop.f32.mrb[27].mxu1  ;;  %v1286_v51 = vadd.f32 %v1285_v38, %v1223_v47  ;;  %1024 = vst [vmem:[%s2263_s2 + $0x68] sm:$0xff] %v743_v43  ;;  %v1154_v52 = vadd.f32 %v1153_v46, %v743_v43  ;;  %v1224_v53 = vmul.f32 %v743_v43, %v743_v43  ;;  %1056 = vst [vmem:[%s2263_s2 + $0x168] sm:$0xff] %v1984_v45 }
 0x149   :  { %v1287_v54 = vadd.f32 %v1286_v51, %v1224_v53 }
 0x14c   :  { %v748_v55 = vpop.f32.mrb[28].mxu0  ;;  %v2000_v56 = vpop.f32.mrb[28].mxu1 }
 0x14d   :  { %v750_v57 = vpop.f32.mrb[29].mxu0  ;;  %v878_v59 = vpop.f32.mrb[29].mxu1  ;;  %1025 = vst [vmem:[%s2263_s2 + $0x70] sm:$0xff] %v748_v55  ;;  %v1155_v63 = vadd.f32 %v1154_v52, %v748_v55  ;;  %v1225_v0 = vmul.f32 %v748_v55, %v748_v55  ;;  %1057 = vst [vmem:[%s2263_s2 + $0x170] sm:$0xff] %v2000_v56 }
 0x14e   :  { %v751_v60 = vpop.f32.mrb[30].mxu0  ;;  %v2002_v61 = vpop.f32.mrb[30].mxu1 }
 0x14f   :  { %v753_v1 = vpop.f32.mrb[31].mxu0  ;;  %v881_v2 = vpop.f32.mrb[31].mxu1  ;;  %v1288_v3 = vadd.f32 %v1287_v54, %v1225_v0  ;;  %1026 = vst [vmem:[%s2263_s2 + $0x78] sm:$0xff] %v751_v60  ;;  %v1156_v4 = vadd.f32 %v1155_v63, %v751_v60  ;;  %v1226_v5 = vmul.f32 %v751_v60, %v751_v60  ;;  %1058 = vst [vmem:[%s2263_s2 + $0x178] sm:$0xff] %v2002_v61 }
 0x151   :  { %v1289_v6 = vadd.f32 %v1288_v3, %v1226_v5 }
 0x154   :  { %v756_v7 = vpop.f32.mrb[32].mxu0  ;;  %v2018_v9 = vpop.f32.mrb[32].mxu1 }
 0x155   :  { %v758_v10 = vpop.f32.mrb[33].mxu0  ;;  %v886_v11 = vpop.f32.mrb[33].mxu1  ;;  %1027 = vst [vmem:[%s2263_s2 + $0x80] sm:$0xff] %v756_v7  ;;  %v1157_v15 = vadd.f32 %v1156_v4, %v756_v7  ;;  %v1227_v16 = vmul.f32 %v756_v7, %v756_v7  ;;  %1059 = vst [vmem:[%s2263_s2 + $0x180] sm:$0xff] %v2018_v9 }
 0x156   :  { %v759_v13 = vpop.f32.mrb[34].mxu0  ;;  %v2020_v14 = vpop.f32.mrb[34].mxu1 }
 0x157   :  { %v761_v17 = vpop.f32.mrb[35].mxu0  ;;  %v889_v19 = vpop.f32.mrb[35].mxu1  ;;  %v1290_v20 = vadd.f32 %v1289_v6, %v1227_v16  ;;  %1028 = vst [vmem:[%s2263_s2 + $0x88] sm:$0xff] %v759_v13  ;;  %v1158_v21 = vadd.f32 %v1157_v15, %v759_v13  ;;  %v1228_v23 = vmul.f32 %v759_v13, %v759_v13  ;;  %1060 = vst [vmem:[%s2263_s2 + $0x188] sm:$0xff] %v2020_v14 }
 0x159   :  { %v1291_v25 = vadd.f32 %v1290_v20, %v1228_v23 }
 0x15c   :  { %v764_v26 = vpop.f32.mrb[36].mxu0  ;;  %v2036_v27 = vpop.f32.mrb[36].mxu1 }
 0x15d   :  { %v766_v29 = vpop.f32.mrb[37].mxu0  ;;  %v894_v31 = vpop.f32.mrb[37].mxu1  ;;  %1029 = vst [vmem:[%s2263_s2 + $0x90] sm:$0xff] %v764_v26  ;;  %v1159_v35 = vadd.f32 %v1158_v21, %v764_v26  ;;  %v1229_v36 = vmul.f32 %v764_v26, %v764_v26  ;;  %1061 = vst [vmem:[%s2263_s2 + $0x190] sm:$0xff] %v2036_v27 }
 0x15e   :  { %v767_v32 = vpop.f32.mrb[38].mxu0  ;;  %v2038_v33 = vpop.f32.mrb[38].mxu1 }
 0x15f   :  { %v769_v37 = vpop.f32.mrb[39].mxu0  ;;  %v897_v38 = vpop.f32.mrb[39].mxu1  ;;  %v1292_v39 = vadd.f32 %v1291_v25, %v1229_v36  ;;  %1030 = vst [vmem:[%s2263_s2 + $0x98] sm:$0xff] %v767_v32  ;;  %v1160_v41 = vadd.f32 %v1159_v35, %v767_v32  ;;  %v1230_v42 = vmul.f32 %v767_v32, %v767_v32  ;;  %1062 = vst [vmem:[%s2263_s2 + $0x198] sm:$0xff] %v2038_v33 }
 0x161   :  { %v1293_v43 = vadd.f32 %v1292_v39, %v1230_v42 }
 0x164   :  { %v772_v46 = vpop.f32.mrb[40].mxu0  ;;  %v2054_v47 = vpop.f32.mrb[40].mxu1 }
 0x165   :  { %v774_v49 = vpop.f32.mrb[41].mxu0  ;;  %v902_v50 = vpop.f32.mrb[41].mxu1  ;;  %1031 = vst [vmem:[%s2263_s2 + $0xa0] sm:$0xff] %v772_v46  ;;  %v1161_v53 = vadd.f32 %v1160_v41, %v772_v46  ;;  %v1231_v54 = vmul.f32 %v772_v46, %v772_v46  ;;  %1063 = vst [vmem:[%s2263_s2 + $0x1a0] sm:$0xff] %v2054_v47 }
 0x166   :  { %v775_v51 = vpop.f32.mrb[42].mxu0  ;;  %v2056_v52 = vpop.f32.mrb[42].mxu1 }
 0x167   :  { %v777_v55 = vpop.f32.mrb[43].mxu0  ;;  %v905_v57 = vpop.f32.mrb[43].mxu1  ;;  %v1294_v59 = vadd.f32 %v1293_v43, %v1231_v54  ;;  %1032 = vst [vmem:[%s2263_s2 + $0xa8] sm:$0xff] %v775_v51  ;;  %v1162_v60 = vadd.f32 %v1161_v53, %v775_v51  ;;  %v1232_v63 = vmul.f32 %v775_v51, %v775_v51  ;;  %1064 = vst [vmem:[%s2263_s2 + $0x1a8] sm:$0xff] %v2056_v52 }
 0x169   :  { %v1295_v0 = vadd.f32 %v1294_v59, %v1232_v63 }
 0x16c   :  { %v780_v1 = vpop.f32.mrb[44].mxu0  ;;  %v2072_v2 = vpop.f32.mrb[44].mxu1 }
 0x16d   :  { %v782_v3 = vpop.f32.mrb[45].mxu0  ;;  %v910_v4 = vpop.f32.mrb[45].mxu1  ;;  %1033 = vst [vmem:[%s2263_s2 + $0xb0] sm:$0xff] %v780_v1  ;;  %v1163_v7 = vadd.f32 %v1162_v60, %v780_v1  ;;  %v1233_v10 = vmul.f32 %v780_v1, %v780_v1  ;;  %1065 = vst [vmem:[%s2263_s2 + $0x1b0] sm:$0xff] %v2072_v2 }
 0x16e   :  { %v783_v5 = vpop.f32.mrb[46].mxu0  ;;  %v2074_v6 = vpop.f32.mrb[46].mxu1 }
 0x16f   :  { %v785_v11 = vpop.f32.mrb[47].mxu0  ;;  %v913_v13 = vpop.f32.mrb[47].mxu1  ;;  %v1296_v15 = vadd.f32 %v1295_v0, %v1233_v10  ;;  %1034 = vst [vmem:[%s2263_s2 + $0xb8] sm:$0xff] %v783_v5  ;;  %v1164_v16 = vadd.f32 %v1163_v7, %v783_v5  ;;  %v1234_v17 = vmul.f32 %v783_v5, %v783_v5  ;;  %1066 = vst [vmem:[%s2263_s2 + $0x1b8] sm:$0xff] %v2074_v6 }
 0x171   :  { %v1297_v19 = vadd.f32 %v1296_v15, %v1234_v17 }
 0x174   :  { %v788_v20 = vpop.f32.mrb[48].mxu0  ;;  %v2090_v21 = vpop.f32.mrb[48].mxu1 }
 0x175   :  { %v790_v23 = vpop.f32.mrb[49].mxu0  ;;  %v918_v25 = vpop.f32.mrb[49].mxu1  ;;  %1035 = vst [vmem:[%s2263_s2 + $0xc0] sm:$0xff] %v788_v20  ;;  %v1165_v31 = vadd.f32 %v1164_v16, %v788_v20  ;;  %v1235_v32 = vmul.f32 %v788_v20, %v788_v20  ;;  %1067 = vst [vmem:[%s2263_s2 + $0x1c0] sm:$0xff] %v2090_v21 }
 0x176   :  { %v791_v26 = vpop.f32.mrb[50].mxu0  ;;  %v2092_v29 = vpop.f32.mrb[50].mxu1 }
 0x177   :  { %v793_v35 = vpop.f32.mrb[51].mxu0  ;;  %v921_v36 = vpop.f32.mrb[51].mxu1  ;;  %v1298_v37 = vadd.f32 %v1297_v19, %v1235_v32  ;;  %1036 = vst [vmem:[%s2263_s2 + $0xc8] sm:$0xff] %v791_v26  ;;  %v1166_v38 = vadd.f32 %v1165_v31, %v791_v26  ;;  %v1236_v39 = vmul.f32 %v791_v26, %v791_v26  ;;  %1068 = vst [vmem:[%s2263_s2 + $0x1c8] sm:$0xff] %v2092_v29 }
 0x179   :  { %v1299_v41 = vadd.f32 %v1298_v37, %v1236_v39 }
 0x17c   :  { %v796_v42 = vpop.f32.mrb[52].mxu0  ;;  %v2108_v43 = vpop.f32.mrb[52].mxu1 }
 0x17d   :  { %v798_v46 = vpop.f32.mrb[53].mxu0  ;;  %v926_v49 = vpop.f32.mrb[53].mxu1  ;;  %1037 = vst [vmem:[%s2263_s2 + $0xd0] sm:$0xff] %v796_v42  ;;  %v1167_v53 = vadd.f32 %v1166_v38, %v796_v42  ;;  %v1237_v54 = vmul.f32 %v796_v42, %v796_v42  ;;  %1069 = vst [vmem:[%s2263_s2 + $0x1d0] sm:$0xff] %v2108_v43 }
 0x17e   :  { %v799_v50 = vpop.f32.mrb[54].mxu0  ;;  %v2110_v51 = vpop.f32.mrb[54].mxu1 }
 0x17f   :  { %v801_v55 = vpop.f32.mrb[55].mxu0  ;;  %v929_v57 = vpop.f32.mrb[55].mxu1  ;;  %v1300_v59 = vadd.f32 %v1299_v41, %v1237_v54  ;;  %1038 = vst [vmem:[%s2263_s2 + $0xd8] sm:$0xff] %v799_v50  ;;  %v1168_v60 = vadd.f32 %v1167_v53, %v799_v50  ;;  %v1238_v63 = vmul.f32 %v799_v50, %v799_v50  ;;  %1070 = vst [vmem:[%s2263_s2 + $0x1d8] sm:$0xff] %v2110_v51 }
 0x180   :  { %v1243_v50 = vmul.f32 %v1874_v18, %v1874_v18  ;;  %v1244_v55 = vmul.f32 %v1876_v22, %v1876_v22 }
 0x181   :  { %v1301_v0 = vadd.f32 %v1300_v59, %v1238_v63 }
 0x184   :  { %v804_v1 = vpop.f32.mrb[56].mxu0  ;;  %v2126_v3 = vpop.f32.mrb[56].mxu1 }
 0x185   :  { %v806_v4 = vpop.f32.mrb[57].mxu0  ;;  %v934_v5 = vpop.f32.mrb[57].mxu1  ;;  %1039 = vst [vmem:[%s2263_s2 + $0xe0] sm:$0xff] %v804_v1  ;;  %v1169_v11 = vadd.f32 %v1168_v60, %v804_v1  ;;  %v1239_v13 = vmul.f32 %v804_v1, %v804_v1  ;;  %1071 = vst [vmem:[%s2263_s2 + $0x1e0] sm:$0xff] %v2126_v3  ;;  %v1245_v60 = vmul.f32 %v1892_v30, %v1892_v30 }
 0x186   :  { %v807_v7 = vpop.f32.mrb[58].mxu0  ;;  %v2128_v10 = vpop.f32.mrb[58].mxu1  ;;  %v1246_v1 = vmul.f32 %v1894_v34, %v1894_v34 }
 0x187   :  { %v809_v15 = vpop.f32.mrb[59].mxu0  ;;  %v937_v16 = vpop.f32.mrb[59].mxu1  ;;  %v1302_v17 = vadd.f32 %v1301_v0, %v1239_v13  ;;  %1040 = vst [vmem:[%s2263_s2 + $0xe8] sm:$0xff] %v807_v7  ;;  %v1170_v19 = vadd.f32 %v1169_v11, %v807_v7  ;;  %v1240_v20 = vmul.f32 %v807_v7, %v807_v7  ;;  %1072 = vst [vmem:[%s2263_s2 + $0x1e8] sm:$0xff] %v2128_v10 }
 0x189   :  { %v1303_v23 = vadd.f32 %v1302_v17, %v1240_v20 }
 0x18c   :  { %v812_v25 = vpop.f32.mrb[60].mxu0  ;;  %v2144_v26 = vpop.f32.mrb[60].mxu1 }
 0x18d   :  { %v814_v31 = vpop.f32.mrb[61].mxu0  ;;  %v942_v32 = vpop.f32.mrb[61].mxu1  ;;  %1041 = vst [vmem:[%s2263_s2 + $0xf0] sm:$0xff] %v812_v25  ;;  %v1171_v37 = vadd.f32 %v1170_v19, %v812_v25  ;;  %v1241_v38 = vmul.f32 %v812_v25, %v812_v25  ;;  %1073 = vst [vmem:[%s2263_s2 + $0x1f0] sm:$0xff] %v2144_v26 }
 0x18e   :  { %v815_v35 = vpop.f32.mrb[62].mxu0  ;;  %v2146_v36 = vpop.f32.mrb[62].mxu1 }
 0x18f   :  { %v817_v39 = vpop.f32.mrb[63].mxu0  ;;  %v945_v41 = vpop.f32.mrb[63].mxu1  ;;  %v1304_v42 = vadd.f32 %v1303_v23, %v1241_v38  ;;  %1042 = vst [vmem:[%s2263_s2 + $0xf8] sm:$0xff] %v815_v35  ;;  %v1172_v46 = vadd.f32 %v1171_v37, %v815_v35  ;;  %v1242_v49 = vmul.f32 %v815_v35, %v815_v35  ;;  %1074 = vst [vmem:[%s2263_s2 + $0x1f8] sm:$0xff] %v2146_v36 }
 0x191   :  { %v1173_v53 = vadd.f32 %v1172_v46, %v1874_v18  ;;  %v1305_v54 = vadd.f32 %v1304_v42, %v1242_v49  ;;  %v1247_v18 = vmul.f32 %v1910_v44, %v1910_v44 }
 0x193   :  { %v1174_v57 = vadd.f32 %v1173_v53, %v1876_v22  ;;  %v1306_v59 = vadd.f32 %v1305_v54, %v1243_v50  ;;  %v1248_v22 = vmul.f32 %v1912_v48, %v1912_v48 }
 0x195   :  { %v1175_v63 = vadd.f32 %v1174_v57, %v1892_v30  ;;  %v1307_v0 = vadd.f32 %v1306_v59, %v1244_v55  ;;  %v1249_v30 = vmul.f32 %v1928_v58, %v1928_v58  ;;  %v1259_v57 = vmul.f32 %v2018_v9, %v2018_v9 }
 0x197   :  { %v1176_v4 = vadd.f32 %v1175_v63, %v1894_v34  ;;  %v1308_v5 = vadd.f32 %v1307_v0, %v1245_v60  ;;  %v1250_v34 = vmul.f32 %v1930_v62, %v1930_v62  ;;  %v1260_v63 = vmul.f32 %v2020_v14, %v2020_v14 }
 0x199   :  { %v1177_v7 = vadd.f32 %v1176_v4, %v1910_v44  ;;  %v1309_v11 = vadd.f32 %v1308_v5, %v1246_v1  ;;  %v1251_v44 = vmul.f32 %v1946_v8, %v1946_v8  ;;  %v1261_v1 = vmul.f32 %v2036_v27, %v2036_v27 }
 0x19a   :  { %v1262_v5 = vmul.f32 %v2038_v33, %v2038_v33 }
 0x19b   :  { %v1178_v13 = vadd.f32 %v1177_v7, %v1912_v48  ;;  %v1310_v15 = vadd.f32 %v1309_v11, %v1247_v18  ;;  %v1252_v48 = vmul.f32 %v1948_v12, %v1948_v12  ;;  %v1263_v7 = vmul.f32 %v2054_v47, %v2054_v47 }
 0x19d   :  { %v1179_v16 = vadd.f32 %v1178_v13, %v1928_v58  ;;  %v1311_v17 = vadd.f32 %v1310_v15, %v1248_v22  ;;  %v1253_v58 = vmul.f32 %v1964_v24, %v1964_v24  ;;  %v1264_v22 = vmul.f32 %v2056_v52, %v2056_v52 }
 0x19e   :  { %v1265_v15 = vmul.f32 %v2072_v2, %v2072_v2 }
 0x19f   :  { %v1180_v19 = vadd.f32 %v1179_v16, %v1930_v62  ;;  %v1312_v20 = vadd.f32 %v1311_v17, %v1249_v30  ;;  %v1254_v62 = vmul.f32 %v1966_v28, %v1966_v28  ;;  %v1266_v16 = vmul.f32 %v2074_v6, %v2074_v6 }
 0x1a1   :  { %v1313_v23 = vadd.f32 %v1312_v20, %v1250_v34  ;;  %v1181_v25 = vadd.f32 %v1180_v19, %v1946_v8  ;;  %v1255_v8 = vmul.f32 %v1982_v40, %v1982_v40  ;;  %v1267_v34 = vmul.f32 %v2090_v21, %v2090_v21 }
 0x1a2   :  { %v1268_v20 = vmul.f32 %v2092_v29, %v2092_v29 }
 0x1a3   :  { %v1182_v31 = vadd.f32 %v1181_v25, %v1948_v12  ;;  %v1314_v32 = vadd.f32 %v1313_v23, %v1251_v44  ;;  %v1256_v12 = vmul.f32 %v1984_v45, %v1984_v45  ;;  %v1269_v23 = vmul.f32 %v2108_v43, %v2108_v43 }
 0x1a5   :  { %v1183_v35 = vadd.f32 %v1182_v31, %v1964_v24  ;;  %v1315_v37 = vadd.f32 %v1314_v32, %v1252_v48  ;;  %v1257_v24 = vmul.f32 %v2000_v56, %v2000_v56  ;;  %v1270_v48 = vmul.f32 %v2110_v51, %v2110_v51 }
 0x1a6   :  { %v1271_v32 = vmul.f32 %v2126_v3, %v2126_v3 }
 0x1a7   :  { %v1184_v38 = vadd.f32 %v1183_v35, %v1966_v28  ;;  %v1316_v39 = vadd.f32 %v1315_v37, %v1253_v58  ;;  %v1258_v28 = vmul.f32 %v2002_v61, %v2002_v61  ;;  %v1272_v35 = vmul.f32 %v2128_v10, %v2128_v10 }
 0x1a9   :  { %v1185_v41 = vadd.f32 %v1184_v38, %v1982_v40  ;;  %v1317_v42 = vadd.f32 %v1316_v39, %v1254_v62  ;;  %v1274_v39 = vmul.f32 %v2146_v36, %v2146_v36 }
 0x1ab   :  { %v1186_v46 = vadd.f32 %v1185_v41, %v1984_v45  ;;  %v1318_v49 = vadd.f32 %v1317_v42, %v1255_v8 }
 0x1ad   :  { %v1187_v50 = vadd.f32 %v1186_v46, %v2000_v56  ;;  %v1319_v53 = vadd.f32 %v1318_v49, %v1256_v12 }
 0x1af   :  { %v1188_v54 = vadd.f32 %v1187_v50, %v2002_v61  ;;  %v1320_v55 = vadd.f32 %v1319_v53, %v1257_v24 }
 0x1b1   :  { %v1189_v40 = vadd.f32 %v1188_v54, %v2018_v9  ;;  %v1321_v59 = vadd.f32 %v1320_v55, %v1258_v28 }
 0x1b3   :  { %v1322_v45 = vadd.f32 %v1321_v59, %v1259_v57  ;;  %v1190_v60 = vadd.f32 %v1189_v40, %v2020_v14 }
 0x1b5   :  { %v1323_v56 = vadd.f32 %v1322_v45, %v1260_v63  ;;  %v1191_v0 = vadd.f32 %v1190_v60, %v2036_v27 }
 0x1b7   :  { %v1324_v61 = vadd.f32 %v1323_v56, %v1261_v1  ;;  %v1192_v4 = vadd.f32 %v1191_v0, %v2038_v33 }
 0x1b9   :  { %v1325_v9 = vadd.f32 %v1324_v61, %v1262_v5  ;;  %v1193_v18 = vadd.f32 %v1192_v4, %v2054_v47 }
 0x1bb   :  { %v1326_v11 = vadd.f32 %v1325_v9, %v1263_v7  ;;  %v1194_v14 = vadd.f32 %v1193_v18, %v2056_v52 }
 0x1bd   :  { %v1327_v13 = vadd.f32 %v1326_v11, %v1264_v22  ;;  %v1195_v27 = vadd.f32 %v1194_v14, %v2072_v2 }
 0x1bf   :  { %v1328_v30 = vadd.f32 %v1327_v13, %v1265_v15  ;;  %v1196_v33 = vadd.f32 %v1195_v27, %v2074_v6 }
 0x1c1   :  { %v1329_v17 = vadd.f32 %v1328_v30, %v1266_v16  ;;  %v1197_v47 = vadd.f32 %v1196_v33, %v2090_v21 }
 0x1c3   :  { %v1330_v19 = vadd.f32 %v1329_v17, %v1267_v34  ;;  %v1198_v52 = vadd.f32 %v1197_v47, %v2092_v29 }
 0x1c5   :  { %v1331_v44 = vadd.f32 %v1330_v19, %v1268_v20  ;;  %v1199_v2 = vadd.f32 %v1198_v52, %v2108_v43  ;;  %v1273_v43 = vmul.f32 %v2144_v26, %v2144_v26 }
 0x1c7   :  { %v1332_v25 = vadd.f32 %v1331_v44, %v1269_v23  ;;  %v1200_v6 = vadd.f32 %v1199_v2, %v2110_v51 }
 0x1c9   :  { %v1333_v31 = vadd.f32 %v1332_v25, %v1270_v48  ;;  %v1201_v21 = vadd.f32 %v1200_v6, %v2126_v3 }
 0x1cb   :  { %v1334_v58 = vadd.f32 %v1333_v31, %v1271_v32  ;;  %v1202_v29 = vadd.f32 %v1201_v21, %v2128_v10 }
 0x1cd   :  { %v1335_v37 = vadd.f32 %v1334_v58, %v1272_v35  ;;  %v1203_v62 = vadd.f32 %v1202_v29, %v2144_v26 }
 0x1cf   :  { %v1336_v38 = vadd.f32 %v1335_v37, %v1273_v43  ;;  %v1204_v51 = vadd.f32 %v1203_v62, %v2146_v36 }
 0x1d1   :  { %v1205_v8 = vrot.slane %v1204_v51, 4  ;;  %v1337_v3 = vadd.f32 %v1336_v38, %v1274_v39 }
 0x1d3   :  { %v1206_v41 = vadd.f32 %v1205_v8, %v1204_v51  ;;  %v1338_v42 = vrot.slane %v1337_v3, 4 }
 0x1d5   :  { %v1207_v12 = vrot.slane %v1206_v41, 2  ;;  %v1339_v46 = vadd.f32 %v1338_v42, %v1337_v3 }
 0x1d7   :  { %v1208_v49 = vadd.f32 %v1207_v12, %v1206_v41  ;;  %v1340_v10 = vrot.slane %v1339_v46, 2 }
 0x1d9   :  { %v1209_v24 = vrot.slane %v1208_v49, 1  ;;  %v1341_v50 = vadd.f32 %v1340_v10, %v1339_v46 }
 0x1db   :  { %v1342_v53 = vrot.slane %v1341_v50, 1  ;;  %v1210_v28 = vadd.f32 %v1209_v24, %v1208_v49 }
 0x1dd   :  { %v1343_v26 = vadd.f32 %v1342_v53, %v1341_v50 }
 0x1df   :  { %v1345_v54 = vsel %vm1344_vm0, %v1210_v28, %v1343_v26 }
 0x1e0   :  { %1346 = vst [vmem:[%s2264_s3] sm:$0x3] %v1345_v54 }

// kernel: resnet_forward.27
= control target key start
LH: loop header
LB: loop body
LE: loop exit
PB: predicated region body
PF: predicated region fallthrough
CT: control target
= control target key end

     0   :  { %s885_s0 = inlined_call_operand.vmem [shape: bf16[128,128], index: 0, kind: input, shape index: {}]   ;;  %s886_s1 = inlined_call_operand.vmem [shape: bf16[128,128], index: 1, kind: input, shape index: {}]   ;;  %s887_s2 = inlined_call_operand.vmem [shape: bf16[128,128], index: 2, kind: input, shape index: {}]   ;;  %s888_s3 = inlined_call_operand.vmem [shape: bf16[128,128], index: 3, kind: input, shape index: {}]   ;;  %s889_s4 = inlined_call_operand.vmem [shape: bf16[128,128], index: 4, kind: input, shape index: {}]   ;;  %s890_s5 = inlined_call_operand.vmem [shape: bf16[128,128], index: 5, kind: input, shape index: {}]   ;;  %s891_s6 = inlined_call_operand.vmem [shape: bf16[128,128], index: 6, kind: input, shape index: {}]   ;;  %s892_s7 = inlined_call_operand.vmem [shape: bf16[128,128], index: 7, kind: input, shape index: {}]   ;;  %s893_s8 = inlined_call_operand.vmem [shape: bf16[128,128], index: 8, kind: input, shape index: {}]   ;;  %s894_s9 = inlined_call_operand.vmem [shape: bf16[128,128], index: 9, kind: output, shape index: {}]  }
   0x1   :  { %v32_v0 = vld [vmem:[%s885_s0] sm:$0xf]  ;;  %v33_v1 = vld [vmem:[%s885_s0 + $0x4] sm:$0xf]  ;;  %v34_v27 = vld [vmem:[%s885_s0 + $0x8] sm:$0xf] }
   0x2   :  { %v48_v2 = vld [vmem:[%s886_s1] sm:$0xf]  ;;  %v49_v3 = vld [vmem:[%s886_s1 + $0x4] sm:$0xf]  ;;  %v35_v28 = vld [vmem:[%s885_s0 + $0xc] sm:$0xf] }
   0x3   :  { %v64_v4 = vld [vmem:[%s887_s2] sm:$0xf]  ;;  %v65_v5 = vld [vmem:[%s887_s2 + $0x4] sm:$0xf]  ;;  %v176_v6 = vmax.bf16 %v48_v2, %v32_v0  ;;  %v177_v10 = vmax.bf16 %v49_v3, %v33_v1  ;;  %v50_v29 = vld [vmem:[%s886_s1 + $0x8] sm:$0xf] }
   0x4   :  { %v80_v7 = vld [vmem:[%s888_s3] sm:$0xf]  ;;  %v81_v8 = vld [vmem:[%s888_s3 + $0x4] sm:$0xf]  ;;  %v51_v32 = vld [vmem:[%s886_s1 + $0xc] sm:$0xf]  ;;  %v178_v35 = vmax.bf16 %v50_v29, %v34_v27 }
   0x5   :  { %v96_v9 = vld [vmem:[%s889_s4] sm:$0xf]  ;;  %v97_v11 = vld [vmem:[%s889_s4 + $0x4] sm:$0xf]  ;;  %v192_v14 = vmax.bf16 %v80_v7, %v64_v4  ;;  %v193_v15 = vmax.bf16 %v81_v8, %v65_v5  ;;  %v66_v33 = vld [vmem:[%s887_s2 + $0x8] sm:$0xf]  ;;  %v179_v40 = vmax.bf16 %v51_v32, %v35_v28 }
   0x6   :  { %v112_v12 = vld [vmem:[%s890_s5] sm:$0xf]  ;;  %v113_v13 = vld [vmem:[%s890_s5 + $0x4] sm:$0xf]  ;;  %v67_v34 = vld [vmem:[%s887_s2 + $0xc] sm:$0xf] }
   0x7   :  { %v128_v16 = vld [vmem:[%s891_s6] sm:$0xf]  ;;  %v129_v17 = vld [vmem:[%s891_s6 + $0x4] sm:$0xf]  ;;  %v208_v19 = vmax.bf16 %v112_v12, %v96_v9  ;;  %v209_v20 = vmax.bf16 %v113_v13, %v97_v11  ;;  %v240_v23 = vmax.bf16 %v192_v14, %v176_v6  ;;  %v241_v26 = vmax.bf16 %v193_v15, %v177_v10  ;;  %v82_v37 = vld [vmem:[%s888_s3 + $0x8] sm:$0xf] }
   0x8   :  { %v144_v18 = vld [vmem:[%s892_s7] sm:$0xf]  ;;  %v145_v21 = vld [vmem:[%s892_s7 + $0x4] sm:$0xf]  ;;  %v83_v38 = vld [vmem:[%s888_s3 + $0xc] sm:$0xf]  ;;  %v194_v45 = vmax.bf16 %v82_v37, %v66_v33 }
   0x9   :  { %v224_v22 = vmax.bf16 %v144_v18, %v128_v16  ;;  %v160_v24 = vld [vmem:[%s893_s8] sm:$0xf]  ;;  %v225_v25 = vmax.bf16 %v145_v21, %v129_v17  ;;  %v161_v30 = vld [vmem:[%s893_s8 + $0x4] sm:$0xf]  ;;  %v98_v39 = vld [vmem:[%s889_s4 + $0x8] sm:$0xf]  ;;  %v195_v46 = vmax.bf16 %v83_v38, %v67_v34 }
   0xa   :  { %v99_v42 = vld [vmem:[%s889_s4 + $0xc] sm:$0xf]  ;;  %v114_v43 = vld [vmem:[%s890_s5 + $0x8] sm:$0xf]  ;;  %v242_v56 = vmax.bf16 %v194_v45, %v178_v35  ;;  %v36_v61 = vld [vmem:[%s885_s0 + $0x10] sm:$0xf] }
   0xb   :  { %v256_v31 = vmax.bf16 %v224_v22, %v208_v19  ;;  %v257_v36 = vmax.bf16 %v225_v25, %v209_v20  ;;  %v115_v44 = vld [vmem:[%s890_s5 + $0xc] sm:$0xf]  ;;  %v130_v48 = vld [vmem:[%s891_s6 + $0x8] sm:$0xf]  ;;  %v210_v51 = vmax.bf16 %v114_v43, %v98_v39  ;;  %v243_v60 = vmax.bf16 %v195_v46, %v179_v40  ;;  %v37_v62 = vld [vmem:[%s885_s0 + $0x14] sm:$0xf] }
   0xc   :  { %v131_v49 = vld [vmem:[%s891_s6 + $0xc] sm:$0xf]  ;;  %v146_v50 = vld [vmem:[%s892_s7 + $0x8] sm:$0xf]  ;;  %v211_v52 = vmax.bf16 %v115_v44, %v99_v42  ;;  %v52_v63 = vld [vmem:[%s886_s1 + $0x10] sm:$0xf] }
   0xd   :  { %v272_v41 = vmax.bf16 %v256_v31, %v240_v23  ;;  %v273_v47 = vmax.bf16 %v257_v36, %v241_v26  ;;  %v147_v54 = vld [vmem:[%s892_s7 + $0xc] sm:$0xf]  ;;  %v226_v55 = vmax.bf16 %v146_v50, %v130_v48  ;;  %v162_v58 = vld [vmem:[%s893_s8 + $0x8] sm:$0xf]  ;;  %v53_v2 = vld [vmem:[%s886_s1 + $0x14] sm:$0xf]  ;;  %v180_v5 = vmax.bf16 %v52_v63, %v36_v61 }
   0xe   :  { %v227_v59 = vmax.bf16 %v147_v54, %v131_v49  ;;  %v163_v0 = vld [vmem:[%s893_s8 + $0xc] sm:$0xf]  ;;  %v68_v3 = vld [vmem:[%s887_s2 + $0x10] sm:$0xf]  ;;  %v69_v4 = vld [vmem:[%s887_s2 + $0x14] sm:$0xf]  ;;  %v181_v11 = vmax.bf16 %v53_v2, %v37_v62 }
   0xf   :  { %v288_v53 = vmax.bf16 %v272_v41, %v160_v24  ;;  %v289_v57 = vmax.bf16 %v273_v47, %v161_v30  ;;  %v258_v1 = vmax.bf16 %v226_v55, %v210_v51  ;;  %v84_v8 = vld [vmem:[%s888_s3 + $0x10] sm:$0xf]  ;;  %v85_v9 = vld [vmem:[%s888_s3 + $0x14] sm:$0xf]  ;;  %v38_v32 = vld [vmem:[%s885_s0 + $0x18] sm:$0xf] }
  0x10   :  { %v259_v7 = vmax.bf16 %v227_v59, %v211_v52  ;;  %v100_v10 = vld [vmem:[%s889_s4 + $0x10] sm:$0xf]  ;;  %v101_v13 = vld [vmem:[%s889_s4 + $0x14] sm:$0xf]  ;;  %v196_v16 = vmax.bf16 %v84_v8, %v68_v3  ;;  %v197_v17 = vmax.bf16 %v85_v9, %v69_v4  ;;  %v39_v33 = vld [vmem:[%s885_s0 + $0x1c] sm:$0xf] }
  0x11   :  { %v364_v6 = vcombine.low %v288_v53, %v289_v57  ;;  %v274_v12 = vmax.bf16 %v258_v1, %v242_v56  ;;  %v116_v14 = vld [vmem:[%s890_s5 + $0x10] sm:$0xf]  ;;  %v117_v15 = vld [vmem:[%s890_s5 + $0x14] sm:$0xf]  ;;  %v54_v34 = vld [vmem:[%s886_s1 + $0x18] sm:$0xf] }
  0x12   :  { %v275_v18 = vmax.bf16 %v259_v7, %v243_v60  ;;  %v132_v19 = vld [vmem:[%s891_s6 + $0x10] sm:$0xf]  ;;  %v133_v20 = vld [vmem:[%s891_s6 + $0x14] sm:$0xf]  ;;  %v212_v22 = vmax.bf16 %v116_v14, %v100_v10  ;;  %v213_v23 = vmax.bf16 %v117_v15, %v101_v13  ;;  %v244_v27 = vmax.bf16 %v196_v16, %v180_v5  ;;  %v55_v37 = vld [vmem:[%s886_s1 + $0x1c] sm:$0xf] }
  0x13   :  { %328 = vst [vmem:[%s894_s9] sm:$0xff] %v364_v6   ;;  %v148_v21 = vld [vmem:[%s892_s7 + $0x10] sm:$0xf]  ;;  %v290_v24 = vmax.bf16 %v274_v12, %v162_v58  ;;  %v149_v25 = vld [vmem:[%s892_s7 + $0x14] sm:$0xf]  ;;  %v245_v31 = vmax.bf16 %v197_v17, %v181_v11  ;;  %v70_v38 = vld [vmem:[%s887_s2 + $0x18] sm:$0xf]  ;;  %v182_v40 = vmax.bf16 %v54_v34, %v38_v32  ;;  %v183_v46 = vmax.bf16 %v55_v37, %v39_v33 }
  0x14   :  { %v228_v26 = vmax.bf16 %v148_v21, %v132_v19  ;;  %v291_v28 = vmax.bf16 %v275_v18, %v163_v0  ;;  %v164_v29 = vld [vmem:[%s893_s8 + $0x10] sm:$0xf]  ;;  %v229_v30 = vmax.bf16 %v149_v25, %v133_v20  ;;  %v165_v35 = vld [vmem:[%s893_s8 + $0x14] sm:$0xf]  ;;  %v71_v39 = vld [vmem:[%s887_s2 + $0x1c] sm:$0xf] }
  0x15   :  { %v86_v43 = vld [vmem:[%s888_s3 + $0x18] sm:$0xf]  ;;  %v87_v44 = vld [vmem:[%s888_s3 + $0x1c] sm:$0xf]  ;;  %v40_v3 = vld [vmem:[%s885_s0 + $0x20] sm:$0xf] }
  0x16   :  { %v260_v36 = vmax.bf16 %v228_v26, %v212_v22  ;;  %v365_v41 = vcombine.low %v290_v24, %v291_v28  ;;  %v261_v42 = vmax.bf16 %v229_v30, %v213_v23  ;;  %v102_v45 = vld [vmem:[%s889_s4 + $0x18] sm:$0xf]  ;;  %v103_v48 = vld [vmem:[%s889_s4 + $0x1c] sm:$0xf]  ;;  %v198_v51 = vmax.bf16 %v86_v43, %v70_v38  ;;  %v41_v4 = vld [vmem:[%s885_s0 + $0x24] sm:$0xf] }
  0x17   :  { %v118_v49 = vld [vmem:[%s890_s5 + $0x18] sm:$0xf]  ;;  %v119_v50 = vld [vmem:[%s890_s5 + $0x1c] sm:$0xf]  ;;  %v199_v52 = vmax.bf16 %v87_v44, %v71_v39  ;;  %v56_v5 = vld [vmem:[%s886_s1 + $0x20] sm:$0xf] }
  0x18   :  { %v276_v47 = vmax.bf16 %v260_v36, %v244_v27  ;;  %366 = vst [vmem:[%s894_s9 + $0x8] sm:$0xff] %v365_v41   ;;  %v277_v53 = vmax.bf16 %v261_v42, %v245_v31  ;;  %v134_v54 = vld [vmem:[%s891_s6 + $0x18] sm:$0xf]  ;;  %v135_v55 = vld [vmem:[%s891_s6 + $0x1c] sm:$0xf]  ;;  %v214_v57 = vmax.bf16 %v118_v49, %v102_v45  ;;  %v215_v58 = vmax.bf16 %v119_v50, %v103_v48 }
  0x19   :  { %v150_v56 = vld [vmem:[%s892_s7 + $0x18] sm:$0xf]  ;;  %v151_v60 = vld [vmem:[%s892_s7 + $0x1c] sm:$0xf]  ;;  %v246_v62 = vmax.bf16 %v198_v51, %v182_v40  ;;  %v247_v2 = vmax.bf16 %v199_v52, %v183_v46  ;;  %v57_v8 = vld [vmem:[%s886_s1 + $0x24] sm:$0xf]  ;;  %v184_v11 = vmax.bf16 %v56_v5, %v40_v3 }
  0x1a   :  { %v292_v59 = vmax.bf16 %v276_v47, %v164_v29  ;;  %v230_v61 = vmax.bf16 %v150_v56, %v134_v54  ;;  %v293_v63 = vmax.bf16 %v277_v53, %v165_v35  ;;  %v166_v0 = vld [vmem:[%s893_s8 + $0x18] sm:$0xf]  ;;  %v231_v1 = vmax.bf16 %v151_v60, %v135_v55  ;;  %v167_v6 = vld [vmem:[%s893_s8 + $0x1c] sm:$0xf]  ;;  %v72_v9 = vld [vmem:[%s887_s2 + $0x20] sm:$0xf] }
  0x1b   :  { %v73_v10 = vld [vmem:[%s887_s2 + $0x24] sm:$0xf]  ;;  %v88_v14 = vld [vmem:[%s888_s3 + $0x20] sm:$0xf]  ;;  %v185_v17 = vmax.bf16 %v57_v8, %v41_v4  ;;  %v42_v38 = vld [vmem:[%s885_s0 + $0x28] sm:$0xf] }
  0x1c   :  { %v262_v7 = vmax.bf16 %v230_v61, %v214_v57  ;;  %v367_v12 = vcombine.low %v292_v59, %v293_v63  ;;  %v263_v13 = vmax.bf16 %v231_v1, %v215_v58  ;;  %v89_v15 = vld [vmem:[%s888_s3 + $0x24] sm:$0xf]  ;;  %v104_v16 = vld [vmem:[%s889_s4 + $0x20] sm:$0xf]  ;;  %v200_v22 = vmax.bf16 %v88_v14, %v72_v9  ;;  %v43_v39 = vld [vmem:[%s885_s0 + $0x2c] sm:$0xf] }
  0x1d   :  { %v105_v19 = vld [vmem:[%s889_s4 + $0x24] sm:$0xf]  ;;  %v120_v20 = vld [vmem:[%s890_s5 + $0x20] sm:$0xf]  ;;  %v201_v23 = vmax.bf16 %v89_v15, %v73_v10  ;;  %v58_v40 = vld [vmem:[%s886_s1 + $0x28] sm:$0xf] }
  0x1e   :  { %v278_v18 = vmax.bf16 %v262_v7, %v246_v62  ;;  %v121_v21 = vld [vmem:[%s890_s5 + $0x24] sm:$0xf]  ;;  %368 = vst [vmem:[%s894_s9 + $0x10] sm:$0xff] %v367_v12   ;;  %v279_v24 = vmax.bf16 %v263_v13, %v247_v2  ;;  %v136_v25 = vld [vmem:[%s891_s6 + $0x20] sm:$0xf]  ;;  %v216_v28 = vmax.bf16 %v120_v20, %v104_v16  ;;  %v248_v33 = vmax.bf16 %v200_v22, %v184_v11 }
  0x1f   :  { %v137_v26 = vld [vmem:[%s891_s6 + $0x24] sm:$0xf]  ;;  %v152_v27 = vld [vmem:[%s892_s7 + $0x20] sm:$0xf]  ;;  %v217_v29 = vmax.bf16 %v121_v21, %v105_v19  ;;  %v249_v37 = vmax.bf16 %v201_v23, %v185_v17  ;;  %v59_v43 = vld [vmem:[%s886_s1 + $0x2c] sm:$0xf]  ;;  %v186_v46 = vmax.bf16 %v58_v40, %v42_v38 }
  0x20   :  { %v294_v30 = vmax.bf16 %v278_v18, %v166_v0  ;;  %v153_v31 = vld [vmem:[%s892_s7 + $0x24] sm:$0xf]  ;;  %v232_v32 = vmax.bf16 %v152_v27, %v136_v25  ;;  %v295_v34 = vmax.bf16 %v279_v24, %v167_v6  ;;  %v168_v35 = vld [vmem:[%s893_s8 + $0x20] sm:$0xf]  ;;  %v74_v44 = vld [vmem:[%s887_s2 + $0x28] sm:$0xf]  ;;  %v187_v52 = vmax.bf16 %v59_v43, %v43_v39 }
  0x21   :  { %v233_v36 = vmax.bf16 %v153_v31, %v137_v26  ;;  %v169_v41 = vld [vmem:[%s893_s8 + $0x24] sm:$0xf]  ;;  %v75_v45 = vld [vmem:[%s887_s2 + $0x2c] sm:$0xf]  ;;  %v90_v49 = vld [vmem:[%s888_s3 + $0x28] sm:$0xf] }
  0x22   :  { %v264_v42 = vmax.bf16 %v232_v32, %v216_v28  ;;  %v369_v47 = vcombine.low %v294_v30, %v295_v34  ;;  %v91_v50 = vld [vmem:[%s888_s3 + $0x2c] sm:$0xf]  ;;  %v106_v51 = vld [vmem:[%s889_s4 + $0x28] sm:$0xf]  ;;  %v202_v57 = vmax.bf16 %v90_v49, %v74_v44  ;;  %v44_v9 = vld [vmem:[%s885_s0 + $0x30] sm:$0xf] }
  0x23   :  { %v265_v48 = vmax.bf16 %v233_v36, %v217_v29  ;;  %v107_v54 = vld [vmem:[%s889_s4 + $0x2c] sm:$0xf]  ;;  %v122_v55 = vld [vmem:[%s890_s5 + $0x28] sm:$0xf]  ;;  %v203_v58 = vmax.bf16 %v91_v50, %v75_v45  ;;  %v45_v10 = vld [vmem:[%s885_s0 + $0x34] sm:$0xf] }
  0x24   :  { %v280_v53 = vmax.bf16 %v264_v42, %v248_v33  ;;  %v123_v56 = vld [vmem:[%s890_s5 + $0x2c] sm:$0xf]  ;;  %370 = vst [vmem:[%s894_s9 + $0x18] sm:$0xff] %v369_v47   ;;  %v138_v60 = vld [vmem:[%s891_s6 + $0x28] sm:$0xf]  ;;  %v218_v63 = vmax.bf16 %v122_v55, %v106_v51  ;;  %v250_v4 = vmax.bf16 %v202_v57, %v186_v46 }
  0x25   :  { %v281_v59 = vmax.bf16 %v265_v48, %v249_v37  ;;  %v139_v61 = vld [vmem:[%s891_s6 + $0x2c] sm:$0xf]  ;;  %v154_v62 = vld [vmem:[%s892_s7 + $0x28] sm:$0xf]  ;;  %v219_v0 = vmax.bf16 %v123_v56, %v107_v54  ;;  %v251_v8 = vmax.bf16 %v203_v58, %v187_v52  ;;  %v60_v11 = vld [vmem:[%s886_s1 + $0x30] sm:$0xf] }
  0x26   :  { %v296_v1 = vmax.bf16 %v280_v53, %v168_v35  ;;  %v155_v2 = vld [vmem:[%s892_s7 + $0x2c] sm:$0xf]  ;;  %v234_v3 = vmax.bf16 %v154_v62, %v138_v60  ;;  %v170_v6 = vld [vmem:[%s893_s8 + $0x28] sm:$0xf]  ;;  %v61_v14 = vld [vmem:[%s886_s1 + $0x34] sm:$0xf]  ;;  %v188_v17 = vmax.bf16 %v60_v11, %v44_v9 }
  0x27   :  { %v297_v5 = vmax.bf16 %v281_v59, %v169_v41  ;;  %v235_v7 = vmax.bf16 %v155_v2, %v139_v61  ;;  %v171_v12 = vld [vmem:[%s893_s8 + $0x2c] sm:$0xf]  ;;  %v76_v15 = vld [vmem:[%s887_s2 + $0x30] sm:$0xf]  ;;  %v77_v16 = vld [vmem:[%s887_s2 + $0x34] sm:$0xf]  ;;  %v189_v23 = vmax.bf16 %v61_v14, %v45_v10 }
  0x28   :  { %v266_v13 = vmax.bf16 %v234_v3, %v218_v63  ;;  %v92_v20 = vld [vmem:[%s888_s3 + $0x30] sm:$0xf]  ;;  %v93_v21 = vld [vmem:[%s888_s3 + $0x34] sm:$0xf]  ;;  %v46_v44 = vld [vmem:[%s885_s0 + $0x38] sm:$0xf] }
  0x29   :  { %v371_v18 = vcombine.low %v296_v1, %v297_v5  ;;  %v267_v19 = vmax.bf16 %v235_v7, %v219_v0  ;;  %v108_v22 = vld [vmem:[%s889_s4 + $0x30] sm:$0xf]  ;;  %v109_v25 = vld [vmem:[%s889_s4 + $0x34] sm:$0xf]  ;;  %v204_v28 = vmax.bf16 %v92_v20, %v76_v15  ;;  %v205_v29 = vmax.bf16 %v93_v21, %v77_v16  ;;  %v47_v45 = vld [vmem:[%s885_s0 + $0x3c] sm:$0xf] }
  0x2a   :  { %v282_v24 = vmax.bf16 %v266_v13, %v250_v4  ;;  %v124_v26 = vld [vmem:[%s890_s5 + $0x30] sm:$0xf]  ;;  %v125_v27 = vld [vmem:[%s890_s5 + $0x34] sm:$0xf]  ;;  %v62_v46 = vld [vmem:[%s886_s1 + $0x38] sm:$0xf] }
  0x2b   :  { %372 = vst [vmem:[%s894_s9 + $0x20] sm:$0xff] %v371_v18   ;;  %v283_v30 = vmax.bf16 %v267_v19, %v251_v8  ;;  %v140_v31 = vld [vmem:[%s891_s6 + $0x30] sm:$0xf]  ;;  %v141_v32 = vld [vmem:[%s891_s6 + $0x34] sm:$0xf]  ;;  %v220_v34 = vmax.bf16 %v124_v26, %v108_v22  ;;  %v221_v35 = vmax.bf16 %v125_v27, %v109_v25  ;;  %v252_v39 = vmax.bf16 %v204_v28, %v188_v17 }
  0x2c   :  { %v156_v33 = vld [vmem:[%s892_s7 + $0x30] sm:$0xf]  ;;  %v298_v36 = vmax.bf16 %v282_v24, %v170_v6  ;;  %v157_v37 = vld [vmem:[%s892_s7 + $0x34] sm:$0xf]  ;;  %v253_v43 = vmax.bf16 %v205_v29, %v189_v23  ;;  %v63_v49 = vld [vmem:[%s886_s1 + $0x3c] sm:$0xf]  ;;  %v190_v52 = vmax.bf16 %v62_v46, %v46_v44 }
  0x2d   :  { %v236_v38 = vmax.bf16 %v156_v33, %v140_v31  ;;  %v299_v40 = vmax.bf16 %v283_v30, %v171_v12  ;;  %v172_v41 = vld [vmem:[%s893_s8 + $0x30] sm:$0xf]  ;;  %v237_v42 = vmax.bf16 %v157_v37, %v141_v32  ;;  %v173_v47 = vld [vmem:[%s893_s8 + $0x34] sm:$0xf]  ;;  %v78_v50 = vld [vmem:[%s887_s2 + $0x38] sm:$0xf]  ;;  %v191_v58 = vmax.bf16 %v63_v49, %v47_v45 }
  0x2e   :  { %v79_v51 = vld [vmem:[%s887_s2 + $0x3c] sm:$0xf]  ;;  %v94_v55 = vld [vmem:[%s888_s3 + $0x38] sm:$0xf] }
  0x2f   :  { %v268_v48 = vmax.bf16 %v236_v38, %v220_v34  ;;  %v373_v53 = vcombine.low %v298_v36, %v299_v40  ;;  %v269_v54 = vmax.bf16 %v237_v42, %v221_v35  ;;  %v95_v56 = vld [vmem:[%s888_s3 + $0x3c] sm:$0xf]  ;;  %v110_v57 = vld [vmem:[%s889_s4 + $0x38] sm:$0xf]  ;;  %v206_v63 = vmax.bf16 %v94_v55, %v78_v50 }
  0x30   :  { %v111_v60 = vld [vmem:[%s889_s4 + $0x3c] sm:$0xf]  ;;  %v126_v61 = vld [vmem:[%s890_s5 + $0x38] sm:$0xf]  ;;  %v207_v0 = vmax.bf16 %v95_v56, %v79_v51 }
  0x31   :  { %v284_v59 = vmax.bf16 %v268_v48, %v252_v39  ;;  %v127_v62 = vld [vmem:[%s890_s5 + $0x3c] sm:$0xf]  ;;  %374 = vst [vmem:[%s894_s9 + $0x28] sm:$0xff] %v373_v53   ;;  %v285_v1 = vmax.bf16 %v269_v54, %v253_v43  ;;  %v142_v2 = vld [vmem:[%s891_s6 + $0x38] sm:$0xf]  ;;  %v222_v5 = vmax.bf16 %v126_v61, %v110_v57  ;;  %v254_v10 = vmax.bf16 %v206_v63, %v190_v52 }
  0x32   :  { %v143_v3 = vld [vmem:[%s891_s6 + $0x3c] sm:$0xf]  ;;  %v158_v4 = vld [vmem:[%s892_s7 + $0x38] sm:$0xf]  ;;  %v223_v6 = vmax.bf16 %v127_v62, %v111_v60  ;;  %v255_v13 = vmax.bf16 %v207_v0, %v191_v58 }
  0x33   :  { %v300_v7 = vmax.bf16 %v284_v59, %v172_v41  ;;  %v159_v8 = vld [vmem:[%s892_s7 + $0x3c] sm:$0xf]  ;;  %v238_v9 = vmax.bf16 %v158_v4, %v142_v2  ;;  %v301_v11 = vmax.bf16 %v285_v1, %v173_v47  ;;  %v174_v16 = vld [vmem:[%s893_s8 + $0x38] sm:$0xf] }
  0x34   :  { %v239_v12 = vmax.bf16 %v159_v8, %v143_v3  ;;  %v175_v18 = vld [vmem:[%s893_s8 + $0x3c] sm:$0xf] }
  0x35   :  { %v270_v14 = vmax.bf16 %v238_v9, %v222_v5  ;;  %v375_v15 = vcombine.low %v300_v7, %v301_v11 }
  0x36   :  { %v271_v17 = vmax.bf16 %v239_v12, %v223_v6 }
  0x37   :  { %v286_v19 = vmax.bf16 %v270_v14, %v254_v10  ;;  %376 = vst [vmem:[%s894_s9 + $0x30] sm:$0xff] %v375_v15  }
  0x38   :  { %v287_v20 = vmax.bf16 %v271_v17, %v255_v13 }
  0x39   :  { %v302_v21 = vmax.bf16 %v286_v19, %v174_v16 }
  0x3a   :  { %v303_v22 = vmax.bf16 %v287_v20, %v175_v18 }
  0x3c   :  { %v377_v23 = vcombine.low %v302_v21, %v303_v22 }
  0x3e   :  { %378 = vst [vmem:[%s894_s9 + $0x38] sm:$0xff] %v377_v23  }

// kernel: resnet_forward.29
= control target key start
LH: loop header
LB: loop body
LE: loop exit
PB: predicated region body
PF: predicated region fallthrough
CT: control target
= control target key end

     0   :  { %s391_s0 = inlined_call_operand.vmem [shape: f32[128,128], index: 0, kind: input, shape index: {}]   ;;  %s392_s1 = inlined_call_operand.vmem [shape: f32[1,128], index: 1, kind: input, shape index: {}]   ;;  %s393_s2 = inlined_call_operand.vmem [shape: f32[1,128], index: 2, kind: input, shape index: {}]   ;;  %s394_s3 = inlined_call_operand.vmem [shape: bf16[128,128], index: 3, kind: output, shape index: {}]  }
   0x1   :  { %v14_v0 = vld [vmem:[%s391_s0] sm:$0xff]  ;;  %v15_v1 = vld [vmem:[%s391_s0 + $0x8] sm:$0xff]  ;;  %v16_v6 = vld [vmem:[%s391_s0 + $0x10] sm:$0xff] }
   0x2   :  { %v286_v2 = vld [vmem:[%s392_s1] ss:$0 sm:$0xff]  ;;  %v17_v7 = vld [vmem:[%s391_s0 + $0x18] sm:$0xff]  ;;  %v19_v11 = vld [vmem:[%s391_s0 + $0x28] sm:$0xff] }
   0x3   :  { %v37_v3 = vmul.f32 %v286_v2, %v14_v0  ;;  %v38_v4 = vmul.f32 %v286_v2, %v15_v1  ;;  %v293_v5 = vld [vmem:[%s393_s2] ss:$0 sm:$0xff]  ;;  %v39_v8 = vmul.f32 %v286_v2, %v16_v6  ;;  %v40_v9 = vmul.f32 %v286_v2, %v17_v7  ;;  %v20_v12 = vld [vmem:[%s391_s0 + $0x30] sm:$0xff]  ;;  %v21_v17 = vld [vmem:[%s391_s0 + $0x38] sm:$0xff] }
   0x4   :  { %v18_v10 = vld [vmem:[%s391_s0 + $0x20] sm:$0xff]  ;;  %v42_v16 = vmul.f32 %v286_v2, %v19_v11  ;;  %v43_v20 = vmul.f32 %v286_v2, %v20_v12  ;;  %v44_v21 = vmul.f32 %v286_v2, %v21_v17  ;;  %v23_v27 = vld [vmem:[%s391_s0 + $0x48] sm:$0xff]  ;;  %v24_v32 = vld [vmem:[%s391_s0 + $0x50] sm:$0xff] }
   0x5   :  { %v60_v13 = vadd.f32 %v293_v5, %v37_v3  ;;  %v61_v14 = vadd.f32 %v293_v5, %v38_v4  ;;  %v41_v15 = vmul.f32 %v286_v2, %v18_v10  ;;  %v62_v18 = vadd.f32 %v293_v5, %v39_v8  ;;  %v22_v22 = vld [vmem:[%s391_s0 + $0x40] sm:$0xff]  ;;  %v25_v33 = vld [vmem:[%s391_s0 + $0x58] sm:$0xff]  ;;  %v27_v39 = vld [vmem:[%s391_s0 + $0x68] sm:$0xff] }
   0x6   :  { %v63_v19 = vadd.f32 %v293_v5, %v40_v9  ;;  %v65_v26 = vadd.f32 %v293_v5, %v42_v16  ;;  %v66_v30 = vadd.f32 %v293_v5, %v43_v20  ;;  %v67_v31 = vadd.f32 %v293_v5, %v44_v21  ;;  %v26_v38 = vld [vmem:[%s391_s0 + $0x60] sm:$0xff]  ;;  %v28_v44 = vld [vmem:[%s391_s0 + $0x70] sm:$0xff]  ;;  %v29_v49 = vld [vmem:[%s391_s0 + $0x78] sm:$0xff] }
   0x7   :  { %v76_v23 = vmax.f32 %v60_v13, 0.0  ;;  %v77_v24 = vmax.f32 %v61_v14, 0.0  ;;  %v64_v25 = vadd.f32 %v293_v5, %v41_v15  ;;  %v78_v28 = vmax.f32 %v62_v18, 0.0 }
   0x8   :  { %v79_v29 = vmax.f32 %v63_v19, 0.0  ;;  %v81_v36 = vmax.f32 %v65_v26, 0.0  ;;  %v45_v37 = vmul.f32 %v286_v2, %v22_v22  ;;  %v82_v41 = vmax.f32 %v66_v30, 0.0 }
   0x9   :  { %v213_v34 = vpack.c.bf16 %v77_v24, %v76_v23  ;;  %v80_v35 = vmax.f32 %v64_v25, 0.0  ;;  %v83_v42 = vmax.f32 %v67_v31, 0.0  ;;  %v46_v43 = vmul.f32 %v286_v2, %v23_v27 }
   0xa   :  { %v218_v40 = vpack.c.bf16 %v79_v29, %v78_v28  ;;  %v68_v46 = vadd.f32 %v293_v5, %v45_v37  ;;  %v47_v47 = vmul.f32 %v286_v2, %v24_v32  ;;  %v48_v48 = vmul.f32 %v286_v2, %v25_v33 }
   0xb   :  { %214 = vst [vmem:[%s394_s3] sm:$0xff] %v213_v34   ;;  %v223_v45 = vpack.c.bf16 %v81_v36, %v80_v35  ;;  %v228_v50 = vpack.c.bf16 %v83_v42, %v82_v41  ;;  %v69_v51 = vadd.f32 %v293_v5, %v46_v43  ;;  %v49_v52 = vmul.f32 %v286_v2, %v26_v38 }
   0xc   :  { %250 = vst [vmem:[%s394_s3 + $0x8] sm:$0xff] %v218_v40   ;;  %v50_v53 = vmul.f32 %v286_v2, %v27_v39  ;;  %v84_v54 = vmax.f32 %v68_v46, 0.0  ;;  %v70_v55 = vadd.f32 %v293_v5, %v47_v47  ;;  %v71_v56 = vadd.f32 %v293_v5, %v48_v48 }
   0xd   :  { %251 = vst [vmem:[%s394_s3 + $0x10] sm:$0xff] %v223_v45   ;;  %v51_v57 = vmul.f32 %v286_v2, %v28_v44  ;;  %252 = vst [vmem:[%s394_s3 + $0x18] sm:$0xff] %v228_v50   ;;  %v85_v58 = vmax.f32 %v69_v51, 0.0  ;;  %v72_v59 = vadd.f32 %v293_v5, %v49_v52  ;;  %v52_v61 = vmul.f32 %v286_v2, %v29_v49 }
   0xe   :  { %v73_v60 = vadd.f32 %v293_v5, %v50_v53  ;;  %v86_v62 = vmax.f32 %v70_v55, 0.0  ;;  %v87_v63 = vmax.f32 %v71_v56, 0.0 }
   0xf   :  { %v74_v0 = vadd.f32 %v293_v5, %v51_v57  ;;  %v233_v1 = vpack.c.bf16 %v85_v58, %v84_v54  ;;  %v88_v3 = vmax.f32 %v72_v59, 0.0  ;;  %v75_v6 = vadd.f32 %v293_v5, %v52_v61 }
  0x10   :  { %v89_v4 = vmax.f32 %v73_v60, 0.0  ;;  %v238_v7 = vpack.c.bf16 %v87_v63, %v86_v62 }
  0x11   :  { %v90_v8 = vmax.f32 %v74_v0, 0.0  ;;  %253 = vst [vmem:[%s394_s3 + $0x20] sm:$0xff] %v233_v1   ;;  %v91_v10 = vmax.f32 %v75_v6, 0.0 }
  0x12   :  { %v243_v9 = vpack.c.bf16 %v89_v4, %v88_v3  ;;  %254 = vst [vmem:[%s394_s3 + $0x28] sm:$0xff] %v238_v7  }
  0x13   :  { %v248_v2 = vpack.c.bf16 %v91_v10, %v90_v8 }
  0x14   :  { %255 = vst [vmem:[%s394_s3 + $0x30] sm:$0xff] %v243_v9  }
  0x15   :  { %256 = vst [vmem:[%s394_s3 + $0x38] sm:$0xff] %v248_v2  }

// kernel: resnet_forward.28
= control target key start
LH: loop header
LB: loop body
LE: loop exit
PB: predicated region body
PF: predicated region fallthrough
CT: control target
= control target key end

     0   :  { %s1492_s12 = smov 0   ;;  %s1494_s13 = smov 0   ;;  %s1874_s0 = inlined_call_operand.vmem [shape: bf16[128,1152], index: 0, kind: input, shape index: {}]   ;;  %s1875_s1 = inlined_call_operand.vmem [shape: bf16[1152,128], index: 1, kind: input, shape index: {}]   ;;  %s1876_s2 = inlined_call_operand.vmem [shape: f32[128,128], index: 2, kind: output, shape index: {0}]   ;;  %s1877_s3 = inlined_call_operand.vmem [shape: f32[1,2,128], index: 3, kind: output, shape index: {1}]  }
   0x1   :  { %s1496_s14 = smov 0   ;;  %s1498_s15 = smov 0  }
   0x2   :  { %s1500_s16 = smov 0  }
   0x3 LB: > { %s23_s17 = sadd.s32 1, %s1465_s15  ;;  %p42_p1 = scmp.ne.s32.totalorder %s1457_s13, %s1453_s12  ;;  %s1469_s16 = sphi %s1500_s16, %s14_s16   ;;  %s1465_s15 = sphi %s1498_s15, %s1881_s15   ;;  %s1461_s14 = sphi %s1496_s14, %s1880_s14   ;;  %s1457_s13 = sphi %s1494_s13, %s1879_s13   ;;  %s1453_s12 = sphi %s1492_s12, %s1878_s12  }
   0x4   : > { %p24_p0 = scmp.ge.s32.totalorder %s23_s17, 3  ;;  %p43_p2 = scmp.eq.s32.totalorder %s1469_s16, 0 }
   0x5   : > { %s35_s19 = sadd.s32 1, %s1457_s13  ;;  %p1128_p5 = scmp.ge.s32.totalorder %s1469_s16, 3 }
   0x6   : > { %s1883_s17 = smov (%p24_p0, %s23_s17), 0  ;;  %p44_p3 = por %p43_p2, %p42_p1 }
   0x7   : > { %s31_s18 = ssub.s32 %s1465_s15, %s1883_s17  ;;  %146 = sbr.rel (%p1128_p5) target bundleno = 37 (0x25), region = 16 }
   0x8   : > { %p33_p4 = scmp.eq.s32.totalorder %s31_s18, 0 }
   0xa   : > { %s1527_s20 = scalar_select %p33_p4, %s1457_s13, %s35_s19  }
   0xe   : > { %149 = sbr.rel (!%p44_p3) target bundleno = 37 (0x25), region = 20  ;;  %s151_s21 = sand.u32 (%p44_p3), 1, %s1457_s13  }
   0xf   : > { %s1219_s22 = smul.u32 (%p44_p3), 12, %s1465_s15 }
  0x10   : > { %s1332_s23 = smul.u32 (%p44_p3), 192, %s151_s21 }
  0x11   : > { %s1535_s26 = scalar_lea.vmem (%p44_p3), %s1874_s0, %s1219_s22 }
  0x12   : > { %v174_v0 = vld [vmem:[%s1535_s26] sm:$0xff] (%p44_p3)  ;;  %v178_v2 = vld [vmem:[%s1535_s26 + $0x48] sm:$0xff] (%p44_p3)  ;;  %s1540_s27 = scalar_lea.vmem (%p44_p3), [#allocation2], %s1332_s23  ;;  %v182_v4 = vld [vmem:[%s1535_s26 + $0x90] sm:$0xff] (%p44_p3) }
  0x13   : > { %v176_v1 = vld [vmem:[%s1535_s26 + $0x24] sm:$0xff] (%p44_p3)  ;;  %175 = vst [vmem:[%s1540_s27] sm:$0xff] (%p44_p3), %v174_v0  ;;  %179 = vst [vmem:[%s1540_s27 + $0x18] sm:$0xff] (%p44_p3), %v178_v2  ;;  %v180_v3 = vld [vmem:[%s1535_s26 + $0x6c] sm:$0xff] (%p44_p3) }
  0x14   : > { %177 = vst [vmem:[%s1540_s27 + $0xc] sm:$0xff] (%p44_p3), %v176_v1  ;;  %v184_v5 = vld [vmem:[%s1535_s26 + $0xb4] sm:$0xff] (%p44_p3)  ;;  %181 = vst [vmem:[%s1540_s27 + $0x24] sm:$0xff] (%p44_p3), %v180_v3  ;;  %v188_v7 = vld [vmem:[%s1535_s26 + $0xfc] sm:$0xff] (%p44_p3) }
  0x15   : > { %183 = vst [vmem:[%s1540_s27 + $0x30] sm:$0xff] %v182_v4  ;;  %185 = vst [vmem:[%s1540_s27 + $0x3c] sm:$0xff] %v184_v5  ;;  %v186_v6 = vld [vmem:[%s1535_s26 + $0xd8] sm:$0xff]  ;;  %v190_v8 = vld [vmem:[%s1535_s26 + $0x120] sm:$0xff] }
  0x16   : > { %187 = vst [vmem:[%s1540_s27 + $0x48] sm:$0xff] %v186_v6  ;;  %189 = vst [vmem:[%s1540_s27 + $0x54] sm:$0xff] %v188_v7  ;;  %v192_v9 = vld [vmem:[%s1535_s26 + $0x144] sm:$0xff]  ;;  %v196_v11 = vld [vmem:[%s1535_s26 + $0x18c] sm:$0xff] }
  0x17   : > { %191 = vst [vmem:[%s1540_s27 + $0x60] sm:$0xff] %v190_v8  ;;  %v194_v10 = vld [vmem:[%s1535_s26 + $0x168] sm:$0xff]  ;;  %193 = vst [vmem:[%s1540_s27 + $0x6c] sm:$0xff] %v192_v9  ;;  %v198_v12 = vld [vmem:[%s1535_s26 + $0x1b0] sm:$0xff] }
  0x18   : > { %195 = vst [vmem:[%s1540_s27 + $0x78] sm:$0xff] %v194_v10  ;;  %197 = vst [vmem:[%s1540_s27 + $0x84] sm:$0xff] %v196_v11  ;;  %v200_v13 = vld [vmem:[%s1535_s26 + $0x1d4] sm:$0xff]  ;;  %v204_v15 = vld [vmem:[%s1535_s26 + $0x21c] sm:$0xff] }
  0x19   : > { %v202_v14 = vld [vmem:[%s1535_s26 + $0x1f8] sm:$0xff]  ;;  %199 = vst [vmem:[%s1540_s27 + $0x90] sm:$0xff] %v198_v12  ;;  %201 = vst [vmem:[%s1540_s27 + $0x9c] sm:$0xff] %v200_v13  ;;  %v1130_v16 = vld [vmem:[%s1535_s26 + $0x8] sm:$0xf] }
  0x1a   : > { %203 = vst [vmem:[%s1540_s27 + $0xa8] sm:$0xff] %v202_v14  ;;  %v1132_v17 = vld [vmem:[%s1535_s26 + $0x2c] sm:$0xf]  ;;  %205 = vst [vmem:[%s1540_s27 + $0xb4] sm:$0xff] %v204_v15  ;;  %v1134_v18 = vld [vmem:[%s1535_s26 + $0x50] sm:$0xf] }
  0x1b   : > { %1131 = vst [vmem:[%s1540_s27 + $0x8] sm:$0xf] %v1130_v16  ;;  %1133 = vst [vmem:[%s1540_s27 + $0x14] sm:$0xf] %v1132_v17  ;;  %v1136_v19 = vld [vmem:[%s1535_s26 + $0x74] sm:$0xf] }
  0x1c   : > { %v1138_v20 = vld [vmem:[%s1535_s26 + $0x98] sm:$0xf]  ;;  %1135 = vst [vmem:[%s1540_s27 + $0x20] sm:$0xf] %v1134_v18  ;;  %1137 = vst [vmem:[%s1540_s27 + $0x2c] sm:$0xf] %v1136_v19 }
  0x1d   : > { %1139 = vst [vmem:[%s1540_s27 + $0x38] sm:$0xf] %v1138_v20  ;;  %v1140_v21 = vld [vmem:[%s1535_s26 + $0xbc] sm:$0xf]  ;;  %v1142_v22 = vld [vmem:[%s1535_s26 + $0xe0] sm:$0xf] }
  0x1e   : > { %v1144_v23 = vld [vmem:[%s1535_s26 + $0x104] sm:$0xf]  ;;  %1141 = vst [vmem:[%s1540_s27 + $0x44] sm:$0xf] %v1140_v21  ;;  %1143 = vst [vmem:[%s1540_s27 + $0x50] sm:$0xf] %v1142_v22 }
  0x1f   : > { %1145 = vst [vmem:[%s1540_s27 + $0x5c] sm:$0xf] %v1144_v23  ;;  %v1146_v24 = vld [vmem:[%s1535_s26 + $0x128] sm:$0xf]  ;;  %v1148_v25 = vld [vmem:[%s1535_s26 + $0x14c] sm:$0xf] }
  0x20   : > { %v1150_v26 = vld [vmem:[%s1535_s26 + $0x170] sm:$0xf]  ;;  %1147 = vst [vmem:[%s1540_s27 + $0x68] sm:$0xf] %v1146_v24  ;;  %1149 = vst [vmem:[%s1540_s27 + $0x74] sm:$0xf] %v1148_v25 }
  0x21   : > { %1151 = vst [vmem:[%s1540_s27 + $0x80] sm:$0xf] %v1150_v26  ;;  %v1152_v27 = vld [vmem:[%s1535_s26 + $0x194] sm:$0xf]  ;;  %v1154_v28 = vld [vmem:[%s1535_s26 + $0x1b8] sm:$0xf] }
  0x22   : > { %v1156_v29 = vld [vmem:[%s1535_s26 + $0x1dc] sm:$0xf]  ;;  %1153 = vst [vmem:[%s1540_s27 + $0x8c] sm:$0xf] %v1152_v27  ;;  %1155 = vst [vmem:[%s1540_s27 + $0x98] sm:$0xf] %v1154_v28 }
  0x23   : > { %1157 = vst [vmem:[%s1540_s27 + $0xa4] sm:$0xf] %v1156_v29  ;;  %v1158_v30 = vld [vmem:[%s1535_s26 + $0x200] sm:$0xf]  ;;  %v1160_v31 = vld [vmem:[%s1535_s26 + $0x224] sm:$0xf] }
  0x24   : > { %1159 = vst [vmem:[%s1540_s27 + $0xb0] sm:$0xf] %v1158_v30  ;;  %1161 = vst [vmem:[%s1540_s27 + $0xbc] sm:$0xf] %v1160_v31 }
  0x25 PF: > { %p1162_p6 = scmp.ge.s32.totalorder %s1469_s16, 1  ;;  %p258_p7 = scmp.lt.s32.totalorder %s1469_s16, 4 }
  0x27   : > { %p259_p8 = pnand %p1162_p6, %p258_p7 }
  0x28   : > { %s265_s28 = sand.u32 (!%p259_p8), 1, %s1453_s12   ;;  %s299_s29 = smul.u32 (!%p259_p8), 48, %s1461_s14 }
  0x29   : > { %262 = sbr.rel (%p259_p8) target bundleno = 406 (0x196), region = 50  ;;  %p1164_p10 = scmp.ne.s32.totalorder (!%p259_p8), %s1461_s14, 0 }
  0x2a   : > { %s1333_s30 = smul.u32 (!%p259_p8), 192, %s265_s28  ;;  %p300_p9 = scmp.lt.s32.totalorder (!%p259_p8), %s299_s29, 143 }
  0x2c   : > { %s1612_s8 = scalar_lea.vmem (!%p259_p8), [#allocation2], %s1333_s30 }
  0x30   : > { %s1885_s29 = smov (!%p300_p9, %s299_s29), 143  ;;  %319 = sbr.rel (%p1164_p10) target bundleno = 58 (0x3a), region = 58 }
  0x31   : > { %s1163_s4 = sshll.u32 %s1885_s29, 2  ;;  %v1471_v32 = vmov (!%p1164_p10), 0.0  }
  0x32   : > { %s1610_s7 = scalar_lea.vmem %s1875_s1, %s1163_s4  ;;  %320 = vst [vmem:[%s1876_s2] sm:$0xff] (!%p1164_p10), %v1471_v32  ;;  %321 = vst [vmem:[%s1876_s2 + $0x8] sm:$0xff] (!%p1164_p10), %v1471_v32 }
  0x33   : > { %322 = vst [vmem:[%s1876_s2 + $0x10] sm:$0xff] (!%p1164_p10), %v1471_v32  ;;  %323 = vst [vmem:[%s1876_s2 + $0x18] sm:$0xff] (!%p1164_p10), %v1471_v32 }
  0x34   : > { %324 = vst [vmem:[%s1876_s2 + $0x20] sm:$0xff] (!%p1164_p10), %v1471_v32  ;;  %325 = vst [vmem:[%s1876_s2 + $0x28] sm:$0xff] (!%p1164_p10), %v1471_v32 }
  0x35   : > { %326 = vst [vmem:[%s1876_s2 + $0x30] sm:$0xff] (!%p1164_p10), %v1471_v32  ;;  %327 = vst [vmem:[%s1876_s2 + $0x38] sm:$0xff] (!%p1164_p10), %v1471_v32 }
  0x36   : > { %328 = vst [vmem:[%s1876_s2 + $0x40] sm:$0xff] (!%p1164_p10), %v1471_v32  ;;  %329 = vst [vmem:[%s1876_s2 + $0x48] sm:$0xff] (!%p1164_p10), %v1471_v32 }
  0x37   : > { %330 = vst [vmem:[%s1876_s2 + $0x50] sm:$0xff] %v1471_v32  ;;  %331 = vst [vmem:[%s1876_s2 + $0x58] sm:$0xff] %v1471_v32 }
  0x38   : > { %332 = vst [vmem:[%s1876_s2 + $0x60] sm:$0xff] %v1471_v32  ;;  %333 = vst [vmem:[%s1876_s2 + $0x68] sm:$0xff] %v1471_v32 }
  0x39   : > { %334 = vst [vmem:[%s1876_s2 + $0x70] sm:$0xff] %v1471_v32  ;;  %335 = vst [vmem:[%s1876_s2 + $0x78] sm:$0xff] %v1471_v32 }
  0x3a PF: > { %v1375_v33 = vld [vmem:[%s1610_s7 + $0x40] sm:$0xff]   ;;  %v1378_v36 = vld [vmem:[%s1610_s7 + $0x48] sm:$0xff]   ;;  %v1381_v39 = vld [vmem:[%s1610_s7 + $0x50] sm:$0xff]   ;;  %p1213_p11 = scmp.ne.s32.totalorder %s1461_s14, 2 }
  0x3b   : > { %v1376_v34 = vld [vmem:[%s1610_s7] sm:$0xff]   ;;  %1220 = vmatprep.subr.bf16.mxu0 %v1375_v33  ;;  %v1379_v37 = vld [vmem:[%s1610_s7 + $0x8] sm:$0xff]   ;;  %v1382_v40 = vld [vmem:[%s1610_s7 + $0x10] sm:$0xff]   ;;  %vm1008_vm0 = vcmask (!%p1213_p11), 1040384  }
  0x3c   : > { %v1377_v35 = vld [vmem:[%s1610_s7 + $0x80] sm:$0xff]   ;;  %1221 = vmatpush3.bf16.msra.mxu0 %v1376_v34  ;;  %v1380_v38 = vld [vmem:[%s1610_s7 + $0x88] sm:$0xff]   ;;  %v1383_v41 = vld [vmem:[%s1610_s7 + $0x90] sm:$0xff]  }
  0x3d   : > { %1300 = vmatprep.subr.bf16.mxu1 %v1377_v35  ;;  %1222 = vmatprep.subr.bf16.mxu0 %v1378_v36  ;;  %v1384_v42 = vld [vmem:[%s1610_s7 + $0x58] sm:$0xff]   ;;  %v1387_v45 = vld [vmem:[%s1610_s7 + $0x60] sm:$0xff]   ;;  %v1390_v48 = vld [vmem:[%s1610_s7 + $0x68] sm:$0xff]  }
  0x3e   : > { %1301 = vmatpush3.bf16.msra.mxu1 %v1377_v35  ;;  %v1385_v43 = vld [vmem:[%s1610_s7 + $0x18] sm:$0xff]   ;;  %v1389_v46 = vld [vmem:[%s1610_s7 + $0xa0] sm:$0xff]   ;;  %v1392_v49 = vld [vmem:[%s1610_s7 + $0xa8] sm:$0xff]  }
  0x3f   : > { %1302 = vmatprep.subr.bf16.mxu1 %v1380_v38  ;;  %v1386_v44 = vld [vmem:[%s1610_s7 + $0x98] sm:$0xff]   ;;  %v1388_v47 = vld [vmem:[%s1610_s7 + $0x20] sm:$0xff]   ;;  %v1391_v50 = vld [vmem:[%s1610_s7 + $0x28] sm:$0xff]  }
  0x40   : > { %1223 = vmatpush3.bf16.msra.mxu0 %v1379_v37  ;;  %v1393_v51 = vld [vmem:[%s1610_s7 + $0x70] sm:$0xff]   ;;  %v1396_v54 = vld [vmem:[%s1610_s7 + $0x78] sm:$0xff]   ;;  %v1399_v59 = vld [vmem:[%s1612_s8] ss:$12 sps:$4 sm:$0xff]  }
  0x41   : > { %1224 = vmatprep.subr.bf16.mxu0 %v1381_v39  ;;  %v1394_v52 = vld [vmem:[%s1610_s7 + $0x30] sm:$0xff]   ;;  %v1398_v55 = vld [vmem:[%s1610_s7 + $0xb8] sm:$0xff]   ;;  %v1403_v61 = vld [vmem:[%s1612_s8 + $0x20] ss:$12 sps:$4 sm:$0xff]  }
  0x42   : > { %1303 = vmatpush3.bf16.msra.mxu1 %v1380_v38  ;;  %v1395_v53 = vld [vmem:[%s1610_s7 + $0xb0] sm:$0xff]   ;;  %v1397_v58 = vld [vmem:[%s1610_s7 + $0x38] sm:$0xff]   ;;  %v1419_v5 = vld [vmem:[%s1612_s8 + $0x80] ss:$12 sps:$4 sm:$0xff]  }
  0x43   : > { %1304 = vmatprep.subr.bf16.mxu1 %v1383_v41  ;;  %v1401_v56 = vld [vmem:[%s1612_s8 + $0x4] ss:$12 sps:$4 sm:$0xff]   ;;  %v1402_v57 = vld [vmem:[%s1612_s8 + $0x8] ss:$12 sps:$4 sm:$0xff]   ;;  %v1412_v4 = vld [vmem:[%s1612_s8 + $0x4c] ss:$12 sps:$4 sm:$0xff]  }
  0x44   : > { %1225 = vmatpush3.bf16.msra.mxu0 %v1382_v40  ;;  %736 = vmatprep.mubr.bf16.mxu0 %v1401_v56  ;;  %v1404_v60 = vld [vmem:[%s1612_s8 + $0x1c] ss:$12 sps:$4 sm:$0xff]   ;;  %v1410_v62 = vld [vmem:[%s1612_s8 + $0x38] ss:$12 sps:$4 sm:$0xff]   ;;  %v1407_v0 = vld [vmem:[%s1612_s8 + $0x34] ss:$12 sps:$4 sm:$0xff]  }
  0x45   : > { %1226 = vmatprep.subr.bf16.mxu0 %v1384_v42  ;;  %1316 = vmatprep.mubr.bf16.mxu1 %v1402_v57  ;;  %v1406_v63 = vld [vmem:[%s1612_s8 + $0x18] ss:$12 sps:$4 sm:$0xff]   ;;  %v1411_v1 = vld [vmem:[%s1612_s8 + $0x50] ss:$12 sps:$4 sm:$0xff]   ;;  %v1418_v2 = vld [vmem:[%s1612_s8 + $0x68] ss:$12 sps:$4 sm:$0xff]  }
  0x46   : > { %1305 = vmatpush3.bf16.msra.mxu1 %v1383_v41  ;;  %v1409_v3 = vld [vmem:[%s1612_s8 + $0x30] ss:$12 sps:$4 sm:$0xff]   ;;  %v1426_v6 = vld [vmem:[%s1612_s8 + $0x98] ss:$12 sps:$4 sm:$0xff]   ;;  %v1414_v7 = vld [vmem:[%s1612_s8 + $0x48] ss:$12 sps:$4 sm:$0xff]  }
  0x47   : > { %1306 = vmatprep.subr.bf16.mxu1 %v1386_v44  ;;  %v1415_v8 = vld [vmem:[%s1612_s8 + $0x64] ss:$12 sps:$4 sm:$0xff]   ;;  %v1417_v10 = vld [vmem:[%s1612_s8 + $0x60] ss:$12 sps:$4 sm:$0xff]   ;;  %v1420_v11 = vld [vmem:[%s1612_s8 + $0x7c] ss:$12 sps:$4 sm:$0xff]  }
  0x48   : > { %1227 = vmatpush3.bf16.msra.mxu0 %v1385_v43  ;;  %v1427_v9 = vld [vmem:[%s1612_s8 + $0xb0] ss:$12 sps:$4 sm:$0xff]   ;;  %v1422_v12 = vld [vmem:[%s1612_s8 + $0x78] ss:$12 sps:$4 sm:$0xff]   ;;  %v1423_v13 = vld [vmem:[%s1612_s8 + $0x94] ss:$12 sps:$4 sm:$0xff]  }
  0x49   : > { %1228 = vmatprep.subr.bf16.mxu0 %v1387_v45  ;;  %v1425_v14 = vld [vmem:[%s1612_s8 + $0x90] ss:$12 sps:$4 sm:$0xff]   ;;  %v1428_v15 = vld [vmem:[%s1612_s8 + $0xac] ss:$12 sps:$4 sm:$0xff]   ;;  %v1430_v16 = vld [vmem:[%s1612_s8 + $0xa8] ss:$12 sps:$4 sm:$0xff]  }
  0x4a   : > { %1307 = vmatpush3.bf16.msra.mxu1 %v1386_v44  ;;  %v336_v23 = vld [vmem:[%s1876_s2] sm:$0xff]  ;;  %v337_v28 = vld [vmem:[%s1876_s2 + $0x8] sm:$0xff]  ;;  %v338_v38 = vld [vmem:[%s1876_s2 + $0x10] sm:$0xff] }
  0x4b   : > { %1308 = vmatprep.subr.bf16.mxu1 %v1389_v46  ;;  %v339_v44 = vld [vmem:[%s1876_s2 + $0x18] sm:$0xff] }
  0x4c   : > { %1229 = vmatpush3.bf16.msra.mxu0 %v1388_v47 }
  0x4d   : > { %1230 = vmatprep.subr.bf16.mxu0 %v1390_v48 }
  0x4e   : > { %1309 = vmatpush3.bf16.msra.mxu1 %v1389_v46 }
  0x4f   : > { %1310 = vmatprep.subr.bf16.mxu1 %v1392_v49 }
  0x50   : > { %1231 = vmatpush3.bf16.msra.mxu0 %v1391_v50 }
  0x51   : > { %1232 = vmatprep.subr.bf16.mxu0 %v1393_v51 }
  0x52   : > { %1311 = vmatpush3.bf16.msra.mxu1 %v1392_v49 }
  0x53   : > { %1312 = vmatprep.subr.bf16.mxu1 %v1395_v53 }
  0x54   : > { %1233 = vmatpush3.bf16.msra.mxu0 %v1394_v52 }
  0x55   : > { %1234 = vmatprep.subr.bf16.mxu0 %v1396_v54 }
  0x56   : > { %1313 = vmatpush3.bf16.msra.mxu1 %v1395_v53 }
  0x57   : > { %1314 = vmatprep.subr.bf16.mxu1 %v1398_v55 }
  0x58   : > { %1235 = vmatpush3.bf16.msra.mxu0 %v1397_v58 }
  0x5a   : > { %1315 = vmatpush3.bf16.msra.mxu1 %v1398_v55  ;;  %v340_v55 = vld [vmem:[%s1876_s2 + $0x20] sm:$0xff] }
  0x5b   : > { %737 = vmatmul.mubr.bf16.vlgmr.msra.gmra.mrb[0].mxu0 %v1399_v59 }
  0x5c   : > { %744 = vmatprep.mubr.bf16.mxu0 %v1404_v60  ;;  %v341_v60 = vld [vmem:[%s1876_s2 + $0x28] sm:$0xff] }
  0x5d   : > { %1317 = vmatmul.mubr.bf16.vlgmr.msra.gmra.mrb[0].mxu1 %v1403_v61 }
  0x5e   : > { %1320 = vmatprep.mubr.bf16.mxu1 %v1410_v62 }
  0x63   : > { %745 = vmatmul.mubr.bf16.gmra.mrb[4].mxu0 %v1406_v63 }
  0x64   : > { %752 = vmatprep.mubr.bf16.mxu0 %v1407_v0 }
  0x65   : > { %1321 = vmatmul.mubr.bf16.gmra.mrb[4].mxu1 %v1411_v1 }
  0x66   : > { %1324 = vmatprep.mubr.bf16.mxu1 %v1418_v2 }
  0x6b   : > { %753 = vmatmul.mubr.bf16.gmra.mrb[8].mxu0 %v1409_v3 }
  0x6c   : > { %760 = vmatprep.mubr.bf16.mxu0 %v1412_v4 }
  0x6d   : > { %1325 = vmatmul.mubr.bf16.gmra.mrb[8].mxu1 %v1419_v5 }
  0x6e   : > { %1328 = vmatprep.mubr.bf16.mxu1 %v1426_v6  ;;  %v342_v6 = vld [vmem:[%s1876_s2 + $0x30] sm:$0xff] }
  0x73   : > { %761 = vmatmul.mubr.bf16.gmra.mrb[12].mxu0 %v1414_v7 }
  0x74   : > { %768 = vmatprep.mubr.bf16.mxu0 %v1415_v8 }
  0x75   : > { %1329 = vmatmul.mubr.bf16.gmra.mrb[12].mxu1 %v1427_v9 }
  0x7b   : > { %769 = vmatmul.mubr.bf16.gmra.mrb[16].mxu0 %v1417_v10 }
  0x7c   : > { %776 = vmatprep.mubr.bf16.mxu0 %v1420_v11 }
  0x83   : > { %777 = vmatmul.mubr.bf16.gmra.mrb[20].mxu0 %v1422_v12  ;;  %v343_v12 = vld [vmem:[%s1876_s2 + $0x38] sm:$0xff] }
  0x84   : > { %784 = vmatprep.mubr.bf16.mxu0 %v1423_v13 }
  0x8b   : > { %785 = vmatmul.mubr.bf16.gmra.mrb[24].mxu0 %v1425_v14 }
  0x8c   : > { %792 = vmatprep.mubr.bf16.mxu0 %v1428_v15 }
  0x93   : > { %793 = vmatmul.mubr.bf16.gmra.mrb[28].mxu0 %v1430_v16 }
 0x12e   : > { %v1236_v17 = vpop.f32.mrb[0].mxu0 }
 0x12f   : > { %v1237_v18 = vpop.f32.mrb[1].mxu0 }
 0x130   : > { %v1238_v19 = vadd.f32 %v1237_v18, %v1236_v17  ;;  %v1239_v20 = vpop.f32.mrb[2].mxu0  ;;  %v1318_v21 = vpop.f32.mrb[0].mxu1 }
 0x131   : > { %v1240_v22 = vpop.f32.mrb[3].mxu0  ;;  %v835_v24 = vpop.f32.mrb[1].mxu1 }
 0x132   : > { %v1241_v25 = vadd.f32 %v1240_v22, %v1239_v20  ;;  %v836_v26 = vadd.f32 %v1238_v19, %v835_v24  ;;  %v1319_v27 = vpop.f32.mrb[2].mxu1  ;;  %v344_v22 = vld [vmem:[%s1876_s2 + $0x40] sm:$0xff] }
 0x133   : > { %v838_v29 = vpop.f32.mrb[3].mxu1 }
 0x134   : > { %v898_v30 = vadd.f32 %v836_v26, %v336_v23  ;;  %v839_v31 = vadd.f32 %v1241_v25, %v838_v29  ;;  %v345_v25 = vld [vmem:[%s1876_s2 + $0x48] sm:$0xff] }
 0x136   : > { %914 = vst [vmem:[%s1876_s2] sm:$0xff] %v898_v30  ;;  %v899_v32 = vadd.f32 %v839_v31, %v337_v28  ;;  %v1242_v33 = vpop.f32.mrb[4].mxu0 }
 0x137   : > { %v1243_v34 = vpop.f32.mrb[5].mxu0 }
 0x138   : > { %915 = vst [vmem:[%s1876_s2 + $0x8] sm:$0xff] %v899_v32  ;;  %v1244_v35 = vadd.f32 %v1243_v34, %v1242_v33  ;;  %v1245_v36 = vpop.f32.mrb[6].mxu0  ;;  %v1322_v37 = vpop.f32.mrb[4].mxu1  ;;  %v346_v33 = vld [vmem:[%s1876_s2 + $0x50] sm:$0xff] }
 0x139   : > { %v1246_v39 = vpop.f32.mrb[7].mxu0  ;;  %v851_v40 = vpop.f32.mrb[5].mxu1 }
 0x13a   : > { %v844_v41 = vadd.f32 %v1318_v21, %v1244_v35  ;;  %v1247_v42 = vadd.f32 %v1246_v39, %v1245_v36  ;;  %v1323_v43 = vpop.f32.mrb[6].mxu1 }
 0x13b   : > { %v854_v45 = vpop.f32.mrb[7].mxu1 }
 0x13c   : > { %v900_v46 = vadd.f32 %v844_v41, %v338_v38  ;;  %v847_v47 = vadd.f32 %v1319_v27, %v1247_v42 }
 0x13e   : > { %916 = vst [vmem:[%s1876_s2 + $0x10] sm:$0xff] %v900_v46  ;;  %v901_v48 = vadd.f32 %v847_v47, %v339_v44  ;;  %v1248_v49 = vpop.f32.mrb[8].mxu0  ;;  %v348_v46 = vld [vmem:[%s1876_s2 + $0x60] sm:$0xff] }
 0x13f   : > { %v1249_v50 = vpop.f32.mrb[9].mxu0 }
 0x140   : > { %917 = vst [vmem:[%s1876_s2 + $0x18] sm:$0xff] %v901_v48  ;;  %v1250_v51 = vadd.f32 %v1249_v50, %v1248_v49  ;;  %v1251_v52 = vpop.f32.mrb[10].mxu0  ;;  %v1326_v53 = vpop.f32.mrb[8].mxu1  ;;  %v349_v49 = vld [vmem:[%s1876_s2 + $0x68] sm:$0xff] }
 0x141   : > { %v1252_v54 = vpop.f32.mrb[11].mxu0  ;;  %v867_v56 = vpop.f32.mrb[9].mxu1 }
 0x142   : > { %v1253_v57 = vadd.f32 %v1252_v54, %v1251_v52  ;;  %v852_v58 = vadd.f32 %v1250_v51, %v851_v40  ;;  %v1327_v59 = vpop.f32.mrb[10].mxu1 }
 0x143   : > { %v870_v61 = vpop.f32.mrb[11].mxu1 }
 0x144   : > { %v902_v62 = vadd.f32 %v852_v58, %v340_v55  ;;  %v855_v63 = vadd.f32 %v1253_v57, %v854_v45  ;;  %v350_v57 = vld [vmem:[%s1876_s2 + $0x70] sm:$0xff] }
 0x146   : > { %918 = vst [vmem:[%s1876_s2 + $0x20] sm:$0xff] %v902_v62  ;;  %v903_v0 = vadd.f32 %v855_v63, %v341_v60  ;;  %v1254_v1 = vpop.f32.mrb[12].mxu0 }
 0x147   : > { %v1255_v2 = vpop.f32.mrb[13].mxu0 }
 0x148   : > { %919 = vst [vmem:[%s1876_s2 + $0x28] sm:$0xff] %v903_v0  ;;  %v1256_v3 = vadd.f32 %v1255_v2, %v1254_v1  ;;  %v1257_v4 = vpop.f32.mrb[14].mxu0  ;;  %v1330_v5 = vpop.f32.mrb[12].mxu1  ;;  %v934_v1 = vld [vmem:[%s1876_s2] sm:$0xff] (!%p1213_p11)  ;;  %v935_v2 = vld [vmem:[%s1876_s2 + $0x8] sm:$0xff] (!%p1213_p11) }
 0x149   : > { %v1258_v7 = vpop.f32.mrb[15].mxu0  ;;  %v883_v8 = vpop.f32.mrb[13].mxu1 }
 0x14a   : > { %v860_v9 = vadd.f32 %v1322_v37, %v1256_v3  ;;  %v1259_v10 = vadd.f32 %v1258_v7, %v1257_v4  ;;  %v1331_v11 = vpop.f32.mrb[14].mxu1  ;;  %v347_v37 = vld [vmem:[%s1876_s2 + $0x58] sm:$0xff]  ;;  %v936_v3 = vld [vmem:[%s1876_s2 + $0x10] sm:$0xff] (!%p1213_p11)  ;;  %v972_v7 = vmul.f32 (!%p1213_p11), %v935_v2, %v935_v2 }
 0x14b   : > { %v886_v13 = vpop.f32.mrb[15].mxu1  ;;  %v937_v4 = vld [vmem:[%s1876_s2 + $0x18] sm:$0xff] (!%p1213_p11) }
 0x14c   : > { %v904_v14 = vadd.f32 %v860_v9, %v342_v6  ;;  %v863_v15 = vadd.f32 %v1323_v43, %v1259_v10  ;;  %v971_v6 = vmul.f32 (!%p1213_p11), %v934_v1, %v934_v1 }
 0x14d   : > { %v938_v9 = vld [vmem:[%s1876_s2 + $0x20] sm:$0xff] (!%p1213_p11) }
 0x14e   : > { %920 = vst [vmem:[%s1876_s2 + $0x30] sm:$0xff] %v904_v14  ;;  %v905_v16 = vadd.f32 %v863_v15, %v343_v12  ;;  %v1260_v17 = vpop.f32.mrb[16].mxu0  ;;  %v987_v12 = vadd.f32 (!%p1213_p11), %v972_v7, %v971_v6  ;;  %v975_v15 = vmul.f32 (!%p1213_p11), %v938_v9, %v938_v9 }
 0x14f   : > { %v1261_v18 = vpop.f32.mrb[17].mxu0 }
 0x150   : > { %921 = vst [vmem:[%s1876_s2 + $0x38] sm:$0xff] %v905_v16  ;;  %v1262_v19 = vadd.f32 %v1261_v18, %v1260_v17  ;;  %v1263_v20 = vpop.f32.mrb[18].mxu0 }
 0x151   : > { %v1264_v21 = vpop.f32.mrb[19].mxu0 }
 0x152   : > { %v1265_v23 = vadd.f32 %v1264_v21, %v1263_v20  ;;  %v868_v24 = vadd.f32 %v1262_v19, %v867_v56 }
 0x154   : > { %v906_v26 = vadd.f32 %v868_v24, %v344_v22  ;;  %v871_v27 = vadd.f32 %v1265_v23, %v870_v61  ;;  %v351_v61 = vld [vmem:[%s1876_s2 + $0x78] sm:$0xff] }
 0x155   : > { %v940_v17 = vld [vmem:[%s1876_s2 + $0x30] sm:$0xff] (!%p1213_p11) }
 0x156   : > { %922 = vst [vmem:[%s1876_s2 + $0x40] sm:$0xff] %v906_v26  ;;  %v907_v28 = vadd.f32 %v871_v27, %v345_v25  ;;  %v1266_v29 = vpop.f32.mrb[20].mxu0  ;;  %v977_v23 = vmul.f32 (!%p1213_p11), %v940_v17, %v940_v17 }
 0x157   : > { %v1267_v30 = vpop.f32.mrb[21].mxu0  ;;  %v941_v21 = vld [vmem:[%s1876_s2 + $0x38] sm:$0xff] (!%p1213_p11) }
 0x158   : > { %923 = vst [vmem:[%s1876_s2 + $0x48] sm:$0xff] %v907_v28  ;;  %v1268_v31 = vadd.f32 %v1267_v30, %v1266_v29  ;;  %v1269_v32 = vpop.f32.mrb[22].mxu0  ;;  %v978_v27 = vmul.f32 (!%p1213_p11), %v941_v21, %v941_v21 }
 0x159   : > { %v1270_v34 = vpop.f32.mrb[23].mxu0 }
 0x15a   : > { %v876_v35 = vadd.f32 %v1326_v53, %v1268_v31  ;;  %v1271_v36 = vadd.f32 %v1270_v34, %v1269_v32 }
 0x15c   : > { %v908_v38 = vadd.f32 %v876_v35, %v346_v33  ;;  %v879_v39 = vadd.f32 %v1327_v59, %v1271_v36 }
 0x15d   : > { %v942_v25 = vld [vmem:[%s1876_s2 + $0x40] sm:$0xff] (!%p1213_p11) }
 0x15e   : > { %924 = vst [vmem:[%s1876_s2 + $0x50] sm:$0xff] %v908_v38  ;;  %v909_v40 = vadd.f32 %v879_v39, %v347_v37  ;;  %v1272_v41 = vpop.f32.mrb[24].mxu0  ;;  %v979_v31 = vmul.f32 (!%p1213_p11), %v942_v25, %v942_v25 }
 0x15f   : > { %v1273_v42 = vpop.f32.mrb[25].mxu0  ;;  %v943_v29 = vld [vmem:[%s1876_s2 + $0x48] sm:$0xff] (!%p1213_p11) }
 0x160   : > { %925 = vst [vmem:[%s1876_s2 + $0x58] sm:$0xff] %v909_v40  ;;  %v1274_v43 = vadd.f32 %v1273_v42, %v1272_v41  ;;  %v1275_v44 = vpop.f32.mrb[26].mxu0  ;;  %v980_v35 = vmul.f32 (!%p1213_p11), %v943_v29, %v943_v29 }
 0x161   : > { %v1276_v45 = vpop.f32.mrb[27].mxu0 }
 0x162   : > { %v1277_v47 = vadd.f32 %v1276_v45, %v1275_v44  ;;  %v884_v48 = vadd.f32 %v1274_v43, %v883_v8  ;;  %v973_v8 = vmul.f32 (!%p1213_p11), %v936_v3, %v936_v3 }
 0x164   : > { %v910_v50 = vadd.f32 %v884_v48, %v348_v46  ;;  %v887_v51 = vadd.f32 %v1277_v47, %v886_v13  ;;  %v939_v13 = vld [vmem:[%s1876_s2 + $0x28] sm:$0xff] (!%p1213_p11)  ;;  %v988_v16 = vadd.f32 (!%p1213_p11), %v987_v12, %v973_v8 }
 0x165   : > { %v976_v19 = vmul.f32 (!%p1213_p11), %v939_v13, %v939_v13  ;;  %v944_v33 = vld [vmem:[%s1876_s2 + $0x50] sm:$0xff] (!%p1213_p11) }
 0x166   : > { %926 = vst [vmem:[%s1876_s2 + $0x60] sm:$0xff] %v910_v50  ;;  %v911_v52 = vadd.f32 %v887_v51, %v349_v49  ;;  %v1278_v53 = vpop.f32.mrb[28].mxu0  ;;  %v981_v39 = vmul.f32 (!%p1213_p11), %v944_v33, %v944_v33 }
 0x167   : > { %v1279_v54 = vpop.f32.mrb[29].mxu0  ;;  %v945_v37 = vld [vmem:[%s1876_s2 + $0x58] sm:$0xff] (!%p1213_p11) }
 0x168   : > { %927 = vst [vmem:[%s1876_s2 + $0x68] sm:$0xff] %v911_v52  ;;  %v1280_v55 = vadd.f32 %v1279_v54, %v1278_v53  ;;  %v1281_v56 = vpop.f32.mrb[30].mxu0  ;;  %v982_v43 = vmul.f32 (!%p1213_p11), %v945_v37, %v945_v37 }
 0x169   : > { %v1282_v58 = vpop.f32.mrb[31].mxu0 }
 0x16a   : > { %v892_v59 = vadd.f32 %v1330_v5, %v1280_v55  ;;  %v1283_v60 = vadd.f32 %v1282_v58, %v1281_v56  ;;  %933 = sbr.rel (%p1213_p11) target bundleno = 406 (0x196), region = 62  ;;  %v950_v5 = vadd.f32 (!%p1213_p11), %v935_v2, %v934_v1 }
 0x16c   : > { %v912_v62 = vadd.f32 %v892_v59, %v350_v57  ;;  %v895_v63 = vadd.f32 %v1331_v11, %v1283_v60  ;;  %v951_v10 = vadd.f32 (!%p1213_p11), %v950_v5, %v936_v3  ;;  %v974_v11 = vmul.f32 (!%p1213_p11), %v937_v4, %v937_v4 }
 0x16d   : > { %v946_v41 = vld [vmem:[%s1876_s2 + $0x60] sm:$0xff] (!%p1213_p11) }
 0x16e   : > { %928 = vst [vmem:[%s1876_s2 + $0x70] sm:$0xff] %v912_v62  ;;  %v913_v0 = vadd.f32 %v895_v63, %v351_v61  ;;  %v952_v14 = vadd.f32 (!%p1213_p11), %v951_v10, %v937_v4  ;;  %v989_v20 = vadd.f32 (!%p1213_p11), %v988_v16, %v974_v11  ;;  %v983_v47 = vmul.f32 (!%p1213_p11), %v946_v41, %v946_v41 }
 0x16f   : > { %v947_v45 = vld [vmem:[%s1876_s2 + $0x68] sm:$0xff] (!%p1213_p11) }
 0x170   : > { %929 = vst [vmem:[%s1876_s2 + $0x78] sm:$0xff] %v913_v0  ;;  %v953_v18 = vadd.f32 (!%p1213_p11), %v952_v14, %v938_v9  ;;  %v990_v24 = vadd.f32 (!%p1213_p11), %v989_v20, %v975_v15  ;;  %v984_v51 = vmul.f32 (!%p1213_p11), %v947_v45, %v947_v45 }
 0x172   : > { %v954_v22 = vadd.f32 %v953_v18, %v939_v13  ;;  %v991_v28 = vadd.f32 %v990_v24, %v976_v19 }
 0x174   : > { %v955_v26 = vadd.f32 %v954_v22, %v940_v17  ;;  %v992_v32 = vadd.f32 %v991_v28, %v977_v23 }
 0x175   : > { %v948_v49 = vld [vmem:[%s1876_s2 + $0x70] sm:$0xff] }
 0x176   : > { %v956_v30 = vadd.f32 %v955_v26, %v941_v21  ;;  %v993_v36 = vadd.f32 %v992_v32, %v978_v27  ;;  %v985_v55 = vmul.f32 %v948_v49, %v948_v49 }
 0x177   : > { %v949_v53 = vld [vmem:[%s1876_s2 + $0x78] sm:$0xff] }
 0x178   : > { %v957_v34 = vadd.f32 %v956_v30, %v942_v25  ;;  %v994_v40 = vadd.f32 %v993_v36, %v979_v31  ;;  %v986_v58 = vmul.f32 %v949_v53, %v949_v53 }
 0x17a   : > { %v958_v38 = vadd.f32 %v957_v34, %v943_v29  ;;  %v995_v44 = vadd.f32 %v994_v40, %v980_v35 }
 0x17c   : > { %v959_v42 = vadd.f32 %v958_v38, %v944_v33  ;;  %v996_v48 = vadd.f32 %v995_v44, %v981_v39 }
 0x17e   : > { %v960_v46 = vadd.f32 %v959_v42, %v945_v37  ;;  %v997_v52 = vadd.f32 %v996_v48, %v982_v43 }
 0x180   : > { %v961_v50 = vadd.f32 %v960_v46, %v946_v41  ;;  %v998_v56 = vadd.f32 %v997_v52, %v983_v47 }
 0x182   : > { %v962_v54 = vadd.f32 %v961_v50, %v947_v45  ;;  %v999_v59 = vadd.f32 %v998_v56, %v984_v51 }
 0x184   : > { %v963_v57 = vadd.f32 %v962_v54, %v948_v49  ;;  %v1000_v61 = vadd.f32 %v999_v59, %v985_v55 }
 0x186   : > { %v964_v60 = vadd.f32 %v963_v57, %v949_v53  ;;  %v1001_v63 = vadd.f32 %v1000_v61, %v986_v58 }
 0x188   : > { %v965_v62 = vrot.slane %v964_v60, 4  ;;  %v1002_v1 = vrot.slane %v1001_v63, 4 }
 0x18a   : > { %v966_v0 = vadd.f32 %v965_v62, %v964_v60  ;;  %v1003_v3 = vadd.f32 %v1002_v1, %v1001_v63 }
 0x18c   : > { %v967_v2 = vrot.slane %v966_v0, 2  ;;  %v1004_v5 = vrot.slane %v1003_v3, 2 }
 0x18e   : > { %v968_v4 = vadd.f32 %v967_v2, %v966_v0  ;;  %v1005_v7 = vadd.f32 %v1004_v5, %v1003_v3 }
 0x190   : > { %v969_v6 = vrot.slane %v968_v4, 1  ;;  %v1006_v9 = vrot.slane %v1005_v7, 1 }
 0x192   : > { %v970_v8 = vadd.f32 %v969_v6, %v968_v4  ;;  %v1007_v10 = vadd.f32 %v1006_v9, %v1005_v7 }
 0x194   : > { %v1009_v11 = vsel %vm1008_vm0, %v970_v8, %v1007_v10 }
 0x195   : > { %1010 = vst [vmem:[%s1877_s3] sm:$0x3] %v1009_v11 }
 0x196 PF: > { %s14_s16 = sadd.s32 1, %s1469_s16   ;;  %s1878_s12 = smov %s1457_s13 }
 0x197   : > { %p11_p12 = scmp.ge.s32.totalorder %s14_s16, 5   ;;  %s1879_s13 = smov %s1527_s20 }
 0x198   : > { %s1880_s14 = smov %s1465_s15  ;;  %s1881_s15 = smov %s1883_s17 }
 0x199   :  { %13 = sbr.rel (!%p11_p12) target bundleno = 3 (0x3), region = 118 }

// kernel: resnet_forward.31
= control target key start
LH: loop header
LB: loop body
LE: loop exit
PB: predicated region body
PF: predicated region fallthrough
CT: control target
= control target key end

     0   :  { %s510_s0 = inlined_call_operand.vmem [shape: f32[128,128], index: 0, kind: input, shape index: {}]   ;;  %s511_s1 = inlined_call_operand.vmem [shape: f32[1,128], index: 1, kind: input, shape index: {}]   ;;  %s512_s2 = inlined_call_operand.vmem [shape: f32[1,128], index: 2, kind: input, shape index: {}]   ;;  %s513_s3 = inlined_call_operand.vmem [shape: bf16[128,128], index: 3, kind: input, shape index: {}]   ;;  %s514_s4 = inlined_call_operand.vmem [shape: bf16[128,128], index: 4, kind: output, shape index: {}]  }
   0x1   :  { %v17_v0 = vld [vmem:[%s510_s0] sm:$0xff]  ;;  %v18_v1 = vld [vmem:[%s510_s0 + $0x8] sm:$0xff]  ;;  %v19_v7 = vld [vmem:[%s510_s0 + $0x10] sm:$0xff] }
   0x2   :  { %v381_v2 = vld [vmem:[%s511_s1] ss:$0 sm:$0xff]  ;;  %v20_v10 = vld [vmem:[%s510_s0 + $0x18] sm:$0xff]  ;;  %v333_v12 = vld [vmem:[%s513_s3 + $0x8] sm:$0xff]  }
   0x3   :  { %v40_v3 = vmul.f32 %v381_v2, %v17_v0  ;;  %v41_v4 = vmul.f32 %v381_v2, %v18_v1  ;;  %v388_v5 = vld [vmem:[%s512_s2] ss:$0 sm:$0xff]  ;;  %v42_v11 = vmul.f32 %v381_v2, %v19_v7  ;;  %v43_v16 = vmul.f32 %v381_v2, %v20_v10  ;;  %v22_v18 = vld [vmem:[%s510_s0 + $0x28] sm:$0xff]  ;;  %v334_v19 = vld [vmem:[%s513_s3 + $0x10] sm:$0xff]  }
   0x4   :  { %v262_v6 = vld [vmem:[%s513_s3] sm:$0xff]   ;;  %v267_v17 = vunpack.c.l.bf16 %v333_v12  ;;  %v268_v21 = vunpack.c.h.bf16 %v333_v12  ;;  %v45_v23 = vmul.f32 %v381_v2, %v22_v18  ;;  %v23_v24 = vld [vmem:[%s510_s0 + $0x30] sm:$0xff]  ;;  %v271_v28 = vunpack.c.l.bf16 %v334_v19  ;;  %v24_v29 = vld [vmem:[%s510_s0 + $0x38] sm:$0xff] }
   0x5   :  { %v263_v8 = vunpack.c.l.bf16 %v262_v6  ;;  %v264_v9 = vunpack.c.h.bf16 %v262_v6  ;;  %v21_v13 = vld [vmem:[%s510_s0 + $0x20] sm:$0xff]  ;;  %v63_v14 = vadd.f32 %v388_v5, %v40_v3  ;;  %v64_v15 = vadd.f32 %v388_v5, %v41_v4  ;;  %v335_v34 = vld [vmem:[%s513_s3 + $0x18] sm:$0xff]   ;;  %v26_v44 = vld [vmem:[%s510_s0 + $0x48] sm:$0xff] }
   0x6   :  { %v65_v20 = vadd.f32 %v388_v5, %v42_v11  ;;  %v44_v22 = vmul.f32 %v381_v2, %v21_v13  ;;  %v66_v27 = vadd.f32 %v388_v5, %v43_v16  ;;  %v68_v32 = vadd.f32 %v388_v5, %v45_v23  ;;  %v25_v43 = vld [vmem:[%s510_s0 + $0x40] sm:$0xff]  ;;  %v27_v54 = vld [vmem:[%s510_s0 + $0x50] sm:$0xff]  ;;  %v28_v59 = vld [vmem:[%s510_s0 + $0x58] sm:$0xff] }
   0x7   :  { %v111_v25 = vadd.f32 %v263_v8, %v63_v14  ;;  %v112_v26 = vadd.f32 %v264_v9, %v64_v15  ;;  %v272_v33 = vunpack.c.h.bf16 %v334_v19  ;;  %v46_v38 = vmul.f32 %v381_v2, %v23_v24  ;;  %v336_v49 = vld [vmem:[%s513_s3 + $0x20] sm:$0xff]   ;;  %v337_v60 = vld [vmem:[%s513_s3 + $0x28] sm:$0xff]   ;;  %v338_v9 = vld [vmem:[%s513_s3 + $0x30] sm:$0xff]  }
   0x8   :  { %v113_v30 = vadd.f32 %v267_v17, %v65_v20  ;;  %v67_v31 = vadd.f32 %v388_v5, %v44_v22  ;;  %v114_v37 = vadd.f32 %v268_v21, %v66_v27  ;;  %v47_v42 = vmul.f32 %v381_v2, %v24_v29  ;;  %v29_v1 = vld [vmem:[%s510_s0 + $0x60] sm:$0xff]  ;;  %v30_v8 = vld [vmem:[%s510_s0 + $0x68] sm:$0xff]  ;;  %v31_v18 = vld [vmem:[%s510_s0 + $0x70] sm:$0xff] }
   0x9   :  { %v127_v35 = vmax.f32 %v111_v25, 0.0  ;;  %v128_v36 = vmax.f32 %v112_v26, 0.0  ;;  %v116_v41 = vadd.f32 %v272_v33, %v68_v32  ;;  %v69_v47 = vadd.f32 %v388_v5, %v46_v38  ;;  %v32_v23 = vld [vmem:[%s510_s0 + $0x78] sm:$0xff] }
   0xa   :  { %v129_v39 = vmax.f32 %v113_v30, 0.0  ;;  %v115_v40 = vadd.f32 %v271_v28, %v67_v31  ;;  %v130_v46 = vmax.f32 %v114_v37, 0.0  ;;  %v275_v48 = vunpack.c.l.bf16 %v335_v34  ;;  %v339_v28 = vld [vmem:[%s513_s3 + $0x38] sm:$0xff]  }
   0xb   :  { %v296_v45 = vpack.c.bf16 %v128_v36, %v127_v35  ;;  %v132_v51 = vmax.f32 %v116_v41, 0.0  ;;  %v70_v52 = vadd.f32 %v388_v5, %v47_v42  ;;  %v276_v53 = vunpack.c.h.bf16 %v335_v34 }
   0xc   :  { %v131_v50 = vmax.f32 %v115_v40, 0.0  ;;  %v301_v55 = vpack.c.bf16 %v130_v46, %v129_v39  ;;  %v117_v56 = vadd.f32 %v275_v48, %v69_v47  ;;  %v48_v57 = vmul.f32 %v381_v2, %v25_v43 }
   0xd   :  { %297 = vst [vmem:[%s514_s4] sm:$0xff] %v296_v45   ;;  %v49_v58 = vmul.f32 %v381_v2, %v26_v44  ;;  %v118_v62 = vadd.f32 %v276_v53, %v70_v52  ;;  %v279_v63 = vunpack.c.l.bf16 %v336_v49  ;;  %v280_v0 = vunpack.c.h.bf16 %v336_v49 }
   0xe   :  { %v306_v61 = vpack.c.bf16 %v132_v51, %v131_v50  ;;  %340 = vst [vmem:[%s514_s4 + $0x8] sm:$0xff] %v301_v55   ;;  %v133_v3 = vmax.f32 %v117_v56, 0.0  ;;  %v71_v4 = vadd.f32 %v388_v5, %v48_v57  ;;  %v50_v7 = vmul.f32 %v381_v2, %v27_v54 }
   0xf   :  { %v72_v6 = vadd.f32 %v388_v5, %v49_v58  ;;  %v134_v10 = vmax.f32 %v118_v62, 0.0  ;;  %v51_v11 = vmul.f32 %v381_v2, %v28_v59  ;;  %v283_v12 = vunpack.c.l.bf16 %v337_v60 }
  0x10   :  { %341 = vst [vmem:[%s514_s4 + $0x10] sm:$0xff] %v306_v61   ;;  %v284_v13 = vunpack.c.h.bf16 %v337_v60  ;;  %v119_v14 = vadd.f32 %v279_v63, %v71_v4  ;;  %v73_v16 = vadd.f32 %v388_v5, %v50_v7  ;;  %v52_v17 = vmul.f32 %v381_v2, %v29_v1 }
  0x11   :  { %v120_v15 = vadd.f32 %v280_v0, %v72_v6  ;;  %v311_v19 = vpack.c.bf16 %v134_v10, %v133_v3  ;;  %v74_v20 = vadd.f32 %v388_v5, %v51_v11  ;;  %v53_v21 = vmul.f32 %v381_v2, %v30_v8 }
  0x12   :  { %v287_v22 = vunpack.c.l.bf16 %v338_v9  ;;  %v135_v24 = vmax.f32 %v119_v14, 0.0  ;;  %v121_v26 = vadd.f32 %v283_v12, %v73_v16  ;;  %v75_v27 = vadd.f32 %v388_v5, %v52_v17 }
  0x13   :  { %v136_v25 = vmax.f32 %v120_v15, 0.0  ;;  %342 = vst [vmem:[%s514_s4 + $0x18] sm:$0xff] %v311_v19   ;;  %v122_v29 = vadd.f32 %v284_v13, %v74_v20  ;;  %v76_v30 = vadd.f32 %v388_v5, %v53_v21  ;;  %v288_v31 = vunpack.c.h.bf16 %v338_v9 }
  0x14   :  { %v54_v32 = vmul.f32 %v381_v2, %v31_v18  ;;  %v137_v34 = vmax.f32 %v121_v26, 0.0  ;;  %v123_v35 = vadd.f32 %v287_v22, %v75_v27  ;;  %v55_v36 = vmul.f32 %v381_v2, %v32_v23 }
  0x15   :  { %v316_v33 = vpack.c.bf16 %v136_v25, %v135_v24  ;;  %v138_v37 = vmax.f32 %v122_v29, 0.0  ;;  %v124_v38 = vadd.f32 %v288_v31, %v76_v30  ;;  %v291_v40 = vunpack.c.l.bf16 %v339_v28 }
  0x16   :  { %v77_v39 = vadd.f32 %v388_v5, %v54_v32  ;;  %v139_v41 = vmax.f32 %v123_v35, 0.0  ;;  %v78_v42 = vadd.f32 %v388_v5, %v55_v36  ;;  %v292_v43 = vunpack.c.h.bf16 %v339_v28 }
  0x17   :  { %343 = vst [vmem:[%s514_s4 + $0x20] sm:$0xff] %v316_v33   ;;  %v321_v44 = vpack.c.bf16 %v138_v37, %v137_v34  ;;  %v140_v45 = vmax.f32 %v124_v38, 0.0 }
  0x18   :  { %v125_v46 = vadd.f32 %v291_v40, %v77_v39  ;;  %v126_v47 = vadd.f32 %v292_v43, %v78_v42 }
  0x19   :  { %344 = vst [vmem:[%s514_s4 + $0x28] sm:$0xff] %v321_v44   ;;  %v326_v2 = vpack.c.bf16 %v140_v45, %v139_v41 }
  0x1a   :  { %v141_v48 = vmax.f32 %v125_v46, 0.0  ;;  %v142_v49 = vmax.f32 %v126_v47, 0.0 }
  0x1b   :  { %345 = vst [vmem:[%s514_s4 + $0x30] sm:$0xff] %v326_v2  }
  0x1c   :  { %v331_v50 = vpack.c.bf16 %v142_v49, %v141_v48 }
  0x1e   :  { %346 = vst [vmem:[%s514_s4 + $0x38] sm:$0xff] %v331_v50  }

// kernel: resnet_forward.32
= control target key start
LH: loop header
LB: loop body
LE: loop exit
PB: predicated region body
PF: predicated region fallthrough
CT: control target
= control target key end

     0   :  { %vm192_vm0 = vcmask 1040384   ;;  %s319_s1 = inlined_call_operand.vmem [shape: bf16[128,128], index: 1, kind: input, shape index: {}]   ;;  %s320_s0 = inlined_call_operand.vmem [shape: bf16[32,128], index: 0, kind: input, shape index: {}]   ;;  %s321_s2 = inlined_call_operand.vmem [shape: f32[32,128], index: 2, kind: output, shape index: {0}]   ;;  %s322_s3 = inlined_call_operand.vmem [shape: f32[1,2,128], index: 3, kind: output, shape index: {1}]  }
   0x1   :  { %v244_v0 = vld [vmem:[%s319_s1] sm:$0xff]   ;;  %v245_v1 = vld [vmem:[%s319_s1 + $0x8] sm:$0xff]   ;;  %v246_v2 = vld [vmem:[%s319_s1 + $0x10] sm:$0xff]  }
   0x2   :  { %223 = vmatprep.subr.bf16.mxu0 %v244_v0  ;;  %v247_v3 = vld [vmem:[%s319_s1 + $0x18] sm:$0xff]   ;;  %v252_v4 = vld [vmem:[%s320_s0] sm:$0xff]   ;;  %v249_v6 = vld [vmem:[%s319_s1 + $0x28] sm:$0xff]  }
   0x3   :  { %224 = vmatpush3.bf16.msra.mxu0 %v244_v0  ;;  %239 = vmatprep.mubr.bf16.mxu0 %v252_v4  ;;  %v248_v5 = vld [vmem:[%s319_s1 + $0x20] sm:$0xff]   ;;  %v250_v7 = vld [vmem:[%s319_s1 + $0x30] sm:$0xff]   ;;  %v251_v8 = vld [vmem:[%s319_s1 + $0x38] sm:$0xff]  }
   0x4   :  { %225 = vmatprep.subr.bf16.mxu0 %v245_v1  ;;  %v253_v9 = vld [vmem:[%s320_s0 + $0x8] sm:$0xff]  }
   0x7   :  { %226 = vmatpush3.bf16.msra.mxu0 %v245_v1 }
   0x8   :  { %227 = vmatprep.subr.bf16.mxu0 %v246_v2 }
   0xb   :  { %228 = vmatpush3.bf16.msra.mxu0 %v246_v2 }
   0xc   :  { %229 = vmatprep.subr.bf16.mxu0 %v247_v3 }
   0xf   :  { %230 = vmatpush3.bf16.msra.mxu0 %v247_v3 }
  0x10   :  { %231 = vmatprep.subr.bf16.mxu0 %v248_v5 }
  0x13   :  { %232 = vmatpush3.bf16.msra.mxu0 %v248_v5 }
  0x14   :  { %233 = vmatprep.subr.bf16.mxu0 %v249_v6 }
  0x17   :  { %234 = vmatpush3.bf16.msra.mxu0 %v249_v6 }
  0x18   :  { %235 = vmatprep.subr.bf16.mxu0 %v250_v7 }
  0x1b   :  { %236 = vmatpush3.bf16.msra.mxu0 %v250_v7 }
  0x1c   :  { %237 = vmatprep.subr.bf16.mxu0 %v251_v8 }
  0x1f   :  { %238 = vmatpush3.bf16.msra.mxu0 %v251_v8 }
  0x22   :  { %240 = vmatmul.mubr.bf16.vlgmr.msra.gmra.mrb[0].mxu0 %v253_v9 }
  0xf5   :  { %v241_v10 = vpop.f32.mrb[0].mxu0 }
  0xf6   :  { %v140_v11 = vpop.f32.mrb[1].mxu0  ;;  %161 = vst [vmem:[%s321_s2 + $0x10] sm:$0xff] %v241_v10  ;;  %v181_v17 = vmul.f32 %v241_v10, %v241_v10 }
  0xf7   :  { %v242_v12 = vpop.f32.mrb[2].mxu0  ;;  %159 = vst [vmem:[%s321_s2] sm:$0xff] %v140_v11  ;;  %v179_v14 = vmul.f32 %v140_v11, %v140_v11 }
  0xf8   :  { %v143_v13 = vpop.f32.mrb[3].mxu0  ;;  %162 = vst [vmem:[%s321_s2 + $0x18] sm:$0xff] %v242_v12  ;;  %v182_v20 = vmul.f32 %v242_v12, %v242_v12 }
  0xf9   :  { %160 = vst [vmem:[%s321_s2 + $0x8] sm:$0xff] %v143_v13  ;;  %v170_v15 = vadd.f32 %v143_v13, %v140_v11  ;;  %v180_v16 = vmul.f32 %v143_v13, %v143_v13 }
  0xfb   :  { %v171_v18 = vadd.f32 %v241_v10, %v170_v15  ;;  %v183_v19 = vadd.f32 %v180_v16, %v179_v14 }
  0xfd   :  { %v172_v21 = vadd.f32 %v242_v12, %v171_v18  ;;  %v184_v22 = vadd.f32 %v183_v19, %v181_v17 }
  0xff   :  { %v173_v23 = vrot.slane %v172_v21, 4  ;;  %v185_v24 = vadd.f32 %v184_v22, %v182_v20 }
 0x101   :  { %v174_v25 = vadd.f32 %v173_v23, %v172_v21  ;;  %v186_v26 = vrot.slane %v185_v24, 4 }
 0x103   :  { %v175_v27 = vrot.slane %v174_v25, 2  ;;  %v187_v28 = vadd.f32 %v186_v26, %v185_v24 }
 0x105   :  { %v176_v29 = vadd.f32 %v175_v27, %v174_v25  ;;  %v188_v30 = vrot.slane %v187_v28, 2 }
 0x107   :  { %v177_v31 = vrot.slane %v176_v29, 1  ;;  %v189_v32 = vadd.f32 %v188_v30, %v187_v28 }
 0x109   :  { %v190_v33 = vrot.slane %v189_v32, 1  ;;  %v178_v34 = vadd.f32 %v177_v31, %v176_v29 }
 0x10b   :  { %v191_v35 = vadd.f32 %v190_v33, %v189_v32 }
 0x10d   :  { %v193_v36 = vsel %vm192_vm0, %v178_v34, %v191_v35 }
 0x10e   :  { %194 = vst [vmem:[%s322_s3] sm:$0x3] %v193_v36 }

// kernel: resnet_forward.33
= control target key start
LH: loop header
LB: loop body
LE: loop exit
PB: predicated region body
PF: predicated region fallthrough
CT: control target
= control target key end

     0   :  { %s129_s0 = inlined_call_operand.vmem [shape: f32[32,128], index: 0, kind: input, shape index: {}]   ;;  %s130_s1 = inlined_call_operand.vmem [shape: f32[1,128], index: 1, kind: input, shape index: {}]   ;;  %s131_s2 = inlined_call_operand.vmem [shape: f32[1,128], index: 2, kind: input, shape index: {}]   ;;  %s132_s3 = inlined_call_operand.vmem [shape: bf16[32,128], index: 3, kind: output, shape index: {}]  }
   0x1   :  { %v14_v0 = vld [vmem:[%s129_s0] sm:$0xff]  ;;  %v15_v1 = vld [vmem:[%s129_s0 + $0x8] sm:$0xff]  ;;  %v16_v6 = vld [vmem:[%s129_s0 + $0x10] sm:$0xff] }
   0x2   :  { %v64_v2 = vld [vmem:[%s130_s1] ss:$0 sm:$0xff]  ;;  %v17_v7 = vld [vmem:[%s129_s0 + $0x18] sm:$0xff] }
   0x3   :  { %v25_v3 = vmul.f32 %v64_v2, %v14_v0  ;;  %v26_v4 = vmul.f32 %v64_v2, %v15_v1  ;;  %v65_v5 = vld [vmem:[%s131_s2] ss:$0 sm:$0xff]  ;;  %v27_v8 = vmul.f32 %v64_v2, %v16_v6  ;;  %v28_v9 = vmul.f32 %v64_v2, %v17_v7 }
   0x5   :  { %v36_v10 = vadd.f32 %v65_v5, %v25_v3  ;;  %v37_v11 = vadd.f32 %v65_v5, %v26_v4  ;;  %v38_v12 = vadd.f32 %v65_v5, %v27_v8  ;;  %v39_v13 = vadd.f32 %v65_v5, %v28_v9 }
   0x7   :  { %v77_v14 = vpack.c.bf16 %v37_v11, %v36_v10  ;;  %v82_v15 = vpack.c.bf16 %v39_v13, %v38_v12 }
   0x9   :  { %78 = vst [vmem:[%s132_s3] sm:$0xff] %v77_v14   ;;  %84 = vst [vmem:[%s132_s3 + $0x8] sm:$0xff] %v82_v15  }

// kernel: resnet_forward.34
= control target key start
LH: loop header
LB: loop body
LE: loop exit
PB: predicated region body
PF: predicated region fallthrough
CT: control target
= control target key end

     0   :  { %s1012_s12 = smov 0   ;;  %s1014_s13 = smov 0   ;;  %s1164_s0 = inlined_call_operand.vmem [shape: bf16[32,1152], index: 0, kind: input, shape index: {}]   ;;  %s1165_s1 = inlined_call_operand.vmem [shape: bf16[1152,128], index: 1, kind: input, shape index: {}]   ;;  %s1166_s2 = inlined_call_operand.vmem [shape: f32[32,128], index: 2, kind: output, shape index: {0}]   ;;  %s1167_s3 = inlined_call_operand.vmem [shape: f32[1,2,128], index: 3, kind: output, shape index: {1}]  }
   0x1   :  { %s1016_s14 = smov 0   ;;  %s1018_s15 = smov 0  }
   0x2   :  { %s1020_s16 = smov 0  }
   0x3 LB: > { %s23_s17 = sadd.s32 1, %s985_s15  ;;  %p42_p1 = scmp.ne.s32.totalorder %s977_s13, %s973_s12  ;;  %s989_s16 = sphi %s1020_s16, %s14_s16   ;;  %s985_s15 = sphi %s1018_s15, %s1171_s15   ;;  %s981_s14 = sphi %s1016_s14, %s1170_s14   ;;  %s977_s13 = sphi %s1014_s13, %s1169_s13   ;;  %s973_s12 = sphi %s1012_s12, %s1168_s12  }
   0x4   : > { %p24_p0 = scmp.ge.s32.totalorder %s23_s17, 3  ;;  %p43_p2 = scmp.eq.s32.totalorder %s989_s16, 0 }
   0x5   : > { %s35_s19 = sadd.s32 1, %s977_s13  ;;  %p768_p5 = scmp.ge.s32.totalorder %s989_s16, 3 }
   0x6   : > { %s1173_s17 = smov (%p24_p0, %s23_s17), 0  ;;  %p44_p3 = por %p43_p2, %p42_p1 }
   0x7   : > { %s31_s18 = ssub.s32 %s985_s15, %s1173_s17  ;;  %146 = sbr.rel (%p768_p5) target bundleno = 23 (0x17), region = 16 }
   0x8   : > { %p33_p4 = scmp.eq.s32.totalorder %s31_s18, 0 }
   0xa   : > { %s1047_s20 = scalar_select %p33_p4, %s977_s13, %s35_s19  }
   0xe   : > { %149 = sbr.rel (!%p44_p3) target bundleno = 23 (0x17), region = 20  ;;  %s151_s21 = sand.u32 (%p44_p3), 1, %s977_s13  }
   0xf   : > { %s817_s22 = smul.u32 (%p44_p3), 12, %s985_s15 }
  0x10   : > { %s876_s23 = smul.u32 (%p44_p3), 48, %s151_s21 }
  0x11   : > { %s159_s26 = scalar_lea.vmem (%p44_p3), %s1164_s0, %s817_s22 }
  0x12   : > { %v174_v0 = vld [vmem:[%s159_s26] sm:$0xff] (%p44_p3)  ;;  %v178_v2 = vld [vmem:[%s159_s26 + $0x48] sm:$0xff] (%p44_p3)  ;;  %s153_s27 = scalar_lea.vmem (%p44_p3), [#allocation2], %s876_s23  ;;  %v774_v6 = vld [vmem:[%s159_s26 + $0x50] sm:$0xf] (%p44_p3) }
  0x13   : > { %v176_v1 = vld [vmem:[%s159_s26 + $0x24] sm:$0xff] (%p44_p3)  ;;  %175 = vst [vmem:[%s153_s27] sm:$0xff] (%p44_p3), %v174_v0  ;;  %179 = vst [vmem:[%s153_s27 + $0x18] sm:$0xff] (%p44_p3), %v178_v2  ;;  %v180_v3 = vld [vmem:[%s159_s26 + $0x6c] sm:$0xff] (%p44_p3) }
  0x14   : > { %177 = vst [vmem:[%s153_s27 + $0xc] sm:$0xff] (%p44_p3), %v176_v1  ;;  %v770_v4 = vld [vmem:[%s159_s26 + $0x8] sm:$0xf] (%p44_p3)  ;;  %v772_v5 = vld [vmem:[%s159_s26 + $0x2c] sm:$0xf] (%p44_p3)  ;;  %181 = vst [vmem:[%s153_s27 + $0x24] sm:$0xff] (%p44_p3), %v180_v3 }
  0x15   : > { %771 = vst [vmem:[%s153_s27 + $0x8] sm:$0xf] %v770_v4  ;;  %773 = vst [vmem:[%s153_s27 + $0x14] sm:$0xf] %v772_v5  ;;  %v776_v7 = vld [vmem:[%s159_s26 + $0x74] sm:$0xf] }
  0x16   : > { %775 = vst [vmem:[%s153_s27 + $0x20] sm:$0xf] %v774_v6  ;;  %777 = vst [vmem:[%s153_s27 + $0x2c] sm:$0xf] %v776_v7 }
  0x17 PF: > { %p778_p6 = scmp.ge.s32.totalorder %s989_s16, 1  ;;  %p210_p7 = scmp.lt.s32.totalorder %s989_s16, 4 }
  0x19   : > { %p211_p8 = pnand %p778_p6, %p210_p7 }
  0x1a   : > { %s217_s28 = sand.u32 (!%p211_p8), 1, %s973_s12   ;;  %s251_s29 = smul.u32 (!%p211_p8), 48, %s981_s14 }
  0x1b   : > { %214 = sbr.rel (%p211_p8) target bundleno = 329 (0x149), region = 50  ;;  %p780_p10 = scmp.ne.s32.totalorder (!%p211_p8), %s981_s14, 0 }
  0x1c   : > { %s877_s30 = smul.u32 (!%p211_p8), 48, %s217_s28  ;;  %p252_p9 = scmp.lt.s32.totalorder (!%p211_p8), %s251_s29, 143 }
  0x1e   : > { %s1064_s8 = scalar_lea.vmem (!%p211_p8), [#allocation2], %s877_s30 }
  0x22   : > { %s1175_s29 = smov (!%p252_p9, %s251_s29), 143  ;;  %271 = sbr.rel (%p780_p10) target bundleno = 41 (0x29), region = 58 }
  0x23   : > { %s779_s4 = sshll.u32 %s1175_s29, 2  ;;  %v991_v8 = vmov (!%p780_p10), 0.0  }
  0x24   : > { %s1062_s7 = scalar_lea.vmem %s1165_s1, %s779_s4  ;;  %272 = vst [vmem:[%s1166_s2] sm:$0xff] (!%p780_p10), %v991_v8  ;;  %273 = vst [vmem:[%s1166_s2 + $0x8] sm:$0xff] (!%p780_p10), %v991_v8 }
  0x25   : > { %274 = vst [vmem:[%s1166_s2 + $0x10] sm:$0xff] (!%p780_p10), %v991_v8  ;;  %275 = vst [vmem:[%s1166_s2 + $0x18] sm:$0xff] (!%p780_p10), %v991_v8 }
  0x29 PF: > { %v919_v9 = vld [vmem:[%s1062_s7 + $0x40] sm:$0xff]   ;;  %v922_v12 = vld [vmem:[%s1062_s7 + $0x48] sm:$0xff]   ;;  %v925_v15 = vld [vmem:[%s1062_s7 + $0x50] sm:$0xff]   ;;  %p811_p11 = scmp.ne.s32.totalorder %s981_s14, 2 }
  0x2a   : > { %v920_v10 = vld [vmem:[%s1062_s7] sm:$0xff]   ;;  %818 = vmatprep.subr.bf16.mxu0 %v919_v9  ;;  %v923_v13 = vld [vmem:[%s1062_s7 + $0x8] sm:$0xff]   ;;  %v926_v16 = vld [vmem:[%s1062_s7 + $0x10] sm:$0xff]   ;;  %vm648_vm0 = vcmask (!%p811_p11), 1040384  }
  0x2b   : > { %v921_v11 = vld [vmem:[%s1062_s7 + $0x80] sm:$0xff]   ;;  %819 = vmatpush3.bf16.msra.mxu0 %v920_v10  ;;  %v924_v14 = vld [vmem:[%s1062_s7 + $0x88] sm:$0xff]   ;;  %v927_v17 = vld [vmem:[%s1062_s7 + $0x90] sm:$0xff]  }
  0x2c   : > { %856 = vmatprep.subr.bf16.mxu1 %v921_v11  ;;  %820 = vmatprep.subr.bf16.mxu0 %v922_v12  ;;  %v928_v18 = vld [vmem:[%s1062_s7 + $0x58] sm:$0xff]   ;;  %v931_v21 = vld [vmem:[%s1062_s7 + $0x60] sm:$0xff]   ;;  %v934_v24 = vld [vmem:[%s1062_s7 + $0x68] sm:$0xff]  }
  0x2d   : > { %857 = vmatpush3.bf16.msra.mxu1 %v921_v11  ;;  %v929_v19 = vld [vmem:[%s1062_s7 + $0x18] sm:$0xff]   ;;  %v933_v22 = vld [vmem:[%s1062_s7 + $0xa0] sm:$0xff]   ;;  %v936_v25 = vld [vmem:[%s1062_s7 + $0xa8] sm:$0xff]  }
  0x2e   : > { %858 = vmatprep.subr.bf16.mxu1 %v924_v14  ;;  %v930_v20 = vld [vmem:[%s1062_s7 + $0x98] sm:$0xff]   ;;  %v932_v23 = vld [vmem:[%s1062_s7 + $0x20] sm:$0xff]   ;;  %v935_v26 = vld [vmem:[%s1062_s7 + $0x28] sm:$0xff]  }
  0x2f   : > { %821 = vmatpush3.bf16.msra.mxu0 %v923_v13  ;;  %v937_v27 = vld [vmem:[%s1062_s7 + $0x70] sm:$0xff]   ;;  %v940_v30 = vld [vmem:[%s1062_s7 + $0x78] sm:$0xff]   ;;  %v276_v45 = vld [vmem:[%s1166_s2] sm:$0xff] }
  0x30   : > { %822 = vmatprep.subr.bf16.mxu0 %v925_v15  ;;  %v938_v28 = vld [vmem:[%s1062_s7 + $0x30] sm:$0xff]   ;;  %v942_v31 = vld [vmem:[%s1062_s7 + $0xb8] sm:$0xff]   ;;  %v277_v50 = vld [vmem:[%s1166_s2 + $0x8] sm:$0xff] }
  0x31   : > { %859 = vmatpush3.bf16.msra.mxu1 %v924_v14  ;;  %v939_v29 = vld [vmem:[%s1062_s7 + $0xb0] sm:$0xff]   ;;  %v941_v34 = vld [vmem:[%s1062_s7 + $0x38] sm:$0xff]  }
  0x32   : > { %860 = vmatprep.subr.bf16.mxu1 %v927_v17  ;;  %v945_v32 = vld [vmem:[%s1064_s8 + $0x4] ss:$12 sps:$4 sm:$0xff]   ;;  %v946_v33 = vld [vmem:[%s1064_s8 + $0x8] ss:$12 sps:$4 sm:$0xff]   ;;  %v943_v35 = vld [vmem:[%s1064_s8] ss:$12 sps:$4 sm:$0xff]  }
  0x33   : > { %823 = vmatpush3.bf16.msra.mxu0 %v926_v16  ;;  %544 = vmatprep.mubr.bf16.mxu0 %v945_v32  ;;  %v948_v36 = vld [vmem:[%s1064_s8 + $0x1c] ss:$12 sps:$4 sm:$0xff]   ;;  %v947_v37 = vld [vmem:[%s1064_s8 + $0x20] ss:$12 sps:$4 sm:$0xff]   ;;  %v950_v38 = vld [vmem:[%s1064_s8 + $0x18] ss:$12 sps:$4 sm:$0xff]  }
  0x34   : > { %824 = vmatprep.subr.bf16.mxu0 %v928_v18  ;;  %872 = vmatprep.mubr.bf16.mxu1 %v946_v33  ;;  %v278_v59 = vld [vmem:[%s1166_s2 + $0x10] sm:$0xff]  ;;  %v279_v63 = vld [vmem:[%s1166_s2 + $0x18] sm:$0xff] }
  0x35   : > { %861 = vmatpush3.bf16.msra.mxu1 %v927_v17 }
  0x36   : > { %862 = vmatprep.subr.bf16.mxu1 %v930_v20 }
  0x37   : > { %825 = vmatpush3.bf16.msra.mxu0 %v929_v19 }
  0x38   : > { %826 = vmatprep.subr.bf16.mxu0 %v931_v21 }
  0x39   : > { %863 = vmatpush3.bf16.msra.mxu1 %v930_v20 }
  0x3a   : > { %864 = vmatprep.subr.bf16.mxu1 %v933_v22 }
  0x3b   : > { %827 = vmatpush3.bf16.msra.mxu0 %v932_v23 }
  0x3c   : > { %828 = vmatprep.subr.bf16.mxu0 %v934_v24 }
  0x3d   : > { %865 = vmatpush3.bf16.msra.mxu1 %v933_v22 }
  0x3e   : > { %866 = vmatprep.subr.bf16.mxu1 %v936_v25 }
  0x3f   : > { %829 = vmatpush3.bf16.msra.mxu0 %v935_v26 }
  0x40   : > { %830 = vmatprep.subr.bf16.mxu0 %v937_v27 }
  0x41   : > { %867 = vmatpush3.bf16.msra.mxu1 %v936_v25 }
  0x42   : > { %868 = vmatprep.subr.bf16.mxu1 %v939_v29 }
  0x43   : > { %831 = vmatpush3.bf16.msra.mxu0 %v938_v28 }
  0x44   : > { %832 = vmatprep.subr.bf16.mxu0 %v940_v30 }
  0x45   : > { %869 = vmatpush3.bf16.msra.mxu1 %v939_v29 }
  0x46   : > { %870 = vmatprep.subr.bf16.mxu1 %v942_v31 }
  0x47   : > { %833 = vmatpush3.bf16.msra.mxu0 %v941_v34 }
  0x49   : > { %871 = vmatpush3.bf16.msra.mxu1 %v942_v31 }
  0x4a   : > { %545 = vmatmul.mubr.bf16.vlgmr.msra.gmra.mrb[0].mxu0 %v943_v35 }
  0x4b   : > { %552 = vmatprep.mubr.bf16.mxu0 %v948_v36 }
  0x4c   : > { %873 = vmatmul.mubr.bf16.vlgmr.msra.gmra.mrb[0].mxu1 %v947_v37 }
  0x52   : > { %553 = vmatmul.mubr.bf16.gmra.mrb[4].mxu0 %v950_v38 }
 0x11d   : > { %v834_v39 = vpop.f32.mrb[0].mxu0 }
 0x11e   : > { %v835_v40 = vpop.f32.mrb[1].mxu0 }
 0x11f   : > { %v836_v41 = vadd.f32 %v835_v40, %v834_v39  ;;  %v837_v42 = vpop.f32.mrb[2].mxu0  ;;  %v874_v43 = vpop.f32.mrb[0].mxu1 }
 0x120   : > { %v838_v44 = vpop.f32.mrb[3].mxu0  ;;  %v595_v46 = vpop.f32.mrb[1].mxu1 }
 0x121   : > { %v839_v47 = vadd.f32 %v838_v44, %v837_v42  ;;  %v596_v48 = vadd.f32 %v836_v41, %v595_v46  ;;  %v875_v49 = vpop.f32.mrb[2].mxu1 }
 0x122   : > { %v598_v51 = vpop.f32.mrb[3].mxu1 }
 0x123   : > { %v610_v52 = vadd.f32 %v596_v48, %v276_v45  ;;  %v599_v53 = vadd.f32 %v839_v47, %v598_v51 }
 0x125   : > { %614 = vst [vmem:[%s1166_s2] sm:$0xff] %v610_v52  ;;  %v611_v54 = vadd.f32 %v599_v53, %v277_v50  ;;  %v840_v55 = vpop.f32.mrb[4].mxu0 }
 0x126   : > { %v841_v56 = vpop.f32.mrb[5].mxu0 }
 0x127   : > { %615 = vst [vmem:[%s1166_s2 + $0x8] sm:$0xff] %v611_v54  ;;  %v842_v57 = vadd.f32 %v841_v56, %v840_v55  ;;  %v843_v58 = vpop.f32.mrb[6].mxu0 }
 0x128   : > { %v844_v60 = vpop.f32.mrb[7].mxu0 }
 0x129   : > { %v604_v61 = vadd.f32 %v874_v43, %v842_v57  ;;  %v845_v62 = vadd.f32 %v844_v60, %v843_v58  ;;  %621 = sbr.rel (%p811_p11) target bundleno = 329 (0x149), region = 62 }
 0x12b   : > { %v612_v0 = vadd.f32 %v604_v61, %v278_v59  ;;  %v607_v1 = vadd.f32 %v875_v49, %v845_v62 }
 0x12c   : > { %v622_v3 = vld [vmem:[%s1166_s2] sm:$0xff] (!%p811_p11) }
 0x12d   : > { %616 = vst [vmem:[%s1166_s2 + $0x10] sm:$0xff] %v612_v0  ;;  %v613_v2 = vadd.f32 %v607_v1, %v279_v63  ;;  %v635_v8 = vmul.f32 (!%p811_p11), %v622_v3, %v622_v3 }
 0x12e   : > { %v623_v4 = vld [vmem:[%s1166_s2 + $0x8] sm:$0xff] (!%p811_p11) }
 0x12f   : > { %617 = vst [vmem:[%s1166_s2 + $0x18] sm:$0xff] %v613_v2  ;;  %v626_v7 = vadd.f32 (!%p811_p11), %v623_v4, %v622_v3  ;;  %v636_v9 = vmul.f32 (!%p811_p11), %v623_v4, %v623_v4 }
 0x131   : > { %v639_v13 = vadd.f32 %v636_v9, %v635_v8 }
 0x134   : > { %v624_v5 = vld [vmem:[%s1166_s2 + $0x10] sm:$0xff] }
 0x135   : > { %v637_v10 = vmul.f32 %v624_v5, %v624_v5  ;;  %v627_v11 = vadd.f32 %v626_v7, %v624_v5 }
 0x136   : > { %v625_v6 = vld [vmem:[%s1166_s2 + $0x18] sm:$0xff] }
 0x137   : > { %v638_v12 = vmul.f32 %v625_v6, %v625_v6  ;;  %v628_v14 = vadd.f32 %v627_v11, %v625_v6  ;;  %v640_v15 = vadd.f32 %v639_v13, %v637_v10 }
 0x139   : > { %v629_v16 = vrot.slane %v628_v14, 4  ;;  %v641_v17 = vadd.f32 %v640_v15, %v638_v12 }
 0x13b   : > { %v630_v18 = vadd.f32 %v629_v16, %v628_v14  ;;  %v642_v19 = vrot.slane %v641_v17, 4 }
 0x13d   : > { %v631_v20 = vrot.slane %v630_v18, 2  ;;  %v643_v21 = vadd.f32 %v642_v19, %v641_v17 }
 0x13f   : > { %v632_v22 = vadd.f32 %v631_v20, %v630_v18  ;;  %v644_v23 = vrot.slane %v643_v21, 2 }
 0x141   : > { %v633_v24 = vrot.slane %v632_v22, 1  ;;  %v645_v25 = vadd.f32 %v644_v23, %v643_v21 }
 0x143   : > { %v634_v26 = vadd.f32 %v633_v24, %v632_v22  ;;  %v646_v27 = vrot.slane %v645_v25, 1 }
 0x145   : > { %v647_v28 = vadd.f32 %v646_v27, %v645_v25 }
 0x147   : > { %v649_v29 = vsel %vm648_vm0, %v634_v26, %v647_v28 }
 0x148   : > { %650 = vst [vmem:[%s1167_s3] sm:$0x3] %v649_v29 }
 0x149 PF: > { %s14_s16 = sadd.s32 1, %s989_s16   ;;  %s1168_s12 = smov %s977_s13 }
 0x14a   : > { %p11_p12 = scmp.ge.s32.totalorder %s14_s16, 5   ;;  %s1169_s13 = smov %s1047_s20 }
 0x14b   : > { %s1170_s14 = smov %s985_s15  ;;  %s1171_s15 = smov %s1173_s17 }
 0x14c   :  { %13 = sbr.rel (!%p11_p12) target bundleno = 3 (0x3), region = 118 }

// kernel: resnet_forward.35
= control target key start
LH: loop header
LB: loop body
LE: loop exit
PB: predicated region body
PF: predicated region fallthrough
CT: control target
= control target key end

     0   :  { %s133_s0 = inlined_call_operand.vmem [shape: f32[32,128], index: 0, kind: input, shape index: {}]   ;;  %s134_s1 = inlined_call_operand.vmem [shape: f32[1,128], index: 1, kind: input, shape index: {}]   ;;  %s135_s2 = inlined_call_operand.vmem [shape: f32[1,128], index: 2, kind: input, shape index: {}]   ;;  %s136_s3 = inlined_call_operand.vmem [shape: bf16[32,128], index: 3, kind: output, shape index: {}]  }
   0x1   :  { %v14_v0 = vld [vmem:[%s133_s0] sm:$0xff]  ;;  %v15_v1 = vld [vmem:[%s133_s0 + $0x8] sm:$0xff]  ;;  %v16_v6 = vld [vmem:[%s133_s0 + $0x10] sm:$0xff] }
   0x2   :  { %v68_v2 = vld [vmem:[%s134_s1] ss:$0 sm:$0xff]  ;;  %v17_v7 = vld [vmem:[%s133_s0 + $0x18] sm:$0xff] }
   0x3   :  { %v25_v3 = vmul.f32 %v68_v2, %v14_v0  ;;  %v26_v4 = vmul.f32 %v68_v2, %v15_v1  ;;  %v69_v5 = vld [vmem:[%s135_s2] ss:$0 sm:$0xff]  ;;  %v27_v8 = vmul.f32 %v68_v2, %v16_v6  ;;  %v28_v9 = vmul.f32 %v68_v2, %v17_v7 }
   0x5   :  { %v36_v10 = vadd.f32 %v69_v5, %v25_v3  ;;  %v37_v11 = vadd.f32 %v69_v5, %v26_v4  ;;  %v38_v12 = vadd.f32 %v69_v5, %v27_v8  ;;  %v39_v13 = vadd.f32 %v69_v5, %v28_v9 }
   0x7   :  { %v40_v14 = vmax.f32 %v36_v10, 0.0  ;;  %v41_v15 = vmax.f32 %v37_v11, 0.0  ;;  %v42_v16 = vmax.f32 %v38_v12, 0.0  ;;  %v43_v17 = vmax.f32 %v39_v13, 0.0 }
   0x9   :  { %v81_v18 = vpack.c.bf16 %v41_v15, %v40_v14  ;;  %v86_v19 = vpack.c.bf16 %v43_v17, %v42_v16 }
   0xb   :  { %82 = vst [vmem:[%s136_s3] sm:$0xff] %v81_v18   ;;  %88 = vst [vmem:[%s136_s3 + $0x8] sm:$0xff] %v86_v19  }

// kernel: resnet_forward.39
= control target key start
LH: loop header
LB: loop body
LE: loop exit
PB: predicated region body
PF: predicated region fallthrough
CT: control target
= control target key end

     0   :  { %v18_v0 = vlaneseq  ;;  %s94_s1 = inlined_call_operand.vmem [shape: f32[1,256], index: 1, kind: input, shape index: {}]   ;;  %s95_s2 = inlined_call_operand.vmem [shape: f32[1,256], index: 2, kind: input, shape index: {}]   ;;  %s96_s0 = inlined_call_operand.vmem [shape: f32[8,256], index: 0, kind: input, shape index: {}]   ;;  %s97_s3 = inlined_call_operand.vmem [shape: bf16[8,256], index: 3, kind: output, shape index: {}]  }
   0x1   :  { %v16_v2 = vld [vmem:[%s94_s1] sm:$0x3]  ;;  %v15_v7 = vld [vmem:[%s96_s0 + $0x8] sm:$0xff] }
   0x2   :  { %v19_v1 = vshrl.u32 %v18_v0, 7  ;;  %v30_v3 = vld [vmem:[%s95_s2] sm:$0x3] }
   0x3   :  { %v14_v6 = vld [vmem:[%s96_s0] sm:$0xff] }
   0x4   :  { %v20_v4 = vsub.s32 0, %v19_v1  ;;  %v24_v5 = vsub.s32 1, %v19_v1 }
   0x6   :  { %v21_v8 = vrot.slane %v16_v2, %v20_v4  ;;  %v25_v9 = vrot.slane %v16_v2, %v24_v5  ;;  %v35_v10 = vrot.slane %v30_v3, %v20_v4  ;;  %v39_v11 = vrot.slane %v30_v3, %v24_v5 }
   0x8   :  { %v28_v12 = vmul.f32 %v21_v8, %v14_v6  ;;  %v29_v13 = vmul.f32 %v25_v9, %v15_v7 }
   0xa   :  { %v42_v14 = vadd.f32 %v35_v10, %v28_v12  ;;  %v43_v15 = vadd.f32 %v39_v11, %v29_v13 }
   0xc   :  { %v58_v16 = vpack.c.bf16 %v43_v15, %v42_v14 }
   0xe   :  { %52 = vst [vmem:[%s97_s3] sm:$0xff] %v58_v16 }

// kernel: resnet_forward.37
= control target key start
LH: loop header
LB: loop body
LE: loop exit
PB: predicated region body
PF: predicated region fallthrough
CT: control target
= control target key end

     0   :  { %s168_s0 = inlined_call_operand.vmem [shape: f32[32,128], index: 0, kind: input, shape index: {}]   ;;  %s169_s1 = inlined_call_operand.vmem [shape: f32[1,128], index: 1, kind: input, shape index: {}]   ;;  %s170_s2 = inlined_call_operand.vmem [shape: f32[1,128], index: 2, kind: input, shape index: {}]   ;;  %s171_s3 = inlined_call_operand.vmem [shape: bf16[32,128], index: 3, kind: input, shape index: {}]   ;;  %s172_s4 = inlined_call_operand.vmem [shape: bf16[32,128], index: 4, kind: output, shape index: {}]  }
   0x1   :  { %v17_v0 = vld [vmem:[%s168_s0] sm:$0xff]  ;;  %v18_v1 = vld [vmem:[%s168_s0 + $0x8] sm:$0xff]  ;;  %v19_v7 = vld [vmem:[%s168_s0 + $0x10] sm:$0xff] }
   0x2   :  { %v83_v2 = vld [vmem:[%s169_s1] ss:$0 sm:$0xff]  ;;  %v20_v10 = vld [vmem:[%s168_s0 + $0x18] sm:$0xff]  ;;  %v111_v12 = vld [vmem:[%s171_s3 + $0x8] sm:$0xff]  }
   0x3   :  { %v28_v3 = vmul.f32 %v83_v2, %v17_v0  ;;  %v29_v4 = vmul.f32 %v83_v2, %v18_v1  ;;  %v84_v5 = vld [vmem:[%s170_s2] ss:$0 sm:$0xff]  ;;  %v30_v11 = vmul.f32 %v83_v2, %v19_v7  ;;  %v31_v15 = vmul.f32 %v83_v2, %v20_v10 }
   0x4   :  { %v94_v6 = vld [vmem:[%s171_s3] sm:$0xff]   ;;  %v99_v16 = vunpack.c.l.bf16 %v111_v12  ;;  %v100_v18 = vunpack.c.h.bf16 %v111_v12 }
   0x5   :  { %v95_v8 = vunpack.c.l.bf16 %v94_v6  ;;  %v96_v9 = vunpack.c.h.bf16 %v94_v6  ;;  %v39_v13 = vadd.f32 %v84_v5, %v28_v3  ;;  %v40_v14 = vadd.f32 %v84_v5, %v29_v4 }
   0x6   :  { %v41_v17 = vadd.f32 %v84_v5, %v30_v11  ;;  %v42_v21 = vadd.f32 %v84_v5, %v31_v15 }
   0x7   :  { %v51_v19 = vadd.f32 %v95_v8, %v39_v13  ;;  %v52_v20 = vadd.f32 %v96_v9, %v40_v14 }
   0x8   :  { %v53_v22 = vadd.f32 %v99_v16, %v41_v17  ;;  %v54_v25 = vadd.f32 %v100_v18, %v42_v21 }
   0x9   :  { %v55_v23 = vmax.f32 %v51_v19, 0.0  ;;  %v56_v24 = vmax.f32 %v52_v20, 0.0 }
   0xa   :  { %v57_v26 = vmax.f32 %v53_v22, 0.0  ;;  %v58_v28 = vmax.f32 %v54_v25, 0.0 }
   0xb   :  { %v104_v27 = vpack.c.bf16 %v56_v24, %v55_v23 }
   0xc   :  { %v109_v29 = vpack.c.bf16 %v58_v28, %v57_v26 }
   0xd   :  { %105 = vst [vmem:[%s172_s4] sm:$0xff] %v104_v27  }
   0xe   :  { %112 = vst [vmem:[%s172_s4 + $0x8] sm:$0xff] %v109_v29  }

// kernel: resnet_forward.38
= control target key start
LH: loop header
LB: loop body
LE: loop exit
PB: predicated region body
PF: predicated region fallthrough
CT: control target
= control target key end

     0   :  { %v261_v1 = vmov 0   ;;  %vm195_vm0 = vcmask 1040384   ;;  %s342_s1 = inlined_call_operand.vmem [shape: bf16[128,256], index: 1, kind: input, shape index: {}]   ;;  %s343_s0 = inlined_call_operand.vmem [shape: bf16[8,128], index: 0, kind: input, shape index: {}]   ;;  %s344_s2 = inlined_call_operand.vmem [shape: f32[8,256], index: 2, kind: output, shape index: {0}]   ;;  %s345_s3 = inlined_call_operand.vmem [shape: f32[1,2,256], index: 3, kind: output, shape index: {1}]  }
   0x1   :  { %v237_v0 = vld [vmem:[%s342_s1 + $0x4] ss:$8 sps:$4 sm:$0xff]   ;;  %151 = vmatprep.mubr.bf16.mxu0 %v261_v1  ;;  %v239_v2 = vld [vmem:[%s342_s1] ss:$8 sps:$4 sm:$0xff]   ;;  %v240_v3 = vld [vmem:[%s342_s1 + $0x14] ss:$8 sps:$4 sm:$0xff]  }
   0x2   :  { %119 = vmatprep.subr.bf16.mxu0 %v237_v0  ;;  %v242_v4 = vld [vmem:[%s342_s1 + $0x10] ss:$8 sps:$4 sm:$0xff]   ;;  %v243_v5 = vld [vmem:[%s342_s1 + $0x24] ss:$8 sps:$4 sm:$0xff]   ;;  %v245_v6 = vld [vmem:[%s342_s1 + $0x20] ss:$8 sps:$4 sm:$0xff]  }
   0x3   :  { %120 = vmatpush1.bf16.msra.mxu0 %v239_v2  ;;  %v246_v7 = vld [vmem:[%s342_s1 + $0x34] ss:$8 sps:$4 sm:$0xff]   ;;  %v248_v8 = vld [vmem:[%s342_s1 + $0x30] ss:$8 sps:$4 sm:$0xff]   ;;  %v249_v9 = vld [vmem:[%s342_s1 + $0x44] ss:$8 sps:$4 sm:$0xff]  }
   0x4   :  { %121 = vmatprep.subr.bf16.mxu0 %v240_v3  ;;  %v251_v10 = vld [vmem:[%s342_s1 + $0x40] ss:$8 sps:$4 sm:$0xff]   ;;  %v252_v11 = vld [vmem:[%s342_s1 + $0x54] ss:$8 sps:$4 sm:$0xff]   ;;  %v254_v12 = vld [vmem:[%s342_s1 + $0x50] ss:$8 sps:$4 sm:$0xff]  }
   0x5   :  { %v255_v13 = vld [vmem:[%s342_s1 + $0x64] ss:$8 sps:$4 sm:$0xff]   ;;  %v257_v14 = vld [vmem:[%s342_s1 + $0x60] ss:$8 sps:$4 sm:$0xff]   ;;  %v258_v15 = vld [vmem:[%s342_s1 + $0x74] ss:$8 sps:$4 sm:$0xff]  }
   0x6   :  { %v260_v16 = vld [vmem:[%s342_s1 + $0x70] ss:$8 sps:$4 sm:$0xff]   ;;  %v22_v17 = vld [vmem:[%s343_s0] sm:$0xf] }
   0x7   :  { %122 = vmatpush1.bf16.msra.mxu0 %v242_v4 }
   0x8   :  { %123 = vmatprep.subr.bf16.mxu0 %v243_v5 }
   0xb   :  { %124 = vmatpush1.bf16.msra.mxu0 %v245_v6 }
   0xc   :  { %125 = vmatprep.subr.bf16.mxu0 %v246_v7 }
   0xf   :  { %126 = vmatpush1.bf16.msra.mxu0 %v248_v8 }
  0x10   :  { %127 = vmatprep.subr.bf16.mxu0 %v249_v9 }
  0x13   :  { %128 = vmatpush1.bf16.msra.mxu0 %v251_v10 }
  0x14   :  { %129 = vmatprep.subr.bf16.mxu0 %v252_v11 }
  0x17   :  { %130 = vmatpush1.bf16.msra.mxu0 %v254_v12 }
  0x18   :  { %131 = vmatprep.subr.bf16.mxu0 %v255_v13 }
  0x1b   :  { %132 = vmatpush1.bf16.msra.mxu0 %v257_v14 }
  0x1c   :  { %133 = vmatprep.subr.bf16.mxu0 %v258_v15 }
  0x1f   :  { %134 = vmatpush1.bf16.msra.mxu0 %v260_v16 }
  0x22   :  { %152 = vmatmul.mubr.bf16.vlgmr.msra.gmra.mrb[0].mxu0 %v22_v17 }
  0xf5   :  { %v153_v18 = vpop.f32.mrb[0].mxu0 }
  0xf6   :  { %v155_v19 = vpop.f32.mrb[1].mxu0  ;;  %162 = vst [vmem:[%s344_s2] sm:$0xff] %v153_v18  ;;  %v169_v21 = vrot.slane %v153_v18, 4  ;;  %v181_v22 = vmul.f32 %v153_v18, %v153_v18 }
  0xf7   :  { %v157_v20 = vpop.f32.mrb[2].mxu0  ;;  %163 = vst [vmem:[%s344_s2 + $0x8] sm:$0xff] %v155_v19  ;;  %v175_v24 = vrot.slane %v155_v19, 4  ;;  %v182_v25 = vmul.f32 %v155_v19, %v155_v19 }
  0xf8   :  { %v158_v23 = vpop.f32.mrb[3].mxu0  ;;  %v170_v26 = vadd.f32 %v169_v21, %v153_v18  ;;  %v183_v27 = vrot.slane %v181_v22, 4 }
  0xf9   :  { %v176_v28 = vadd.f32 %v175_v24, %v155_v19  ;;  %v189_v29 = vrot.slane %v182_v25, 4 }
  0xfa   :  { %v171_v30 = vrot.slane %v170_v26, 2  ;;  %v184_v31 = vadd.f32 %v183_v27, %v181_v22 }
  0xfb   :  { %v177_v32 = vrot.slane %v176_v28, 2  ;;  %v190_v33 = vadd.f32 %v189_v29, %v182_v25 }
  0xfc   :  { %v172_v34 = vadd.f32 %v171_v30, %v170_v26  ;;  %v185_v35 = vrot.slane %v184_v31, 2 }
  0xfd   :  { %v178_v36 = vadd.f32 %v177_v32, %v176_v28  ;;  %v191_v37 = vrot.slane %v190_v33, 2 }
  0xfe   :  { %v173_v38 = vrot.slane %v172_v34, 1  ;;  %v186_v39 = vadd.f32 %v185_v35, %v184_v31 }
  0xff   :  { %v179_v40 = vrot.slane %v178_v36, 1  ;;  %v192_v41 = vadd.f32 %v191_v37, %v190_v33 }
 0x100   :  { %v187_v42 = vrot.slane %v186_v39, 1  ;;  %v174_v44 = vadd.f32 %v173_v38, %v172_v34 }
 0x101   :  { %v193_v43 = vrot.slane %v192_v41, 1  ;;  %v180_v46 = vadd.f32 %v179_v40, %v178_v36 }
 0x102   :  { %v188_v45 = vadd.f32 %v187_v42, %v186_v39 }
 0x103   :  { %v194_v47 = vadd.f32 %v193_v43, %v192_v41 }
 0x104   :  { %v196_v48 = vsel %vm195_vm0, %v174_v44, %v188_v45 }
 0x105   :  { %v197_v49 = vsel %vm195_vm0, %v180_v46, %v194_v47 }
 0x106   :  { %v200_v50 = vcombine.low %v196_v48, %v197_v49 }
 0x108   :  { %234 = vst.sshfl [vmem:[%s345_s3] sm:$0x33 pattern:$0x76325410] %v200_v50 }

// kernel: resnet_forward.41
= control target key start
LH: loop header
LB: loop body
LE: loop exit
PB: predicated region body
PF: predicated region fallthrough
CT: control target
= control target key end

     0   :  { %v18_v0 = vlaneseq  ;;  %s96_s1 = inlined_call_operand.vmem [shape: f32[1,256], index: 1, kind: input, shape index: {}]   ;;  %s97_s2 = inlined_call_operand.vmem [shape: f32[1,256], index: 2, kind: input, shape index: {}]   ;;  %s98_s0 = inlined_call_operand.vmem [shape: f32[8,256], index: 0, kind: input, shape index: {}]   ;;  %s99_s3 = inlined_call_operand.vmem [shape: bf16[8,256], index: 3, kind: output, shape index: {}]  }
   0x1   :  { %v16_v2 = vld [vmem:[%s96_s1] sm:$0x3]  ;;  %v15_v7 = vld [vmem:[%s98_s0 + $0x8] sm:$0xff] }
   0x2   :  { %v19_v1 = vshrl.u32 %v18_v0, 7  ;;  %v30_v3 = vld [vmem:[%s97_s2] sm:$0x3] }
   0x3   :  { %v14_v6 = vld [vmem:[%s98_s0] sm:$0xff] }
   0x4   :  { %v20_v4 = vsub.s32 0, %v19_v1  ;;  %v24_v5 = vsub.s32 1, %v19_v1 }
   0x6   :  { %v21_v8 = vrot.slane %v16_v2, %v20_v4  ;;  %v25_v9 = vrot.slane %v16_v2, %v24_v5  ;;  %v35_v10 = vrot.slane %v30_v3, %v20_v4  ;;  %v39_v11 = vrot.slane %v30_v3, %v24_v5 }
   0x8   :  { %v28_v12 = vmul.f32 %v21_v8, %v14_v6  ;;  %v29_v13 = vmul.f32 %v25_v9, %v15_v7 }
   0xa   :  { %v42_v14 = vadd.f32 %v35_v10, %v28_v12  ;;  %v43_v15 = vadd.f32 %v39_v11, %v29_v13 }
   0xc   :  { %v44_v16 = vmax.f32 %v42_v14, 0.0  ;;  %v45_v17 = vmax.f32 %v43_v15, 0.0 }
   0xe   :  { %v60_v18 = vpack.c.bf16 %v45_v17, %v44_v16 }
  0x10   :  { %54 = vst [vmem:[%s99_s3] sm:$0xff] %v60_v18 }

// kernel: resnet_forward.40
= control target key start
LH: loop header
LB: loop body
LE: loop exit
PB: predicated region body
PF: predicated region fallthrough
CT: control target
= control target key end

     0   :  { %s1002_s12 = smov 0   ;;  %s1004_s13 = smov 0   ;;  %s1122_s0 = inlined_call_operand.vmem [shape: bf16[8,1152], index: 0, kind: input, shape index: {}]   ;;  %s1123_s1 = inlined_call_operand.vmem [shape: bf16[1152,256], index: 1, kind: input, shape index: {}]   ;;  %s1124_s2 = inlined_call_operand.vmem [shape: f32[8,256], index: 2, kind: output, shape index: {0}]   ;;  %s1125_s3 = inlined_call_operand.vmem [shape: f32[1,2,256], index: 3, kind: output, shape index: {1}]  }
   0x1   :  { %s1006_s14 = smov 0  }
   0x2 LB: > { %s23_s15 = sadd.s32 1, %s974_s13  ;;  %p792_p0 = scmp.ge.s32.totalorder %s978_s14, 1  ;;  %s978_s14 = sphi %s1006_s14, %s14_s14   ;;  %s974_s13 = sphi %s1004_s13, %s1127_s13   ;;  %s970_s12 = sphi %s1002_s12, %s1126_s12  }
   0x3   : > { %p24_p1 = scmp.ge.s32.totalorder %s23_s15, 3  ;;  %p171_p2 = scmp.lt.s32.totalorder %s978_s14, 4 }
   0x5   : > { %s1129_s15 = smov (%p24_p1, %s23_s15), 0  ;;  %p172_p3 = pnand %p792_p0, %p171_p2 }
   0x6   : > { %s210_s16 = smul.u32 (!%p172_p3), 3, %s970_s12  ;;  %p796_p6 = scmp.ne.s32.totalorder (!%p172_p3), %s970_s12, 0 }
   0x7   : > { %175 = sbr.rel (%p172_p3) target bundleno = 332 (0x14c), region = 28 }
   0x8   : > { %s220_s17 = smul.u32 (!%p172_p3), 48, %s970_s12  ;;  %p213_p4 = scmp.lt.s32.totalorder (!%p172_p3), %s210_s16, 8 }
   0xa   : > { %p221_p5 = scmp.lt.s32.totalorder (!%p172_p3), %s220_s17, 143 }
   0xe   : > { %s1131_s16 = smov (!%p213_p4, %s210_s16), 8  ;;  %s1133_s17 = smov (!%p221_p5, %s220_s17), 143 }
   0xf   : > { %s793_s18 = sshll.u32 %s1131_s16, 2  ;;  %s854_s22 = sshll.u32 %s1133_s17, 3  ;;  %v980_v0 = vmov (!%p796_p6), 0.0  }
  0x10   : > { %s1027_s21 = scalar_lea.vmem %s1122_s0, %s793_s18  ;;  %s1032_s25 = scalar_lea.vmem %s1123_s1, %s854_s22  ;;  %242 = vst [vmem:[%s1124_s2] sm:$0xff] (!%p796_p6), %v980_v0  ;;  %243 = vst [vmem:[%s1124_s2 + $0x8] sm:$0xff] (!%p796_p6), %v980_v0 }
  0x11   : > { %241 = sbr.rel (%p796_p6) target bundleno = 24 (0x18), region = 32 }
  0x18 PF: > { %v881_v1 = vld [vmem:[%s1032_s25 + $0x4] ss:$8 sps:$4 sm:$0xff]   ;;  %v883_v2 = vld [vmem:[%s1032_s25] ss:$8 sps:$4 sm:$0xff]   ;;  %v981_v3 = vmov 0   ;;  %p848_p7 = scmp.ne.s32.totalorder %s970_s12, 2 }
  0x19   : > { %620 = vmatprep.mubr.bf16.mxu1 %v981_v3  ;;  %547 = vmatprep.subr.bf16.mxu0 %v881_v1  ;;  %v884_v4 = vld [vmem:[%s1032_s25 + $0x14] ss:$8 sps:$4 sm:$0xff]   ;;  %v886_v5 = vld [vmem:[%s1032_s25 + $0x10] ss:$8 sps:$4 sm:$0xff]   ;;  %v887_v6 = vld [vmem:[%s1032_s25 + $0x24] ss:$8 sps:$4 sm:$0xff]  }
  0x1a   : > { %548 = vmatpush1.bf16.msra.mxu0 %v883_v2  ;;  %v889_v7 = vld [vmem:[%s1032_s25 + $0x20] ss:$8 sps:$4 sm:$0xff]   ;;  %v890_v8 = vld [vmem:[%s1032_s25 + $0x34] ss:$8 sps:$4 sm:$0xff]   ;;  %v892_v9 = vld [vmem:[%s1032_s25 + $0x30] ss:$8 sps:$4 sm:$0xff]  }
  0x1b   : > { %549 = vmatprep.subr.bf16.mxu0 %v884_v4  ;;  %v905_v10 = vld [vmem:[%s1032_s25 + $0x104] ss:$8 sps:$4 sm:$0xff]   ;;  %v907_v11 = vld [vmem:[%s1032_s25 + $0x100] ss:$8 sps:$4 sm:$0xff]   ;;  %v911_v13 = vld [vmem:[%s1032_s25 + $0x114] ss:$8 sps:$4 sm:$0xff]  }
  0x1c   : > { %v893_v12 = vld [vmem:[%s1032_s25 + $0x44] ss:$8 sps:$4 sm:$0xff]   ;;  %588 = vmatprep.subr.bf16.mxu1 %v905_v10  ;;  %v913_v14 = vld [vmem:[%s1032_s25 + $0x110] ss:$8 sps:$4 sm:$0xff]   ;;  %v895_v15 = vld [vmem:[%s1032_s25 + $0x40] ss:$8 sps:$4 sm:$0xff]  }
  0x1d   : > { %589 = vmatpush1.bf16.msra.mxu1 %v907_v11  ;;  %v896_v16 = vld [vmem:[%s1032_s25 + $0x54] ss:$8 sps:$4 sm:$0xff]   ;;  %v917_v17 = vld [vmem:[%s1032_s25 + $0x124] ss:$8 sps:$4 sm:$0xff]   ;;  %v919_v18 = vld [vmem:[%s1032_s25 + $0x120] ss:$8 sps:$4 sm:$0xff]  }
  0x1e   : > { %550 = vmatpush1.bf16.msra.mxu0 %v886_v5  ;;  %590 = vmatprep.subr.bf16.mxu1 %v911_v13  ;;  %v898_v19 = vld [vmem:[%s1032_s25 + $0x50] ss:$8 sps:$4 sm:$0xff]   ;;  %v923_v20 = vld [vmem:[%s1032_s25 + $0x134] ss:$8 sps:$4 sm:$0xff]   ;;  %v899_v21 = vld [vmem:[%s1032_s25 + $0x64] ss:$8 sps:$4 sm:$0xff]  }
  0x1f   : > { %551 = vmatprep.subr.bf16.mxu0 %v887_v6  ;;  %v925_v22 = vld [vmem:[%s1032_s25 + $0x130] ss:$8 sps:$4 sm:$0xff]   ;;  %v901_v23 = vld [vmem:[%s1032_s25 + $0x60] ss:$8 sps:$4 sm:$0xff]   ;;  %v929_v24 = vld [vmem:[%s1032_s25 + $0x144] ss:$8 sps:$4 sm:$0xff]  }
  0x20   : > { %v902_v25 = vld [vmem:[%s1032_s25 + $0x74] ss:$8 sps:$4 sm:$0xff]   ;;  %v931_v26 = vld [vmem:[%s1032_s25 + $0x140] ss:$8 sps:$4 sm:$0xff]   ;;  %v904_v27 = vld [vmem:[%s1032_s25 + $0x70] ss:$8 sps:$4 sm:$0xff]  }
  0x21   : > { %591 = vmatpush1.bf16.msra.mxu1 %v913_v14  ;;  %v935_v28 = vld [vmem:[%s1032_s25 + $0x154] ss:$8 sps:$4 sm:$0xff]   ;;  %v908_v29 = vld [vmem:[%s1032_s25 + $0x84] ss:$8 sps:$4 sm:$0xff]   ;;  %v937_v30 = vld [vmem:[%s1032_s25 + $0x150] ss:$8 sps:$4 sm:$0xff]  }
  0x22   : > { %552 = vmatpush1.bf16.msra.mxu0 %v889_v7  ;;  %592 = vmatprep.subr.bf16.mxu1 %v917_v17  ;;  %v910_v31 = vld [vmem:[%s1032_s25 + $0x80] ss:$8 sps:$4 sm:$0xff]   ;;  %v941_v32 = vld [vmem:[%s1032_s25 + $0x164] ss:$8 sps:$4 sm:$0xff]   ;;  %v914_v33 = vld [vmem:[%s1032_s25 + $0x94] ss:$8 sps:$4 sm:$0xff]  }
  0x23   : > { %553 = vmatprep.subr.bf16.mxu0 %v890_v8  ;;  %v246_v34 = vld [vmem:[%s1027_s21] sm:$0xff]  ;;  %v916_v37 = vld [vmem:[%s1032_s25 + $0x90] ss:$8 sps:$4 sm:$0xff]   ;;  %v947_v38 = vld [vmem:[%s1032_s25 + $0x174] ss:$8 sps:$4 sm:$0xff]   ;;  %vm665_vm0 = vcmask (!%p848_p7), 1040384  }
  0x24   : > { %v798_v35 = vcombine.high %v246_v34, %v246_v34  ;;  %v943_v36 = vld [vmem:[%s1032_s25 + $0x160] ss:$8 sps:$4 sm:$0xff]   ;;  %v920_v39 = vld [vmem:[%s1032_s25 + $0xa4] ss:$8 sps:$4 sm:$0xff]   ;;  %v949_v40 = vld [vmem:[%s1032_s25 + $0x170] ss:$8 sps:$4 sm:$0xff]   ;;  %v797_v53 = vcombine.low %v246_v34, %v246_v34 }
  0x25   : > { %593 = vmatpush1.bf16.msra.mxu1 %v919_v18  ;;  %v922_v41 = vld [vmem:[%s1032_s25 + $0xa0] ss:$8 sps:$4 sm:$0xff]   ;;  %v926_v42 = vld [vmem:[%s1032_s25 + $0xb4] ss:$8 sps:$4 sm:$0xff]   ;;  %v928_v44 = vld [vmem:[%s1032_s25 + $0xb0] ss:$8 sps:$4 sm:$0xff]  }
  0x26   : > { %554 = vmatpush1.bf16.msra.mxu0 %v892_v9  ;;  %594 = vmatprep.subr.bf16.mxu1 %v923_v20  ;;  %v953_v43 = vld [vmem:[%s1027_s21 + $0x8] ss:$0 sps:$4 sm:$0xff]   ;;  %v932_v45 = vld [vmem:[%s1032_s25 + $0xc4] ss:$8 sps:$4 sm:$0xff]   ;;  %v938_v47 = vld [vmem:[%s1032_s25 + $0xd4] ss:$8 sps:$4 sm:$0xff]  }
  0x27   : > { %555 = vmatprep.subr.bf16.mxu0 %v893_v12  ;;  %579 = vmatprep.mubr.bf16.mxu0 %v798_v35  ;;  %v934_v46 = vld [vmem:[%s1032_s25 + $0xc0] ss:$8 sps:$4 sm:$0xff]   ;;  %v940_v48 = vld [vmem:[%s1032_s25 + $0xd0] ss:$8 sps:$4 sm:$0xff]   ;;  %v944_v49 = vld [vmem:[%s1032_s25 + $0xe4] ss:$8 sps:$4 sm:$0xff]  }
  0x28   : > { %v946_v50 = vld [vmem:[%s1032_s25 + $0xe0] ss:$8 sps:$4 sm:$0xff]   ;;  %v950_v51 = vld [vmem:[%s1032_s25 + $0xf4] ss:$8 sps:$4 sm:$0xff]   ;;  %v952_v52 = vld [vmem:[%s1032_s25 + $0xf0] ss:$8 sps:$4 sm:$0xff]  }
  0x29   : > { %595 = vmatpush1.bf16.msra.mxu1 %v925_v22  ;;  %v244_v58 = vld [vmem:[%s1124_s2] sm:$0xff]  ;;  %v245_v61 = vld [vmem:[%s1124_s2 + $0x8] sm:$0xff] }
  0x2a   : > { %556 = vmatpush1.bf16.msra.mxu0 %v895_v15  ;;  %596 = vmatprep.subr.bf16.mxu1 %v929_v24 }
  0x2b   : > { %557 = vmatprep.subr.bf16.mxu0 %v896_v16 }
  0x2d   : > { %597 = vmatpush1.bf16.msra.mxu1 %v931_v26 }
  0x2e   : > { %558 = vmatpush1.bf16.msra.mxu0 %v898_v19  ;;  %598 = vmatprep.subr.bf16.mxu1 %v935_v28 }
  0x2f   : > { %559 = vmatprep.subr.bf16.mxu0 %v899_v21 }
  0x31   : > { %599 = vmatpush1.bf16.msra.mxu1 %v937_v30 }
  0x32   : > { %560 = vmatpush1.bf16.msra.mxu0 %v901_v23  ;;  %600 = vmatprep.subr.bf16.mxu1 %v941_v32 }
  0x33   : > { %561 = vmatprep.subr.bf16.mxu0 %v902_v25 }
  0x35   : > { %601 = vmatpush1.bf16.msra.mxu1 %v943_v36 }
  0x36   : > { %562 = vmatpush1.bf16.msra.mxu0 %v904_v27  ;;  %602 = vmatprep.subr.bf16.mxu1 %v947_v38 }
  0x37   : > { %563 = vmatprep.subr.bf16.mxu0 %v908_v29 }
  0x39   : > { %603 = vmatpush1.bf16.msra.mxu1 %v949_v40 }
  0x3a   : > { %564 = vmatpush1.bf16.msra.mxu0 %v910_v31 }
  0x3b   : > { %565 = vmatprep.subr.bf16.mxu0 %v914_v33 }
  0x3c   : > { %621 = vmatmul.mubr.bf16.vlgmr.msra.gmra.mrb[0].mxu1 %v953_v43 }
  0x3e   : > { %566 = vmatpush1.bf16.msra.mxu0 %v916_v37 }
  0x3f   : > { %567 = vmatprep.subr.bf16.mxu0 %v920_v39 }
  0x42   : > { %568 = vmatpush1.bf16.msra.mxu0 %v922_v41 }
  0x43   : > { %569 = vmatprep.subr.bf16.mxu0 %v926_v42 }
  0x46   : > { %570 = vmatpush1.bf16.msra.mxu0 %v928_v44 }
  0x47   : > { %571 = vmatprep.subr.bf16.mxu0 %v932_v45 }
  0x4a   : > { %572 = vmatpush1.bf16.msra.mxu0 %v934_v46 }
  0x4b   : > { %573 = vmatprep.subr.bf16.mxu0 %v938_v47 }
  0x4e   : > { %574 = vmatpush1.bf16.msra.mxu0 %v940_v48 }
  0x4f   : > { %575 = vmatprep.subr.bf16.mxu0 %v944_v49 }
  0x52   : > { %576 = vmatpush1.bf16.msra.mxu0 %v946_v50 }
  0x53   : > { %577 = vmatprep.subr.bf16.mxu0 %v950_v51 }
  0x56   : > { %578 = vmatpush1.bf16.msra.mxu0 %v952_v52 }
  0x59   : > { %580 = vmatmul.mubr.bf16.vlgmr.msra.gmra.mrb[0].mxu0 %v797_v53 }
 0x10f   : > { %v622_v54 = vpop.f32.mrb[0].mxu1 }
 0x110   : > { %v624_v55 = vpop.f32.mrb[1].mxu1 }
 0x111   : > { %v626_v56 = vpop.f32.mrb[2].mxu1 }
 0x112   : > { %v627_v57 = vpop.f32.mrb[3].mxu1 }
 0x12c   : > { %v581_v59 = vpop.f32.mrb[0].mxu0  ;;  %636 = sbr.rel (%p848_p7) target bundleno = 332 (0x14c), region = 36 }
 0x12d   : > { %v623_v60 = vadd.f32 %v622_v54, %v581_v59  ;;  %v583_v62 = vpop.f32.mrb[1].mxu0 }
 0x12e   : > { %v625_v63 = vadd.f32 %v624_v55, %v583_v62  ;;  %v585_v0 = vpop.f32.mrb[2].mxu0 }
 0x12f   : > { %v629_v1 = vadd.f32 %v623_v60, %v244_v58  ;;  %v586_v2 = vpop.f32.mrb[3].mxu0 }
 0x130   : > { %v630_v3 = vadd.f32 %v625_v63, %v245_v61 }
 0x131   : > { %631 = vst [vmem:[%s1124_s2] sm:$0xff] %v629_v1 }
 0x132   : > { %632 = vst [vmem:[%s1124_s2 + $0x8] sm:$0xff] %v630_v3 }
 0x138   : > { %v637_v4 = vld [vmem:[%s1124_s2] sm:$0xff] }
 0x139   : > { %v638_v5 = vld [vmem:[%s1124_s2 + $0x8] sm:$0xff]  ;;  %v639_v6 = vrot.slane %v637_v4, 4  ;;  %v651_v8 = vmul.f32 %v637_v4, %v637_v4 }
 0x13a   : > { %v645_v7 = vrot.slane %v638_v5, 4  ;;  %v652_v9 = vmul.f32 %v638_v5, %v638_v5 }
 0x13b   : > { %v640_v10 = vadd.f32 %v639_v6, %v637_v4  ;;  %v653_v12 = vrot.slane %v651_v8, 4 }
 0x13c   : > { %v646_v11 = vadd.f32 %v645_v7, %v638_v5  ;;  %v659_v13 = vrot.slane %v652_v9, 4 }
 0x13d   : > { %v641_v14 = vrot.slane %v640_v10, 2  ;;  %v654_v16 = vadd.f32 %v653_v12, %v651_v8 }
 0x13e   : > { %v647_v15 = vrot.slane %v646_v11, 2  ;;  %v660_v17 = vadd.f32 %v659_v13, %v652_v9 }
 0x13f   : > { %v642_v18 = vadd.f32 %v641_v14, %v640_v10  ;;  %v655_v20 = vrot.slane %v654_v16, 2 }
 0x140   : > { %v648_v19 = vadd.f32 %v647_v15, %v646_v11  ;;  %v661_v21 = vrot.slane %v660_v17, 2 }
 0x141   : > { %v643_v22 = vrot.slane %v642_v18, 1  ;;  %v656_v24 = vadd.f32 %v655_v20, %v654_v16 }
 0x142   : > { %v649_v23 = vrot.slane %v648_v19, 1  ;;  %v662_v25 = vadd.f32 %v661_v21, %v660_v17 }
 0x143   : > { %v644_v26 = vadd.f32 %v643_v22, %v642_v18  ;;  %v657_v28 = vrot.slane %v656_v24, 1 }
 0x144   : > { %v650_v27 = vadd.f32 %v649_v23, %v648_v19  ;;  %v663_v29 = vrot.slane %v662_v25, 1 }
 0x145   : > { %v658_v30 = vadd.f32 %v657_v28, %v656_v24 }
 0x146   : > { %v664_v31 = vadd.f32 %v663_v29, %v662_v25 }
 0x147   : > { %v666_v32 = vsel %vm665_vm0, %v644_v26, %v658_v30 }
 0x148   : > { %v667_v33 = vsel %vm665_vm0, %v650_v27, %v664_v31 }
 0x149   : > { %v670_v34 = vcombine.low %v666_v32, %v667_v33 }
 0x14b   : > { %849 = vst.sshfl [vmem:[%s1125_s3] sm:$0x33 pattern:$0x76325410] %v670_v34 }
 0x14c PF: > { %s14_s14 = sadd.s32 1, %s978_s14   ;;  %s1126_s12 = smov %s974_s13 }
 0x14d   : > { %p11_p8 = scmp.ge.s32.totalorder %s14_s14, 5   ;;  %s1127_s13 = smov %s1129_s15 }
 0x14f   :  { %13 = sbr.rel (!%p11_p8) target bundleno = 2 (0x2), region = 81 }

// kernel: resnet_forward.43
= control target key start
LH: loop header
LB: loop body
LE: loop exit
PB: predicated region body
PF: predicated region fallthrough
CT: control target
= control target key end

     0   :  { %v21_v0 = vlaneseq  ;;  %s112_s1 = inlined_call_operand.vmem [shape: f32[1,256], index: 1, kind: input, shape index: {}]   ;;  %s113_s2 = inlined_call_operand.vmem [shape: f32[1,256], index: 2, kind: input, shape index: {}]   ;;  %s114_s0 = inlined_call_operand.vmem [shape: f32[8,256], index: 0, kind: input, shape index: {}]   ;;  %s115_s3 = inlined_call_operand.vmem [shape: bf16[8,256], index: 3, kind: input, shape index: {}]   ;;  %s116_s4 = inlined_call_operand.vmem [shape: bf16[8,256], index: 4, kind: output, shape index: {}]  }
   0x1   :  { %v19_v2 = vld [vmem:[%s112_s1] sm:$0x3]  ;;  %v18_v7 = vld [vmem:[%s114_s0 + $0x8] sm:$0xff] }
   0x2   :  { %v22_v1 = vshrl.u32 %v21_v0, 7  ;;  %v33_v3 = vld [vmem:[%s113_s2] sm:$0x3] }
   0x3   :  { %v17_v6 = vld [vmem:[%s114_s0] sm:$0xff] }
   0x4   :  { %v23_v4 = vsub.s32 0, %v22_v1  ;;  %v27_v5 = vsub.s32 1, %v22_v1  ;;  %v47_v8 = vld [vmem:[%s115_s3] sm:$0xff] }
   0x5   :  { %v48_v15 = vunpack.c.l.bf16 %v47_v8  ;;  %v49_v16 = vunpack.c.h.bf16 %v47_v8 }
   0x6   :  { %v24_v9 = vrot.slane %v19_v2, %v23_v4  ;;  %v28_v10 = vrot.slane %v19_v2, %v27_v5  ;;  %v38_v11 = vrot.slane %v33_v3, %v23_v4  ;;  %v42_v12 = vrot.slane %v33_v3, %v27_v5 }
   0x8   :  { %v31_v13 = vmul.f32 %v24_v9, %v17_v6  ;;  %v32_v14 = vmul.f32 %v28_v10, %v18_v7 }
   0xa   :  { %v45_v17 = vadd.f32 %v38_v11, %v31_v13  ;;  %v46_v18 = vadd.f32 %v42_v12, %v32_v14 }
   0xc   :  { %v50_v19 = vadd.f32 %v48_v15, %v45_v17  ;;  %v51_v20 = vadd.f32 %v49_v16, %v46_v18 }
   0xe   :  { %v52_v21 = vmax.f32 %v50_v19, 0.0  ;;  %v53_v22 = vmax.f32 %v51_v20, 0.0 }
  0x10   :  { %v68_v23 = vpack.c.bf16 %v53_v22, %v52_v21 }
  0x12   :  { %62 = vst [vmem:[%s116_s4] sm:$0xff] %v68_v23 }

// kernel: resnet_forward.42
= control target key start
LH: loop header
LB: loop body
LE: loop exit
PB: predicated region body
PF: predicated region fallthrough
CT: control target
= control target key end

     0   :  { %s1002_s12 = smov 0   ;;  %s1004_s13 = smov 0   ;;  %s1122_s0 = inlined_call_operand.vmem [shape: bf16[8,2304], index: 0, kind: input, shape index: {}]   ;;  %s1123_s1 = inlined_call_operand.vmem [shape: bf16[2304,256], index: 1, kind: input, shape index: {}]   ;;  %s1124_s2 = inlined_call_operand.vmem [shape: f32[8,256], index: 2, kind: output, shape index: {0}]   ;;  %s1125_s3 = inlined_call_operand.vmem [shape: f32[1,2,256], index: 3, kind: output, shape index: {1}]  }
   0x1   :  { %s1006_s14 = smov 0  }
   0x2 LB: > { %s23_s15 = sadd.s32 1, %s974_s13  ;;  %p792_p0 = scmp.ge.s32.totalorder %s978_s14, 1  ;;  %s978_s14 = sphi %s1006_s14, %s14_s14   ;;  %s974_s13 = sphi %s1004_s13, %s1127_s13   ;;  %s970_s12 = sphi %s1002_s12, %s1126_s12  }
   0x3   : > { %p24_p1 = scmp.ge.s32.totalorder %s23_s15, 6  ;;  %p171_p2 = scmp.lt.s32.totalorder %s978_s14, 7 }
   0x5   : > { %s1129_s15 = smov (%p24_p1, %s23_s15), 0  ;;  %p172_p3 = pnand %p792_p0, %p171_p2 }
   0x6   : > { %s210_s16 = smul.u32 (!%p172_p3), 3, %s970_s12  ;;  %p796_p6 = scmp.ne.s32.totalorder (!%p172_p3), %s970_s12, 0 }
   0x7   : > { %175 = sbr.rel (%p172_p3) target bundleno = 332 (0x14c), region = 28 }
   0x8   : > { %s220_s17 = smul.u32 (!%p172_p3), 48, %s970_s12  ;;  %p213_p4 = scmp.lt.s32.totalorder (!%p172_p3), %s210_s16, 17 }
   0xa   : > { %p221_p5 = scmp.lt.s32.totalorder (!%p172_p3), %s220_s17, 287 }
   0xe   : > { %s1131_s16 = smov (!%p213_p4, %s210_s16), 17  ;;  %s1133_s17 = smov (!%p221_p5, %s220_s17), 287 }
   0xf   : > { %s793_s18 = sshll.u32 %s1131_s16, 2  ;;  %s854_s22 = sshll.u32 %s1133_s17, 3  ;;  %v980_v0 = vmov (!%p796_p6), 0.0  }
  0x10   : > { %s1027_s21 = scalar_lea.vmem %s1122_s0, %s793_s18  ;;  %s1032_s25 = scalar_lea.vmem %s1123_s1, %s854_s22  ;;  %242 = vst [vmem:[%s1124_s2] sm:$0xff] (!%p796_p6), %v980_v0  ;;  %243 = vst [vmem:[%s1124_s2 + $0x8] sm:$0xff] (!%p796_p6), %v980_v0 }
  0x11   : > { %241 = sbr.rel (%p796_p6) target bundleno = 24 (0x18), region = 32 }
  0x18 PF: > { %v881_v1 = vld [vmem:[%s1032_s25 + $0x4] ss:$8 sps:$4 sm:$0xff]   ;;  %v883_v2 = vld [vmem:[%s1032_s25] ss:$8 sps:$4 sm:$0xff]   ;;  %v981_v3 = vmov 0   ;;  %p848_p7 = scmp.ne.s32.totalorder %s970_s12, 5 }
  0x19   : > { %620 = vmatprep.mubr.bf16.mxu1 %v981_v3  ;;  %547 = vmatprep.subr.bf16.mxu0 %v881_v1  ;;  %v884_v4 = vld [vmem:[%s1032_s25 + $0x14] ss:$8 sps:$4 sm:$0xff]   ;;  %v886_v5 = vld [vmem:[%s1032_s25 + $0x10] ss:$8 sps:$4 sm:$0xff]   ;;  %v887_v6 = vld [vmem:[%s1032_s25 + $0x24] ss:$8 sps:$4 sm:$0xff]  }
  0x1a   : > { %548 = vmatpush1.bf16.msra.mxu0 %v883_v2  ;;  %v889_v7 = vld [vmem:[%s1032_s25 + $0x20] ss:$8 sps:$4 sm:$0xff]   ;;  %v890_v8 = vld [vmem:[%s1032_s25 + $0x34] ss:$8 sps:$4 sm:$0xff]   ;;  %v892_v9 = vld [vmem:[%s1032_s25 + $0x30] ss:$8 sps:$4 sm:$0xff]  }
  0x1b   : > { %549 = vmatprep.subr.bf16.mxu0 %v884_v4  ;;  %v905_v10 = vld [vmem:[%s1032_s25 + $0x104] ss:$8 sps:$4 sm:$0xff]   ;;  %v907_v11 = vld [vmem:[%s1032_s25 + $0x100] ss:$8 sps:$4 sm:$0xff]   ;;  %v911_v13 = vld [vmem:[%s1032_s25 + $0x114] ss:$8 sps:$4 sm:$0xff]  }
  0x1c   : > { %v893_v12 = vld [vmem:[%s1032_s25 + $0x44] ss:$8 sps:$4 sm:$0xff]   ;;  %588 = vmatprep.subr.bf16.mxu1 %v905_v10  ;;  %v913_v14 = vld [vmem:[%s1032_s25 + $0x110] ss:$8 sps:$4 sm:$0xff]   ;;  %v895_v15 = vld [vmem:[%s1032_s25 + $0x40] ss:$8 sps:$4 sm:$0xff]  }
  0x1d   : > { %589 = vmatpush1.bf16.msra.mxu1 %v907_v11  ;;  %v896_v16 = vld [vmem:[%s1032_s25 + $0x54] ss:$8 sps:$4 sm:$0xff]   ;;  %v917_v17 = vld [vmem:[%s1032_s25 + $0x124] ss:$8 sps:$4 sm:$0xff]   ;;  %v919_v18 = vld [vmem:[%s1032_s25 + $0x120] ss:$8 sps:$4 sm:$0xff]  }
  0x1e   : > { %550 = vmatpush1.bf16.msra.mxu0 %v886_v5  ;;  %590 = vmatprep.subr.bf16.mxu1 %v911_v13  ;;  %v898_v19 = vld [vmem:[%s1032_s25 + $0x50] ss:$8 sps:$4 sm:$0xff]   ;;  %v923_v20 = vld [vmem:[%s1032_s25 + $0x134] ss:$8 sps:$4 sm:$0xff]   ;;  %v899_v21 = vld [vmem:[%s1032_s25 + $0x64] ss:$8 sps:$4 sm:$0xff]  }
  0x1f   : > { %551 = vmatprep.subr.bf16.mxu0 %v887_v6  ;;  %v925_v22 = vld [vmem:[%s1032_s25 + $0x130] ss:$8 sps:$4 sm:$0xff]   ;;  %v901_v23 = vld [vmem:[%s1032_s25 + $0x60] ss:$8 sps:$4 sm:$0xff]   ;;  %v929_v24 = vld [vmem:[%s1032_s25 + $0x144] ss:$8 sps:$4 sm:$0xff]  }
  0x20   : > { %v902_v25 = vld [vmem:[%s1032_s25 + $0x74] ss:$8 sps:$4 sm:$0xff]   ;;  %v931_v26 = vld [vmem:[%s1032_s25 + $0x140] ss:$8 sps:$4 sm:$0xff]   ;;  %v904_v27 = vld [vmem:[%s1032_s25 + $0x70] ss:$8 sps:$4 sm:$0xff]  }
  0x21   : > { %591 = vmatpush1.bf16.msra.mxu1 %v913_v14  ;;  %v935_v28 = vld [vmem:[%s1032_s25 + $0x154] ss:$8 sps:$4 sm:$0xff]   ;;  %v908_v29 = vld [vmem:[%s1032_s25 + $0x84] ss:$8 sps:$4 sm:$0xff]   ;;  %v937_v30 = vld [vmem:[%s1032_s25 + $0x150] ss:$8 sps:$4 sm:$0xff]  }
  0x22   : > { %552 = vmatpush1.bf16.msra.mxu0 %v889_v7  ;;  %592 = vmatprep.subr.bf16.mxu1 %v917_v17  ;;  %v910_v31 = vld [vmem:[%s1032_s25 + $0x80] ss:$8 sps:$4 sm:$0xff]   ;;  %v941_v32 = vld [vmem:[%s1032_s25 + $0x164] ss:$8 sps:$4 sm:$0xff]   ;;  %v914_v33 = vld [vmem:[%s1032_s25 + $0x94] ss:$8 sps:$4 sm:$0xff]  }
  0x23   : > { %553 = vmatprep.subr.bf16.mxu0 %v890_v8  ;;  %v246_v34 = vld [vmem:[%s1027_s21] sm:$0xff]  ;;  %v916_v37 = vld [vmem:[%s1032_s25 + $0x90] ss:$8 sps:$4 sm:$0xff]   ;;  %v947_v38 = vld [vmem:[%s1032_s25 + $0x174] ss:$8 sps:$4 sm:$0xff]   ;;  %vm665_vm0 = vcmask (!%p848_p7), 1040384  }
  0x24   : > { %v798_v35 = vcombine.high %v246_v34, %v246_v34  ;;  %v943_v36 = vld [vmem:[%s1032_s25 + $0x160] ss:$8 sps:$4 sm:$0xff]   ;;  %v920_v39 = vld [vmem:[%s1032_s25 + $0xa4] ss:$8 sps:$4 sm:$0xff]   ;;  %v949_v40 = vld [vmem:[%s1032_s25 + $0x170] ss:$8 sps:$4 sm:$0xff]   ;;  %v797_v53 = vcombine.low %v246_v34, %v246_v34 }
  0x25   : > { %593 = vmatpush1.bf16.msra.mxu1 %v919_v18  ;;  %v922_v41 = vld [vmem:[%s1032_s25 + $0xa0] ss:$8 sps:$4 sm:$0xff]   ;;  %v926_v42 = vld [vmem:[%s1032_s25 + $0xb4] ss:$8 sps:$4 sm:$0xff]   ;;  %v928_v44 = vld [vmem:[%s1032_s25 + $0xb0] ss:$8 sps:$4 sm:$0xff]  }
  0x26   : > { %554 = vmatpush1.bf16.msra.mxu0 %v892_v9  ;;  %594 = vmatprep.subr.bf16.mxu1 %v923_v20  ;;  %v953_v43 = vld [vmem:[%s1027_s21 + $0x8] ss:$0 sps:$4 sm:$0xff]   ;;  %v932_v45 = vld [vmem:[%s1032_s25 + $0xc4] ss:$8 sps:$4 sm:$0xff]   ;;  %v938_v47 = vld [vmem:[%s1032_s25 + $0xd4] ss:$8 sps:$4 sm:$0xff]  }
  0x27   : > { %555 = vmatprep.subr.bf16.mxu0 %v893_v12  ;;  %579 = vmatprep.mubr.bf16.mxu0 %v798_v35  ;;  %v934_v46 = vld [vmem:[%s1032_s25 + $0xc0] ss:$8 sps:$4 sm:$0xff]   ;;  %v940_v48 = vld [vmem:[%s1032_s25 + $0xd0] ss:$8 sps:$4 sm:$0xff]   ;;  %v944_v49 = vld [vmem:[%s1032_s25 + $0xe4] ss:$8 sps:$4 sm:$0xff]  }
  0x28   : > { %v946_v50 = vld [vmem:[%s1032_s25 + $0xe0] ss:$8 sps:$4 sm:$0xff]   ;;  %v950_v51 = vld [vmem:[%s1032_s25 + $0xf4] ss:$8 sps:$4 sm:$0xff]   ;;  %v952_v52 = vld [vmem:[%s1032_s25 + $0xf0] ss:$8 sps:$4 sm:$0xff]  }
  0x29   : > { %595 = vmatpush1.bf16.msra.mxu1 %v925_v22  ;;  %v244_v58 = vld [vmem:[%s1124_s2] sm:$0xff]  ;;  %v245_v61 = vld [vmem:[%s1124_s2 + $0x8] sm:$0xff] }
  0x2a   : > { %556 = vmatpush1.bf16.msra.mxu0 %v895_v15  ;;  %596 = vmatprep.subr.bf16.mxu1 %v929_v24 }
  0x2b   : > { %557 = vmatprep.subr.bf16.mxu0 %v896_v16 }
  0x2d   : > { %597 = vmatpush1.bf16.msra.mxu1 %v931_v26 }
  0x2e   : > { %558 = vmatpush1.bf16.msra.mxu0 %v898_v19  ;;  %598 = vmatprep.subr.bf16.mxu1 %v935_v28 }
  0x2f   : > { %559 = vmatprep.subr.bf16.mxu0 %v899_v21 }
  0x31   : > { %599 = vmatpush1.bf16.msra.mxu1 %v937_v30 }
  0x32   : > { %560 = vmatpush1.bf16.msra.mxu0 %v901_v23  ;;  %600 = vmatprep.subr.bf16.mxu1 %v941_v32 }
  0x33   : > { %561 = vmatprep.subr.bf16.mxu0 %v902_v25 }
  0x35   : > { %601 = vmatpush1.bf16.msra.mxu1 %v943_v36 }
  0x36   : > { %562 = vmatpush1.bf16.msra.mxu0 %v904_v27  ;;  %602 = vmatprep.subr.bf16.mxu1 %v947_v38 }
  0x37   : > { %563 = vmatprep.subr.bf16.mxu0 %v908_v29 }
  0x39   : > { %603 = vmatpush1.bf16.msra.mxu1 %v949_v40 }
  0x3a   : > { %564 = vmatpush1.bf16.msra.mxu0 %v910_v31 }
  0x3b   : > { %565 = vmatprep.subr.bf16.mxu0 %v914_v33 }
  0x3c   : > { %621 = vmatmul.mubr.bf16.vlgmr.msra.gmra.mrb[0].mxu1 %v953_v43 }
  0x3e   : > { %566 = vmatpush1.bf16.msra.mxu0 %v916_v37 }
  0x3f   : > { %567 = vmatprep.subr.bf16.mxu0 %v920_v39 }
  0x42   : > { %568 = vmatpush1.bf16.msra.mxu0 %v922_v41 }
  0x43   : > { %569 = vmatprep.subr.bf16.mxu0 %v926_v42 }
  0x46   : > { %570 = vmatpush1.bf16.msra.mxu0 %v928_v44 }
  0x47   : > { %571 = vmatprep.subr.bf16.mxu0 %v932_v45 }
  0x4a   : > { %572 = vmatpush1.bf16.msra.mxu0 %v934_v46 }
  0x4b   : > { %573 = vmatprep.subr.bf16.mxu0 %v938_v47 }
  0x4e   : > { %574 = vmatpush1.bf16.msra.mxu0 %v940_v48 }
  0x4f   : > { %575 = vmatprep.subr.bf16.mxu0 %v944_v49 }
  0x52   : > { %576 = vmatpush1.bf16.msra.mxu0 %v946_v50 }
  0x53   : > { %577 = vmatprep.subr.bf16.mxu0 %v950_v51 }
  0x56   : > { %578 = vmatpush1.bf16.msra.mxu0 %v952_v52 }
  0x59   : > { %580 = vmatmul.mubr.bf16.vlgmr.msra.gmra.mrb[0].mxu0 %v797_v53 }
 0x10f   : > { %v622_v54 = vpop.f32.mrb[0].mxu1 }
 0x110   : > { %v624_v55 = vpop.f32.mrb[1].mxu1 }
 0x111   : > { %v626_v56 = vpop.f32.mrb[2].mxu1 }
 0x112   : > { %v627_v57 = vpop.f32.mrb[3].mxu1 }
 0x12c   : > { %v581_v59 = vpop.f32.mrb[0].mxu0  ;;  %636 = sbr.rel (%p848_p7) target bundleno = 332 (0x14c), region = 36 }
 0x12d   : > { %v623_v60 = vadd.f32 %v622_v54, %v581_v59  ;;  %v583_v62 = vpop.f32.mrb[1].mxu0 }
 0x12e   : > { %v625_v63 = vadd.f32 %v624_v55, %v583_v62  ;;  %v585_v0 = vpop.f32.mrb[2].mxu0 }
 0x12f   : > { %v629_v1 = vadd.f32 %v623_v60, %v244_v58  ;;  %v586_v2 = vpop.f32.mrb[3].mxu0 }
 0x130   : > { %v630_v3 = vadd.f32 %v625_v63, %v245_v61 }
 0x131   : > { %631 = vst [vmem:[%s1124_s2] sm:$0xff] %v629_v1 }
 0x132   : > { %632 = vst [vmem:[%s1124_s2 + $0x8] sm:$0xff] %v630_v3 }
 0x138   : > { %v637_v4 = vld [vmem:[%s1124_s2] sm:$0xff] }
 0x139   : > { %v638_v5 = vld [vmem:[%s1124_s2 + $0x8] sm:$0xff]  ;;  %v639_v6 = vrot.slane %v637_v4, 4  ;;  %v651_v8 = vmul.f32 %v637_v4, %v637_v4 }
 0x13a   : > { %v645_v7 = vrot.slane %v638_v5, 4  ;;  %v652_v9 = vmul.f32 %v638_v5, %v638_v5 }
 0x13b   : > { %v640_v10 = vadd.f32 %v639_v6, %v637_v4  ;;  %v653_v12 = vrot.slane %v651_v8, 4 }
 0x13c   : > { %v646_v11 = vadd.f32 %v645_v7, %v638_v5  ;;  %v659_v13 = vrot.slane %v652_v9, 4 }
 0x13d   : > { %v641_v14 = vrot.slane %v640_v10, 2  ;;  %v654_v16 = vadd.f32 %v653_v12, %v651_v8 }
 0x13e   : > { %v647_v15 = vrot.slane %v646_v11, 2  ;;  %v660_v17 = vadd.f32 %v659_v13, %v652_v9 }
 0x13f   : > { %v642_v18 = vadd.f32 %v641_v14, %v640_v10  ;;  %v655_v20 = vrot.slane %v654_v16, 2 }
 0x140   : > { %v648_v19 = vadd.f32 %v647_v15, %v646_v11  ;;  %v661_v21 = vrot.slane %v660_v17, 2 }
 0x141   : > { %v643_v22 = vrot.slane %v642_v18, 1  ;;  %v656_v24 = vadd.f32 %v655_v20, %v654_v16 }
 0x142   : > { %v649_v23 = vrot.slane %v648_v19, 1  ;;  %v662_v25 = vadd.f32 %v661_v21, %v660_v17 }
 0x143   : > { %v644_v26 = vadd.f32 %v643_v22, %v642_v18  ;;  %v657_v28 = vrot.slane %v656_v24, 1 }
 0x144   : > { %v650_v27 = vadd.f32 %v649_v23, %v648_v19  ;;  %v663_v29 = vrot.slane %v662_v25, 1 }
 0x145   : > { %v658_v30 = vadd.f32 %v657_v28, %v656_v24 }
 0x146   : > { %v664_v31 = vadd.f32 %v663_v29, %v662_v25 }
 0x147   : > { %v666_v32 = vsel %vm665_vm0, %v644_v26, %v658_v30 }
 0x148   : > { %v667_v33 = vsel %vm665_vm0, %v650_v27, %v664_v31 }
 0x149   : > { %v670_v34 = vcombine.low %v666_v32, %v667_v33 }
 0x14b   : > { %849 = vst.sshfl [vmem:[%s1125_s3] sm:$0x33 pattern:$0x76325410] %v670_v34 }
 0x14c PF: > { %s14_s14 = sadd.s32 1, %s978_s14   ;;  %s1126_s12 = smov %s974_s13 }
 0x14d   : > { %p11_p8 = scmp.ge.s32.totalorder %s14_s14, 8   ;;  %s1127_s13 = smov %s1129_s15 }
 0x14f   :  { %13 = sbr.rel (!%p11_p8) target bundleno = 2 (0x2), region = 81 }

// kernel: resnet_forward.45
= control target key start
LH: loop header
LB: loop body
LE: loop exit
PB: predicated region body
PF: predicated region fallthrough
CT: control target
= control target key end

     0   :  { %v20_v0 = vlaneseq  ;;  %s140_s1 = inlined_call_operand.vmem [shape: f32[1,512], index: 1, kind: input, shape index: {}]   ;;  %s141_s2 = inlined_call_operand.vmem [shape: f32[1,512], index: 2, kind: input, shape index: {}]   ;;  %s142_s0 = inlined_call_operand.vmem [shape: f32[8,512], index: 0, kind: input, shape index: {}]   ;;  %s143_s3 = inlined_call_operand.vmem [shape: bf16[8,512], index: 3, kind: output, shape index: {}]  }
   0x1   :  { %v18_v2 = vld [vmem:[%s140_s1] sm:$0xf]  ;;  %v15_v9 = vld [vmem:[%s142_s0 + $0x8] sm:$0xff]  ;;  %v16_v14 = vld [vmem:[%s142_s0 + $0x10] sm:$0xff] }
   0x2   :  { %v21_v1 = vshrl.u32 %v20_v0, 7  ;;  %v44_v3 = vld [vmem:[%s141_s2] sm:$0xf]  ;;  %v17_v15 = vld [vmem:[%s142_s0 + $0x18] sm:$0xff] }
   0x3   :  { %v14_v8 = vld [vmem:[%s142_s0] sm:$0xff] }
   0x4   :  { %v22_v4 = vsub.s32 0, %v21_v1  ;;  %v26_v5 = vsub.s32 1, %v21_v1  ;;  %v30_v6 = vsub.s32 2, %v21_v1  ;;  %v34_v7 = vsub.s32 3, %v21_v1 }
   0x6   :  { %v23_v10 = vrot.slane %v18_v2, %v22_v4  ;;  %v27_v11 = vrot.slane %v18_v2, %v26_v5  ;;  %v49_v12 = vrot.slane %v44_v3, %v22_v4  ;;  %v53_v13 = vrot.slane %v44_v3, %v26_v5 }
   0x7   :  { %v31_v16 = vrot.slane %v18_v2, %v30_v6  ;;  %v35_v17 = vrot.slane %v18_v2, %v34_v7  ;;  %v57_v18 = vrot.slane %v44_v3, %v30_v6  ;;  %v61_v19 = vrot.slane %v44_v3, %v34_v7 }
   0x8   :  { %v40_v20 = vmul.f32 %v23_v10, %v14_v8  ;;  %v41_v21 = vmul.f32 %v27_v11, %v15_v9 }
   0x9   :  { %v42_v22 = vmul.f32 %v31_v16, %v16_v14  ;;  %v43_v23 = vmul.f32 %v35_v17, %v17_v15 }
   0xa   :  { %v66_v24 = vadd.f32 %v49_v12, %v40_v20  ;;  %v67_v25 = vadd.f32 %v53_v13, %v41_v21 }
   0xb   :  { %v68_v26 = vadd.f32 %v57_v18, %v42_v22  ;;  %v69_v27 = vadd.f32 %v61_v19, %v43_v23 }
   0xc   :  { %v94_v28 = vpack.c.bf16 %v67_v25, %v66_v24 }
   0xd   :  { %v95_v29 = vpack.c.bf16 %v69_v27, %v68_v26 }
   0xe   :  { %86 = vst [vmem:[%s143_s3] sm:$0xff] %v94_v28 }
   0xf   :  { %87 = vst [vmem:[%s143_s3 + $0x8] sm:$0xff] %v95_v29 }

// kernel: resnet_forward.44
= control target key start
LH: loop header
LB: loop body
LE: loop exit
PB: predicated region body
PF: predicated region fallthrough
CT: control target
= control target key end

     0   :  { %vm566_vm0 = vcmask 1040384   ;;  %s1002_s1 = inlined_call_operand.vmem [shape: bf16[256,512], index: 1, kind: input, shape index: {}]   ;;  %s1003_s0 = inlined_call_operand.vmem [shape: bf16[8,256], index: 0, kind: input, shape index: {}]   ;;  %s1004_s2 = inlined_call_operand.vmem [shape: f32[8,512], index: 2, kind: output, shape index: {0}]   ;;  %s1005_s3 = inlined_call_operand.vmem [shape: f32[1,2,512], index: 3, kind: output, shape index: {1}]  }
   0x1   :  { %v670_v0 = vld [vmem:[%s1002_s1 + $0x4] ss:$16 sps:$4 sm:$0xff]   ;;  %v672_v1 = vld [vmem:[%s1002_s1 + $0xc] ss:$16 sps:$4 sm:$0xff]   ;;  %v674_v2 = vld [vmem:[%s1002_s1] ss:$16 sps:$4 sm:$0xff]  }
   0x2   :  { %417 = vmatprep.subr.bf16.mxu0 %v670_v0  ;;  %v675_v3 = vld [vmem:[%s1002_s1 + $0x8] ss:$16 sps:$4 sm:$0xff]   ;;  %458 = vmatprep.subr.bf16.mxu1 %v672_v1  ;;  %v676_v4 = vld [vmem:[%s1002_s1 + $0x24] ss:$16 sps:$4 sm:$0xff]   ;;  %v678_v5 = vld [vmem:[%s1002_s1 + $0x2c] ss:$16 sps:$4 sm:$0xff]  }
   0x3   :  { %418 = vmatpush1.bf16.msra.mxu0 %v674_v2  ;;  %459 = vmatpush1.bf16.msra.mxu1 %v675_v3  ;;  %v680_v6 = vld [vmem:[%s1002_s1 + $0x20] ss:$16 sps:$4 sm:$0xff]   ;;  %v681_v7 = vld [vmem:[%s1002_s1 + $0x28] ss:$16 sps:$4 sm:$0xff]   ;;  %v682_v8 = vld [vmem:[%s1002_s1 + $0x44] ss:$16 sps:$4 sm:$0xff]  }
   0x4   :  { %419 = vmatprep.subr.bf16.mxu0 %v676_v4  ;;  %460 = vmatprep.subr.bf16.mxu1 %v678_v5  ;;  %v684_v9 = vld [vmem:[%s1002_s1 + $0x4c] ss:$16 sps:$4 sm:$0xff]   ;;  %v686_v10 = vld [vmem:[%s1002_s1 + $0x40] ss:$16 sps:$4 sm:$0xff]   ;;  %v687_v11 = vld [vmem:[%s1002_s1 + $0x48] ss:$16 sps:$4 sm:$0xff]  }
   0x5   :  { %v688_v12 = vld [vmem:[%s1002_s1 + $0x64] ss:$16 sps:$4 sm:$0xff]   ;;  %v690_v13 = vld [vmem:[%s1002_s1 + $0x6c] ss:$16 sps:$4 sm:$0xff]   ;;  %v692_v14 = vld [vmem:[%s1002_s1 + $0x60] ss:$16 sps:$4 sm:$0xff]  }
   0x6   :  { %v693_v15 = vld [vmem:[%s1002_s1 + $0x68] ss:$16 sps:$4 sm:$0xff]   ;;  %v694_v16 = vld [vmem:[%s1002_s1 + $0x84] ss:$16 sps:$4 sm:$0xff]   ;;  %v696_v17 = vld [vmem:[%s1002_s1 + $0x8c] ss:$16 sps:$4 sm:$0xff]  }
   0x7   :  { %420 = vmatpush1.bf16.msra.mxu0 %v680_v6  ;;  %461 = vmatpush1.bf16.msra.mxu1 %v681_v7  ;;  %v698_v18 = vld [vmem:[%s1002_s1 + $0x80] ss:$16 sps:$4 sm:$0xff]   ;;  %v699_v19 = vld [vmem:[%s1002_s1 + $0x88] ss:$16 sps:$4 sm:$0xff]   ;;  %v700_v20 = vld [vmem:[%s1002_s1 + $0xa4] ss:$16 sps:$4 sm:$0xff]  }
   0x8   :  { %421 = vmatprep.subr.bf16.mxu0 %v682_v8  ;;  %462 = vmatprep.subr.bf16.mxu1 %v684_v9  ;;  %v702_v21 = vld [vmem:[%s1002_s1 + $0xac] ss:$16 sps:$4 sm:$0xff]   ;;  %v704_v22 = vld [vmem:[%s1002_s1 + $0xa0] ss:$16 sps:$4 sm:$0xff]   ;;  %v705_v23 = vld [vmem:[%s1002_s1 + $0xa8] ss:$16 sps:$4 sm:$0xff]   ;;  %v580_v9 = vlaneseq }
   0x9   :  { %v706_v24 = vld [vmem:[%s1002_s1 + $0xc4] ss:$16 sps:$4 sm:$0xff]   ;;  %v708_v25 = vld [vmem:[%s1002_s1 + $0xcc] ss:$16 sps:$4 sm:$0xff]   ;;  %v710_v26 = vld [vmem:[%s1002_s1 + $0xc0] ss:$16 sps:$4 sm:$0xff]  }
   0xa   :  { %v711_v27 = vld [vmem:[%s1002_s1 + $0xc8] ss:$16 sps:$4 sm:$0xff]   ;;  %v712_v28 = vld [vmem:[%s1002_s1 + $0xe4] ss:$16 sps:$4 sm:$0xff]   ;;  %v714_v29 = vld [vmem:[%s1002_s1 + $0xec] ss:$16 sps:$4 sm:$0xff]  }
   0xb   :  { %422 = vmatpush1.bf16.msra.mxu0 %v686_v10  ;;  %463 = vmatpush1.bf16.msra.mxu1 %v687_v11  ;;  %v716_v30 = vld [vmem:[%s1002_s1 + $0xe0] ss:$16 sps:$4 sm:$0xff]   ;;  %v717_v31 = vld [vmem:[%s1002_s1 + $0xe8] ss:$16 sps:$4 sm:$0xff]   ;;  %v718_v32 = vld [vmem:[%s1002_s1 + $0x104] ss:$16 sps:$4 sm:$0xff]  }
   0xc   :  { %423 = vmatprep.subr.bf16.mxu0 %v688_v12  ;;  %464 = vmatprep.subr.bf16.mxu1 %v690_v13  ;;  %v720_v33 = vld [vmem:[%s1002_s1 + $0x10c] ss:$16 sps:$4 sm:$0xff]   ;;  %v722_v34 = vld [vmem:[%s1002_s1 + $0x100] ss:$16 sps:$4 sm:$0xff]   ;;  %v723_v35 = vld [vmem:[%s1002_s1 + $0x108] ss:$16 sps:$4 sm:$0xff]  }
   0xd   :  { %v724_v36 = vld [vmem:[%s1002_s1 + $0x124] ss:$16 sps:$4 sm:$0xff]   ;;  %v726_v37 = vld [vmem:[%s1002_s1 + $0x12c] ss:$16 sps:$4 sm:$0xff]   ;;  %v728_v38 = vld [vmem:[%s1002_s1 + $0x120] ss:$16 sps:$4 sm:$0xff]  }
   0xe   :  { %v729_v39 = vld [vmem:[%s1002_s1 + $0x128] ss:$16 sps:$4 sm:$0xff]   ;;  %v730_v40 = vld [vmem:[%s1002_s1 + $0x144] ss:$16 sps:$4 sm:$0xff]   ;;  %v732_v41 = vld [vmem:[%s1002_s1 + $0x14c] ss:$16 sps:$4 sm:$0xff]  }
   0xf   :  { %424 = vmatpush1.bf16.msra.mxu0 %v692_v14  ;;  %465 = vmatpush1.bf16.msra.mxu1 %v693_v15  ;;  %v734_v42 = vld [vmem:[%s1002_s1 + $0x140] ss:$16 sps:$4 sm:$0xff]   ;;  %v735_v43 = vld [vmem:[%s1002_s1 + $0x148] ss:$16 sps:$4 sm:$0xff]   ;;  %v736_v44 = vld [vmem:[%s1002_s1 + $0x164] ss:$16 sps:$4 sm:$0xff]  }
  0x10   :  { %425 = vmatprep.subr.bf16.mxu0 %v694_v16  ;;  %466 = vmatprep.subr.bf16.mxu1 %v696_v17  ;;  %v738_v45 = vld [vmem:[%s1002_s1 + $0x16c] ss:$16 sps:$4 sm:$0xff]   ;;  %v25_v46 = vld [vmem:[%s1003_s0] sm:$0xff]  ;;  %v741_v49 = vld [vmem:[%s1002_s1 + $0x168] ss:$16 sps:$4 sm:$0xff]  }
  0x11   :  { %v603_v47 = vcombine.high %v25_v46, %v25_v46  ;;  %v740_v48 = vld [vmem:[%s1002_s1 + $0x160] ss:$16 sps:$4 sm:$0xff]   ;;  %v742_v50 = vld [vmem:[%s1002_s1 + $0x184] ss:$16 sps:$4 sm:$0xff]   ;;  %v744_v51 = vld [vmem:[%s1002_s1 + $0x18c] ss:$16 sps:$4 sm:$0xff]   ;;  %v602_v2 = vcombine.low %v25_v46, %v25_v46 }
  0x12   :  { %v746_v52 = vld [vmem:[%s1002_s1 + $0x180] ss:$16 sps:$4 sm:$0xff]   ;;  %v747_v53 = vld [vmem:[%s1002_s1 + $0x188] ss:$16 sps:$4 sm:$0xff]   ;;  %v748_v54 = vld [vmem:[%s1002_s1 + $0x1a4] ss:$16 sps:$4 sm:$0xff]  }
  0x13   :  { %426 = vmatpush1.bf16.msra.mxu0 %v698_v18  ;;  %467 = vmatpush1.bf16.msra.mxu1 %v699_v19  ;;  %v750_v55 = vld [vmem:[%s1002_s1 + $0x1ac] ss:$16 sps:$4 sm:$0xff]   ;;  %v752_v56 = vld [vmem:[%s1002_s1 + $0x1a0] ss:$16 sps:$4 sm:$0xff]   ;;  %v753_v57 = vld [vmem:[%s1002_s1 + $0x1a8] ss:$16 sps:$4 sm:$0xff]  }
  0x14   :  { %427 = vmatprep.subr.bf16.mxu0 %v700_v20  ;;  %468 = vmatprep.subr.bf16.mxu1 %v702_v21  ;;  %v754_v58 = vld [vmem:[%s1002_s1 + $0x1c4] ss:$16 sps:$4 sm:$0xff]   ;;  %v756_v59 = vld [vmem:[%s1002_s1 + $0x1cc] ss:$16 sps:$4 sm:$0xff]   ;;  %v758_v60 = vld [vmem:[%s1002_s1 + $0x1c0] ss:$16 sps:$4 sm:$0xff]  }
  0x15   :  { %449 = vmatprep.mubr.bf16.mxu0 %v603_v47  ;;  %490 = vmatprep.mubr.bf16.mxu1 %v603_v47  ;;  %v759_v61 = vld [vmem:[%s1002_s1 + $0x1c8] ss:$16 sps:$4 sm:$0xff]   ;;  %v760_v62 = vld [vmem:[%s1002_s1 + $0x1e4] ss:$16 sps:$4 sm:$0xff]   ;;  %v762_v63 = vld [vmem:[%s1002_s1 + $0x1ec] ss:$16 sps:$4 sm:$0xff]  }
  0x16   :  { %v764_v0 = vld [vmem:[%s1002_s1 + $0x1e0] ss:$16 sps:$4 sm:$0xff]   ;;  %v765_v1 = vld [vmem:[%s1002_s1 + $0x1e8] ss:$16 sps:$4 sm:$0xff]   ;;  %v768_v7 = vmov 1983009808  }
  0x17   :  { %428 = vmatpush1.bf16.msra.mxu0 %v704_v22  ;;  %469 = vmatpush1.bf16.msra.mxu1 %v705_v23  ;;  %v984_v8 = vunpack.c.l.s4 %v768_v7 }
  0x18   :  { %429 = vmatprep.subr.bf16.mxu0 %v706_v24  ;;  %470 = vmatprep.subr.bf16.mxu1 %v708_v25 }
  0x1b   :  { %430 = vmatpush1.bf16.msra.mxu0 %v710_v26  ;;  %471 = vmatpush1.bf16.msra.mxu1 %v711_v27 }
  0x1c   :  { %431 = vmatprep.subr.bf16.mxu0 %v712_v28  ;;  %472 = vmatprep.subr.bf16.mxu1 %v714_v29 }
  0x1f   :  { %432 = vmatpush1.bf16.msra.mxu0 %v716_v30  ;;  %473 = vmatpush1.bf16.msra.mxu1 %v717_v31 }
  0x20   :  { %433 = vmatprep.subr.bf16.mxu0 %v718_v32  ;;  %474 = vmatprep.subr.bf16.mxu1 %v720_v33 }
  0x23   :  { %434 = vmatpush1.bf16.msra.mxu0 %v722_v34  ;;  %475 = vmatpush1.bf16.msra.mxu1 %v723_v35 }
  0x24   :  { %435 = vmatprep.subr.bf16.mxu0 %v724_v36  ;;  %476 = vmatprep.subr.bf16.mxu1 %v726_v37 }
  0x27   :  { %436 = vmatpush1.bf16.msra.mxu0 %v728_v38  ;;  %477 = vmatpush1.bf16.msra.mxu1 %v729_v39 }
  0x28   :  { %437 = vmatprep.subr.bf16.mxu0 %v730_v40  ;;  %478 = vmatprep.subr.bf16.mxu1 %v732_v41 }
  0x2b   :  { %438 = vmatpush1.bf16.msra.mxu0 %v734_v42  ;;  %479 = vmatpush1.bf16.msra.mxu1 %v735_v43 }
  0x2c   :  { %439 = vmatprep.subr.bf16.mxu0 %v736_v44  ;;  %480 = vmatprep.subr.bf16.mxu1 %v738_v45 }
  0x2f   :  { %440 = vmatpush1.bf16.msra.mxu0 %v740_v48  ;;  %481 = vmatpush1.bf16.msra.mxu1 %v741_v49 }
  0x30   :  { %441 = vmatprep.subr.bf16.mxu0 %v742_v50  ;;  %482 = vmatprep.subr.bf16.mxu1 %v744_v51 }
  0x33   :  { %442 = vmatpush1.bf16.msra.mxu0 %v746_v52  ;;  %483 = vmatpush1.bf16.msra.mxu1 %v747_v53 }
  0x34   :  { %443 = vmatprep.subr.bf16.mxu0 %v748_v54  ;;  %484 = vmatprep.subr.bf16.mxu1 %v750_v55 }
  0x37   :  { %444 = vmatpush1.bf16.msra.mxu0 %v752_v56  ;;  %485 = vmatpush1.bf16.msra.mxu1 %v753_v57  ;;  %v579_v56 = vunpack.c.0.s8 %v984_v8  ;;  %v581_v57 = vshrl.u32 %v580_v9, 7 }
  0x38   :  { %445 = vmatprep.subr.bf16.mxu0 %v754_v58  ;;  %486 = vmatprep.subr.bf16.mxu1 %v756_v59 }
  0x3b   :  { %446 = vmatpush1.bf16.msra.mxu0 %v758_v60  ;;  %487 = vmatpush1.bf16.msra.mxu1 %v759_v61 }
  0x3c   :  { %447 = vmatprep.subr.bf16.mxu0 %v760_v62  ;;  %488 = vmatprep.subr.bf16.mxu1 %v762_v63 }
  0x3f   :  { %448 = vmatpush1.bf16.msra.mxu0 %v764_v0  ;;  %489 = vmatpush1.bf16.msra.mxu1 %v765_v1 }
  0x42   :  { %450 = vmatmul.mubr.bf16.vlgmr.msra.gmra.mrb[0].mxu0 %v602_v2  ;;  %491 = vmatmul.mubr.bf16.vlgmr.msra.gmra.mrb[0].mxu1 %v602_v2 }
 0x115   :  { %v451_v3 = vpop.f32.mrb[0].mxu0  ;;  %v492_v4 = vpop.f32.mrb[0].mxu1 }
 0x116   :  { %v453_v5 = vpop.f32.mrb[1].mxu0  ;;  %v494_v6 = vpop.f32.mrb[1].mxu1  ;;  %503 = vst [vmem:[%s1004_s2] sm:$0xff] %v451_v3  ;;  %v514_v12 = vrot.slane %v451_v3, 4  ;;  %v538_v13 = vmul.f32 %v451_v3, %v451_v3  ;;  %505 = vst [vmem:[%s1004_s2 + $0x10] sm:$0xff] %v492_v4  ;;  %v526_v14 = vrot.slane %v492_v4, 4  ;;  %v540_v15 = vmul.f32 %v492_v4, %v492_v4 }
 0x117   :  { %v455_v10 = vpop.f32.mrb[2].mxu0  ;;  %v496_v11 = vpop.f32.mrb[2].mxu1  ;;  %504 = vst [vmem:[%s1004_s2 + $0x8] sm:$0xff] %v453_v5  ;;  %v520_v18 = vrot.slane %v453_v5, 4  ;;  %v539_v19 = vmul.f32 %v453_v5, %v453_v5  ;;  %506 = vst [vmem:[%s1004_s2 + $0x18] sm:$0xff] %v494_v6  ;;  %v532_v20 = vrot.slane %v494_v6, 4  ;;  %v541_v21 = vmul.f32 %v494_v6, %v494_v6 }
 0x118   :  { %v456_v16 = vpop.f32.mrb[3].mxu0  ;;  %v497_v17 = vpop.f32.mrb[3].mxu1  ;;  %v515_v22 = vadd.f32 %v514_v12, %v451_v3  ;;  %v542_v23 = vrot.slane %v538_v13, 4  ;;  %v527_v24 = vadd.f32 %v526_v14, %v492_v4  ;;  %v554_v25 = vrot.slane %v540_v15, 4 }
 0x119   :  { %v521_v26 = vadd.f32 %v520_v18, %v453_v5  ;;  %v548_v27 = vrot.slane %v539_v19, 4  ;;  %v533_v28 = vadd.f32 %v532_v20, %v494_v6  ;;  %v560_v29 = vrot.slane %v541_v21, 4 }
 0x11a   :  { %v516_v30 = vrot.slane %v515_v22, 2  ;;  %v543_v31 = vadd.f32 %v542_v23, %v538_v13  ;;  %v528_v32 = vrot.slane %v527_v24, 2  ;;  %v555_v33 = vadd.f32 %v554_v25, %v540_v15 }
 0x11b   :  { %v522_v34 = vrot.slane %v521_v26, 2  ;;  %v549_v35 = vadd.f32 %v548_v27, %v539_v19  ;;  %v534_v36 = vrot.slane %v533_v28, 2  ;;  %v561_v37 = vadd.f32 %v560_v29, %v541_v21 }
 0x11c   :  { %v517_v38 = vadd.f32 %v516_v30, %v515_v22  ;;  %v544_v39 = vrot.slane %v543_v31, 2  ;;  %v529_v40 = vadd.f32 %v528_v32, %v527_v24  ;;  %v556_v41 = vrot.slane %v555_v33, 2 }
 0x11d   :  { %v523_v42 = vadd.f32 %v522_v34, %v521_v26  ;;  %v550_v43 = vrot.slane %v549_v35, 2  ;;  %v535_v44 = vadd.f32 %v534_v36, %v533_v28  ;;  %v562_v45 = vrot.slane %v561_v37, 2 }
 0x11e   :  { %v518_v46 = vrot.slane %v517_v38, 1  ;;  %v545_v47 = vadd.f32 %v544_v39, %v543_v31  ;;  %v530_v48 = vrot.slane %v529_v40, 1  ;;  %v557_v49 = vadd.f32 %v556_v41, %v555_v33 }
 0x11f   :  { %v524_v50 = vrot.slane %v523_v42, 1  ;;  %v551_v51 = vadd.f32 %v550_v43, %v549_v35  ;;  %v536_v52 = vrot.slane %v535_v44, 1  ;;  %v563_v53 = vadd.f32 %v562_v45, %v561_v37 }
 0x120   :  { %v546_v54 = vrot.slane %v545_v47, 1  ;;  %v558_v55 = vrot.slane %v557_v49, 1  ;;  %v519_v60 = vadd.f32 %v518_v46, %v517_v38  ;;  %v531_v62 = vadd.f32 %v530_v48, %v529_v40 }
 0x121   :  { %v552_v58 = vrot.slane %v551_v51, 1  ;;  %v564_v59 = vrot.slane %v563_v53, 1  ;;  %v525_v0 = vadd.f32 %v524_v50, %v523_v42  ;;  %v537_v2 = vadd.f32 %v536_v52, %v535_v44 }
 0x122   :  { %v547_v61 = vadd.f32 %v546_v54, %v545_v47  ;;  %v559_v63 = vadd.f32 %v558_v55, %v557_v49  ;;  %v582_v6 = vsub.s32 %v579_v56, %v581_v57 }
 0x123   :  { %v553_v1 = vadd.f32 %v552_v58, %v551_v51  ;;  %v565_v3 = vadd.f32 %v564_v59, %v563_v53 }
 0x124   :  { %v567_v4 = vsel %vm566_vm0, %v519_v60, %v547_v61  ;;  %v569_v5 = vsel %vm566_vm0, %v531_v62, %v559_v63 }
 0x125   :  { %v568_v7 = vsel %vm566_vm0, %v525_v0, %v553_v1  ;;  %v570_v10 = vsel %vm566_vm0, %v537_v2, %v565_v3 }
 0x126   :  { %v575_v11 = vcombine.low %v567_v4, %v568_v7  ;;  %v576_v12 = vcombine.low %v569_v5, %v570_v10 }
 0x128   :  { %v583_v8 = vrot.slane %v575_v11, %v582_v6  ;;  %v590_v9 = vrot.slane %v576_v12, %v582_v6 }
 0x12a   :  { %v591_v13 = vcombine.low %v583_v8, %v590_v9 }
 0x12c   :  { %593 = vst [vmem:[%s1005_s3] sm:$0xff] %v591_v13 }

// kernel: resnet_forward.47
= control target key start
LH: loop header
LB: loop body
LE: loop exit
PB: predicated region body
PF: predicated region fallthrough
CT: control target
= control target key end

     0   :  { %v20_v0 = vlaneseq  ;;  %s144_s1 = inlined_call_operand.vmem [shape: f32[1,512], index: 1, kind: input, shape index: {}]   ;;  %s145_s2 = inlined_call_operand.vmem [shape: f32[1,512], index: 2, kind: input, shape index: {}]   ;;  %s146_s0 = inlined_call_operand.vmem [shape: f32[8,512], index: 0, kind: input, shape index: {}]   ;;  %s147_s3 = inlined_call_operand.vmem [shape: bf16[8,512], index: 3, kind: output, shape index: {}]  }
   0x1   :  { %v18_v2 = vld [vmem:[%s144_s1] sm:$0xf]  ;;  %v15_v9 = vld [vmem:[%s146_s0 + $0x8] sm:$0xff]  ;;  %v16_v14 = vld [vmem:[%s146_s0 + $0x10] sm:$0xff] }
   0x2   :  { %v21_v1 = vshrl.u32 %v20_v0, 7  ;;  %v44_v3 = vld [vmem:[%s145_s2] sm:$0xf]  ;;  %v17_v15 = vld [vmem:[%s146_s0 + $0x18] sm:$0xff] }
   0x3   :  { %v14_v8 = vld [vmem:[%s146_s0] sm:$0xff] }
   0x4   :  { %v22_v4 = vsub.s32 0, %v21_v1  ;;  %v26_v5 = vsub.s32 1, %v21_v1  ;;  %v30_v6 = vsub.s32 2, %v21_v1  ;;  %v34_v7 = vsub.s32 3, %v21_v1 }
   0x6   :  { %v23_v10 = vrot.slane %v18_v2, %v22_v4  ;;  %v27_v11 = vrot.slane %v18_v2, %v26_v5  ;;  %v49_v12 = vrot.slane %v44_v3, %v22_v4  ;;  %v53_v13 = vrot.slane %v44_v3, %v26_v5 }
   0x7   :  { %v31_v16 = vrot.slane %v18_v2, %v30_v6  ;;  %v35_v17 = vrot.slane %v18_v2, %v34_v7  ;;  %v57_v18 = vrot.slane %v44_v3, %v30_v6  ;;  %v61_v19 = vrot.slane %v44_v3, %v34_v7 }
   0x8   :  { %v40_v20 = vmul.f32 %v23_v10, %v14_v8  ;;  %v41_v21 = vmul.f32 %v27_v11, %v15_v9 }
   0x9   :  { %v42_v22 = vmul.f32 %v31_v16, %v16_v14  ;;  %v43_v23 = vmul.f32 %v35_v17, %v17_v15 }
   0xa   :  { %v66_v24 = vadd.f32 %v49_v12, %v40_v20  ;;  %v67_v25 = vadd.f32 %v53_v13, %v41_v21 }
   0xb   :  { %v68_v26 = vadd.f32 %v57_v18, %v42_v22  ;;  %v69_v27 = vadd.f32 %v61_v19, %v43_v23 }
   0xc   :  { %v70_v28 = vmax.f32 %v66_v24, 0.0  ;;  %v71_v29 = vmax.f32 %v67_v25, 0.0 }
   0xd   :  { %v72_v30 = vmax.f32 %v68_v26, 0.0  ;;  %v73_v31 = vmax.f32 %v69_v27, 0.0 }
   0xe   :  { %v98_v32 = vpack.c.bf16 %v71_v29, %v70_v28 }
   0xf   :  { %v99_v33 = vpack.c.bf16 %v73_v31, %v72_v30 }
  0x10   :  { %90 = vst [vmem:[%s147_s3] sm:$0xff] %v98_v32 }
  0x11   :  { %91 = vst [vmem:[%s147_s3 + $0x8] sm:$0xff] %v99_v33 }

// kernel: resnet_forward.46
= control target key start
LH: loop header
LB: loop body
LE: loop exit
PB: predicated region body
PF: predicated region fallthrough
CT: control target
= control target key end

     0   :  { %s1542_s12 = smov 0   ;;  %s1544_s13 = smov 0   ;;  %s1748_s0 = inlined_call_operand.vmem [shape: bf16[8,2304], index: 0, kind: input, shape index: {}]   ;;  %s1749_s1 = inlined_call_operand.vmem [shape: bf16[2304,512], index: 1, kind: input, shape index: {}]   ;;  %s1750_s2 = inlined_call_operand.vmem [shape: f32[8,512], index: 2, kind: output, shape index: {0}]   ;;  %s1751_s3 = inlined_call_operand.vmem [shape: f32[1,2,512], index: 3, kind: output, shape index: {1}]  }
   0x1   :  { %s1546_s14 = smov 0  }
   0x2 LB: > { %s23_s15 = sadd.s32 1, %s1513_s13  ;;  %p1211_p0 = scmp.ge.s32.totalorder %s1517_s14, 1  ;;  %s1517_s14 = sphi %s1546_s14, %s14_s14   ;;  %s1513_s13 = sphi %s1544_s13, %s1753_s13   ;;  %s1509_s12 = sphi %s1542_s12, %s1752_s12  }
   0x3   : > { %p24_p1 = scmp.ge.s32.totalorder %s23_s15, 6  ;;  %p171_p2 = scmp.lt.s32.totalorder %s1517_s14, 7 }
   0x5   : > { %s1755_s15 = smov (%p24_p1, %s23_s15), 0  ;;  %p172_p3 = pnand %p1211_p0, %p171_p2 }
   0x6   : > { %s210_s16 = smul.u32 (!%p172_p3), 3, %s1509_s12  ;;  %p1215_p6 = scmp.ne.s32.totalorder (!%p172_p3), %s1509_s12, 0 }
   0x7   : > { %175 = sbr.rel (%p172_p3) target bundleno = 369 (0x171), region = 28 }
   0x8   : > { %s220_s17 = smul.u32 (!%p172_p3), 48, %s1509_s12  ;;  %p213_p4 = scmp.lt.s32.totalorder (!%p172_p3), %s210_s16, 17 }
   0xa   : > { %p221_p5 = scmp.lt.s32.totalorder (!%p172_p3), %s220_s17, 287 }
   0xe   : > { %s1757_s16 = smov (!%p213_p4, %s210_s16), 17  ;;  %s1759_s17 = smov (!%p221_p5, %s220_s17), 287 }
   0xf   : > { %s1212_s18 = sshll.u32 %s1757_s16, 2  ;;  %s1320_s22 = sshll.u32 %s1759_s17, 4  ;;  %v1519_v0 = vmov (!%p1215_p6), 0.0  }
  0x10   : > { %s1567_s21 = scalar_lea.vmem %s1748_s0, %s1212_s18  ;;  %s1572_s25 = scalar_lea.vmem %s1749_s1, %s1320_s22  ;;  %242 = vst [vmem:[%s1750_s2] sm:$0xff] (!%p1215_p6), %v1519_v0  ;;  %243 = vst [vmem:[%s1750_s2 + $0x8] sm:$0xff] (!%p1215_p6), %v1519_v0 }
  0x11   : > { %241 = sbr.rel (%p1215_p6) target bundleno = 24 (0x18), region = 32  ;;  %244 = vst [vmem:[%s1750_s2 + $0x10] sm:$0xff] (!%p1215_p6), %v1519_v0  ;;  %245 = vst [vmem:[%s1750_s2 + $0x18] sm:$0xff] (!%p1215_p6), %v1519_v0 }
  0x18 PF: > { %v1348_v1 = vld [vmem:[%s1572_s25 + $0x4] ss:$16 sps:$4 sm:$0xff]   ;;  %v1520_v3 = vmov 0   ;;  %v1352_v4 = vld [vmem:[%s1572_s25] ss:$16 sps:$4 sm:$0xff]   ;;  %p1315_p7 = scmp.ne.s32.totalorder %s1509_s12, 5 }
  0x19   : > { %v1350_v2 = vld [vmem:[%s1572_s25 + $0x204] ss:$16 sps:$4 sm:$0xff]   ;;  %912 = vmatprep.mubr.bf16.mxu1 %v1520_v3  ;;  %839 = vmatprep.subr.bf16.mxu0 %v1348_v1  ;;  %v1353_v5 = vld [vmem:[%s1572_s25 + $0x200] ss:$16 sps:$4 sm:$0xff]   ;;  %v1401_v35 = vld [vmem:[%s1572_s25 + $0xc] ss:$16 sps:$4 sm:$0xff]  }
  0x1a   : > { %880 = vmatprep.subr.bf16.mxu1 %v1350_v2  ;;  %v1354_v6 = vld [vmem:[%s1572_s25 + $0x24] ss:$16 sps:$4 sm:$0xff]   ;;  %840 = vmatpush1.bf16.msra.mxu0 %v1352_v4  ;;  %v1358_v8 = vld [vmem:[%s1572_s25 + $0x20] ss:$16 sps:$4 sm:$0xff]   ;;  %v1623_v36 = vld [vmem:[%s1567_s21 + $0x8] ss:$0 sps:$4 sm:$0xff]  }
  0x1b   : > { %881 = vmatpush1.bf16.msra.mxu1 %v1353_v5  ;;  %v1356_v7 = vld [vmem:[%s1572_s25 + $0x224] ss:$16 sps:$4 sm:$0xff]   ;;  %841 = vmatprep.subr.bf16.mxu0 %v1354_v6  ;;  %v1359_v9 = vld [vmem:[%s1572_s25 + $0x220] ss:$16 sps:$4 sm:$0xff]   ;;  %v1399_v37 = vld [vmem:[%s1572_s25 + $0x8] ss:$16 sps:$4 sm:$0xff]  }
  0x1c   : > { %882 = vmatprep.subr.bf16.mxu1 %v1356_v7  ;;  %v1360_v10 = vld [vmem:[%s1572_s25 + $0x44] ss:$16 sps:$4 sm:$0xff]   ;;  %v1364_v12 = vld [vmem:[%s1572_s25 + $0x40] ss:$16 sps:$4 sm:$0xff]   ;;  %v1407_v40 = vld [vmem:[%s1572_s25 + $0x2c] ss:$16 sps:$4 sm:$0xff]  }
  0x1d   : > { %v1362_v11 = vld [vmem:[%s1572_s25 + $0x244] ss:$16 sps:$4 sm:$0xff]   ;;  %v1365_v13 = vld [vmem:[%s1572_s25 + $0x240] ss:$16 sps:$4 sm:$0xff]   ;;  %v1405_v41 = vld [vmem:[%s1572_s25 + $0x28] ss:$16 sps:$4 sm:$0xff]  }
  0x1e   : > { %842 = vmatpush1.bf16.msra.mxu0 %v1358_v8  ;;  %v1366_v14 = vld [vmem:[%s1572_s25 + $0x64] ss:$16 sps:$4 sm:$0xff]   ;;  %v1370_v16 = vld [vmem:[%s1572_s25 + $0x60] ss:$16 sps:$4 sm:$0xff]   ;;  %v1413_v44 = vld [vmem:[%s1572_s25 + $0x4c] ss:$16 sps:$4 sm:$0xff]  }
  0x1f   : > { %883 = vmatpush1.bf16.msra.mxu1 %v1359_v9  ;;  %843 = vmatprep.subr.bf16.mxu0 %v1360_v10  ;;  %v1368_v15 = vld [vmem:[%s1572_s25 + $0x264] ss:$16 sps:$4 sm:$0xff]   ;;  %v1371_v17 = vld [vmem:[%s1572_s25 + $0x260] ss:$16 sps:$4 sm:$0xff]   ;;  %v1411_v45 = vld [vmem:[%s1572_s25 + $0x48] ss:$16 sps:$4 sm:$0xff]  }
  0x20   : > { %884 = vmatprep.subr.bf16.mxu1 %v1362_v11  ;;  %v1372_v18 = vld [vmem:[%s1572_s25 + $0x84] ss:$16 sps:$4 sm:$0xff]   ;;  %v1376_v20 = vld [vmem:[%s1572_s25 + $0x80] ss:$16 sps:$4 sm:$0xff]   ;;  %v1419_v48 = vld [vmem:[%s1572_s25 + $0x6c] ss:$16 sps:$4 sm:$0xff]  }
  0x21   : > { %v1374_v19 = vld [vmem:[%s1572_s25 + $0x284] ss:$16 sps:$4 sm:$0xff]   ;;  %v1377_v21 = vld [vmem:[%s1572_s25 + $0x280] ss:$16 sps:$4 sm:$0xff]   ;;  %v1417_v49 = vld [vmem:[%s1572_s25 + $0x68] ss:$16 sps:$4 sm:$0xff]  }
  0x22   : > { %844 = vmatpush1.bf16.msra.mxu0 %v1364_v12  ;;  %v1378_v22 = vld [vmem:[%s1572_s25 + $0xa4] ss:$16 sps:$4 sm:$0xff]   ;;  %v1382_v24 = vld [vmem:[%s1572_s25 + $0xa0] ss:$16 sps:$4 sm:$0xff]   ;;  %v1425_v54 = vld [vmem:[%s1572_s25 + $0x8c] ss:$16 sps:$4 sm:$0xff]  }
  0x23   : > { %885 = vmatpush1.bf16.msra.mxu1 %v1365_v13  ;;  %845 = vmatprep.subr.bf16.mxu0 %v1366_v14  ;;  %v1380_v23 = vld [vmem:[%s1572_s25 + $0x2a4] ss:$16 sps:$4 sm:$0xff]   ;;  %v1383_v25 = vld [vmem:[%s1572_s25 + $0x2a0] ss:$16 sps:$4 sm:$0xff]   ;;  %v1423_v55 = vld [vmem:[%s1572_s25 + $0x88] ss:$16 sps:$4 sm:$0xff]  }
  0x24   : > { %886 = vmatprep.subr.bf16.mxu1 %v1368_v15  ;;  %v1384_v26 = vld [vmem:[%s1572_s25 + $0xc4] ss:$16 sps:$4 sm:$0xff]   ;;  %v1388_v28 = vld [vmem:[%s1572_s25 + $0xc0] ss:$16 sps:$4 sm:$0xff]   ;;  %v1431_v58 = vld [vmem:[%s1572_s25 + $0xac] ss:$16 sps:$4 sm:$0xff]  }
  0x25   : > { %v1386_v27 = vld [vmem:[%s1572_s25 + $0x2c4] ss:$16 sps:$4 sm:$0xff]   ;;  %v1389_v29 = vld [vmem:[%s1572_s25 + $0x2c0] ss:$16 sps:$4 sm:$0xff]   ;;  %v1429_v59 = vld [vmem:[%s1572_s25 + $0xa8] ss:$16 sps:$4 sm:$0xff]  }
  0x26   : > { %846 = vmatpush1.bf16.msra.mxu0 %v1370_v16  ;;  %v1390_v30 = vld [vmem:[%s1572_s25 + $0xe4] ss:$16 sps:$4 sm:$0xff]   ;;  %v1394_v32 = vld [vmem:[%s1572_s25 + $0xe0] ss:$16 sps:$4 sm:$0xff]   ;;  %v1437_v62 = vld [vmem:[%s1572_s25 + $0xcc] ss:$16 sps:$4 sm:$0xff]  }
  0x27   : > { %887 = vmatpush1.bf16.msra.mxu1 %v1371_v17  ;;  %847 = vmatprep.subr.bf16.mxu0 %v1372_v18  ;;  %v1392_v31 = vld [vmem:[%s1572_s25 + $0x2e4] ss:$16 sps:$4 sm:$0xff]   ;;  %v1395_v33 = vld [vmem:[%s1572_s25 + $0x2e0] ss:$16 sps:$4 sm:$0xff]   ;;  %v1435_v63 = vld [vmem:[%s1572_s25 + $0xc8] ss:$16 sps:$4 sm:$0xff]  }
  0x28   : > { %888 = vmatprep.subr.bf16.mxu1 %v1374_v19  ;;  %v1396_v34 = vld [vmem:[%s1572_s25 + $0x104] ss:$16 sps:$4 sm:$0xff]   ;;  %v1402_v38 = vld [vmem:[%s1572_s25 + $0x100] ss:$16 sps:$4 sm:$0xff]   ;;  %v1443_v2 = vld [vmem:[%s1572_s25 + $0xec] ss:$16 sps:$4 sm:$0xff]  }
  0x29   : > { %v1403_v39 = vld [vmem:[%s1572_s25 + $0x124] ss:$16 sps:$4 sm:$0xff]   ;;  %v1408_v42 = vld [vmem:[%s1572_s25 + $0x120] ss:$16 sps:$4 sm:$0xff]   ;;  %v1441_v4 = vld [vmem:[%s1572_s25 + $0xe8] ss:$16 sps:$4 sm:$0xff]  }
  0x2a   : > { %848 = vmatpush1.bf16.msra.mxu0 %v1376_v20  ;;  %v1409_v43 = vld [vmem:[%s1572_s25 + $0x144] ss:$16 sps:$4 sm:$0xff]   ;;  %v1414_v46 = vld [vmem:[%s1572_s25 + $0x140] ss:$16 sps:$4 sm:$0xff]   ;;  %v1449_v6 = vld [vmem:[%s1572_s25 + $0x10c] ss:$16 sps:$4 sm:$0xff]  }
  0x2b   : > { %889 = vmatpush1.bf16.msra.mxu1 %v1377_v21  ;;  %849 = vmatprep.subr.bf16.mxu0 %v1378_v22  ;;  %v1415_v47 = vld [vmem:[%s1572_s25 + $0x164] ss:$16 sps:$4 sm:$0xff]   ;;  %v1420_v51 = vld [vmem:[%s1572_s25 + $0x160] ss:$16 sps:$4 sm:$0xff]   ;;  %v1452_v7 = vld [vmem:[%s1572_s25 + $0x20c] ss:$16 sps:$4 sm:$0xff]  }
  0x2c   : > { %890 = vmatprep.subr.bf16.mxu1 %v1380_v23  ;;  %v250_v50 = vld [vmem:[%s1567_s21] sm:$0xff]  ;;  %v1447_v9 = vld [vmem:[%s1572_s25 + $0x108] ss:$16 sps:$4 sm:$0xff]   ;;  %v1455_v11 = vld [vmem:[%s1572_s25 + $0x12c] ss:$16 sps:$4 sm:$0xff]   ;;  %vm1071_vm0 = vcmask (!%p1315_p7), 1040384  }
  0x2d   : > { %v1421_v52 = vld [vmem:[%s1572_s25 + $0x184] ss:$16 sps:$4 sm:$0xff]   ;;  %v1217_v53 = vcombine.high %v250_v50, %v250_v50  ;;  %v1426_v56 = vld [vmem:[%s1572_s25 + $0x180] ss:$16 sps:$4 sm:$0xff]   ;;  %v1659_v8 = vcombine.low %v250_v50, %v250_v50  ;;  %v1450_v10 = vld [vmem:[%s1572_s25 + $0x208] ss:$16 sps:$4 sm:$0xff]  }
  0x2e   : > { %850 = vmatpush1.bf16.msra.mxu0 %v1382_v24  ;;  %v1427_v57 = vld [vmem:[%s1572_s25 + $0x1a4] ss:$16 sps:$4 sm:$0xff]   ;;  %v1432_v60 = vld [vmem:[%s1572_s25 + $0x1a0] ss:$16 sps:$4 sm:$0xff]   ;;  %v1458_v12 = vld [vmem:[%s1572_s25 + $0x22c] ss:$16 sps:$4 sm:$0xff]  }
  0x2f   : > { %891 = vmatpush1.bf16.msra.mxu1 %v1383_v25  ;;  %851 = vmatprep.subr.bf16.mxu0 %v1384_v26  ;;  %v1433_v61 = vld [vmem:[%s1572_s25 + $0x1c4] ss:$16 sps:$4 sm:$0xff]   ;;  %v1438_v0 = vld [vmem:[%s1572_s25 + $0x1c0] ss:$16 sps:$4 sm:$0xff]   ;;  %v1453_v13 = vld [vmem:[%s1572_s25 + $0x128] ss:$16 sps:$4 sm:$0xff]  }
  0x30   : > { %892 = vmatprep.subr.bf16.mxu1 %v1386_v27  ;;  %871 = vmatprep.mubr.bf16.mxu0 %v1217_v53  ;;  %v1439_v1 = vld [vmem:[%s1572_s25 + $0x1e4] ss:$16 sps:$4 sm:$0xff]   ;;  %v1444_v5 = vld [vmem:[%s1572_s25 + $0x1e0] ss:$16 sps:$4 sm:$0xff]   ;;  %v1456_v14 = vld [vmem:[%s1572_s25 + $0x228] ss:$16 sps:$4 sm:$0xff]  }
  0x31   : > { %v1461_v15 = vld [vmem:[%s1572_s25 + $0x14c] ss:$16 sps:$4 sm:$0xff]   ;;  %v1459_v17 = vld [vmem:[%s1572_s25 + $0x148] ss:$16 sps:$4 sm:$0xff]  }
  0x32   : > { %852 = vmatpush1.bf16.msra.mxu0 %v1388_v28  ;;  %v1464_v16 = vld [vmem:[%s1572_s25 + $0x24c] ss:$16 sps:$4 sm:$0xff]   ;;  %v1462_v18 = vld [vmem:[%s1572_s25 + $0x248] ss:$16 sps:$4 sm:$0xff]  }
  0x33   : > { %893 = vmatpush1.bf16.msra.mxu1 %v1389_v29  ;;  %853 = vmatprep.subr.bf16.mxu0 %v1390_v30  ;;  %v1467_v19 = vld [vmem:[%s1572_s25 + $0x16c] ss:$16 sps:$4 sm:$0xff]   ;;  %v1465_v21 = vld [vmem:[%s1572_s25 + $0x168] ss:$16 sps:$4 sm:$0xff]  }
  0x34   : > { %894 = vmatprep.subr.bf16.mxu1 %v1392_v31  ;;  %v1470_v20 = vld [vmem:[%s1572_s25 + $0x26c] ss:$16 sps:$4 sm:$0xff]   ;;  %v1468_v22 = vld [vmem:[%s1572_s25 + $0x268] ss:$16 sps:$4 sm:$0xff]  }
  0x35   : > { %v1476_v23 = vld [vmem:[%s1572_s25 + $0x28c] ss:$16 sps:$4 sm:$0xff]   ;;  %v1471_v24 = vld [vmem:[%s1572_s25 + $0x188] ss:$16 sps:$4 sm:$0xff]  }
  0x36   : > { %854 = vmatpush1.bf16.msra.mxu0 %v1394_v32  ;;  %v1474_v25 = vld [vmem:[%s1572_s25 + $0x288] ss:$16 sps:$4 sm:$0xff]   ;;  %v1479_v26 = vld [vmem:[%s1572_s25 + $0x1ac] ss:$16 sps:$4 sm:$0xff]  }
  0x37   : > { %895 = vmatpush1.bf16.msra.mxu1 %v1395_v33  ;;  %855 = vmatprep.subr.bf16.mxu0 %v1396_v34  ;;  %v1482_v27 = vld [vmem:[%s1572_s25 + $0x2ac] ss:$16 sps:$4 sm:$0xff]   ;;  %v1477_v28 = vld [vmem:[%s1572_s25 + $0x1a8] ss:$16 sps:$4 sm:$0xff]  }
  0x38   : > { %921 = vmatprep.subr.bf16.mxu1 %v1401_v35  ;;  %v1480_v29 = vld [vmem:[%s1572_s25 + $0x2a8] ss:$16 sps:$4 sm:$0xff]   ;;  %v1485_v30 = vld [vmem:[%s1572_s25 + $0x1cc] ss:$16 sps:$4 sm:$0xff]  }
  0x39   : > { %v1488_v31 = vld [vmem:[%s1572_s25 + $0x2cc] ss:$16 sps:$4 sm:$0xff]   ;;  %v1483_v32 = vld [vmem:[%s1572_s25 + $0x1c8] ss:$16 sps:$4 sm:$0xff]  }
  0x3a   : > { %913 = vmatmul.mubr.bf16.vlgmr.msra.gmra.mrb[0].mxu1 %v1623_v36  ;;  %856 = vmatpush1.bf16.msra.mxu0 %v1402_v38  ;;  %v1486_v33 = vld [vmem:[%s1572_s25 + $0x2c8] ss:$16 sps:$4 sm:$0xff]   ;;  %v1491_v34 = vld [vmem:[%s1572_s25 + $0x1ec] ss:$16 sps:$4 sm:$0xff]  }
  0x3b   : > { %922 = vmatpush1.bf16.msra.mxu1 %v1399_v37  ;;  %857 = vmatprep.subr.bf16.mxu0 %v1403_v39  ;;  %v1494_v35 = vld [vmem:[%s1572_s25 + $0x2ec] ss:$16 sps:$4 sm:$0xff]   ;;  %v1489_v37 = vld [vmem:[%s1572_s25 + $0x1e8] ss:$16 sps:$4 sm:$0xff]  }
  0x3c   : > { %923 = vmatprep.subr.bf16.mxu1 %v1407_v40  ;;  %953 = vmatprep.mubr.bf16.mxu1 %v1217_v53  ;;  %v1492_v38 = vld [vmem:[%s1572_s25 + $0x2e8] ss:$16 sps:$4 sm:$0xff]   ;;  %v248_v53 = vld [vmem:[%s1750_s2 + $0x10] sm:$0xff] }
  0x3e   : > { %858 = vmatpush1.bf16.msra.mxu0 %v1408_v42 }
  0x3f   : > { %924 = vmatpush1.bf16.msra.mxu1 %v1405_v41  ;;  %859 = vmatprep.subr.bf16.mxu0 %v1409_v43  ;;  %v246_v43 = vld [vmem:[%s1750_s2] sm:$0xff] }
  0x40   : > { %925 = vmatprep.subr.bf16.mxu1 %v1413_v44 }
  0x42   : > { %860 = vmatpush1.bf16.msra.mxu0 %v1414_v46  ;;  %v247_v46 = vld [vmem:[%s1750_s2 + $0x8] sm:$0xff] }
  0x43   : > { %926 = vmatpush1.bf16.msra.mxu1 %v1411_v45  ;;  %861 = vmatprep.subr.bf16.mxu0 %v1415_v47 }
  0x44   : > { %927 = vmatprep.subr.bf16.mxu1 %v1419_v48 }
  0x46   : > { %862 = vmatpush1.bf16.msra.mxu0 %v1420_v51 }
  0x47   : > { %928 = vmatpush1.bf16.msra.mxu1 %v1417_v49  ;;  %863 = vmatprep.subr.bf16.mxu0 %v1421_v52 }
  0x48   : > { %929 = vmatprep.subr.bf16.mxu1 %v1425_v54 }
  0x4a   : > { %864 = vmatpush1.bf16.msra.mxu0 %v1426_v56 }
  0x4b   : > { %930 = vmatpush1.bf16.msra.mxu1 %v1423_v55  ;;  %865 = vmatprep.subr.bf16.mxu0 %v1427_v57  ;;  %v249_v57 = vld [vmem:[%s1750_s2 + $0x18] sm:$0xff] }
  0x4c   : > { %931 = vmatprep.subr.bf16.mxu1 %v1431_v58 }
  0x4e   : > { %866 = vmatpush1.bf16.msra.mxu0 %v1432_v60 }
  0x4f   : > { %932 = vmatpush1.bf16.msra.mxu1 %v1429_v59  ;;  %867 = vmatprep.subr.bf16.mxu0 %v1433_v61 }
  0x50   : > { %933 = vmatprep.subr.bf16.mxu1 %v1437_v62 }
  0x52   : > { %868 = vmatpush1.bf16.msra.mxu0 %v1438_v0 }
  0x53   : > { %934 = vmatpush1.bf16.msra.mxu1 %v1435_v63  ;;  %869 = vmatprep.subr.bf16.mxu0 %v1439_v1 }
  0x54   : > { %935 = vmatprep.subr.bf16.mxu1 %v1443_v2 }
  0x56   : > { %870 = vmatpush1.bf16.msra.mxu0 %v1444_v5 }
  0x57   : > { %936 = vmatpush1.bf16.msra.mxu1 %v1441_v4  ;;  %962 = vmatprep.subr.bf16.mxu0 %v1452_v7 }
  0x58   : > { %937 = vmatprep.subr.bf16.mxu1 %v1449_v6  ;;  %v1085_v6 = vlaneseq (!%p1315_p7) }
  0x59   : > { %872 = vmatmul.mubr.bf16.vlgmr.msra.gmra.mrb[0].mxu0 %v1659_v8 }
  0x5a   : > { %963 = vmatpush1.bf16.msra.mxu0 %v1450_v10  ;;  %994 = vmatprep.mubr.bf16.mxu0 %v1520_v3  ;;  %v1473_v3 = vld [vmem:[%s1572_s25 + $0x18c] ss:$16 sps:$4 sm:$0xff]  }
  0x5b   : > { %938 = vmatpush1.bf16.msra.mxu1 %v1447_v9  ;;  %964 = vmatprep.subr.bf16.mxu0 %v1458_v12 }
  0x5c   : > { %939 = vmatprep.subr.bf16.mxu1 %v1455_v11 }
  0x5e   : > { %965 = vmatpush1.bf16.msra.mxu0 %v1456_v14 }
  0x5f   : > { %940 = vmatpush1.bf16.msra.mxu1 %v1453_v13  ;;  %966 = vmatprep.subr.bf16.mxu0 %v1464_v16 }
  0x60   : > { %941 = vmatprep.subr.bf16.mxu1 %v1461_v15 }
  0x62   : > { %967 = vmatpush1.bf16.msra.mxu0 %v1462_v18 }
  0x63   : > { %942 = vmatpush1.bf16.msra.mxu1 %v1459_v17  ;;  %968 = vmatprep.subr.bf16.mxu0 %v1470_v20 }
  0x64   : > { %943 = vmatprep.subr.bf16.mxu1 %v1467_v19 }
  0x66   : > { %969 = vmatpush1.bf16.msra.mxu0 %v1468_v22 }
  0x67   : > { %944 = vmatpush1.bf16.msra.mxu1 %v1465_v21  ;;  %970 = vmatprep.subr.bf16.mxu0 %v1476_v23 }
  0x68   : > { %945 = vmatprep.subr.bf16.mxu1 %v1473_v3 }
  0x6a   : > { %971 = vmatpush1.bf16.msra.mxu0 %v1474_v25 }
  0x6b   : > { %946 = vmatpush1.bf16.msra.mxu1 %v1471_v24  ;;  %972 = vmatprep.subr.bf16.mxu0 %v1482_v27 }
  0x6c   : > { %947 = vmatprep.subr.bf16.mxu1 %v1479_v26 }
  0x6e   : > { %973 = vmatpush1.bf16.msra.mxu0 %v1480_v29 }
  0x6f   : > { %948 = vmatpush1.bf16.msra.mxu1 %v1477_v28  ;;  %974 = vmatprep.subr.bf16.mxu0 %v1488_v31 }
  0x70   : > { %949 = vmatprep.subr.bf16.mxu1 %v1485_v30 }
  0x72   : > { %975 = vmatpush1.bf16.msra.mxu0 %v1486_v33 }
  0x73   : > { %950 = vmatpush1.bf16.msra.mxu1 %v1483_v32  ;;  %976 = vmatprep.subr.bf16.mxu0 %v1494_v35 }
  0x74   : > { %951 = vmatprep.subr.bf16.mxu1 %v1491_v34 }
  0x76   : > { %977 = vmatpush1.bf16.msra.mxu0 %v1492_v38 }
  0x77   : > { %952 = vmatpush1.bf16.msra.mxu1 %v1489_v37 }
  0x79   : > { %995 = vmatmul.mubr.bf16.vlgmr.msra.gmra.mrb[4].mxu0 %v1623_v36 }
  0x7a   : > { %954 = vmatmul.mubr.bf16.vlgmr.msra.gmra.mrb[4].mxu1 %v1659_v8 }
 0x10d   : > { %v914_v39 = vpop.f32.mrb[0].mxu1 }
 0x10e   : > { %v916_v40 = vpop.f32.mrb[1].mxu1 }
 0x10f   : > { %v918_v41 = vpop.f32.mrb[2].mxu1 }
 0x110   : > { %v919_v42 = vpop.f32.mrb[3].mxu1 }
 0x12c   : > { %v873_v44 = vpop.f32.mrb[0].mxu0 }
 0x12d   : > { %v915_v45 = vadd.f32 %v914_v39, %v873_v44  ;;  %v875_v47 = vpop.f32.mrb[1].mxu0 }
 0x12e   : > { %v917_v48 = vadd.f32 %v916_v40, %v875_v47  ;;  %v877_v49 = vpop.f32.mrb[2].mxu0 }
 0x12f   : > { %v1003_v50 = vadd.f32 %v915_v45, %v246_v43  ;;  %v878_v51 = vpop.f32.mrb[3].mxu0 }
 0x130   : > { %v1004_v36 = vadd.f32 %v917_v48, %v247_v46 }
 0x131   : > { %1007 = vst [vmem:[%s1750_s2] sm:$0xff] %v1003_v50 }
 0x132   : > { %1008 = vst [vmem:[%s1750_s2 + $0x8] sm:$0xff] %v1004_v36 }
 0x138   : > { %v1015_v2 = vld [vmem:[%s1750_s2] sm:$0xff] (!%p1315_p7) }
 0x139   : > { %v1016_v4 = vld [vmem:[%s1750_s2 + $0x8] sm:$0xff] (!%p1315_p7)  ;;  %v1019_v8 = vrot.slane (!%p1315_p7), %v1015_v2, 4  ;;  %v1043_v11 = vmul.f32 (!%p1315_p7), %v1015_v2, %v1015_v2 }
 0x13a   : > { %v1025_v9 = vrot.slane (!%p1315_p7), %v1016_v4, 4  ;;  %v1044_v13 = vmul.f32 (!%p1315_p7), %v1016_v4, %v1016_v4 }
 0x13b   : > { %v1020_v16 = vadd.f32 (!%p1315_p7), %v1019_v8, %v1015_v2  ;;  %v1047_v19 = vrot.slane (!%p1315_p7), %v1043_v11, 4 }
 0x13c   : > { %v1026_v17 = vadd.f32 (!%p1315_p7), %v1025_v9, %v1016_v4  ;;  %v1053_v21 = vrot.slane (!%p1315_p7), %v1044_v13, 4 }
 0x13d   : > { %v1021_v23 = vrot.slane (!%p1315_p7), %v1020_v16, 2  ;;  %v1048_v26 = vadd.f32 (!%p1315_p7), %v1047_v19, %v1043_v11 }
 0x13e   : > { %v1027_v24 = vrot.slane (!%p1315_p7), %v1026_v17, 2  ;;  %v1054_v28 = vadd.f32 (!%p1315_p7), %v1053_v21, %v1044_v13 }
 0x13f   : > { %v1022_v31 = vadd.f32 (!%p1315_p7), %v1021_v23, %v1020_v16  ;;  %v1049_v34 = vrot.slane (!%p1315_p7), %v1048_v26, 2 }
 0x140   : > { %v1028_v32 = vadd.f32 (!%p1315_p7), %v1027_v24, %v1026_v17  ;;  %v1055_v37 = vrot.slane (!%p1315_p7), %v1054_v28, 2 }
 0x141   : > { %v1023_v40 = vrot.slane (!%p1315_p7), %v1022_v31, 1  ;;  %v1050_v43 = vadd.f32 (!%p1315_p7), %v1049_v34, %v1048_v26 }
 0x142   : > { %v1029_v41 = vrot.slane (!%p1315_p7), %v1028_v32, 1  ;;  %v1056_v45 = vadd.f32 (!%p1315_p7), %v1055_v37, %v1054_v28 }
 0x143   : > { %v1024_v48 = vadd.f32 (!%p1315_p7), %v1023_v40, %v1022_v31  ;;  %v1051_v51 = vrot.slane (!%p1315_p7), %v1050_v43, 1 }
 0x144   : > { %v1030_v49 = vadd.f32 (!%p1315_p7), %v1029_v41, %v1028_v32 }
 0x14c   : > { %v996_v54 = vpop.f32.mrb[4].mxu0 }
 0x14d   : > { %v955_v52 = vpop.f32.mrb[4].mxu1  ;;  %v998_v58 = vpop.f32.mrb[5].mxu0  ;;  %1014 = sbr.rel (%p1315_p7) target bundleno = 369 (0x171), region = 36 }
 0x14e   : > { %v997_v55 = vadd.f32 %v996_v54, %v955_v52  ;;  %v957_v56 = vpop.f32.mrb[5].mxu1  ;;  %v1000_v61 = vpop.f32.mrb[6].mxu0  ;;  %v1057_v52 = vrot.slane (!%p1315_p7), %v1056_v45, 1 }
 0x14f   : > { %v999_v59 = vadd.f32 %v998_v58, %v957_v56  ;;  %v959_v60 = vpop.f32.mrb[6].mxu1  ;;  %v1001_v0 = vpop.f32.mrb[7].mxu0  ;;  %v1521_v56 = vmov (!%p1315_p7), 1983009808   ;;  %v1086_v58 = vshrl.u32 (!%p1315_p7), %v1085_v6, 7 }
 0x150   : > { %v1005_v62 = vadd.f32 %v997_v55, %v248_v53  ;;  %v960_v63 = vpop.f32.mrb[7].mxu1  ;;  %v1052_v55 = vadd.f32 (!%p1315_p7), %v1051_v51, %v1050_v43 }
 0x151   : > { %v1006_v1 = vadd.f32 %v999_v59, %v249_v57  ;;  %v1083_v57 = vunpack.c.l.s4 (!%p1315_p7), %v1521_v56  ;;  %v1058_v59 = vadd.f32 (!%p1315_p7), %v1057_v52, %v1056_v45 }
 0x152   : > { %1009 = vst [vmem:[%s1750_s2 + $0x10] sm:$0xff] %v1005_v62  ;;  %v1072_v62 = vsel (!%p1315_p7), %vm1071_vm0, %v1024_v48, %v1052_v55 }
 0x153   : > { %1010 = vst [vmem:[%s1750_s2 + $0x18] sm:$0xff] %v1006_v1  ;;  %v1084_v63 = vunpack.c.0.s8 (!%p1315_p7), %v1083_v57  ;;  %v1073_v0 = vsel (!%p1315_p7), %vm1071_vm0, %v1030_v49, %v1058_v59 }
 0x154   : > { %v1080_v4 = vcombine.low %v1072_v62, %v1073_v0 }
 0x159   : > { %v1017_v5 = vld [vmem:[%s1750_s2 + $0x10] sm:$0xff] }
 0x15a   : > { %v1018_v7 = vld [vmem:[%s1750_s2 + $0x18] sm:$0xff]  ;;  %v1031_v10 = vrot.slane %v1017_v5, 4  ;;  %v1045_v14 = vmul.f32 %v1017_v5, %v1017_v5 }
 0x15b   : > { %v1037_v12 = vrot.slane %v1018_v7, 4  ;;  %v1046_v15 = vmul.f32 %v1018_v7, %v1018_v7 }
 0x15c   : > { %v1032_v18 = vadd.f32 %v1031_v10, %v1017_v5  ;;  %v1059_v22 = vrot.slane %v1045_v14, 4 }
 0x15d   : > { %v1038_v20 = vadd.f32 %v1037_v12, %v1018_v7  ;;  %v1065_v3 = vrot.slane %v1046_v15, 4  ;;  %v1087_v7 = vsub.s32 %v1084_v63, %v1086_v58 }
 0x15e   : > { %v1033_v25 = vrot.slane %v1032_v18, 2  ;;  %v1060_v29 = vadd.f32 %v1059_v22, %v1045_v14 }
 0x15f   : > { %v1039_v27 = vrot.slane %v1038_v20, 2  ;;  %v1066_v30 = vadd.f32 %v1065_v3, %v1046_v15  ;;  %v1088_v8 = vrot.slane %v1080_v4, %v1087_v7 }
 0x160   : > { %v1034_v33 = vadd.f32 %v1033_v25, %v1032_v18  ;;  %v1061_v38 = vrot.slane %v1060_v29, 2 }
 0x161   : > { %v1040_v35 = vadd.f32 %v1039_v27, %v1038_v20  ;;  %v1067_v39 = vrot.slane %v1066_v30, 2 }
 0x162   : > { %v1035_v42 = vrot.slane %v1034_v33, 1  ;;  %v1062_v46 = vadd.f32 %v1061_v38, %v1060_v29 }
 0x163   : > { %v1041_v44 = vrot.slane %v1040_v35, 1  ;;  %v1068_v47 = vadd.f32 %v1067_v39, %v1066_v30 }
 0x164   : > { %v1036_v50 = vadd.f32 %v1035_v42, %v1034_v33  ;;  %v1063_v53 = vrot.slane %v1062_v46, 1 }
 0x165   : > { %v1042_v36 = vadd.f32 %v1041_v44, %v1040_v35  ;;  %v1069_v54 = vrot.slane %v1068_v47, 1 }
 0x166   : > { %v1064_v60 = vadd.f32 %v1063_v53, %v1062_v46 }
 0x167   : > { %v1070_v61 = vadd.f32 %v1069_v54, %v1068_v47 }
 0x168   : > { %v1074_v1 = vsel %vm1071_vm0, %v1036_v50, %v1064_v60 }
 0x169   : > { %v1075_v2 = vsel %vm1071_vm0, %v1042_v36, %v1070_v61 }
 0x16a   : > { %v1081_v5 = vcombine.low %v1074_v1, %v1075_v2 }
 0x16c   : > { %v1095_v9 = vrot.slane %v1081_v5, %v1087_v7 }
 0x16e   : > { %v1096_v10 = vcombine.low %v1088_v8, %v1095_v9 }
 0x170   : > { %1098 = vst [vmem:[%s1751_s3] sm:$0xff] %v1096_v10 }
 0x171 PF: > { %s14_s14 = sadd.s32 1, %s1517_s14   ;;  %s1752_s12 = smov %s1513_s13 }
 0x172   : > { %p11_p8 = scmp.ge.s32.totalorder %s14_s14, 8   ;;  %s1753_s13 = smov %s1755_s15 }
 0x174   :  { %13 = sbr.rel (!%p11_p8) target bundleno = 2 (0x2), region = 81 }

// kernel: resnet_forward.48
= control target key start
LH: loop header
LB: loop body
LE: loop exit
PB: predicated region body
PF: predicated region fallthrough
CT: control target
= control target key end

     0   :  { %s1818_s12 = smov 0   ;;  %s1820_s13 = smov 0   ;;  %s2058_s0 = inlined_call_operand.vmem [shape: bf16[8,4608], index: 0, kind: input, shape index: {}]   ;;  %s2059_s1 = inlined_call_operand.vmem [shape: bf16[4608,512], index: 1, kind: input, shape index: {}]   ;;  %s2060_s2 = inlined_call_operand.vmem [shape: f32[8,512], index: 2, kind: output, shape index: {0}]   ;;  %s2061_s3 = inlined_call_operand.vmem [shape: f32[1,2,512], index: 3, kind: output, shape index: {1}]  }
   0x1   :  { %s1822_s14 = smov 0  }
   0x2 LB: > { %s23_s15 = sadd.s32 1, %s1790_s13  ;;  %p1405_p0 = scmp.ge.s32.totalorder %s1794_s14, 1  ;;  %s1794_s14 = sphi %s1822_s14, %s14_s14   ;;  %s1790_s13 = sphi %s1820_s13, %s2063_s13   ;;  %s1786_s12 = sphi %s1818_s12, %s2062_s12  }
   0x3   : > { %p24_p1 = scmp.ge.s32.totalorder %s23_s15, 9  ;;  %p171_p2 = scmp.lt.s32.totalorder %s1794_s14, 10 }
   0x5   : > { %s2065_s15 = smov (%p24_p1, %s23_s15), 0  ;;  %p172_p3 = pnand %p1405_p0, %p171_p2 }
   0x6   : > { %s1406_s16 = sshll.u32 (!%p172_p3), %s1786_s12, 2  ;;  %s1408_s17 = sshll.u32 (!%p172_p3), %s1786_s12, 6 }
   0x7   : > { %175 = sbr.rel (%p172_p3) target bundleno = 401 (0x191), region = 28  ;;  %p213_p4 = scmp.lt.s32.totalorder (!%p172_p3), %s1406_s16, 35 }
   0x8   : > { %p221_p5 = scmp.lt.s32.totalorder (!%p172_p3), %s1408_s17, 575  ;;  %p1411_p6 = scmp.ne.s32.totalorder (!%p172_p3), %s1786_s12, 0 }
   0xe   : > { %s2067_s16 = smov (!%p213_p4, %s1406_s16), 35  ;;  %s2069_s17 = smov (!%p221_p5, %s1408_s17), 575 }
   0xf   : > { %s1407_s18 = sshll.u32 %s2067_s16, 2  ;;  %s1549_s22 = sshll.u32 %s2069_s17, 4  ;;  %v1796_v0 = vmov (!%p1411_p6), 0.0  }
  0x10   : > { %s1843_s21 = scalar_lea.vmem %s2058_s0, %s1407_s18  ;;  %s1848_s25 = scalar_lea.vmem %s2059_s1, %s1549_s22  ;;  %241 = vst [vmem:[%s2060_s2] sm:$0xff] (!%p1411_p6), %v1796_v0  ;;  %242 = vst [vmem:[%s2060_s2 + $0x8] sm:$0xff] (!%p1411_p6), %v1796_v0 }
  0x11   : > { %240 = sbr.rel (%p1411_p6) target bundleno = 24 (0x18), region = 32  ;;  %243 = vst [vmem:[%s2060_s2 + $0x10] sm:$0xff] (!%p1411_p6), %v1796_v0  ;;  %244 = vst [vmem:[%s2060_s2 + $0x18] sm:$0xff] (!%p1411_p6), %v1796_v0 }
  0x18 PF: > { %v1576_v1 = vld [vmem:[%s1848_s25 + $0x4] ss:$16 sps:$4 sm:$0xff]   ;;  %v1580_v3 = vld [vmem:[%s1848_s25] ss:$16 sps:$4 sm:$0xff]   ;;  %v250_v49 = vld [vmem:[%s1843_s21 + $0x8] sm:$0xff]  ;;  %p1544_p7 = scmp.ne.s32.totalorder %s1786_s12, 8 }
  0x19   : > { %v1578_v2 = vld [vmem:[%s1848_s25 + $0x204] ss:$16 sps:$4 sm:$0xff]   ;;  %1033 = vmatprep.subr.bf16.mxu0 %v1576_v1  ;;  %v1581_v4 = vld [vmem:[%s1848_s25 + $0x200] ss:$16 sps:$4 sm:$0xff]   ;;  %v1415_v52 = vcombine.high %v250_v49, %v250_v49  ;;  %vm1265_vm0 = vcmask (!%p1544_p7), 1040384  }
  0x1a   : > { %1074 = vmatprep.subr.bf16.mxu1 %v1578_v2  ;;  %v1582_v5 = vld [vmem:[%s1848_s25 + $0x24] ss:$16 sps:$4 sm:$0xff]   ;;  %1034 = vmatpush1.bf16.msra.mxu0 %v1580_v3  ;;  %v1586_v7 = vld [vmem:[%s1848_s25 + $0x20] ss:$16 sps:$4 sm:$0xff]  }
  0x1b   : > { %1075 = vmatpush1.bf16.msra.mxu1 %v1581_v4  ;;  %v1584_v6 = vld [vmem:[%s1848_s25 + $0x224] ss:$16 sps:$4 sm:$0xff]   ;;  %1035 = vmatprep.subr.bf16.mxu0 %v1582_v5  ;;  %v1587_v8 = vld [vmem:[%s1848_s25 + $0x220] ss:$16 sps:$4 sm:$0xff]   ;;  %v1678_v5 = vld [vmem:[%s1848_s25 + $0xc] ss:$16 sps:$4 sm:$0xff]  }
  0x1c   : > { %1076 = vmatprep.subr.bf16.mxu1 %v1584_v6  ;;  %v1588_v9 = vld [vmem:[%s1848_s25 + $0x44] ss:$16 sps:$4 sm:$0xff]   ;;  %v1592_v11 = vld [vmem:[%s1848_s25 + $0x40] ss:$16 sps:$4 sm:$0xff]   ;;  %1106 = vmatprep.mubr.bf16.mxu1 %v1415_v52  ;;  %v1681_v6 = vld [vmem:[%s1848_s25 + $0x20c] ss:$16 sps:$4 sm:$0xff]  }
  0x1d   : > { %v1590_v10 = vld [vmem:[%s1848_s25 + $0x244] ss:$16 sps:$4 sm:$0xff]   ;;  %v1593_v12 = vld [vmem:[%s1848_s25 + $0x240] ss:$16 sps:$4 sm:$0xff]  }
  0x1e   : > { %1036 = vmatpush1.bf16.msra.mxu0 %v1586_v7  ;;  %v1594_v13 = vld [vmem:[%s1848_s25 + $0x64] ss:$16 sps:$4 sm:$0xff]   ;;  %v1598_v15 = vld [vmem:[%s1848_s25 + $0x60] ss:$16 sps:$4 sm:$0xff]  }
  0x1f   : > { %1077 = vmatpush1.bf16.msra.mxu1 %v1587_v8  ;;  %1037 = vmatprep.subr.bf16.mxu0 %v1588_v9  ;;  %v1596_v14 = vld [vmem:[%s1848_s25 + $0x264] ss:$16 sps:$4 sm:$0xff]   ;;  %v1599_v16 = vld [vmem:[%s1848_s25 + $0x260] ss:$16 sps:$4 sm:$0xff]   ;;  %v1936_v8 = vcombine.low %v250_v49, %v250_v49  ;;  %v1676_v9 = vld [vmem:[%s1848_s25 + $0x8] ss:$16 sps:$4 sm:$0xff]  }
  0x20   : > { %1078 = vmatprep.subr.bf16.mxu1 %v1590_v10  ;;  %v1600_v17 = vld [vmem:[%s1848_s25 + $0x84] ss:$16 sps:$4 sm:$0xff]   ;;  %v1604_v19 = vld [vmem:[%s1848_s25 + $0x80] ss:$16 sps:$4 sm:$0xff]   ;;  %v1679_v10 = vld [vmem:[%s1848_s25 + $0x208] ss:$16 sps:$4 sm:$0xff]  }
  0x21   : > { %v1602_v18 = vld [vmem:[%s1848_s25 + $0x284] ss:$16 sps:$4 sm:$0xff]   ;;  %v1605_v20 = vld [vmem:[%s1848_s25 + $0x280] ss:$16 sps:$4 sm:$0xff]   ;;  %v1736_v49 = vld [vmem:[%s1848_s25 + $0x148] ss:$16 sps:$4 sm:$0xff]  }
  0x22   : > { %1038 = vmatpush1.bf16.msra.mxu0 %v1592_v11  ;;  %v1606_v21 = vld [vmem:[%s1848_s25 + $0xa4] ss:$16 sps:$4 sm:$0xff]   ;;  %v1610_v23 = vld [vmem:[%s1848_s25 + $0xa0] ss:$16 sps:$4 sm:$0xff]   ;;  %v1684_v11 = vld [vmem:[%s1848_s25 + $0x2c] ss:$16 sps:$4 sm:$0xff]  }
  0x23   : > { %1079 = vmatpush1.bf16.msra.mxu1 %v1593_v12  ;;  %1039 = vmatprep.subr.bf16.mxu0 %v1594_v13  ;;  %v1608_v22 = vld [vmem:[%s1848_s25 + $0x2a4] ss:$16 sps:$4 sm:$0xff]   ;;  %v1611_v24 = vld [vmem:[%s1848_s25 + $0x2a0] ss:$16 sps:$4 sm:$0xff]   ;;  %v1687_v12 = vld [vmem:[%s1848_s25 + $0x22c] ss:$16 sps:$4 sm:$0xff]  }
  0x24   : > { %1080 = vmatprep.subr.bf16.mxu1 %v1596_v14  ;;  %v1612_v25 = vld [vmem:[%s1848_s25 + $0xc4] ss:$16 sps:$4 sm:$0xff]   ;;  %v1616_v27 = vld [vmem:[%s1848_s25 + $0xc0] ss:$16 sps:$4 sm:$0xff]   ;;  %v1682_v13 = vld [vmem:[%s1848_s25 + $0x28] ss:$16 sps:$4 sm:$0xff]  }
  0x25   : > { %v1614_v26 = vld [vmem:[%s1848_s25 + $0x2c4] ss:$16 sps:$4 sm:$0xff]   ;;  %v1617_v28 = vld [vmem:[%s1848_s25 + $0x2c0] ss:$16 sps:$4 sm:$0xff]   ;;  %v1685_v14 = vld [vmem:[%s1848_s25 + $0x228] ss:$16 sps:$4 sm:$0xff]  }
  0x26   : > { %1040 = vmatpush1.bf16.msra.mxu0 %v1598_v15  ;;  %v1618_v29 = vld [vmem:[%s1848_s25 + $0xe4] ss:$16 sps:$4 sm:$0xff]   ;;  %v1622_v31 = vld [vmem:[%s1848_s25 + $0xe0] ss:$16 sps:$4 sm:$0xff]   ;;  %v1690_v15 = vld [vmem:[%s1848_s25 + $0x4c] ss:$16 sps:$4 sm:$0xff]  }
  0x27   : > { %1081 = vmatpush1.bf16.msra.mxu1 %v1599_v16  ;;  %1041 = vmatprep.subr.bf16.mxu0 %v1600_v17  ;;  %v1620_v30 = vld [vmem:[%s1848_s25 + $0x2e4] ss:$16 sps:$4 sm:$0xff]   ;;  %v1623_v32 = vld [vmem:[%s1848_s25 + $0x2e0] ss:$16 sps:$4 sm:$0xff]   ;;  %v1693_v16 = vld [vmem:[%s1848_s25 + $0x24c] ss:$16 sps:$4 sm:$0xff]  }
  0x28   : > { %1082 = vmatprep.subr.bf16.mxu1 %v1602_v18  ;;  %v1624_v33 = vld [vmem:[%s1848_s25 + $0x104] ss:$16 sps:$4 sm:$0xff]   ;;  %v1628_v35 = vld [vmem:[%s1848_s25 + $0x100] ss:$16 sps:$4 sm:$0xff]   ;;  %v1688_v17 = vld [vmem:[%s1848_s25 + $0x48] ss:$16 sps:$4 sm:$0xff]  }
  0x29   : > { %v1626_v34 = vld [vmem:[%s1848_s25 + $0x304] ss:$16 sps:$4 sm:$0xff]   ;;  %v1629_v36 = vld [vmem:[%s1848_s25 + $0x300] ss:$16 sps:$4 sm:$0xff]   ;;  %v1691_v18 = vld [vmem:[%s1848_s25 + $0x248] ss:$16 sps:$4 sm:$0xff]  }
  0x2a   : > { %1042 = vmatpush1.bf16.msra.mxu0 %v1604_v19  ;;  %v1630_v37 = vld [vmem:[%s1848_s25 + $0x124] ss:$16 sps:$4 sm:$0xff]   ;;  %v1634_v39 = vld [vmem:[%s1848_s25 + $0x120] ss:$16 sps:$4 sm:$0xff]   ;;  %v1696_v19 = vld [vmem:[%s1848_s25 + $0x6c] ss:$16 sps:$4 sm:$0xff]  }
  0x2b   : > { %1083 = vmatpush1.bf16.msra.mxu1 %v1605_v20  ;;  %1043 = vmatprep.subr.bf16.mxu0 %v1606_v21  ;;  %v1632_v38 = vld [vmem:[%s1848_s25 + $0x324] ss:$16 sps:$4 sm:$0xff]   ;;  %v1635_v40 = vld [vmem:[%s1848_s25 + $0x320] ss:$16 sps:$4 sm:$0xff]   ;;  %v1699_v20 = vld [vmem:[%s1848_s25 + $0x26c] ss:$16 sps:$4 sm:$0xff]  }
  0x2c   : > { %1084 = vmatprep.subr.bf16.mxu1 %v1608_v22  ;;  %v1636_v41 = vld [vmem:[%s1848_s25 + $0x144] ss:$16 sps:$4 sm:$0xff]   ;;  %v1640_v43 = vld [vmem:[%s1848_s25 + $0x140] ss:$16 sps:$4 sm:$0xff]   ;;  %v1694_v21 = vld [vmem:[%s1848_s25 + $0x68] ss:$16 sps:$4 sm:$0xff]  }
  0x2d   : > { %v1638_v42 = vld [vmem:[%s1848_s25 + $0x344] ss:$16 sps:$4 sm:$0xff]   ;;  %v1641_v44 = vld [vmem:[%s1848_s25 + $0x340] ss:$16 sps:$4 sm:$0xff]   ;;  %v1697_v22 = vld [vmem:[%s1848_s25 + $0x268] ss:$16 sps:$4 sm:$0xff]  }
  0x2e   : > { %1044 = vmatpush1.bf16.msra.mxu0 %v1610_v23  ;;  %v1642_v45 = vld [vmem:[%s1848_s25 + $0x164] ss:$16 sps:$4 sm:$0xff]   ;;  %v1646_v50 = vld [vmem:[%s1848_s25 + $0x160] ss:$16 sps:$4 sm:$0xff]   ;;  %v1702_v23 = vld [vmem:[%s1848_s25 + $0x8c] ss:$16 sps:$4 sm:$0xff]  }
  0x2f   : > { %1085 = vmatpush1.bf16.msra.mxu1 %v1611_v24  ;;  %1045 = vmatprep.subr.bf16.mxu0 %v1612_v25  ;;  %v1644_v46 = vld [vmem:[%s1848_s25 + $0x364] ss:$16 sps:$4 sm:$0xff]   ;;  %v1647_v51 = vld [vmem:[%s1848_s25 + $0x360] ss:$16 sps:$4 sm:$0xff]   ;;  %v1705_v24 = vld [vmem:[%s1848_s25 + $0x28c] ss:$16 sps:$4 sm:$0xff]  }
  0x30   : > { %1086 = vmatprep.subr.bf16.mxu1 %v1614_v26  ;;  %v249_v47 = vld [vmem:[%s1843_s21] sm:$0xff]  ;;  %v1700_v25 = vld [vmem:[%s1848_s25 + $0x88] ss:$16 sps:$4 sm:$0xff]  }
  0x31   : > { %v1910_v48 = vcombine.high %v249_v47, %v249_v47  ;;  %v1648_v53 = vld [vmem:[%s1848_s25 + $0x184] ss:$16 sps:$4 sm:$0xff]   ;;  %v1652_v55 = vld [vmem:[%s1848_s25 + $0x180] ss:$16 sps:$4 sm:$0xff]   ;;  %v1934_v7 = vcombine.low %v249_v47, %v249_v47  ;;  %v1703_v26 = vld [vmem:[%s1848_s25 + $0x288] ss:$16 sps:$4 sm:$0xff]  }
  0x32   : > { %1046 = vmatpush1.bf16.msra.mxu0 %v1616_v27  ;;  %v1650_v54 = vld [vmem:[%s1848_s25 + $0x384] ss:$16 sps:$4 sm:$0xff]   ;;  %v1653_v56 = vld [vmem:[%s1848_s25 + $0x380] ss:$16 sps:$4 sm:$0xff]   ;;  %v1708_v27 = vld [vmem:[%s1848_s25 + $0xac] ss:$16 sps:$4 sm:$0xff]  }
  0x33   : > { %1087 = vmatpush1.bf16.msra.mxu1 %v1617_v28  ;;  %1047 = vmatprep.subr.bf16.mxu0 %v1618_v29  ;;  %v1654_v57 = vld [vmem:[%s1848_s25 + $0x1a4] ss:$16 sps:$4 sm:$0xff]   ;;  %v1658_v59 = vld [vmem:[%s1848_s25 + $0x1a0] ss:$16 sps:$4 sm:$0xff]   ;;  %v1711_v28 = vld [vmem:[%s1848_s25 + $0x2ac] ss:$16 sps:$4 sm:$0xff]  }
  0x34   : > { %1088 = vmatprep.subr.bf16.mxu1 %v1620_v30  ;;  %1065 = vmatprep.mubr.bf16.mxu0 %v1910_v48  ;;  %v1656_v58 = vld [vmem:[%s1848_s25 + $0x3a4] ss:$16 sps:$4 sm:$0xff]   ;;  %v1659_v60 = vld [vmem:[%s1848_s25 + $0x3a0] ss:$16 sps:$4 sm:$0xff]   ;;  %v1706_v29 = vld [vmem:[%s1848_s25 + $0xa8] ss:$16 sps:$4 sm:$0xff]  }
  0x35   : > { %v1660_v61 = vld [vmem:[%s1848_s25 + $0x1c4] ss:$16 sps:$4 sm:$0xff]   ;;  %v1664_v63 = vld [vmem:[%s1848_s25 + $0x1c0] ss:$16 sps:$4 sm:$0xff]   ;;  %v1709_v30 = vld [vmem:[%s1848_s25 + $0x2a8] ss:$16 sps:$4 sm:$0xff]  }
  0x36   : > { %1048 = vmatpush1.bf16.msra.mxu0 %v1622_v31  ;;  %v1662_v62 = vld [vmem:[%s1848_s25 + $0x3c4] ss:$16 sps:$4 sm:$0xff]   ;;  %v1665_v0 = vld [vmem:[%s1848_s25 + $0x3c0] ss:$16 sps:$4 sm:$0xff]   ;;  %v1714_v31 = vld [vmem:[%s1848_s25 + $0xcc] ss:$16 sps:$4 sm:$0xff]  }
  0x37   : > { %1089 = vmatpush1.bf16.msra.mxu1 %v1623_v32  ;;  %1049 = vmatprep.subr.bf16.mxu0 %v1624_v33  ;;  %v1666_v1 = vld [vmem:[%s1848_s25 + $0x1e4] ss:$16 sps:$4 sm:$0xff]   ;;  %v1670_v3 = vld [vmem:[%s1848_s25 + $0x1e0] ss:$16 sps:$4 sm:$0xff]   ;;  %v1717_v32 = vld [vmem:[%s1848_s25 + $0x2cc] ss:$16 sps:$4 sm:$0xff]  }
  0x38   : > { %1090 = vmatprep.subr.bf16.mxu1 %v1626_v34  ;;  %v1668_v2 = vld [vmem:[%s1848_s25 + $0x3e4] ss:$16 sps:$4 sm:$0xff]   ;;  %v1671_v4 = vld [vmem:[%s1848_s25 + $0x3e0] ss:$16 sps:$4 sm:$0xff]   ;;  %v1712_v33 = vld [vmem:[%s1848_s25 + $0xc8] ss:$16 sps:$4 sm:$0xff]  }
  0x39   : > { %v1715_v34 = vld [vmem:[%s1848_s25 + $0x2c8] ss:$16 sps:$4 sm:$0xff]   ;;  %v1738_v47 = vld [vmem:[%s1848_s25 + $0x14c] ss:$16 sps:$4 sm:$0xff]  }
  0x3a   : > { %1050 = vmatpush1.bf16.msra.mxu0 %v1628_v35  ;;  %v1720_v35 = vld [vmem:[%s1848_s25 + $0xec] ss:$16 sps:$4 sm:$0xff]  }
  0x3b   : > { %1091 = vmatpush1.bf16.msra.mxu1 %v1629_v36  ;;  %1051 = vmatprep.subr.bf16.mxu0 %v1630_v37  ;;  %v1723_v36 = vld [vmem:[%s1848_s25 + $0x2ec] ss:$16 sps:$4 sm:$0xff]   ;;  %v1718_v37 = vld [vmem:[%s1848_s25 + $0xe8] ss:$16 sps:$4 sm:$0xff]  }
  0x3c   : > { %1092 = vmatprep.subr.bf16.mxu1 %v1632_v38  ;;  %v1721_v38 = vld [vmem:[%s1848_s25 + $0x2e8] ss:$16 sps:$4 sm:$0xff]  }
  0x3e   : > { %1052 = vmatpush1.bf16.msra.mxu0 %v1634_v39  ;;  %v1726_v39 = vld [vmem:[%s1848_s25 + $0x10c] ss:$16 sps:$4 sm:$0xff]  }
  0x3f   : > { %1093 = vmatpush1.bf16.msra.mxu1 %v1635_v40  ;;  %1053 = vmatprep.subr.bf16.mxu0 %v1636_v41  ;;  %v1729_v40 = vld [vmem:[%s1848_s25 + $0x30c] ss:$16 sps:$4 sm:$0xff]   ;;  %v1724_v41 = vld [vmem:[%s1848_s25 + $0x108] ss:$16 sps:$4 sm:$0xff]  }
  0x40   : > { %1094 = vmatprep.subr.bf16.mxu1 %v1638_v42  ;;  %v1727_v42 = vld [vmem:[%s1848_s25 + $0x308] ss:$16 sps:$4 sm:$0xff]  }
  0x42   : > { %1054 = vmatpush1.bf16.msra.mxu0 %v1640_v43  ;;  %v1732_v43 = vld [vmem:[%s1848_s25 + $0x12c] ss:$16 sps:$4 sm:$0xff]  }
  0x43   : > { %1095 = vmatpush1.bf16.msra.mxu1 %v1641_v44  ;;  %1055 = vmatprep.subr.bf16.mxu0 %v1642_v45  ;;  %v1735_v44 = vld [vmem:[%s1848_s25 + $0x32c] ss:$16 sps:$4 sm:$0xff]   ;;  %v1730_v45 = vld [vmem:[%s1848_s25 + $0x128] ss:$16 sps:$4 sm:$0xff]  }
  0x44   : > { %1096 = vmatprep.subr.bf16.mxu1 %v1644_v46  ;;  %v1733_v46 = vld [vmem:[%s1848_s25 + $0x328] ss:$16 sps:$4 sm:$0xff]  }
  0x46   : > { %1056 = vmatpush1.bf16.msra.mxu0 %v1646_v50  ;;  %v1739_v50 = vld [vmem:[%s1848_s25 + $0x348] ss:$16 sps:$4 sm:$0xff]  }
  0x47   : > { %1097 = vmatpush1.bf16.msra.mxu1 %v1647_v51  ;;  %1057 = vmatprep.subr.bf16.mxu0 %v1648_v53  ;;  %v1744_v51 = vld [vmem:[%s1848_s25 + $0x16c] ss:$16 sps:$4 sm:$0xff]   ;;  %v1742_v53 = vld [vmem:[%s1848_s25 + $0x168] ss:$16 sps:$4 sm:$0xff]  }
  0x48   : > { %1098 = vmatprep.subr.bf16.mxu1 %v1650_v54  ;;  %v1745_v54 = vld [vmem:[%s1848_s25 + $0x368] ss:$16 sps:$4 sm:$0xff]  }
  0x4a   : > { %1058 = vmatpush1.bf16.msra.mxu0 %v1652_v55  ;;  %v1750_v55 = vld [vmem:[%s1848_s25 + $0x18c] ss:$16 sps:$4 sm:$0xff]  }
  0x4b   : > { %1099 = vmatpush1.bf16.msra.mxu1 %v1653_v56  ;;  %1059 = vmatprep.subr.bf16.mxu0 %v1654_v57  ;;  %v1753_v56 = vld [vmem:[%s1848_s25 + $0x38c] ss:$16 sps:$4 sm:$0xff]   ;;  %v1748_v57 = vld [vmem:[%s1848_s25 + $0x188] ss:$16 sps:$4 sm:$0xff]  }
  0x4c   : > { %1100 = vmatprep.subr.bf16.mxu1 %v1656_v58  ;;  %v1751_v58 = vld [vmem:[%s1848_s25 + $0x388] ss:$16 sps:$4 sm:$0xff]  }
  0x4e   : > { %1060 = vmatpush1.bf16.msra.mxu0 %v1658_v59  ;;  %v1756_v59 = vld [vmem:[%s1848_s25 + $0x1ac] ss:$16 sps:$4 sm:$0xff]  }
  0x4f   : > { %1101 = vmatpush1.bf16.msra.mxu1 %v1659_v60  ;;  %1061 = vmatprep.subr.bf16.mxu0 %v1660_v61  ;;  %v1759_v60 = vld [vmem:[%s1848_s25 + $0x3ac] ss:$16 sps:$4 sm:$0xff]   ;;  %v1754_v61 = vld [vmem:[%s1848_s25 + $0x1a8] ss:$16 sps:$4 sm:$0xff]  }
  0x50   : > { %1102 = vmatprep.subr.bf16.mxu1 %v1662_v62  ;;  %v1757_v62 = vld [vmem:[%s1848_s25 + $0x3a8] ss:$16 sps:$4 sm:$0xff]  }
  0x52   : > { %1062 = vmatpush1.bf16.msra.mxu0 %v1664_v63  ;;  %v1762_v63 = vld [vmem:[%s1848_s25 + $0x1cc] ss:$16 sps:$4 sm:$0xff]  }
  0x53   : > { %1103 = vmatpush1.bf16.msra.mxu1 %v1665_v0  ;;  %1063 = vmatprep.subr.bf16.mxu0 %v1666_v1  ;;  %v1765_v0 = vld [vmem:[%s1848_s25 + $0x3cc] ss:$16 sps:$4 sm:$0xff]   ;;  %v1760_v1 = vld [vmem:[%s1848_s25 + $0x1c8] ss:$16 sps:$4 sm:$0xff]  }
  0x54   : > { %1104 = vmatprep.subr.bf16.mxu1 %v1668_v2  ;;  %v1763_v2 = vld [vmem:[%s1848_s25 + $0x3c8] ss:$16 sps:$4 sm:$0xff]  }
  0x56   : > { %1064 = vmatpush1.bf16.msra.mxu0 %v1670_v3  ;;  %v1768_v3 = vld [vmem:[%s1848_s25 + $0x1ec] ss:$16 sps:$4 sm:$0xff]  }
  0x57   : > { %1105 = vmatpush1.bf16.msra.mxu1 %v1671_v4  ;;  %1115 = vmatprep.subr.bf16.mxu0 %v1678_v5  ;;  %v1771_v4 = vld [vmem:[%s1848_s25 + $0x3ec] ss:$16 sps:$4 sm:$0xff]   ;;  %v1766_v5 = vld [vmem:[%s1848_s25 + $0x1e8] ss:$16 sps:$4 sm:$0xff]  }
  0x58   : > { %1156 = vmatprep.subr.bf16.mxu1 %v1681_v6  ;;  %v1769_v6 = vld [vmem:[%s1848_s25 + $0x3e8] ss:$16 sps:$4 sm:$0xff]  }
  0x59   : > { %1066 = vmatmul.mubr.bf16.vlgmr.msra.gmra.mrb[0].mxu0 %v1934_v7 }
  0x5a   : > { %1107 = vmatmul.mubr.bf16.vlgmr.msra.gmra.mrb[0].mxu1 %v1936_v8  ;;  %1116 = vmatpush1.bf16.msra.mxu0 %v1676_v9 }
  0x5b   : > { %1157 = vmatpush1.bf16.msra.mxu1 %v1679_v10  ;;  %1117 = vmatprep.subr.bf16.mxu0 %v1684_v11  ;;  %v245_v10 = vld [vmem:[%s2060_s2] sm:$0xff] }
  0x5c   : > { %1158 = vmatprep.subr.bf16.mxu1 %v1687_v12  ;;  %1147 = vmatprep.mubr.bf16.mxu0 %v1910_v48  ;;  %v1741_v48 = vld [vmem:[%s1848_s25 + $0x34c] ss:$16 sps:$4 sm:$0xff]  }
  0x5d   : > { %1188 = vmatprep.mubr.bf16.mxu1 %v1415_v52  ;;  %v1747_v52 = vld [vmem:[%s1848_s25 + $0x36c] ss:$16 sps:$4 sm:$0xff]  }
  0x5e   : > { %1118 = vmatpush1.bf16.msra.mxu0 %v1682_v13 }
  0x5f   : > { %1159 = vmatpush1.bf16.msra.mxu1 %v1685_v14  ;;  %1119 = vmatprep.subr.bf16.mxu0 %v1690_v15  ;;  %v246_v14 = vld [vmem:[%s2060_s2 + $0x8] sm:$0xff] }
  0x60   : > { %1160 = vmatprep.subr.bf16.mxu1 %v1693_v16 }
  0x62   : > { %1120 = vmatpush1.bf16.msra.mxu0 %v1688_v17 }
  0x63   : > { %1161 = vmatpush1.bf16.msra.mxu1 %v1691_v18  ;;  %1121 = vmatprep.subr.bf16.mxu0 %v1696_v19 }
  0x64   : > { %1162 = vmatprep.subr.bf16.mxu1 %v1699_v20 }
  0x66   : > { %1122 = vmatpush1.bf16.msra.mxu0 %v1694_v21 }
  0x67   : > { %1163 = vmatpush1.bf16.msra.mxu1 %v1697_v22  ;;  %1123 = vmatprep.subr.bf16.mxu0 %v1702_v23  ;;  %v247_v22 = vld [vmem:[%s2060_s2 + $0x10] sm:$0xff] }
  0x68   : > { %1164 = vmatprep.subr.bf16.mxu1 %v1705_v24 }
  0x6a   : > { %1124 = vmatpush1.bf16.msra.mxu0 %v1700_v25 }
  0x6b   : > { %1165 = vmatpush1.bf16.msra.mxu1 %v1703_v26  ;;  %1125 = vmatprep.subr.bf16.mxu0 %v1708_v27  ;;  %v248_v26 = vld [vmem:[%s2060_s2 + $0x18] sm:$0xff] }
  0x6c   : > { %1166 = vmatprep.subr.bf16.mxu1 %v1711_v28 }
  0x6e   : > { %1126 = vmatpush1.bf16.msra.mxu0 %v1706_v29 }
  0x6f   : > { %1167 = vmatpush1.bf16.msra.mxu1 %v1709_v30  ;;  %1127 = vmatprep.subr.bf16.mxu0 %v1714_v31 }
  0x70   : > { %1168 = vmatprep.subr.bf16.mxu1 %v1717_v32 }
  0x72   : > { %1128 = vmatpush1.bf16.msra.mxu0 %v1712_v33 }
  0x73   : > { %1169 = vmatpush1.bf16.msra.mxu1 %v1715_v34  ;;  %1129 = vmatprep.subr.bf16.mxu0 %v1720_v35 }
  0x74   : > { %1170 = vmatprep.subr.bf16.mxu1 %v1723_v36 }
  0x76   : > { %1130 = vmatpush1.bf16.msra.mxu0 %v1718_v37 }
  0x77   : > { %1171 = vmatpush1.bf16.msra.mxu1 %v1721_v38  ;;  %1131 = vmatprep.subr.bf16.mxu0 %v1726_v39  ;;  %v1279_v38 = vlaneseq (!%p1544_p7) }
  0x78   : > { %1172 = vmatprep.subr.bf16.mxu1 %v1729_v40 }
  0x7a   : > { %1132 = vmatpush1.bf16.msra.mxu0 %v1724_v41 }
  0x7b   : > { %1173 = vmatpush1.bf16.msra.mxu1 %v1727_v42  ;;  %1133 = vmatprep.subr.bf16.mxu0 %v1732_v43 }
  0x7c   : > { %1174 = vmatprep.subr.bf16.mxu1 %v1735_v44 }
  0x7e   : > { %1134 = vmatpush1.bf16.msra.mxu0 %v1730_v45 }
  0x7f   : > { %1175 = vmatpush1.bf16.msra.mxu1 %v1733_v46  ;;  %1135 = vmatprep.subr.bf16.mxu0 %v1738_v47 }
  0x80   : > { %1176 = vmatprep.subr.bf16.mxu1 %v1741_v48 }
  0x82   : > { %1136 = vmatpush1.bf16.msra.mxu0 %v1736_v49 }
  0x83   : > { %1177 = vmatpush1.bf16.msra.mxu1 %v1739_v50  ;;  %1137 = vmatprep.subr.bf16.mxu0 %v1744_v51 }
  0x84   : > { %1178 = vmatprep.subr.bf16.mxu1 %v1747_v52 }
  0x86   : > { %1138 = vmatpush1.bf16.msra.mxu0 %v1742_v53 }
  0x87   : > { %1179 = vmatpush1.bf16.msra.mxu1 %v1745_v54  ;;  %1139 = vmatprep.subr.bf16.mxu0 %v1750_v55 }
  0x88   : > { %1180 = vmatprep.subr.bf16.mxu1 %v1753_v56 }
  0x8a   : > { %1140 = vmatpush1.bf16.msra.mxu0 %v1748_v57 }
  0x8b   : > { %1181 = vmatpush1.bf16.msra.mxu1 %v1751_v58  ;;  %1141 = vmatprep.subr.bf16.mxu0 %v1756_v59 }
  0x8c   : > { %1182 = vmatprep.subr.bf16.mxu1 %v1759_v60 }
  0x8e   : > { %1142 = vmatpush1.bf16.msra.mxu0 %v1754_v61 }
  0x8f   : > { %1183 = vmatpush1.bf16.msra.mxu1 %v1757_v62  ;;  %1143 = vmatprep.subr.bf16.mxu0 %v1762_v63 }
  0x90   : > { %1184 = vmatprep.subr.bf16.mxu1 %v1765_v0 }
  0x92   : > { %1144 = vmatpush1.bf16.msra.mxu0 %v1760_v1 }
  0x93   : > { %1185 = vmatpush1.bf16.msra.mxu1 %v1763_v2  ;;  %1145 = vmatprep.subr.bf16.mxu0 %v1768_v3 }
  0x94   : > { %1186 = vmatprep.subr.bf16.mxu1 %v1771_v4 }
  0x96   : > { %1146 = vmatpush1.bf16.msra.mxu0 %v1766_v5 }
  0x97   : > { %1187 = vmatpush1.bf16.msra.mxu1 %v1769_v6 }
  0x99   : > { %1148 = vmatmul.mubr.bf16.vlgmr.msra.gmra.mrb[4].mxu0 %v1934_v7 }
  0x9a   : > { %1189 = vmatmul.mubr.bf16.vlgmr.msra.gmra.mrb[4].mxu1 %v1936_v8 }
 0x12c   : > { %v1067_v9 = vpop.f32.mrb[0].mxu0 }
 0x12d   : > { %v1108_v11 = vpop.f32.mrb[0].mxu1  ;;  %v1069_v13 = vpop.f32.mrb[1].mxu0 }
 0x12e   : > { %v1109_v12 = vadd.f32 %v1108_v11, %v1067_v9  ;;  %v1110_v15 = vpop.f32.mrb[1].mxu1  ;;  %v1071_v17 = vpop.f32.mrb[2].mxu0 }
 0x12f   : > { %v1111_v16 = vadd.f32 %v1110_v15, %v1069_v13  ;;  %v1112_v18 = vpop.f32.mrb[2].mxu1  ;;  %v1072_v7 = vpop.f32.mrb[3].mxu0 }
 0x130   : > { %v1197_v19 = vadd.f32 %v1109_v12, %v245_v10  ;;  %v1113_v20 = vpop.f32.mrb[3].mxu1 }
 0x131   : > { %v1198_v8 = vadd.f32 %v1111_v16, %v246_v14 }
 0x132   : > { %1201 = vst [vmem:[%s2060_s2] sm:$0xff] %v1197_v19 }
 0x133   : > { %1202 = vst [vmem:[%s2060_s2 + $0x8] sm:$0xff] %v1198_v8 }
 0x139   : > { %v1209_v35 = vld [vmem:[%s2060_s2] sm:$0xff] (!%p1544_p7) }
 0x13a   : > { %v1210_v36 = vld [vmem:[%s2060_s2 + $0x8] sm:$0xff] (!%p1544_p7)  ;;  %v1213_v40 = vrot.slane (!%p1544_p7), %v1209_v35, 4  ;;  %v1237_v43 = vmul.f32 (!%p1544_p7), %v1209_v35, %v1209_v35 }
 0x13b   : > { %v1219_v41 = vrot.slane (!%p1544_p7), %v1210_v36, 4  ;;  %v1238_v45 = vmul.f32 (!%p1544_p7), %v1210_v36, %v1210_v36 }
 0x13c   : > { %v1214_v48 = vadd.f32 (!%p1544_p7), %v1213_v40, %v1209_v35  ;;  %v1241_v51 = vrot.slane (!%p1544_p7), %v1237_v43, 4 }
 0x13d   : > { %v1220_v49 = vadd.f32 (!%p1544_p7), %v1219_v41, %v1210_v36  ;;  %v1247_v53 = vrot.slane (!%p1544_p7), %v1238_v45, 4 }
 0x13e   : > { %v1215_v56 = vrot.slane (!%p1544_p7), %v1214_v48, 2  ;;  %v1242_v59 = vadd.f32 (!%p1544_p7), %v1241_v51, %v1237_v43 }
 0x13f   : > { %v1221_v57 = vrot.slane (!%p1544_p7), %v1220_v49, 2  ;;  %v1248_v61 = vadd.f32 (!%p1544_p7), %v1247_v53, %v1238_v45 }
 0x140   : > { %v1216_v0 = vadd.f32 (!%p1544_p7), %v1215_v56, %v1214_v48  ;;  %v1243_v3 = vrot.slane (!%p1544_p7), %v1242_v59, 2 }
 0x141   : > { %v1222_v1 = vadd.f32 (!%p1544_p7), %v1221_v57, %v1220_v49  ;;  %v1249_v5 = vrot.slane (!%p1544_p7), %v1248_v61, 2 }
 0x142   : > { %v1217_v10 = vrot.slane (!%p1544_p7), %v1216_v0, 1  ;;  %v1244_v13 = vadd.f32 (!%p1544_p7), %v1243_v3, %v1242_v59 }
 0x143   : > { %v1223_v11 = vrot.slane (!%p1544_p7), %v1222_v1, 1  ;;  %v1250_v15 = vadd.f32 (!%p1544_p7), %v1249_v5, %v1248_v61 }
 0x144   : > { %v1218_v18 = vadd.f32 (!%p1544_p7), %v1217_v10, %v1216_v0  ;;  %v1245_v20 = vrot.slane (!%p1544_p7), %v1244_v13, 1 }
 0x145   : > { %v1224_v19 = vadd.f32 (!%p1544_p7), %v1223_v11, %v1222_v1 }
 0x16c   : > { %v1149_v21 = vpop.f32.mrb[4].mxu0 }
 0x16d   : > { %v1190_v23 = vpop.f32.mrb[4].mxu1  ;;  %v1151_v25 = vpop.f32.mrb[5].mxu0  ;;  %1208 = sbr.rel (%p1544_p7) target bundleno = 401 (0x191), region = 36 }
 0x16e   : > { %v1191_v24 = vadd.f32 %v1190_v23, %v1149_v21  ;;  %v1192_v27 = vpop.f32.mrb[5].mxu1  ;;  %v1153_v29 = vpop.f32.mrb[6].mxu0  ;;  %v1251_v21 = vrot.slane (!%p1544_p7), %v1250_v15, 1 }
 0x16f   : > { %v1193_v28 = vadd.f32 %v1192_v27, %v1151_v25  ;;  %v1194_v30 = vpop.f32.mrb[6].mxu1  ;;  %v1154_v32 = vpop.f32.mrb[7].mxu0  ;;  %v1797_v25 = vmov (!%p1544_p7), 1983009808   ;;  %v1280_v27 = vshrl.u32 (!%p1544_p7), %v1279_v38, 7 }
 0x170   : > { %v1199_v31 = vadd.f32 %v1191_v24, %v247_v22  ;;  %v1195_v33 = vpop.f32.mrb[7].mxu1  ;;  %v1246_v24 = vadd.f32 (!%p1544_p7), %v1245_v20, %v1244_v13 }
 0x171   : > { %v1200_v34 = vadd.f32 %v1193_v28, %v248_v26  ;;  %v1277_v26 = vunpack.c.l.s4 (!%p1544_p7), %v1797_v25  ;;  %v1252_v28 = vadd.f32 (!%p1544_p7), %v1251_v21, %v1250_v15 }
 0x172   : > { %1203 = vst [vmem:[%s2060_s2 + $0x10] sm:$0xff] %v1199_v31  ;;  %v1266_v31 = vsel (!%p1544_p7), %vm1265_vm0, %v1218_v18, %v1246_v24 }
 0x173   : > { %1204 = vst [vmem:[%s2060_s2 + $0x18] sm:$0xff] %v1200_v34  ;;  %v1278_v32 = vunpack.c.0.s8 (!%p1544_p7), %v1277_v26  ;;  %v1267_v33 = vsel (!%p1544_p7), %vm1265_vm0, %v1224_v19, %v1252_v28 }
 0x174   : > { %v1274_v36 = vcombine.low %v1266_v31, %v1267_v33 }
 0x179   : > { %v1211_v37 = vld [vmem:[%s2060_s2 + $0x10] sm:$0xff] }
 0x17a   : > { %v1212_v39 = vld [vmem:[%s2060_s2 + $0x18] sm:$0xff]  ;;  %v1225_v42 = vrot.slane %v1211_v37, 4  ;;  %v1239_v46 = vmul.f32 %v1211_v37, %v1211_v37 }
 0x17b   : > { %v1231_v44 = vrot.slane %v1212_v39, 4  ;;  %v1240_v47 = vmul.f32 %v1212_v39, %v1212_v39 }
 0x17c   : > { %v1226_v50 = vadd.f32 %v1225_v42, %v1211_v37  ;;  %v1253_v54 = vrot.slane %v1239_v46, 4 }
 0x17d   : > { %v1232_v52 = vadd.f32 %v1231_v44, %v1212_v39  ;;  %v1259_v55 = vrot.slane %v1240_v47, 4  ;;  %v1281_v39 = vsub.s32 %v1278_v32, %v1280_v27 }
 0x17e   : > { %v1227_v58 = vrot.slane %v1226_v50, 2  ;;  %v1254_v62 = vadd.f32 %v1253_v54, %v1239_v46 }
 0x17f   : > { %v1233_v60 = vrot.slane %v1232_v52, 2  ;;  %v1260_v63 = vadd.f32 %v1259_v55, %v1240_v47  ;;  %v1282_v40 = vrot.slane %v1274_v36, %v1281_v39 }
 0x180   : > { %v1228_v2 = vadd.f32 %v1227_v58, %v1226_v50  ;;  %v1255_v6 = vrot.slane %v1254_v62, 2 }
 0x181   : > { %v1234_v4 = vadd.f32 %v1233_v60, %v1232_v52  ;;  %v1261_v9 = vrot.slane %v1260_v63, 2 }
 0x182   : > { %v1229_v12 = vrot.slane %v1228_v2, 1  ;;  %v1256_v16 = vadd.f32 %v1255_v6, %v1254_v62 }
 0x183   : > { %v1235_v14 = vrot.slane %v1234_v4, 1  ;;  %v1262_v17 = vadd.f32 %v1261_v9, %v1260_v63 }
 0x184   : > { %v1230_v7 = vadd.f32 %v1229_v12, %v1228_v2  ;;  %v1257_v22 = vrot.slane %v1256_v16, 1 }
 0x185   : > { %v1236_v8 = vadd.f32 %v1235_v14, %v1234_v4  ;;  %v1263_v23 = vrot.slane %v1262_v17, 1 }
 0x186   : > { %v1258_v29 = vadd.f32 %v1257_v22, %v1256_v16 }
 0x187   : > { %v1264_v30 = vadd.f32 %v1263_v23, %v1262_v17 }
 0x188   : > { %v1268_v34 = vsel %vm1265_vm0, %v1230_v7, %v1258_v29 }
 0x189   : > { %v1269_v35 = vsel %vm1265_vm0, %v1236_v8, %v1264_v30 }
 0x18a   : > { %v1275_v37 = vcombine.low %v1268_v34, %v1269_v35 }
 0x18c   : > { %v1289_v41 = vrot.slane %v1275_v37, %v1281_v39 }
 0x18e   : > { %v1290_v42 = vcombine.low %v1282_v40, %v1289_v41 }
 0x190   : > { %1292 = vst [vmem:[%s2061_s3] sm:$0xff] %v1290_v42 }
 0x191 PF: > { %s14_s14 = sadd.s32 1, %s1794_s14   ;;  %s2062_s12 = smov %s1790_s13 }
 0x192   : > { %p11_p8 = scmp.ge.s32.totalorder %s14_s14, 11   ;;  %s2063_s13 = smov %s2065_s15 }
 0x194   :  { %13 = sbr.rel (!%p11_p8) target bundleno = 2 (0x2), region = 81 }

// kernel: resnet_forward.49
= control target key start
LH: loop header
LB: loop body
LE: loop exit
PB: predicated region body
PF: predicated region fallthrough
CT: control target
= control target key end

     0   :  { %v23_v0 = vlaneseq  ;;  %s168_s1 = inlined_call_operand.vmem [shape: f32[1,512], index: 1, kind: input, shape index: {}]   ;;  %s169_s2 = inlined_call_operand.vmem [shape: f32[1,512], index: 2, kind: input, shape index: {}]   ;;  %s170_s0 = inlined_call_operand.vmem [shape: f32[8,512], index: 0, kind: input, shape index: {}]   ;;  %s171_s3 = inlined_call_operand.vmem [shape: bf16[8,512], index: 3, kind: input, shape index: {}]   ;;  %s172_s4 = inlined_call_operand.vmem [shape: bf16[8,512], index: 4, kind: output, shape index: {}]  }
   0x1   :  { %v21_v2 = vld [vmem:[%s168_s1] sm:$0xf]  ;;  %v18_v9 = vld [vmem:[%s170_s0 + $0x8] sm:$0xff]  ;;  %v19_v15 = vld [vmem:[%s170_s0 + $0x10] sm:$0xff] }
   0x2   :  { %v24_v1 = vshrl.u32 %v23_v0, 7  ;;  %v47_v3 = vld [vmem:[%s169_s2] sm:$0xf]  ;;  %v20_v16 = vld [vmem:[%s170_s0 + $0x18] sm:$0xff]  ;;  %v74_v17 = vld [vmem:[%s171_s3 + $0x8] sm:$0xff] }
   0x3   :  { %v17_v8 = vld [vmem:[%s170_s0] sm:$0xff]  ;;  %v77_v28 = vunpack.c.l.bf16 %v74_v17  ;;  %v78_v29 = vunpack.c.h.bf16 %v74_v17 }
   0x4   :  { %v25_v4 = vsub.s32 0, %v24_v1  ;;  %v29_v5 = vsub.s32 1, %v24_v1  ;;  %v33_v6 = vsub.s32 2, %v24_v1  ;;  %v37_v7 = vsub.s32 3, %v24_v1  ;;  %v73_v10 = vld [vmem:[%s171_s3] sm:$0xff] }
   0x5   :  { %v75_v24 = vunpack.c.l.bf16 %v73_v10  ;;  %v76_v25 = vunpack.c.h.bf16 %v73_v10 }
   0x6   :  { %v26_v11 = vrot.slane %v21_v2, %v25_v4  ;;  %v30_v12 = vrot.slane %v21_v2, %v29_v5  ;;  %v52_v13 = vrot.slane %v47_v3, %v25_v4  ;;  %v56_v14 = vrot.slane %v47_v3, %v29_v5 }
   0x7   :  { %v34_v18 = vrot.slane %v21_v2, %v33_v6  ;;  %v38_v19 = vrot.slane %v21_v2, %v37_v7  ;;  %v60_v20 = vrot.slane %v47_v3, %v33_v6  ;;  %v64_v21 = vrot.slane %v47_v3, %v37_v7 }
   0x8   :  { %v43_v22 = vmul.f32 %v26_v11, %v17_v8  ;;  %v44_v23 = vmul.f32 %v30_v12, %v18_v9 }
   0x9   :  { %v45_v26 = vmul.f32 %v34_v18, %v19_v15  ;;  %v46_v27 = vmul.f32 %v38_v19, %v20_v16 }
   0xa   :  { %v69_v30 = vadd.f32 %v52_v13, %v43_v22  ;;  %v70_v31 = vadd.f32 %v56_v14, %v44_v23 }
   0xb   :  { %v71_v32 = vadd.f32 %v60_v20, %v45_v26  ;;  %v72_v33 = vadd.f32 %v64_v21, %v46_v27 }
   0xc   :  { %v79_v34 = vadd.f32 %v75_v24, %v69_v30  ;;  %v80_v35 = vadd.f32 %v76_v25, %v70_v31 }
   0xd   :  { %v81_v36 = vadd.f32 %v77_v28, %v71_v32  ;;  %v82_v37 = vadd.f32 %v78_v29, %v72_v33 }
   0xe   :  { %v83_v38 = vmax.f32 %v79_v34, 0.0  ;;  %v84_v39 = vmax.f32 %v80_v35, 0.0 }
   0xf   :  { %v85_v40 = vmax.f32 %v81_v36, 0.0  ;;  %v86_v41 = vmax.f32 %v82_v37, 0.0 }
  0x10   :  { %v111_v42 = vpack.c.bf16 %v84_v39, %v83_v38 }
  0x11   :  { %v112_v43 = vpack.c.bf16 %v86_v41, %v85_v40 }
  0x12   :  { %103 = vst [vmem:[%s172_s4] sm:$0xff] %v111_v42 }
  0x13   :  { %104 = vst [vmem:[%s172_s4 + $0x8] sm:$0xff] %v112_v43 }

</bundles_post_ra>
